<compile_context>
chip_gen: v6e
topology: v6e:2x2x1
jax: 0.10.0
libtpu: 0.0.40
codegen_flags: <defaults>
</compile_context>

<pallas_src>
from functools import partial

import jax
import jax.numpy as jnp
from jax.experimental import pallas as pl
from jax.experimental.pallas import tpu as pltpu


def _hardswish(x):
    # PyTorch nn.Hardswish: x * relu6(x + 3) / 6
    return x * jnp.clip(x + 3.0, 0.0, 6.0) * (1.0 / 6.0)


def _supports_buffered():
    """One-time capability probe for pl.Buffered single-buffering (no call-time try/except)."""
    if not hasattr(pl, "Buffered"):
        return False
    try:
        pl.BlockSpec((8, 128), lambda i: (0, 0), pipeline_mode=pl.Buffered(1))
    except Exception:
        return False
    return True


_SINGLE_BUFFER_WEIGHTS = _supports_buffered()


def _block_kernel(
    x_ref,
    ln1g_ref, ln1b_ref,
    wqkv_ref,
    wproj_ref, bproj_ref,
    ln2g_ref, ln2b_ref,
    wfc1_ref, bfc1_ref, wfc2_ref, bfc2_ref,
    out_ref,
    *, bt, n, num_heads, head_dim, eps,
):
    C = num_heads * head_dim
    M = bt * n

    # Native-dtype block in, f32 only for LN statistics / residuals.
    x = x_ref[...].astype(jnp.float32).reshape(M, C)          # (BT*N, C) f32

    # ---- LayerNorm 1 ----
    mu = jnp.mean(x, axis=-1, keepdims=True)
    var = jnp.mean((x - mu) ** 2, axis=-1, keepdims=True)
    h1 = (x - mu) * jax.lax.rsqrt(var + eps) * ln1g_ref[...] + ln1b_ref[...]

    # ---- Attention: fused QKV projection (bf16 in, f32 accumulate).
    # 1/sqrt(head_dim) is pre-folded into the q columns of wqkv by the wrapper.
    qkv = jnp.dot(h1.astype(jnp.bfloat16), wqkv_ref[...],
                  preferred_element_type=jnp.float32)          # (M, 3C) f32

    def heads(t):  # (M, C) f32 -> (H*BT, N, hd) bf16; one stack, leading-dim reshapes
        return jnp.stack(
            [t[:, h * head_dim:(h + 1) * head_dim].reshape(bt, n, head_dim)
             for h in range(num_heads)],
            axis=0,
        ).reshape(num_heads * bt, n, head_dim).astype(jnp.bfloat16)

    qh = heads(qkv[:, :C])
    kh = heads(qkv[:, C:2 * C])
    vh = heads(qkv[:, 2 * C:])

    # Head- and image-batched score matmul: batch axis = H*BT (>= 256 rows of work).
    s = jnp.einsum("bqd,bkd->bqk", qh, kh,
                   preferred_element_type=jnp.float32)          # (H*BT, N, N) f32
    s = s - jnp.max(s, axis=-1, keepdims=True)
    p = jnp.exp(s)
    p = p * pl.reciprocal(jnp.sum(p, axis=-1, keepdims=True), approx=False)

    o = jnp.einsum("bqk,bkd->bqd", p.astype(jnp.bfloat16), vh,
                   preferred_element_type=jnp.float32)          # (H*BT, N, hd) f32
    o = o.reshape(num_heads, bt, n, head_dim)
    attn = jnp.concatenate([o[h] for h in range(num_heads)], axis=-1)  # (BT, N, C)
    attn = attn.reshape(M, C)

    attn = jnp.dot(attn.astype(jnp.bfloat16), wproj_ref[...],
                   preferred_element_type=jnp.float32) + bproj_ref[...]
    x1 = x + attn                                               # residual 1 (f32)

    # ---- LayerNorm 2 ----
    mu2 = jnp.mean(x1, axis=-1, keepdims=True)
    var2 = jnp.mean((x1 - mu2) ** 2, axis=-1, keepdims=True)
    h2 = (x1 - mu2) * jax.lax.rsqrt(var2 + eps) * ln2g_ref[...] + ln2b_ref[...]

    # ---- IRB / MLP: fc1 -> Hardswish -> Hardswish -> fc2 ----
    m = jnp.dot(h2.astype(jnp.bfloat16), wfc1_ref[...],
                preferred_element_type=jnp.float32) + bfc1_ref[...]
    m = _hardswish(_hardswish(m))
    m = jnp.dot(m.astype(jnp.bfloat16), wfc2_ref[...],
                preferred_element_type=jnp.float32) + bfc2_ref[...]

    out_ref[...] = (x1 + m).reshape(bt, n, C).astype(out_ref.dtype)   # residual 2


def _choose_bt(B, N, C, itemsize):
    """Images per grid step: target BT*N >= 256 MXU rows, keep >= 2 grid steps (v7x 2 TCs)."""
    max_block_bytes = 8 * 1024 * 1024  # per x/out block (double-buffered by the pipeline)
    divs = [d for d in range(1, B + 1)
            if B % d == 0 and d * N * C * itemsize <= max_block_bytes]
    if not divs:
        divs = [1]
    good = [d for d in divs if B // d >= 2 and d * N >= 256]
    if good:
        return min(good)                 # smallest BT hitting 256 rows -> longest grid
    good = [d for d in divs if B // d >= 2]
    if good:
        return max(good)                 # as many rows as possible with 2+ grid steps
    return max(divs)                     # B == 1 (or tiny): single step


def _vmem_limit_bytes(BT, N, C, hidden, num_heads, x_itemsize, single_buffer):
    """Working-set estimate + headroom (replaces the blanket 48 MiB; v7x has 64 MiB)."""
    M = BT * N
    io = 2 * 2 * M * C * x_itemsize                                   # x + out, double-buffered
    wmul = 1 if single_buffer else 2
    weights = wmul * 2 * (3 * C * C + C * C + 2 * C * hidden)          # bf16 weights
    smalls = wmul * 4 * (6 * C + hidden)                               # f32 LN params / biases
    work = 4 * (M * (8 * C + hidden) + 2 * num_heads * BT * N * N)     # rough f32 intermediates
    total = io + weights + smalls + work
    return int(min(32 * 1024 * 1024, max(int(1.5 * total), 16 * 1024 * 1024)))


def _build_call(B, N, C, hidden, num_heads, out_dtype, x_itemsize):
    head_dim = C // num_heads
    BT = _choose_bt(B, N, C, x_itemsize)
    grid = (B // BT,)

    kernel = partial(_block_kernel, bt=BT, n=N, num_heads=num_heads,
                     head_dim=head_dim, eps=1e-5)

    def const_spec(shape):
        # Operands whose block never changes across the grid: single-buffer if supported.
        if _SINGLE_BUFFER_WEIGHTS:
            return pl.BlockSpec(shape, lambda b: (0, 0), pipeline_mode=pl.Buffered(1))
        return pl.BlockSpec(shape, lambda b: (0, 0))

    grid_spec = pltpu.PrefetchScalarGridSpec(
        num_scalar_prefetch=0,
        grid=grid,
        in_specs=[
            pl.BlockSpec((BT, N, C), lambda b: (b, 0, 0)),    # x (native dtype)
            const_spec((1, C)), const_spec((1, C)),           # ln1 gamma, beta
            const_spec((C, 3 * C)),                           # fused w_qkv (bf16, scale folded)
            const_spec((C, C)), const_spec((1, C)),           # w_proj (bf16), b_proj
            const_spec((1, C)), const_spec((1, C)),           # ln2 gamma, beta
            const_spec((C, hidden)), const_spec((1, hidden)), # w_fc1 (bf16), b_fc1
            const_spec((hidden, C)), const_spec((1, C)),      # w_fc2 (bf16), b_fc2
        ],
        out_specs=pl.BlockSpec((BT, N, C), lambda b: (b, 0, 0)),
    )

    # Advisory cost estimate for XLA's scheduler.
    flops = B * (2 * N * C * (3 * C + C + 2 * hidden) + 4 * N * N * C)
    transcendentals = B * (num_heads * N * N + num_heads * N + 2 * N)
    weight_bytes = (3 * C * C + C * C + 2 * C * hidden) * 2           # bf16 weights
    small_bytes = (6 * C + hidden) * 4                                # LN params / biases
    bytes_accessed = 2 * B * N * C * x_itemsize + weight_bytes + small_bytes

    return pl.pallas_call(
        kernel,
        out_shape=jax.ShapeDtypeStruct((B, N, C), out_dtype),
        grid_spec=grid_spec,
        compiler_params=pltpu.CompilerParams(
            dimension_semantics=("parallel",),
            vmem_limit_bytes=_vmem_limit_bytes(BT, N, C, hidden, num_heads,
                                               x_itemsize, _SINGLE_BUFFER_WEIGHTS),
        ),
        cost_estimate=pl.CostEstimate(
            flops=int(flops),
            transcendentals=int(transcendentals),
            bytes_accessed=int(bytes_accessed),
        ),
    )


def block_forward(x, params, *, num_heads):
    B, N, C = x.shape
    hidden = params["w_fc1"].shape[1]
    head_dim = C // num_heads
    scale = head_dim ** -0.5

    # Fold the softmax scale into the q projection, fuse q/kv weights, cast to bf16 once.
    w_qkv = jnp.concatenate([params["w_q"] * scale, params["w_kv"]],
                            axis=1).astype(jnp.bfloat16)

    call = _build_call(B, N, C, hidden, num_heads, x.dtype,
                       jnp.dtype(x.dtype).itemsize)
    return call(
        x,                                # native dtype; f32 cast happens in-kernel only
        params["ln1_g"], params["ln1_b"],
        w_qkv,
        params["w_proj"].astype(jnp.bfloat16), params["b_proj"],
        params["ln2_g"], params["ln2_b"],
        params["w_fc1"].astype(jnp.bfloat16), params["b_fc1"],
        params["w_fc2"].astype(jnp.bfloat16), params["b_fc2"],
    )


def reference_forward(x, params, *, num_heads):
    """Plain-JAX f32 reference mirroring the PyTorch forward (for verification)."""
    B, N, C = x.shape
    hd = C // num_heads
    scale = hd ** -0.5
    eps = 1e-5

    def ln(v, g, b):
        mu = jnp.mean(v, axis=-1, keepdims=True)
        var = jnp.mean((v - mu) ** 2, axis=-1, keepdims=True)
        return (v - mu) / jnp.sqrt(var + eps) * g + b

    h1 = ln(x, params["ln1_g"][0], params["ln1_b"][0])
    q = h1 @ params["w_q"]
    kv = h1 @ params["w_kv"]
    k, v = kv[..., :C], kv[..., C:]
    qh = q.reshape(B, N, num_heads, hd).transpose(0, 2, 1, 3)
    kh = k.reshape(B, N, num_heads, hd).transpose(0, 2, 1, 3)
    vh = v.reshape(B, N, num_heads, hd).transpose(0, 2, 1, 3)
    attn = jax.nn.softmax(jnp.einsum("bhqd,bhkd->bhqk", qh, kh) * scale, axis=-1)
    o = jnp.einsum("bhqk,bhkd->bhqd", attn, vh).transpose(0, 2, 1, 3).reshape(B, N, C)
    o = o @ params["w_proj"] + params["b_proj"][0]
    x1 = x + o

    h2 = ln(x1, params["ln2_g"][0], params["ln2_b"][0])
    m = h2 @ params["w_fc1"] + params["b_fc1"][0]
    m = _hardswish(_hardswish(m))
    m = m @ params["w_fc2"] + params["b_fc2"][0]
    return x1 + m


def init_params(key, dim, num_heads, mlp_ratio=4.0):
    hidden = int(dim * mlp_ratio)
    ks = jax.random.split(key, 8)
    std = 0.02
    return {
        "ln1_g": jnp.ones((1, dim), jnp.float32),
        "ln1_b": jnp.zeros((1, dim), jnp.float32),
        # weights stored as (in, out), i.e. PyTorch W.T
        "w_q": std * jax.random.normal(ks[0], (dim, dim), jnp.float32),
        "w_kv": std * jax.random.normal(ks[1], (dim, 2 * dim), jnp.float32),
        "w_proj": std * jax.random.normal(ks[2], (dim, dim), jnp.float32),
        "b_proj": std * jax.random.normal(ks[3], (1, dim), jnp.float32),
        "ln2_g": jnp.ones((1, dim), jnp.float32),
        "ln2_b": jnp.zeros((1, dim), jnp.float32),
        "w_fc1": std * jax.random.normal(ks[4], (dim, hidden), jnp.float32),
        "b_fc1": std * jax.random.normal(ks[5], (1, hidden), jnp.float32),
        "w_fc2": std * jax.random.normal(ks[6], (hidden, dim), jnp.float32),
        "b_fc2": std * jax.random.normal(ks[7], (1, dim), jnp.float32),
    }


if __name__ == "__main__":
    # Small but lane-aligned demo shapes: C and hidden are multiples of 128.
    # B=8, N=64 -> BT=4 images per grid step (256 MXU rows) and a grid of 2 (both v7x TCs).
    B, N, C = 8, 64, 128
    num_heads = 2

    key = jax.random.PRNGKey(0)
    k_x, k_p = jax.random.split(key)
    x = jax.random.normal(k_x, (B, N, C), jnp.float32)
    params = init_params(k_p, C, num_heads, mlp_ratio=4.0)

    out = jax.block_until_ready(block_forward(x, params, num_heads=num_heads))

    ref = reference_forward(x, params, num_heads=num_heads)
    assert out.shape == (B, N, C)
    err = float(jnp.max(jnp.abs(out - ref)))
    # bf16 MXU inputs with f32 accumulation: tolerance relaxed accordingly.
    assert err < 3e-2, f"mismatch vs reference: max abs err = {err}"

    print("KERNEL_OK")
</pallas_src>

<mosaic_0001>
module attributes {stable_mosaic.version = 11 : i64} {
  func.func @_block_kernel(%arg0: i32, %arg1: memref<4x64x128xf32, #tpu.memory_space<vmem>>, %arg2: memref<1x128xf32, #tpu.memory_space<vmem>>, %arg3: memref<1x128xf32, #tpu.memory_space<vmem>>, %arg4: memref<128x384xbf16, #tpu.memory_space<vmem>>, %arg5: memref<128x128xbf16, #tpu.memory_space<vmem>>, %arg6: memref<1x128xf32, #tpu.memory_space<vmem>>, %arg7: memref<1x128xf32, #tpu.memory_space<vmem>>, %arg8: memref<1x128xf32, #tpu.memory_space<vmem>>, %arg9: memref<128x512xbf16, #tpu.memory_space<vmem>>, %arg10: memref<1x512xf32, #tpu.memory_space<vmem>>, %arg11: memref<512x128xbf16, #tpu.memory_space<vmem>>, %arg12: memref<1x128xf32, #tpu.memory_space<vmem>>, %arg13: memref<4x64x128xf32, #tpu.memory_space<vmem>>) attributes {dimension_semantics = [#tpu.dimension_semantics<parallel>], iteration_bounds = array<i64: 2>, scalar_prefetch = 0 : i64, scratch_operands = 0 : i64, tpu.core_type = #tpu.core_type<tc>, window_params = [{transform_indices = @transform_0, window_bounds = array<i64: 4, 64, 128>}, {pipeline_mode = #tpu.pipeline_mode<synchronous>, transform_indices = @transform_1, window_bounds = array<i64: 1, 128>}, {pipeline_mode = #tpu.pipeline_mode<synchronous>, transform_indices = @transform_2, window_bounds = array<i64: 1, 128>}, {pipeline_mode = #tpu.pipeline_mode<synchronous>, transform_indices = @transform_3, window_bounds = array<i64: 128, 384>}, {pipeline_mode = #tpu.pipeline_mode<synchronous>, transform_indices = @transform_4, window_bounds = array<i64: 128, 128>}, {pipeline_mode = #tpu.pipeline_mode<synchronous>, transform_indices = @transform_5, window_bounds = array<i64: 1, 128>}, {pipeline_mode = #tpu.pipeline_mode<synchronous>, transform_indices = @transform_6, window_bounds = array<i64: 1, 128>}, {pipeline_mode = #tpu.pipeline_mode<synchronous>, transform_indices = @transform_7, window_bounds = array<i64: 1, 128>}, {pipeline_mode = #tpu.pipeline_mode<synchronous>, transform_indices = @transform_8, window_bounds = array<i64: 128, 512>}, {pipeline_mode = #tpu.pipeline_mode<synchronous>, transform_indices = @transform_9, window_bounds = array<i64: 1, 512>}, {pipeline_mode = #tpu.pipeline_mode<synchronous>, transform_indices = @transform_10, window_bounds = array<i64: 512, 128>}, {pipeline_mode = #tpu.pipeline_mode<synchronous>, transform_indices = @transform_11, window_bounds = array<i64: 1, 128>}, {transform_indices = @transform_12, window_bounds = array<i64: 4, 64, 128>}]} {
    %c0 = arith.constant 0 : index
    %c0_0 = arith.constant 0 : index
    %c0_1 = arith.constant 0 : index
    %0 = vector.load %arg1[%c0, %c0_0, %c0_1] : memref<4x64x128xf32, #tpu.memory_space<vmem>>, vector<4x64x128xf32>
    %1 = vector.shape_cast %0 : vector<4x64x128xf32> to vector<256x128xf32>
    %cst = arith.constant dense<0.000000e+00> : vector<256xf32>
    %2 = vector.multi_reduction <add>, %1, %cst [1] : vector<256x128xf32> to vector<256xf32>
    %3 = vector.shape_cast %2 : vector<256xf32> to vector<256x1xf32>
    %cst_2 = arith.constant 1.280000e+02 : f32
    %4 = vector.broadcast %cst_2 : f32 to vector<256x1xf32>
    %5 = arith.divf %3, %4 : vector<256x1xf32>
    %6 = vector.broadcast %5 : vector<256x1xf32> to vector<256x128xf32>
    %7 = arith.subf %1, %6 : vector<256x128xf32>
    %8 = arith.mulf %7, %7 : vector<256x128xf32>
    %cst_3 = arith.constant dense<0.000000e+00> : vector<256xf32>
    %9 = vector.multi_reduction <add>, %8, %cst_3 [1] : vector<256x128xf32> to vector<256xf32>
    %10 = vector.shape_cast %9 : vector<256xf32> to vector<256x1xf32>
    %cst_4 = arith.constant 1.280000e+02 : f32
    %11 = vector.broadcast %cst_4 : f32 to vector<256x1xf32>
    %12 = arith.divf %10, %11 : vector<256x1xf32>
    %13 = vector.broadcast %5 : vector<256x1xf32> to vector<256x128xf32>
    %14 = arith.subf %1, %13 : vector<256x128xf32>
    %cst_5 = arith.constant 9.99999974E-6 : f32
    %15 = vector.broadcast %cst_5 : f32 to vector<256x1xf32>
    %16 = arith.addf %12, %15 : vector<256x1xf32>
    %17 = math.rsqrt %16 : vector<256x1xf32>
    %18 = vector.broadcast %17 : vector<256x1xf32> to vector<256x128xf32>
    %19 = arith.mulf %14, %18 : vector<256x128xf32>
    %c0_6 = arith.constant 0 : index
    %c0_7 = arith.constant 0 : index
    %20 = vector.load %arg2[%c0_6, %c0_7] : memref<1x128xf32, #tpu.memory_space<vmem>>, vector<1x128xf32>
    %21 = vector.broadcast %20 : vector<1x128xf32> to vector<256x128xf32>
    %22 = arith.mulf %19, %21 : vector<256x128xf32>
    %c0_8 = arith.constant 0 : index
    %c0_9 = arith.constant 0 : index
    %23 = vector.load %arg3[%c0_8, %c0_9] : memref<1x128xf32, #tpu.memory_space<vmem>>, vector<1x128xf32>
    %24 = vector.broadcast %23 : vector<1x128xf32> to vector<256x128xf32>
    %25 = arith.addf %22, %24 : vector<256x128xf32>
    %26 = arith.truncf %25 : vector<256x128xf32> to vector<256x128xbf16>
    %c0_10 = arith.constant 0 : index
    %c0_11 = arith.constant 0 : index
    %27 = vector.load %arg4[%c0_10, %c0_11] : memref<128x384xbf16, #tpu.memory_space<vmem>>, vector<128x384xbf16>
    %cst_12 = arith.constant dense<0.000000e+00> : vector<256x384xf32>
    %28 = tpu.matmul %26, %27, %cst_12 {dimension_numbers = #tpu.dot_dimension_numbers<[1], [0], [0], [1], [0, 0, 1, 1], [], []>} : vector<256x128xbf16>, vector<128x384xbf16>, vector<256x384xf32> -> vector<256x384xf32>
    %29 = vector.extract_strided_slice %28 {offsets = [0, 0], sizes = [256, 128], strides = [1, 1]} : vector<256x384xf32> to vector<256x128xf32>
    %30 = vector.extract_strided_slice %29 {offsets = [0, 0], sizes = [256, 64], strides = [1, 1]} : vector<256x128xf32> to vector<256x64xf32>
    %31 = vector.shape_cast %30 : vector<256x64xf32> to vector<4x64x64xf32>
    %32 = vector.extract_strided_slice %29 {offsets = [0, 64], sizes = [256, 64], strides = [1, 1]} : vector<256x128xf32> to vector<256x64xf32>
    %33 = vector.shape_cast %32 : vector<256x64xf32> to vector<4x64x64xf32>
    %34 = vector.shape_cast %31 : vector<4x64x64xf32> to vector<1x4x64x64xf32>
    %35 = vector.shape_cast %33 : vector<4x64x64xf32> to vector<1x4x64x64xf32>
    %36 = tpu.concatenate %34, %35 in 0 : vector<1x4x64x64xf32>, vector<1x4x64x64xf32> -> vector<2x4x64x64xf32>
    %37 = vector.shape_cast %36 : vector<2x4x64x64xf32> to vector<8x64x64xf32>
    %38 = arith.truncf %37 : vector<8x64x64xf32> to vector<8x64x64xbf16>
    %39 = vector.extract_strided_slice %28 {offsets = [0, 128], sizes = [256, 128], strides = [1, 1]} : vector<256x384xf32> to vector<256x128xf32>
    %40 = vector.extract_strided_slice %39 {offsets = [0, 0], sizes = [256, 64], strides = [1, 1]} : vector<256x128xf32> to vector<256x64xf32>
    %41 = vector.shape_cast %40 : vector<256x64xf32> to vector<4x64x64xf32>
    %42 = vector.extract_strided_slice %39 {offsets = [0, 64], sizes = [256, 64], strides = [1, 1]} : vector<256x128xf32> to vector<256x64xf32>
    %43 = vector.shape_cast %42 : vector<256x64xf32> to vector<4x64x64xf32>
    %44 = vector.shape_cast %41 : vector<4x64x64xf32> to vector<1x4x64x64xf32>
    %45 = vector.shape_cast %43 : vector<4x64x64xf32> to vector<1x4x64x64xf32>
    %46 = tpu.concatenate %44, %45 in 0 : vector<1x4x64x64xf32>, vector<1x4x64x64xf32> -> vector<2x4x64x64xf32>
    %47 = vector.shape_cast %46 : vector<2x4x64x64xf32> to vector<8x64x64xf32>
    %48 = arith.truncf %47 : vector<8x64x64xf32> to vector<8x64x64xbf16>
    %49 = vector.extract_strided_slice %28 {offsets = [0, 256], sizes = [256, 128], strides = [1, 1]} : vector<256x384xf32> to vector<256x128xf32>
    %50 = vector.extract_strided_slice %49 {offsets = [0, 0], sizes = [256, 64], strides = [1, 1]} : vector<256x128xf32> to vector<256x64xf32>
    %51 = vector.shape_cast %50 : vector<256x64xf32> to vector<4x64x64xf32>
    %52 = vector.extract_strided_slice %49 {offsets = [0, 64], sizes = [256, 64], strides = [1, 1]} : vector<256x128xf32> to vector<256x64xf32>
    %53 = vector.shape_cast %52 : vector<256x64xf32> to vector<4x64x64xf32>
    %54 = vector.shape_cast %51 : vector<4x64x64xf32> to vector<1x4x64x64xf32>
    %55 = vector.shape_cast %53 : vector<4x64x64xf32> to vector<1x4x64x64xf32>
    %56 = tpu.concatenate %54, %55 in 0 : vector<1x4x64x64xf32>, vector<1x4x64x64xf32> -> vector<2x4x64x64xf32>
    %57 = vector.shape_cast %56 : vector<2x4x64x64xf32> to vector<8x64x64xf32>
    %58 = arith.truncf %57 : vector<8x64x64xf32> to vector<8x64x64xbf16>
    "tpu.trace_start"() <{level = 10 : i32, message = "bqd,bkd->bqk"}> : () -> ()
    %cst_13 = arith.constant dense<0.000000e+00> : vector<8x64x64xf32>
    %59 = tpu.matmul %38, %48, %cst_13 {dimension_numbers = #tpu.dot_dimension_numbers<[2], [2], [1], [1], [0, 0, 0, 1, 1, 1], [0], [0]>} : vector<8x64x64xbf16>, vector<8x64x64xbf16>, vector<8x64x64xf32> -> vector<8x64x64xf32>
    "tpu.trace_stop"() : () -> ()
    %cst_14 = arith.constant dense<0xFF800000> : vector<8x64xf32>
    %60 = vector.multi_reduction <maximumf>, %59, %cst_14 [2] : vector<8x64x64xf32> to vector<8x64xf32>
    %61 = vector.shape_cast %60 : vector<8x64xf32> to vector<8x64x1xf32>
    %62 = vector.broadcast %61 : vector<8x64x1xf32> to vector<8x64x64xf32>
    %63 = arith.subf %59, %62 : vector<8x64x64xf32>
    %64 = math.exp %63 : vector<8x64x64xf32>
    %cst_15 = arith.constant dense<0.000000e+00> : vector<8x64xf32>
    %65 = vector.multi_reduction <add>, %64, %cst_15 [2] : vector<8x64x64xf32> to vector<8x64xf32>
    %66 = vector.shape_cast %65 : vector<8x64xf32> to vector<8x64x1xf32>
    %67 = tpu.reciprocal %66 : vector<8x64x1xf32> -> vector<8x64x1xf32>
    %68 = vector.broadcast %67 : vector<8x64x1xf32> to vector<8x64x64xf32>
    %69 = arith.mulf %64, %68 : vector<8x64x64xf32>
    %70 = arith.truncf %69 : vector<8x64x64xf32> to vector<8x64x64xbf16>
    "tpu.trace_start"() <{level = 10 : i32, message = "bqk,bkd->bqd"}> : () -> ()
    %cst_16 = arith.constant dense<0.000000e+00> : vector<8x64x64xf32>
    %71 = tpu.matmul %70, %58, %cst_16 {dimension_numbers = #tpu.dot_dimension_numbers<[2], [1], [1], [2], [0, 0, 0, 1, 1, 2], [0], [0]>} : vector<8x64x64xbf16>, vector<8x64x64xbf16>, vector<8x64x64xf32> -> vector<8x64x64xf32>
    "tpu.trace_stop"() : () -> ()
    %72 = vector.shape_cast %71 : vector<8x64x64xf32> to vector<2x4x64x64xf32>
    %73 = vector.extract_strided_slice %72 {offsets = [0, 0, 0, 0], sizes = [1, 4, 64, 64], strides = [1, 1, 1, 1]} : vector<2x4x64x64xf32> to vector<1x4x64x64xf32>
    %74 = vector.shape_cast %73 : vector<1x4x64x64xf32> to vector<4x64x64xf32>
    %75 = vector.extract_strided_slice %72 {offsets = [1, 0, 0, 0], sizes = [1, 4, 64, 64], strides = [1, 1, 1, 1]} : vector<2x4x64x64xf32> to vector<1x4x64x64xf32>
    %76 = vector.shape_cast %75 : vector<1x4x64x64xf32> to vector<4x64x64xf32>
    %77 = tpu.concatenate %74, %76 in 2 : vector<4x64x64xf32>, vector<4x64x64xf32> -> vector<4x64x128xf32>
    %78 = vector.shape_cast %77 : vector<4x64x128xf32> to vector<256x128xf32>
    %79 = arith.truncf %78 : vector<256x128xf32> to vector<256x128xbf16>
    %c0_17 = arith.constant 0 : index
    %c0_18 = arith.constant 0 : index
    %80 = vector.load %arg5[%c0_17, %c0_18] : memref<128x128xbf16, #tpu.memory_space<vmem>>, vector<128x128xbf16>
    %cst_19 = arith.constant dense<0.000000e+00> : vector<256x128xf32>
    %81 = tpu.matmul %79, %80, %cst_19 {dimension_numbers = #tpu.dot_dimension_numbers<[1], [0], [0], [1], [0, 0, 1, 1], [], []>} : vector<256x128xbf16>, vector<128x128xbf16>, vector<256x128xf32> -> vector<256x128xf32>
    %c0_20 = arith.constant 0 : index
    %c0_21 = arith.constant 0 : index
    %82 = vector.load %arg6[%c0_20, %c0_21] : memref<1x128xf32, #tpu.memory_space<vmem>>, vector<1x128xf32>
    %83 = vector.broadcast %82 : vector<1x128xf32> to vector<256x128xf32>
    %84 = arith.addf %81, %83 : vector<256x128xf32>
    %85 = arith.addf %1, %84 : vector<256x128xf32>
    %cst_22 = arith.constant dense<0.000000e+00> : vector<256xf32>
    %86 = vector.multi_reduction <add>, %85, %cst_22 [1] : vector<256x128xf32> to vector<256xf32>
    %87 = vector.shape_cast %86 : vector<256xf32> to vector<256x1xf32>
    %cst_23 = arith.constant 1.280000e+02 : f32
    %88 = vector.broadcast %cst_23 : f32 to vector<256x1xf32>
    %89 = arith.divf %87, %88 : vector<256x1xf32>
    %90 = vector.broadcast %89 : vector<256x1xf32> to vector<256x128xf32>
    %91 = arith.subf %85, %90 : vector<256x128xf32>
    %92 = arith.mulf %91, %91 : vector<256x128xf32>
    %cst_24 = arith.constant dense<0.000000e+00> : vector<256xf32>
    %93 = vector.multi_reduction <add>, %92, %cst_24 [1] : vector<256x128xf32> to vector<256xf32>
    %94 = vector.shape_cast %93 : vector<256xf32> to vector<256x1xf32>
    %cst_25 = arith.constant 1.280000e+02 : f32
    %95 = vector.broadcast %cst_25 : f32 to vector<256x1xf32>
    %96 = arith.divf %94, %95 : vector<256x1xf32>
    %97 = vector.broadcast %89 : vector<256x1xf32> to vector<256x128xf32>
    %98 = arith.subf %85, %97 : vector<256x128xf32>
    %cst_26 = arith.constant 9.99999974E-6 : f32
    %99 = vector.broadcast %cst_26 : f32 to vector<256x1xf32>
    %100 = arith.addf %96, %99 : vector<256x1xf32>
    %101 = math.rsqrt %100 : vector<256x1xf32>
    %102 = vector.broadcast %101 : vector<256x1xf32> to vector<256x128xf32>
    %103 = arith.mulf %98, %102 : vector<256x128xf32>
    %c0_27 = arith.constant 0 : index
    %c0_28 = arith.constant 0 : index
    %104 = vector.load %arg7[%c0_27, %c0_28] : memref<1x128xf32, #tpu.memory_space<vmem>>, vector<1x128xf32>
    %105 = vector.broadcast %104 : vector<1x128xf32> to vector<256x128xf32>
    %106 = arith.mulf %103, %105 : vector<256x128xf32>
    %c0_29 = arith.constant 0 : index
    %c0_30 = arith.constant 0 : index
    %107 = vector.load %arg8[%c0_29, %c0_30] : memref<1x128xf32, #tpu.memory_space<vmem>>, vector<1x128xf32>
    %108 = vector.broadcast %107 : vector<1x128xf32> to vector<256x128xf32>
    %109 = arith.addf %106, %108 : vector<256x128xf32>
    %110 = arith.truncf %109 : vector<256x128xf32> to vector<256x128xbf16>
    %c0_31 = arith.constant 0 : index
    %c0_32 = arith.constant 0 : index
    %111 = vector.load %arg9[%c0_31, %c0_32] : memref<128x512xbf16, #tpu.memory_space<vmem>>, vector<128x512xbf16>
    %cst_33 = arith.constant dense<0.000000e+00> : vector<256x512xf32>
    %112 = tpu.matmul %110, %111, %cst_33 {dimension_numbers = #tpu.dot_dimension_numbers<[1], [0], [0], [1], [0, 0, 1, 1], [], []>} : vector<256x128xbf16>, vector<128x512xbf16>, vector<256x512xf32> -> vector<256x512xf32>
    %c0_34 = arith.constant 0 : index
    %c0_35 = arith.constant 0 : index
    %113 = vector.load %arg10[%c0_34, %c0_35] : memref<1x512xf32, #tpu.memory_space<vmem>>, vector<1x512xf32>
    %114 = vector.broadcast %113 : vector<1x512xf32> to vector<256x512xf32>
    %115 = arith.addf %112, %114 : vector<256x512xf32>
    %cst_36 = arith.constant 3.000000e+00 : f32
    %116 = vector.broadcast %cst_36 : f32 to vector<256x512xf32>
    %117 = arith.addf %115, %116 : vector<256x512xf32>
    %cst_37 = arith.constant 0.000000e+00 : f32
    %cst_38 = arith.constant 6.000000e+00 : f32
    %118 = vector.broadcast %cst_37 : f32 to vector<256x512xf32>
    %119 = arith.maximumf %118, %117 : vector<256x512xf32>
    %120 = vector.broadcast %cst_38 : f32 to vector<256x512xf32>
    %121 = arith.minimumf %120, %119 : vector<256x512xf32>
    %122 = arith.mulf %115, %121 : vector<256x512xf32>
    %cst_39 = arith.constant 0.166666672 : f32
    %123 = vector.broadcast %cst_39 : f32 to vector<256x512xf32>
    %124 = arith.mulf %122, %123 : vector<256x512xf32>
    %cst_40 = arith.constant 3.000000e+00 : f32
    %125 = vector.broadcast %cst_40 : f32 to vector<256x512xf32>
    %126 = arith.addf %124, %125 : vector<256x512xf32>
    %cst_41 = arith.constant 0.000000e+00 : f32
    %cst_42 = arith.constant 6.000000e+00 : f32
    %127 = vector.broadcast %cst_41 : f32 to vector<256x512xf32>
    %128 = arith.maximumf %127, %126 : vector<256x512xf32>
    %129 = vector.broadcast %cst_42 : f32 to vector<256x512xf32>
    %130 = arith.minimumf %129, %128 : vector<256x512xf32>
    %131 = arith.mulf %124, %130 : vector<256x512xf32>
    %cst_43 = arith.constant 0.166666672 : f32
    %132 = vector.broadcast %cst_43 : f32 to vector<256x512xf32>
    %133 = arith.mulf %131, %132 : vector<256x512xf32>
    %134 = arith.truncf %133 : vector<256x512xf32> to vector<256x512xbf16>
    %c0_44 = arith.constant 0 : index
    %c0_45 = arith.constant 0 : index
    %135 = vector.load %arg11[%c0_44, %c0_45] : memref<512x128xbf16, #tpu.memory_space<vmem>>, vector<512x128xbf16>
    %cst_46 = arith.constant dense<0.000000e+00> : vector<256x128xf32>
    %136 = tpu.matmul %134, %135, %cst_46 {dimension_numbers = #tpu.dot_dimension_numbers<[1], [0], [0], [1], [0, 0, 1, 1], [], []>} : vector<256x512xbf16>, vector<512x128xbf16>, vector<256x128xf32> -> vector<256x128xf32>
    %c0_47 = arith.constant 0 : index
    %c0_48 = arith.constant 0 : index
    %137 = vector.load %arg12[%c0_47, %c0_48] : memref<1x128xf32, #tpu.memory_space<vmem>>, vector<1x128xf32>
    %138 = vector.broadcast %137 : vector<1x128xf32> to vector<256x128xf32>
    %139 = arith.addf %136, %138 : vector<256x128xf32>
    %140 = arith.addf %85, %139 : vector<256x128xf32>
    %141 = vector.shape_cast %140 : vector<256x128xf32> to vector<4x64x128xf32>
    %c0_49 = arith.constant 0 : index
    %c0_50 = arith.constant 0 : index
    %c0_51 = arith.constant 0 : index
    %142 = vector.load %arg13[%c0_49, %c0_50, %c0_51] : memref<4x64x128xf32, #tpu.memory_space<vmem>>, vector<4x64x128xf32>
    tpu.vector_store %arg13[%c0_49, %c0_50, %c0_51], %141 {strides = array<i32>} : memref<4x64x128xf32, #tpu.memory_space<vmem>>, vector<4x64x128xf32>,
    return
  }
  func.func @transform_0(%arg0: i32) -> (i32, i32, i32) {
    %c0_i32 = arith.constant 0 : i32
    %c0_i32_0 = arith.constant 0 : i32
    %c0_i32_1 = arith.constant 0 : i32
    return %arg0, %c0_i32, %c0_i32_0 : i32, i32, i32
  }
  func.func @transform_1(%arg0: i32) -> (i32, i32) {
    %c0_i32 = arith.constant 0 : i32
    %c0_i32_0 = arith.constant 0 : i32
    %c0_i32_1 = arith.constant 0 : i32
    return %c0_i32, %c0_i32_0 : i32, i32
  }
  func.func @transform_2(%arg0: i32) -> (i32, i32) {
    %c0_i32 = arith.constant 0 : i32
    %c0_i32_0 = arith.constant 0 : i32
    %c0_i32_1 = arith.constant 0 : i32
    return %c0_i32, %c0_i32_0 : i32, i32
  }
  func.func @transform_3(%arg0: i32) -> (i32, i32) {
    %c0_i32 = arith.constant 0 : i32
    %c0_i32_0 = arith.constant 0 : i32
    %c0_i32_1 = arith.constant 0 : i32
    return %c0_i32, %c0_i32_0 : i32, i32
  }
  func.func @transform_4(%arg0: i32) -> (i32, i32) {
    %c0_i32 = arith.constant 0 : i32
    %c0_i32_0 = arith.constant 0 : i32
    %c0_i32_1 = arith.constant 0 : i32
    return %c0_i32, %c0_i32_0 : i32, i32
  }
  func.func @transform_5(%arg0: i32) -> (i32, i32) {
    %c0_i32 = arith.constant 0 : i32
    %c0_i32_0 = arith.constant 0 : i32
    %c0_i32_1 = arith.constant 0 : i32
    return %c0_i32, %c0_i32_0 : i32, i32
  }
  func.func @transform_6(%arg0: i32) -> (i32, i32) {
    %c0_i32 = arith.constant 0 : i32
    %c0_i32_0 = arith.constant 0 : i32
    %c0_i32_1 = arith.constant 0 : i32
    return %c0_i32, %c0_i32_0 : i32, i32
  }
  func.func @transform_7(%arg0: i32) -> (i32, i32) {
    %c0_i32 = arith.constant 0 : i32
    %c0_i32_0 = arith.constant 0 : i32
    %c0_i32_1 = arith.constant 0 : i32
    return %c0_i32, %c0_i32_0 : i32, i32
  }
  func.func @transform_8(%arg0: i32) -> (i32, i32) {
    %c0_i32 = arith.constant 0 : i32
    %c0_i32_0 = arith.constant 0 : i32
    %c0_i32_1 = arith.constant 0 : i32
    return %c0_i32, %c0_i32_0 : i32, i32
  }
  func.func @transform_9(%arg0: i32) -> (i32, i32) {
    %c0_i32 = arith.constant 0 : i32
    %c0_i32_0 = arith.constant 0 : i32
    %c0_i32_1 = arith.constant 0 : i32
    return %c0_i32, %c0_i32_0 : i32, i32
  }
  func.func @transform_10(%arg0: i32) -> (i32, i32) {
    %c0_i32 = arith.constant 0 : i32
    %c0_i32_0 = arith.constant 0 : i32
    %c0_i32_1 = arith.constant 0 : i32
    return %c0_i32, %c0_i32_0 : i32, i32
  }
  func.func @transform_11(%arg0: i32) -> (i32, i32) {
    %c0_i32 = arith.constant 0 : i32
    %c0_i32_0 = arith.constant 0 : i32
    %c0_i32_1 = arith.constant 0 : i32
    return %c0_i32, %c0_i32_0 : i32, i32
  }
  func.func @transform_12(%arg0: i32) -> (i32, i32, i32) {
    %c0_i32 = arith.constant 0 : i32
    %c0_i32_0 = arith.constant 0 : i32
    %c0_i32_1 = arith.constant 0 : i32
    return %arg0, %c0_i32, %c0_i32_0 : i32, i32, i32
  }
}

</mosaic_0001>

<bundles_post_ra>
// kernel: tpu_custom_call.1
= control target key start
LH: loop header
LB: loop body
LE: loop exit
PB: predicated region body
PF: predicated region fallthrough
CT: control target
= control target key end

     0   :  { %s13465_s0 = inlined_call_operand.hbm [shape: f32[8,64,128], index: 0, kind: input, shape index: {}]   ;;  %s13466_s1 = inlined_call_operand.vmem [shape: f32[1,128], index: 1, kind: input, shape index: {}]   ;;  %s13467_s2 = inlined_call_operand.vmem [shape: f32[1,128], index: 2, kind: input, shape index: {}]   ;;  %s13468_s3 = inlined_call_operand.hbm [shape: bf16[128,384], index: 3, kind: input, shape index: {}]   ;;  %s13469_s4 = inlined_call_operand.hbm [shape: bf16[128,128], index: 4, kind: input, shape index: {}]   ;;  %s13470_s5 = inlined_call_operand.vmem [shape: f32[1,128], index: 5, kind: input, shape index: {}]   ;;  %s13471_s6 = inlined_call_operand.vmem [shape: f32[1,128], index: 6, kind: input, shape index: {}]   ;;  %s13472_s7 = inlined_call_operand.vmem [shape: f32[1,128], index: 7, kind: input, shape index: {}]   ;;  %s13473_s8 = inlined_call_operand.hbm [shape: bf16[128,512], index: 8, kind: input, shape index: {}]   ;;  %s13474_s9 = inlined_call_operand.vmem [shape: f32[1,512], index: 9, kind: input, shape index: {}]   ;;  %s13475_s10 = inlined_call_operand.hbm [shape: bf16[512,128], index: 10, kind: input, shape index: {}]   ;;  %s13476_s11 = inlined_call_operand.vmem [shape: f32[1,128], index: 11, kind: input, shape index: {}]   ;;  %s13477_s12 = inlined_call_operand.hbm [shape: f32[8,64,128], index: 12, kind: output, shape index: {}]  }
   0x1   :  { %13578 = sst [smem:[#allocation74_spill]] %s13468_s3 }
   0x2   :  { %13579 = sst [smem:[#allocation75_spill]] %s13469_s4 }
   0x3   :  { %13580 = sst [smem:[#allocation76_spill]] %s13473_s8 }
   0x4   :  { %13581 = sst [smem:[#allocation77_spill]] %s13475_s10 }
   0x5   :  { %17 = vsyncpa [#allocation3], 0 }
   0x6   :  { %19 = vsyncpa [#allocation3 + $0x1], 0 }
   0x7   :  { %20 = vsyncpa [#allocation6], 0 }
   0x8   :  { %21 = vsyncpa [#allocation9], 0 }
   0x9   :  { %22 = vsyncpa [#allocation4], 0 }
   0xa   :  { %24 = vsyncpa [#allocation4 + $0x1], 0  ;;  %s9875_s21 = smov 0   ;;  %s9877_s22 = smov 0  }
   0xb   :  { %s9879_s23 = smov 0   ;;  %s9881_s24 = smov 0  }
   0xc LB: > { %13582 = sst [smem:[#allocation16_spill]] %s9778_s21  ;;  %s9896_s25 = sadd.s32 4294967295, %s9790_s24   ;;  %s9790_s24 = sphi %s9881_s24, %s13866_s24   ;;  %s9786_s23 = sphi %s9879_s23, %s13865_s23   ;;  %s9782_s22 = sphi %s9877_s22, %s13864_s22   ;;  %s9778_s21 = sphi %s9875_s21, %s13863_s21  }
   0xd   : > { %s7637_s26 = sadd.s32 4294967294, %s9790_s24   ;;  %p50_p0 = scmp.ne.s32.totalorder %s9782_s22, %s9778_s21 }
   0xe   : > { %p13478_p1 = scmp.eq.s32.totalorder %s9896_s25, 0  ;;  %p311_p3 = scmp.eq.s32.totalorder %s7637_s26, 1 }
   0xf   : > { %p7638_p5 = scmp.ge.s32.totalorder %s9790_s24, 1  ;;  %p318_p7 = scmp.lt.s32.totalorder %s9790_s24, 3 }
  0x10   : > { %p9905_p4 = por %p13478_p1, %p50_p0  ;;  %p9910_p6 = por %p311_p3, %p50_p0 }
  0x11   : > { %p9915_p8 = pnand %p7638_p5, %p318_p7  ;;  %s9792_s30 = smov [#allocation5]  }
  0x12   : > { %s13583_s27 = scalar_select %p9905_p4, 1, 0 }
  0x13   : > { %s13584_s28 = scalar_select %p9910_p6, 1, 0 }
  0x14   : > { %s13586_s29 = scalar_select %p9915_p8, 1, 0 }
  0x15   : > { %13585 = sst [smem:[#allocation17_spill]] %s13584_s28  ;;  %s336_s13 = sshll.u32 %s9792_s30, 4  ;;  %s337_s13 = int_to_ptr.vmem [resolvable:$true] %s336_s13 }
  0x16   : > { %p8651_p9 = pneg %p9915_p8  ;;  %s9793_s15 = smov [#allocation8]  }
  0x17   : > { %s371_s16 = sshll.u32 %s9793_s15, 4  ;;  %s9597_s17 = scalar_lea.vmem %s337_s13, 3072  ;;  %s372_s16 = int_to_ptr.vmem [resolvable:$true] %s371_s16 }
  0x18   : > { %p9924_p11 = pnand %p8651_p9, %p13478_p1  ;;  %p9598_p13 = scmp.ne.s32.totalorder %s337_s13, %s9597_s17 }
  0x19   : > { %p9605_p5 = scmp.lt.s32.totalorder %s337_s13, %s337_s13  ;;  %p9606_p7 = scmp.lt.s32.totalorder %s9597_s17, %s9597_s17 }
  0x1a   : > { %p9588_p12 = pneg %p9924_p11 }
  0x1b   : > { %p9607_p10 = por %p9606_p7, %p9605_p5 }
  0x1c   : > { %p9600_p0 = pnand %p9598_p13, %p9588_p12 }
  0x1e   : > { %p9601_p3 = pneg %p9600_p0 }
  0x20   : > { %p9608_p9 = pnand %p9607_p10, %p9601_p3 }
  0x22   : > { %9611 = shalt.err (!%p9608_p9)
}
  0x23   : > { %s9794_s18 = smov 192   ;;  %s9795_s19 = smov 12  }
  0x24   : > { %s13588_s3 = sld [smem:[#allocation74_spill]]  ;;  %s9623_s30 = scalar_lea.vmem %s372_s16, 4096 }
  0x25   : > { %p9624_p1 = scmp.ne.s32.totalorder %s372_s16, %s9623_s30  ;;  %p9631_p2 = scmp.lt.s32.totalorder %s372_s16, %s372_s16 }
  0x26   : > { %p9632_p6 = scmp.lt.s32.totalorder %s9623_s30, %s9623_s30 }
  0x27   : > { %p9626_p13 = pnand %p9624_p1, %p9588_p12 }
  0x28   : > { %p9633_p5 = por %p9632_p6, %p9631_p2 }
  0x29   : > { %p9627_p0 = pneg %p9626_p13 }
  0x2a   : > { %8654 = dma.hbm_to_vmem [thread:$0]  (!%p9924_p11), %s13588_s3, 3072, %s337_s13, [#allocation6], %s9794_s18, %s9794_s18, %s9795_s19  }
  0x2b   : > { %p9634_p10 = pnand %p9633_p5, %p9627_p0 }
  0x2d   : > { %9637 = shalt.err (!%p9634_p10)
}
  0x2e   : > { %s9796_s15 = smov 256   ;;  %s9797_s17 = smov 16  }
  0x2f   : > { %s13589_s8 = sld [smem:[#allocation76_spill]]  ;;  %s9798_s13 = smov [#allocation7]  }
  0x30   : > { %s349_s18 = sshll.u32 %s9798_s13, 4  ;;  %s350_s18 = int_to_ptr.vmem [resolvable:$true] %s349_s18 }
  0x31   : > { %s9649_s19 = scalar_lea.vmem %s350_s18, 1024  ;;  %p9657_p6 = scmp.lt.s32.totalorder %s350_s18, %s350_s18 }
  0x32   : > { %p9650_p1 = scmp.ne.s32.totalorder %s350_s18, %s9649_s19  ;;  %p9658_p7 = scmp.lt.s32.totalorder %s9649_s19, %s9649_s19 }
  0x34   : > { %p9652_p3 = pnand %p9650_p1, %p9588_p12  ;;  %p9659_p9 = por %p9658_p7, %p9657_p6 }
  0x35   : > { %8660 = dma.hbm_to_vmem [thread:$0]  (!%p9924_p11), %s13589_s8, 4096, %s372_s16, [#allocation9], %s9796_s15, %s9796_s15, %s9797_s17  }
  0x36   : > { %p9653_p2 = pneg %p9652_p3 }
  0x38   : > { %p9660_p13 = pnand %p9659_p9, %p9653_p2 }
  0x3a   : > { %9663 = shalt.err (!%p9660_p13)
}
  0x3b   : > { %s9799_s20 = smov 64   ;;  %s9800_s26 = smov 4  }
  0x3c   : > { %s13590_s4 = sld [smem:[#allocation75_spill]]  ;;  %s9801_s16 = smov [#allocation10]  }
  0x3d   : > { %s387_s30 = sshll.u32 %s9801_s16, 4  ;;  %s388_s30 = int_to_ptr.vmem [resolvable:$true] %s387_s30 }
  0x3e   : > { %s9675_s15 = scalar_lea.vmem %s388_s30, 4096  ;;  %p9683_p1 = scmp.lt.s32.totalorder %s388_s30, %s388_s30 }
  0x3f   : > { %p9676_p0 = scmp.ne.s32.totalorder %s388_s30, %s9675_s15  ;;  %p9684_p3 = scmp.lt.s32.totalorder %s9675_s15, %s9675_s15 }
  0x41   : > { %p9678_p5 = pnand %p9676_p0, %p9588_p12  ;;  %p9685_p2 = por %p9684_p3, %p9683_p1 }
  0x42   : > { %8657 = dma.hbm_to_vmem [thread:$0]  (!%p9924_p11), %s13590_s4, 1024, %s350_s18, [#allocation6], %s9799_s20, %s9799_s20, %s9800_s26  }
  0x43   : > { %p9679_p10 = pneg %p9678_p5 }
  0x45   : > { %p9686_p6 = pnand %p9685_p2, %p9679_p10 }
  0x47   : > { %9689 = shalt.err (!%p9686_p6)
}
  0x48   : > { %s13591_s10 = sld [smem:[#allocation77_spill]]  ;;  %s9963_s18 = sadd.s32 1, %s9790_s24  }
  0x49   : > { %s37_s19 = sadd.s32 1, %s9786_s23  ;;  %s34_s14 = ssub.s32 %s9790_s24, %s9963_s18 }
  0x4a   : > { %p44_p12 = scmp.ne.s32.totalorder %s9786_s23, %s9782_s22  ;;  %p35_p7 = scmp.eq.s32.totalorder %s34_s14, 0 }
  0x4b   : > { %p45_p9 = scmp.eq.s32.totalorder %s9790_s24, 0  ;;  %p13592_p13 = scmp.eq.s32.totalorder %s9896_s25, 1 }
  0x4c   : > { %p8676_p5 = scmp.lt.s32.totalorder %s9790_s24, 2  ;;  %s404_s16 = sand.u32 1, %s9786_s23  }
  0x4d   : > { %p9973_p0 = por %p13592_p13, %p44_p12  ;;  %p46_p10 = por %p45_p9, %p44_p12 }
  0x4e   : > { %8663 = dma.hbm_to_vmem [thread:$0]  (!%p9924_p11), %s13591_s10, 4096, %s388_s30, [#allocation9], %s9799_s20, %s9799_s20, %s9800_s26  }
  0x4f   : > { %s13593_s21 = scalar_select %p9973_p0, 1, 0 }
  0x50   : > { %s9979_s28 = scalar_select %p35_p7, %s9786_s23, %s37_s19  }
  0x51   : > { %s7644_s15 = sshll.u32 %s404_s16, 8  ;;  %s7828_s20 = sshll.u32 %s9790_s24, 12 }
  0x52   : > { %s9986_s17 = scalar_lea.hbm %s13465_s0, %s7828_s20  ;;  %s408_s13 = scalar_lea.vmem [#allocation2], %s7644_s15 }
  0x53   : > { %s416_s14 = sshll.u32 %s408_s13, 4  ;;  %p9990_p11 = pnand %p8676_p5, %p46_p10  ;;  %s9988_s14 = int_to_ptr.vmem [resolvable:$true] %s416_s14 }
  0x54   : > { %s9994_s19 = scalar_lea.sflag [#allocation3], %s404_s16  ;;  %s9690_s4 = scalar_lea.hbm %s9986_s17, 4096 }
  0x55   : > { %p9691_p1 = scmp.ne.s32.totalorder %s9986_s17, %s9690_s4  ;;  %p9692_p3 = pneg %p9990_p11 }
  0x56   : > { %s9695_s15 = scalar_lea.hbm %s13465_s0, 8192  ;;  %p9696_p12 = scmp.lt.s32.totalorder %s9986_s17, %s13465_s0 }
  0x57   : > { %p9693_p2 = pnand %p9692_p3, %p9691_p1  ;;  %p9697_p7 = scmp.lt.s32.totalorder %s9695_s15, %s9690_s4 }
  0x59   : > { %p9694_p6 = pneg %p9693_p2  ;;  %p9698_p9 = por %p9697_p7, %p9696_p12 }
  0x5b   : > { %p9699_p13 = pnand %p9698_p9, %p9694_p6 }
  0x5d   : > { %9702 = shalt.err (!%p9699_p13)
}
  0x5e   : > { %s9703_s16 = scalar_lea.vmem %s9988_s14, 4096  ;;  %s9802_s8 = smov [#allocation2]  }
  0x5f   : > { %p9704_p5 = scmp.ne.s32.totalorder %s9988_s14, %s9703_s16  ;;  %s9708_s10 = sshll.u32 %s9802_s8, 4  ;;  %s9709_s10 = int_to_ptr.vmem [resolvable:$false] %s9708_s10 }
  0x60   : > { %s9710_s20 = scalar_lea.vmem %s9709_s10, 8192  ;;  %p9711_p2 = scmp.lt.s32.totalorder %s9988_s14, %s9709_s10 }
  0x61   : > { %p9706_p10 = pnand %p9704_p5, %p9692_p3  ;;  %p9712_p0 = scmp.lt.s32.totalorder %s9710_s20, %s9703_s16 }
  0x63   : > { %p9707_p1 = pneg %p9706_p10  ;;  %p9713_p4 = por %p9712_p0, %p9711_p2 }
  0x65   : > { %p9714_p8 = pnand %p9713_p4, %p9707_p1 }
  0x67   : > { %9717 = shalt.err (!%p9714_p8)
}
  0x68   : > { %s9803_s4 = smov 128   ;;  %s9804_s26 = smov 8  }
  0x69   : > { %8667 = dma.hbm_to_vmem [thread:$0]  (!%p9990_p11), %s9986_s17, 4096, %s9988_s14, %s9994_s19, %s9803_s4, %s9803_s4, %s9804_s26  }
  0x6a   : > { %p13595_p3 = scmp.ne.s32.totalorder %s13586_s29, 0 }
  0x6c   : > { %428 = sbr.rel (%p13595_p3) target bundleno = 3063 (0xbf7), region = 68 }
  0x71   : > { %s10018_s8 = sand.u32 1, %s9782_s22   ;;  %p13596_p4 = scmp.ne.s32.totalorder %s13583_s27, 0 }
  0x72   : > { %s7649_s10 = sshll.u32 %s10018_s8, 8  ;;  %s431_s15 = scalar_lea.sflag [#allocation3], %s10018_s8 }
  0x73   : > { %s10024_s30 = scalar_lea.vmem [#allocation2], %s7649_s10 }
  0x74   : > { %9761 = dma.done.wait (%p13596_p4), %s431_s15, 4096  }
  0x75   : > { %9763 = vsyncadd (%p13596_p4), %s431_s15, 4294963200  ;;  %p13597_p8 = scmp.eq.s32.totalorder %s9896_s25, 0 }
  0x77   : > { %9765 = dma.done.wait (%p13597_p8), [#allocation6], 4096   ;;  %p13598_p0 = pmov %p13597_p8 }
  0x79   : > { %9767 = vsyncadd (%p13598_p0), [#allocation6], 4294963200  ;;  %p13599_p11 = pmov %p13598_p0 }
  0x7a   : > { %p13600_p6 = pmov %p13598_p0 }
  0x7b   : > { %9769 = dma.done.wait (%p13599_p11), [#allocation9], 8192  }
  0x7c   : > { %9771 = vsyncadd (%p13600_p6), [#allocation9], 4294959104  ;;  %v494_v0 = vld [vmem:[%s10024_s30] sm:$0xff]  ;;  %v496_v1 = vld [vmem:[%s10024_s30 + $0x10] sm:$0xff]  ;;  %s9806_s14 = smov 64   ;;  %vm1967_vm0 = vcmask 523264  }
  0x7d   : > { %526 = vadd.xlane.f32.xlu0 %v494_v0  ;;  %530 = vadd.xlane.f32.xlu1 %v496_v1  ;;  %v495_v2 = vld [vmem:[%s10024_s30 + $0x8] sm:$0xff]  ;;  %v497_v3 = vld [vmem:[%s10024_s30 + $0x18] sm:$0xff]  ;;  %v10043_v4 = vld [vmem:[%s10024_s30 + $0x20] sm:$0xff]  ;;  %s13311_s29 = scalar_lea.vmem [#allocation11], %s7649_s10  ;;  %s7830_s10 = sshll.u32 %s9896_s25, 12 }
  0x7e   : > { %v10046_v5 = vld [vmem:[%s10024_s30 + $0x28] sm:$0xff]  ;;  %v10049_v6 = vld [vmem:[%s10024_s30 + $0x30] sm:$0xff]  ;;  %v10052_v7 = vld [vmem:[%s10024_s30 + $0x38] sm:$0xff]  ;;  %s7526_s17 = sshll.u32 %s13311_s29, 4  ;;  %s13418_s13 = scalar_lea.hbm %s13477_s12, %s7830_s10  ;;  %s13420_s17 = int_to_ptr.vmem [resolvable:$true] %s7526_s17 }
  0x7f   : > { %v10057_v8 = vld [vmem:[%s10024_s30 + $0x40] sm:$0xff]  ;;  %v10060_v9 = vld [vmem:[%s10024_s30 + $0x48] sm:$0xff]  ;;  %v10065_v10 = vld [vmem:[%s10024_s30 + $0x50] sm:$0xff]  ;;  %s7512_s16 = scalar_lea.sflag [#allocation4], %s10018_s8  ;;  %s9718_s20 = scalar_lea.vmem %s13420_s17, 4096 }
  0x80   : > { %v10070_v11 = vld [vmem:[%s10024_s30 + $0x58] sm:$0xff]  ;;  %v10073_v12 = vld [vmem:[%s10024_s30 + $0x60] sm:$0xff]  ;;  %v10076_v13 = vld [vmem:[%s10024_s30 + $0x68] sm:$0xff]  ;;  %p9719_p12 = scmp.ne.s32.totalorder %s13420_s17, %s9718_s20  ;;  %p13858_p7 = scmp.ne.s32.totalorder %s13593_s21, 0 }
  0x81   : > { %528 = vadd.xlane.f32.xlu0 %v495_v2  ;;  %532 = vadd.xlane.f32.xlu1 %v497_v3  ;;  %v10081_v14 = vld [vmem:[%s10024_s30 + $0x70] sm:$0xff]  ;;  %v10086_v15 = vld [vmem:[%s10024_s30 + $0x78] sm:$0xff]  ;;  %v10089_v16 = vld [vmem:[%s10024_s30 + $0x80] sm:$0xff]  ;;  %s9807_s25 = smov [#allocation11]  }
  0x82   : > { %v10094_v17 = vld [vmem:[%s10024_s30 + $0x88] sm:$0xff]  ;;  %v10097_v18 = vld [vmem:[%s10024_s30 + $0x90] sm:$0xff]  ;;  %v10100_v19 = vld [vmem:[%s10024_s30 + $0x98] sm:$0xff]  ;;  %p9720_p9 = pnand %p9719_p12, %p13858_p7  ;;  %s9722_s4 = sshll.u32 %s9807_s25, 4  ;;  %s9723_s4 = int_to_ptr.vmem [resolvable:$false] %s9722_s4 }
  0x83   : > { %v9050_v20 = vld [vmem:[#allocation5 + $0xac] ss:$12 sps:$4 sm:$0xff]   ;;  %v9052_v21 = vld [vmem:[#allocation5 + $0xa8] ss:$12 sps:$4 sm:$0xff]   ;;  %v10115_v34 = vld [vmem:[%s10024_s30 + $0xa0] sm:$0xff]  ;;  %s9724_s26 = scalar_lea.vmem %s9723_s4, 8192  ;;  %p9725_p5 = scmp.lt.s32.totalorder %s13420_s17, %s9723_s4 }
  0x84   : > { %1133 = vmatprep.subr.bf16.mxu0 %v9050_v20  ;;  %8583 = vmatprep.subr.bf16.mxu1 %v9050_v20  ;;  %v10125_v40 = vld [vmem:[%s10024_s30 + $0xa8] sm:$0xff]  ;;  %v10134_v45 = vld [vmem:[%s10024_s30 + $0xb0] sm:$0xff]  ;;  %v10143_v52 = vld [vmem:[%s10024_s30 + $0xb8] sm:$0xff]  ;;  %p9721_p13 = pneg %p9720_p9  ;;  %p9726_p10 = scmp.lt.s32.totalorder %s9724_s26, %s9718_s20 }
  0x85   : > { %534 = vadd.xlane.f32.xlu0 %v10043_v4  ;;  %536 = vadd.xlane.f32.xlu1 %v10046_v5  ;;  %v9053_v47 = vld [vmem:[#allocation5 + $0x94] ss:$12 sps:$4 sm:$0xff]   ;;  %v9055_v48 = vld [vmem:[#allocation5 + $0x90] ss:$12 sps:$4 sm:$0xff]   ;;  %v9058_v55 = vld [vmem:[#allocation5 + $0x78] ss:$12 sps:$4 sm:$0xff]  }
  0x86   : > { %1134 = vmatpush1.bf16.msra.mxu0 %v9052_v21  ;;  %8591 = vmatpush1.bf16.msra.mxu1 %v9052_v21  ;;  %v9056_v54 = vld [vmem:[#allocation5 + $0x7c] ss:$12 sps:$4 sm:$0xff]   ;;  %v10152_v59 = vld [vmem:[%s10024_s30 + $0xc0] sm:$0xff]  ;;  %p9727_p1 = por %p9726_p10, %p9725_p5 }
  0x87   : > { %1135 = vmatprep.subr.bf16.mxu0 %v9053_v47  ;;  %8584 = vmatprep.subr.bf16.mxu1 %v9053_v47  ;;  %v9059_v61 = vld [vmem:[#allocation5 + $0x64] ss:$12 sps:$4 sm:$0xff]   ;;  %v9061_v62 = vld [vmem:[#allocation5 + $0x60] ss:$12 sps:$4 sm:$0xff]  }
  0x88   : > { %p9728_p2 = pnand %p9727_p1, %p9721_p13 }
  0x89   : > { %538 = vadd.xlane.f32.xlu0 %v10049_v6  ;;  %540 = vadd.xlane.f32.xlu1 %v10052_v7 }
  0x8a   : > { %1136 = vmatpush1.bf16.msra.mxu0 %v9055_v48  ;;  %8592 = vmatpush1.bf16.msra.mxu1 %v9055_v48 }
  0x8b   : > { %1137 = vmatprep.subr.bf16.mxu0 %v9056_v54  ;;  %8585 = vmatprep.subr.bf16.mxu1 %v9056_v54 }
  0x8d   : > { %542 = vadd.xlane.f32.xlu0 %v10057_v8  ;;  %544 = vadd.xlane.f32.xlu1 %v10060_v9 }
  0x8e   : > { %1138 = vmatpush1.bf16.msra.mxu0 %v9058_v55  ;;  %8593 = vmatpush1.bf16.msra.mxu1 %v9058_v55  ;;  %v13484_v55 = vmov 0  }
  0x8f   : > { %1139 = vmatprep.subr.bf16.mxu0 %v9059_v61  ;;  %8586 = vmatprep.subr.bf16.mxu1 %v9059_v61 }
  0x90   : > { %1165 = vmatprep.mubr.bf16.mxu0 %v13484_v55  ;;  %1285 = vmatprep.mubr.bf16.mxu1 %v13484_v55 }
  0x91   : > { %546 = vadd.xlane.f32.xlu0 %v10065_v10  ;;  %548 = vadd.xlane.f32.xlu1 %v10070_v11 }
  0x92   : > { %1140 = vmatpush1.bf16.msra.mxu0 %v9061_v62  ;;  %8594 = vmatpush1.bf16.msra.mxu1 %v9061_v62 }
  0x95   : > { %550 = vadd.xlane.f32.xlu0 %v10073_v12  ;;  %552 = vadd.xlane.f32.xlu1 %v10076_v13 }
  0x99   : > { %554 = vadd.xlane.f32.xlu0 %v10081_v14  ;;  %556 = vadd.xlane.f32.xlu1 %v10086_v15 }
  0x9d   : > { %558 = vadd.xlane.f32.xlu0 %v10089_v16  ;;  %560 = vadd.xlane.f32.xlu1 %v10094_v17 }
  0xa1   : > { %562 = vadd.xlane.f32.xlu0 %v10097_v18  ;;  %564 = vadd.xlane.f32.xlu1 %v10100_v19 }
 0x106   : > { %v527_v22 = vpop.xlane.xlu0 %526  ;;  %v531_v23 = vpop.xlane.xlu1 %530 }
 0x107   : > { %v591_v24 = vmul.f32 0.0078125, %v527_v22  ;;  %v593_v26 = vmul.f32 0.0078125, %v531_v23  ;;  %v10170_v22 = vld [vmem:[%s10024_s30 + $0xd0] sm:$0xff] }
 0x108   : > { %v9065_v23 = vld [vmem:[#allocation5 + $0x34] ss:$12 sps:$4 sm:$0xff]  }
 0x109   : > { %v10106_v25 = vsub.f32 %v494_v0, %v591_v24  ;;  %v10112_v33 = vsub.f32 %v496_v1, %v593_v26 }
 0x10a   : > { %v529_v27 = vpop.xlane.xlu0 %528  ;;  %v533_v28 = vpop.xlane.xlu1 %532 }
 0x10b   : > { %v592_v29 = vmul.f32 0.0078125, %v529_v27  ;;  %v655_v30 = vmul.f32 %v10106_v25, %v10106_v25  ;;  %v594_v32 = vmul.f32 0.0078125, %v533_v28  ;;  %v657_v37 = vmul.f32 %v10112_v33, %v10112_v33  ;;  %v9067_v27 = vld [vmem:[#allocation5 + $0x30] ss:$12 sps:$4 sm:$0xff]  }
 0x10d   : > { %687 = vadd.xlane.f32.xlu0 %v655_v30  ;;  %v10110_v31 = vsub.f32 %v495_v2, %v592_v29  ;;  %v10122_v39 = vsub.f32 %v497_v3, %v594_v32  ;;  %v10161_v2 = vld [vmem:[%s10024_s30 + $0xc8] sm:$0xff]  ;;  %v10179_v30 = vld [vmem:[%s10024_s30 + $0xd8] sm:$0xff] }
 0x10e   : > { %v535_v35 = vpop.xlane.xlu0 %534  ;;  %v537_v41 = vpop.xlane.xlu1 %536  ;;  %v9068_v32 = vld [vmem:[#allocation5 + $0x1c] ss:$12 sps:$4 sm:$0xff]  }
 0x10f   : > { %v656_v36 = vmul.f32 %v10110_v31, %v10110_v31  ;;  %v595_v38 = vmul.f32 0.0078125, %v535_v35  ;;  %v658_v42 = vmul.f32 %v10122_v39, %v10122_v39  ;;  %v596_v43 = vmul.f32 0.0078125, %v537_v41  ;;  %v10188_v41 = vld [vmem:[%s10024_s30 + $0xe0] sm:$0xff] }
 0x111   : > { %566 = vadd.xlane.f32.xlu0 %v10115_v34  ;;  %689 = vadd.xlane.f32.xlu1 %v656_v36  ;;  %v10131_v44 = vsub.f32 %v10043_v4, %v595_v38  ;;  %v10140_v51 = vsub.f32 %v10046_v5, %v596_v43  ;;  %v9062_v4 = vld [vmem:[#allocation5 + $0x4c] ss:$12 sps:$4 sm:$0xff]   ;;  %v9071_v43 = vld [vmem:[#allocation5 + $0x4] ss:$12 sps:$4 sm:$0xff]  }
 0x112   : > { %v539_v46 = vpop.xlane.xlu0 %538  ;;  %v541_v53 = vpop.xlane.xlu1 %540  ;;  %1141 = vmatprep.subr.bf16.mxu0 %v9062_v4  ;;  %8587 = vmatprep.subr.bf16.mxu1 %v9062_v4  ;;  %v9070_v36 = vld [vmem:[#allocation5 + $0x18] ss:$12 sps:$4 sm:$0xff]  }
 0x113   : > { %v659_v49 = vmul.f32 %v10131_v44, %v10131_v44  ;;  %v597_v50 = vmul.f32 0.0078125, %v539_v46  ;;  %v660_v56 = vmul.f32 %v10140_v51, %v10140_v51  ;;  %v598_v57 = vmul.f32 0.0078125, %v541_v53  ;;  %v9073_v46 = vld [vmem:[#allocation5] ss:$12 sps:$4 sm:$0xff]  }
 0x115   : > { %691 = vadd.xlane.f32.xlu0 %v657_v37  ;;  %568 = vadd.xlane.f32.xlu1 %v10125_v40  ;;  %v10149_v58 = vsub.f32 %v10049_v6, %v597_v50  ;;  %v10158_v1 = vsub.f32 %v10052_v7, %v598_v57  ;;  %v9064_v6 = vld [vmem:[#allocation5 + $0x48] ss:$12 sps:$4 sm:$0xff]  }
 0x116   : > { %v543_v60 = vpop.xlane.xlu0 %542  ;;  %v545_v3 = vpop.xlane.xlu1 %544  ;;  %1142 = vmatpush1.bf16.msra.mxu0 %v9064_v6  ;;  %8595 = vmatpush1.bf16.msra.mxu1 %v9064_v6 }
 0x117   : > { %v661_v63 = vmul.f32 %v10149_v58, %v10149_v58  ;;  %v599_v0 = vmul.f32 0.0078125, %v543_v60  ;;  %v662_v20 = vmul.f32 %v10158_v1, %v10158_v1  ;;  %v600_v21 = vmul.f32 0.0078125, %v545_v3  ;;  %1143 = vmatprep.subr.bf16.mxu0 %v9065_v23  ;;  %8588 = vmatprep.subr.bf16.mxu1 %v9065_v23  ;;  %v10208_v60 = vld [vmem:[%s10024_s30 + $0xf0] sm:$0xff] }
 0x119   : > { %570 = vadd.xlane.f32.xlu0 %v10134_v45  ;;  %693 = vadd.xlane.f32.xlu1 %v658_v42  ;;  %v10167_v7 = vsub.f32 %v10057_v8, %v599_v0  ;;  %v10176_v8 = vsub.f32 %v10060_v9, %v600_v21 }
 0x11a   : > { %v547_v5 = vpop.xlane.xlu0 %546  ;;  %v549_v24 = vpop.xlane.xlu1 %548  ;;  %1144 = vmatpush1.bf16.msra.mxu0 %v9067_v27  ;;  %8596 = vmatpush1.bf16.msra.mxu1 %v9067_v27 }
 0x11b   : > { %v663_v28 = vmul.f32 %v10167_v7, %v10167_v7  ;;  %v601_v29 = vmul.f32 0.0078125, %v547_v5  ;;  %v664_v37 = vmul.f32 %v10176_v8, %v10176_v8  ;;  %v602_v38 = vmul.f32 0.0078125, %v549_v24  ;;  %1145 = vmatprep.subr.bf16.mxu0 %v9068_v32  ;;  %8589 = vmatprep.subr.bf16.mxu1 %v9068_v32  ;;  %v10220_v5 = vld [vmem:[%s10024_s30 + $0xf8] sm:$0xff] }
 0x11d   : > { %572 = vadd.xlane.f32.xlu1 %v10143_v52  ;;  %695 = vadd.xlane.f32.xlu0 %v659_v49  ;;  %v10185_v9 = vsub.f32 %v10065_v10, %v601_v29  ;;  %v10194_v49 = vsub.f32 %v10070_v11, %v602_v38  ;;  %v10197_v10 = vld [vmem:[%s10024_s30 + $0xe8] sm:$0xff] }
 0x11e   : > { %v551_v26 = vpop.xlane.xlu0 %550  ;;  %v553_v35 = vpop.xlane.xlu1 %552  ;;  %1146 = vmatpush1.bf16.msra.mxu0 %v9070_v36  ;;  %8597 = vmatpush1.bf16.msra.mxu1 %v9070_v36 }
 0x11f   : > { %v665_v47 = vmul.f32 %v10185_v9, %v10185_v9  ;;  %v603_v48 = vmul.f32 0.0078125, %v551_v26  ;;  %1147 = vmatprep.subr.bf16.mxu0 %v9071_v43  ;;  %8590 = vmatprep.subr.bf16.mxu1 %v9071_v43  ;;  %v604_v53 = vmul.f32 0.0078125, %v553_v35  ;;  %v666_v11 = vmul.f32 %v10194_v49, %v10194_v49 }
 0x121   : > { %697 = vadd.xlane.f32.xlu1 %v660_v56  ;;  %574 = vadd.xlane.f32.xlu0 %v10152_v59  ;;  %v10205_v57 = vsub.f32 %v10073_v12, %v603_v48  ;;  %v10211_v62 = vsub.f32 %v10076_v13, %v604_v53 }
 0x122   : > { %v555_v42 = vpop.xlane.xlu0 %554  ;;  %v557_v50 = vpop.xlane.xlu1 %556  ;;  %1148 = vmatpush1.bf16.msra.mxu0 %v9073_v46  ;;  %8598 = vmatpush1.bf16.msra.mxu1 %v9073_v46 }
 0x123   : > { %v605_v56 = vmul.f32 0.0078125, %v555_v42  ;;  %v606_v61 = vmul.f32 0.0078125, %v557_v50  ;;  %v667_v0 = vmul.f32 %v10205_v57, %v10205_v57  ;;  %v668_v6 = vmul.f32 %v10211_v62, %v10211_v62 }
 0x125   : > { %576 = vadd.xlane.f32.xlu1 %v10161_v2  ;;  %699 = vadd.xlane.f32.xlu0 %v661_v63  ;;  %v10217_v4 = vsub.f32 %v10081_v14, %v605_v56  ;;  %v10225_v13 = vsub.f32 %v10086_v15, %v606_v61 }
 0x126   : > { %v559_v54 = vpop.xlane.xlu0 %558  ;;  %v561_v63 = vpop.xlane.xlu1 %560 }
 0x127   : > { %v607_v3 = vmul.f32 0.0078125, %v559_v54  ;;  %v608_v21 = vmul.f32 0.0078125, %v561_v63  ;;  %v670_v26 = vmul.f32 %v10225_v13, %v10225_v13 }
 0x129   : > { %701 = vadd.xlane.f32.xlu1 %v662_v20  ;;  %578 = vadd.xlane.f32.xlu0 %v10170_v22  ;;  %v669_v20 = vmul.f32 %v10217_v4, %v10217_v4  ;;  %v10231_v14 = vsub.f32 %v10089_v16, %v607_v3 }
 0x12a   : > { %v563_v12 = vpop.xlane.xlu0 %562  ;;  %v565_v24 = vpop.xlane.xlu1 %564 }
 0x12b   : > { %v609_v23 = vmul.f32 0.0078125, %v563_v12  ;;  %v671_v15 = vmul.f32 %v10231_v14, %v10231_v14  ;;  %v610_v27 = vmul.f32 0.0078125, %v565_v24 }
 0x12d   : > { %580 = vadd.xlane.f32.xlu1 %v10179_v30  ;;  %703 = vadd.xlane.f32.xlu0 %v663_v28  ;;  %v10238_v28 = vsub.f32 %v10094_v17, %v608_v21  ;;  %v10241_v29 = vsub.f32 %v10097_v18, %v609_v23  ;;  %v10248_v35 = vsub.f32 %v10100_v19, %v610_v27 }
 0x12f   : > { %v672_v16 = vmul.f32 %v10238_v28, %v10238_v28  ;;  %v673_v32 = vmul.f32 %v10241_v29, %v10241_v29  ;;  %v674_v17 = vmul.f32 %v10248_v35, %v10248_v35 }
 0x131   : > { %705 = vadd.xlane.f32.xlu1 %v664_v37  ;;  %582 = vadd.xlane.f32.xlu0 %v10188_v41 }
 0x135   : > { %584 = vadd.xlane.f32.xlu1 %v10197_v10  ;;  %707 = vadd.xlane.f32.xlu0 %v665_v47 }
 0x139   : > { %709 = vadd.xlane.f32.xlu1 %v666_v11  ;;  %586 = vadd.xlane.f32.xlu0 %v10208_v60 }
 0x13d   : > { %588 = vadd.xlane.f32.xlu1 %v10220_v5  ;;  %711 = vadd.xlane.f32.xlu0 %v667_v0 }
 0x141   : > { %713 = vadd.xlane.f32.xlu1 %v668_v6  ;;  %715 = vadd.xlane.f32.xlu0 %v669_v20 }
 0x145   : > { %717 = vadd.xlane.f32.xlu1 %v670_v26  ;;  %719 = vadd.xlane.f32.xlu0 %v671_v15 }
 0x149   : > { %721 = vadd.xlane.f32.xlu1 %v672_v16  ;;  %723 = vadd.xlane.f32.xlu0 %v673_v32 }
 0x14d   : > { %725 = vadd.xlane.f32.xlu1 %v674_v17 }
 0x196   : > { %v688_v36 = vpop.xlane.xlu0 %687 }
 0x197   : > { %v751_v18 = vmul.f32 0.0078125, %v688_v36 }
 0x199   : > { %v783_v37 = vadd.f32 1e-05, %v751_v18 }
 0x19a   : > { %v690_v38 = vpop.xlane.xlu1 %689  ;;  %v567_v42 = vpop.xlane.xlu0 %566 }
 0x19b   : > { %9170 = vrsqrt.f32 %v783_v37  ;;  %v752_v43 = vmul.f32 0.0078125, %v690_v38  ;;  %v611_v46 = vmul.f32 0.0078125, %v567_v42  ;;  %v10276_v38 = vld [vmem:[%s13466_s1] ss:$0 sm:$0xff] }
 0x19d   : > { %v784_v47 = vadd.f32 1e-05, %v752_v43  ;;  %v10253_v48 = vsub.f32 %v10115_v34, %v611_v46 }
 0x19e   : > { %v569_v19 = vpop.xlane.xlu1 %568  ;;  %v692_v50 = vpop.xlane.xlu0 %691 }
 0x19f   : > { %9172 = vrsqrt.f32 %v784_v47  ;;  %v612_v53 = vmul.f32 0.0078125, %v569_v19  ;;  %v753_v54 = vmul.f32 0.0078125, %v692_v50  ;;  %v675_v11 = vmul.f32 %v10253_v48, %v10253_v48 }
 0x1a1   : > { %v785_v56 = vadd.f32 1e-05, %v753_v54  ;;  %727 = vadd.xlane.f32.xlu0 %v675_v11  ;;  %v10258_v61 = vsub.f32 %v10125_v40, %v612_v53  ;;  %v10288_v11 = vld [vmem:[%s13467_s2] ss:$0 sm:$0xff] }
 0x1a2   : > { %v694_v63 = vpop.xlane.xlu1 %693  ;;  %v571_v0 = vpop.xlane.xlu0 %570 }
 0x1a3   : > { %9174 = vrsqrt.f32 %v785_v56  ;;  %v754_v3 = vmul.f32 0.0078125, %v694_v63  ;;  %v613_v12 = vmul.f32 0.0078125, %v571_v0  ;;  %v676_v34 = vmul.f32 %v10258_v61, %v10258_v61 }
 0x1a5   : > { %v786_v6 = vadd.f32 1e-05, %v754_v3  ;;  %729 = vadd.xlane.f32.xlu1 %v676_v34  ;;  %v10263_v20 = vsub.f32 %v10134_v45, %v613_v12 }
 0x1a6   : > { %v573_v21 = vpop.xlane.xlu1 %572  ;;  %v696_v23 = vpop.xlane.xlu0 %695 }
 0x1a7   : > { %9176 = vrsqrt.f32 %v786_v6  ;;  %v614_v24 = vmul.f32 0.0078125, %v573_v21  ;;  %v755_v26 = vmul.f32 0.0078125, %v696_v23  ;;  %v677_v40 = vmul.f32 %v10263_v20, %v10263_v20 }
 0x1a8   : > { %v9171_v15 = vpop.eup %9170 }
 0x1a9   : > { %v787_v27 = vadd.f32 1e-05, %v755_v26  ;;  %731 = vadd.xlane.f32.xlu0 %v677_v40  ;;  %v10268_v16 = vsub.f32 %v10143_v52, %v614_v24  ;;  %v847_v36 = vmul.f32 %v9171_v15, %v10106_v25 }
 0x1aa   : > { %v698_v32 = vpop.xlane.xlu1 %697  ;;  %v575_v17 = vpop.xlane.xlu0 %574 }
 0x1ab   : > { %9178 = vrsqrt.f32 %v787_v27  ;;  %v756_v45 = vmul.f32 0.0078125, %v698_v32  ;;  %v615_v18 = vmul.f32 0.0078125, %v575_v17  ;;  %v678_v37 = vmul.f32 %v10268_v16, %v10268_v16 }
 0x1ac   : > { %v9173_v42 = vpop.eup %9172  ;;  %v886_v19 = vmul.f32 %v10276_v38, %v847_v36 }
 0x1ad   : > { %v788_v43 = vadd.f32 1e-05, %v756_v45  ;;  %733 = vadd.xlane.f32.xlu1 %v678_v37  ;;  %v10279_v52 = vsub.f32 %v10152_v59, %v615_v18  ;;  %v848_v46 = vmul.f32 %v9173_v42, %v10110_v31 }
 0x1ae   : > { %v577_v25 = vpop.xlane.xlu1 %576  ;;  %v700_v47 = vpop.xlane.xlu0 %699  ;;  %v925_v12 = vadd.f32 %v10288_v11, %v886_v19 }
 0x1af   : > { %9180 = vrsqrt.f32 %v788_v43  ;;  %v616_v50 = vmul.f32 0.0078125, %v577_v25  ;;  %v757_v53 = vmul.f32 0.0078125, %v700_v47  ;;  %v679_v54 = vmul.f32 %v10279_v52, %v10279_v52 }
 0x1b0   : > { %v9175_v56 = vpop.eup %9174  ;;  %v887_v59 = vmul.f32 %v10276_v38, %v848_v46 }
 0x1b1   : > { %v789_v63 = vadd.f32 1e-05, %v757_v53  ;;  %735 = vadd.xlane.f32.xlu0 %v679_v54  ;;  %v10292_v31 = vsub.f32 %v10161_v2, %v616_v50  ;;  %v849_v6 = vmul.f32 %v9175_v56, %v10112_v33 }
 0x1b2   : > { %v702_v0 = vpop.xlane.xlu1 %701  ;;  %v579_v3 = vpop.xlane.xlu0 %578  ;;  %v926_v34 = vadd.f32 %v10288_v11, %v887_v59 }
 0x1b3   : > { %9182 = vrsqrt.f32 %v789_v63  ;;  %v758_v21 = vmul.f32 0.0078125, %v702_v0  ;;  %v617_v23 = vmul.f32 0.0078125, %v579_v3  ;;  %v680_v24 = vmul.f32 %v10292_v31, %v10292_v31 }
 0x1b4   : > { %v9177_v26 = vpop.eup %9176  ;;  %v10299_v40 = vpack.c.bf16 %v926_v34, %v925_v12  ;;  %v888_v17 = vmul.f32 %v10276_v38, %v849_v6 }
 0x1b5   : > { %v790_v15 = vadd.f32 1e-05, %v758_v21  ;;  %737 = vadd.xlane.f32.xlu1 %v680_v24  ;;  %v10302_v2 = vsub.f32 %v10170_v22, %v617_v23  ;;  %v850_v27 = vmul.f32 %v9177_v26, %v10122_v39 }
 0x1b6   : > { %1166 = vmatmul.mubr.bf16.vlgmr.msra.gmra.mxu0 %v10299_v40  ;;  %v581_v32 = vpop.xlane.xlu1 %580  ;;  %v704_v33 = vpop.xlane.xlu0 %703  ;;  %v927_v25 = vadd.f32 %v10288_v11, %v888_v17 }
 0x1b7   : > { %9184 = vrsqrt.f32 %v790_v15  ;;  %v618_v36 = vmul.f32 0.0078125, %v581_v32  ;;  %v759_v45 = vmul.f32 0.0078125, %v704_v33  ;;  %v681_v18 = vmul.f32 %v10302_v2, %v10302_v2  ;;  %1175 = vmatprep.mubr.bf16.mxu0 %v13484_v55 }
 0x1b8   : > { %v9179_v37 = vpop.eup %9178  ;;  %v889_v22 = vmul.f32 %v10276_v38, %v850_v27 }
 0x1b9   : > { %v791_v42 = vadd.f32 1e-05, %v759_v45  ;;  %739 = vadd.xlane.f32.xlu0 %v681_v18  ;;  %v10312_v39 = vsub.f32 %v10179_v30, %v618_v36  ;;  %v851_v19 = vmul.f32 %v9179_v37, %v10131_v44 }
 0x1ba   : > { %v706_v43 = vpop.xlane.xlu1 %705  ;;  %v583_v46 = vpop.xlane.xlu0 %582  ;;  %v928_v47 = vadd.f32 %v10288_v11, %v889_v22 }
 0x1bb   : > { %9186 = vrsqrt.f32 %v791_v42  ;;  %v760_v50 = vmul.f32 0.0078125, %v706_v43  ;;  %v619_v53 = vmul.f32 0.0078125, %v583_v46  ;;  %v682_v54 = vmul.f32 %v10312_v39, %v10312_v39 }
 0x1bc   : > { %v9181_v56 = vpop.eup %9180  ;;  %v10319_v59 = vpack.c.bf16 %v928_v47, %v927_v25  ;;  %v890_v12 = vmul.f32 %v10276_v38, %v851_v19 }
 0x1bd   : > { %v792_v63 = vadd.f32 1e-05, %v760_v50  ;;  %741 = vadd.xlane.f32.xlu1 %v682_v54  ;;  %v10322_v30 = vsub.f32 %v10188_v41, %v619_v53  ;;  %v852_v0 = vmul.f32 %v9181_v56, %v10140_v51 }
 0x1be   : > { %1176 = vmatmul.mubr.bf16.gmra.mxu0 %v10319_v59  ;;  %v585_v3 = vpop.xlane.xlu1 %584  ;;  %v708_v44 = vpop.xlane.xlu0 %707  ;;  %v929_v27 = vadd.f32 %v10288_v11, %v890_v12 }
 0x1bf   : > { %9188 = vrsqrt.f32 %v792_v63  ;;  %v620_v34 = vmul.f32 0.0078125, %v585_v3  ;;  %v761_v6 = vmul.f32 0.0078125, %v708_v44  ;;  %v683_v21 = vmul.f32 %v10322_v30, %v10322_v30  ;;  %1185 = vmatprep.mubr.bf16.mxu0 %v13484_v55 }
 0x1c0   : > { %v9183_v23 = vpop.eup %9182  ;;  %v891_v41 = vmul.f32 %v10276_v38, %v852_v0 }
 0x1c1   : > { %v793_v24 = vadd.f32 1e-05, %v761_v6  ;;  %743 = vadd.xlane.f32.xlu0 %v683_v21  ;;  %v10332_v51 = vsub.f32 %v10197_v10, %v620_v34  ;;  %v853_v33 = vmul.f32 %v9183_v23, %v10149_v58 }
 0x1c2   : > { %v710_v26 = vpop.xlane.xlu1 %709  ;;  %v587_v15 = vpop.xlane.xlu0 %586  ;;  %v930_v32 = vadd.f32 %v10288_v11, %v891_v41 }
 0x1c3   : > { %9190 = vrsqrt.f32 %v793_v24  ;;  %v762_v17 = vmul.f32 0.0078125, %v710_v26  ;;  %v621_v36 = vmul.f32 0.0078125, %v587_v15  ;;  %v684_v45 = vmul.f32 %v10332_v51, %v10332_v51 }
 0x1c4   : > { %v9185_v18 = vpop.eup %9184  ;;  %v10339_v37 = vpack.c.bf16 %v930_v32, %v929_v27  ;;  %v892_v46 = vmul.f32 %v10276_v38, %v853_v33 }
 0x1c5   : > { %v794_v22 = vadd.f32 1e-05, %v762_v17  ;;  %745 = vadd.xlane.f32.xlu1 %v684_v45  ;;  %v10342_v10 = vsub.f32 %v10208_v60, %v621_v36  ;;  %v854_v42 = vmul.f32 %v9185_v18, %v10158_v1 }
 0x1c6   : > { %1186 = vmatmul.mubr.bf16.gmra.mxu0 %v10339_v37  ;;  %v589_v43 = vpop.xlane.xlu1 %588  ;;  %v712_v58 = vpop.xlane.xlu0 %711  ;;  %v931_v0 = vadd.f32 %v10288_v11, %v892_v46 }
 0x1c7   : > { %9192 = vrsqrt.f32 %v794_v22  ;;  %v622_v25 = vmul.f32 0.0078125, %v589_v43  ;;  %v763_v47 = vmul.f32 0.0078125, %v712_v58  ;;  %v685_v19 = vmul.f32 %v10342_v10, %v10342_v10  ;;  %1195 = vmatprep.mubr.bf16.mxu0 %v13484_v55 }
 0x1c8   : > { %v9187_v50 = vpop.eup %9186  ;;  %v893_v60 = vmul.f32 %v10276_v38, %v854_v42 }
 0x1c9   : > { %v795_v53 = vadd.f32 1e-05, %v763_v47  ;;  %747 = vadd.xlane.f32.xlu0 %v685_v19  ;;  %v10352_v1 = vsub.f32 %v10220_v5, %v622_v25  ;;  %v855_v54 = vmul.f32 %v9187_v50, %v10167_v7 }
 0x1ca   : > { %v714_v56 = vpop.xlane.xlu1 %713  ;;  %v716_v63 = vpop.xlane.xlu0 %715  ;;  %v932_v3 = vadd.f32 %v10288_v11, %v893_v60 }
 0x1cb   : > { %9194 = vrsqrt.f32 %v795_v53  ;;  %v764_v44 = vmul.f32 0.0078125, %v714_v56  ;;  %v765_v12 = vmul.f32 0.0078125, %v716_v63  ;;  %v686_v34 = vmul.f32 %v10352_v1, %v10352_v1 }
 0x1cc   : > { %v9189_v6 = vpop.eup %9188  ;;  %v10359_v21 = vpack.c.bf16 %v932_v3, %v931_v0  ;;  %v894_v7 = vmul.f32 %v10276_v38, %v855_v54  ;;  %v10376_v54 = vld [vmem:[#allocation5 + $0xb0] ss:$12 sps:$4 sm:$0xff]  }
 0x1cd   : > { %v796_v23 = vadd.f32 1e-05, %v764_v44  ;;  %749 = vadd.xlane.f32.xlu1 %v686_v34  ;;  %v856_v5 = vmul.f32 %v9189_v6, %v10176_v8  ;;  %v797_v41 = vadd.f32 1e-05, %v765_v12  ;;  %8231 = vmatprep.subr.bf16.mxu1 %v10376_v54 }
 0x1ce   : > { %1196 = vmatmul.mubr.bf16.gmra.mxu0 %v10359_v21  ;;  %v718_v24 = vpop.xlane.xlu1 %717  ;;  %v720_v15 = vpop.xlane.xlu0 %719  ;;  %v933_v17 = vadd.f32 %v10288_v11, %v894_v7 }
 0x1cf   : > { %9196 = vrsqrt.f32 %v796_v23  ;;  %v766_v26 = vmul.f32 0.0078125, %v718_v24  ;;  %1205 = vmatprep.mubr.bf16.mxu0 %v13484_v55  ;;  %v895_v27 = vmul.f32 %v10276_v38, %v856_v5  ;;  %v767_v45 = vmul.f32 0.0078125, %v720_v15 }
 0x1d0   : > { %v9191_v32 = vpop.eup %9190  ;;  %9198 = vrsqrt.f32 %v797_v41 }
 0x1d1   : > { %v798_v33 = vadd.f32 1e-05, %v766_v26  ;;  %v934_v36 = vadd.f32 %v10288_v11, %v895_v27  ;;  %v857_v8 = vmul.f32 %v9191_v32, %v10185_v9  ;;  %v799_v47 = vadd.f32 1e-05, %v767_v45 }
 0x1d2   : > { %v722_v18 = vpop.xlane.xlu1 %721  ;;  %v724_v50 = vpop.xlane.xlu0 %723 }
 0x1d3   : > { %9200 = vrsqrt.f32 %v798_v33  ;;  %v768_v22 = vmul.f32 0.0078125, %v722_v18  ;;  %v10369_v42 = vpack.c.bf16 %v934_v36, %v933_v17  ;;  %v896_v25 = vmul.f32 %v10276_v38, %v857_v8 }
 0x1d4   : > { %v9193_v43 = vpop.eup %9192  ;;  %v769_v0 = vmul.f32 0.0078125, %v724_v50 }
 0x1d5   : > { %v800_v58 = vadd.f32 1e-05, %v768_v22  ;;  %v858_v46 = vmul.f32 %v9193_v43, %v10194_v49  ;;  %v935_v56 = vadd.f32 %v10288_v11, %v896_v25 }
 0x1d6   : > { %1206 = vmatmul.mubr.bf16.gmra.mxu0 %v10369_v42  ;;  %v726_v19 = vpop.xlane.xlu1 %725  ;;  %v801_v23 = vadd.f32 1e-05, %v769_v0 }
 0x1d7   : > { %1215 = vmatprep.mubr.bf16.mxu0 %v13484_v55  ;;  %v897_v9 = vmul.f32 %v10276_v38, %v858_v46  ;;  %9202 = vrsqrt.f32 %v800_v58  ;;  %v770_v53 = vmul.f32 0.0078125, %v726_v19 }
 0x1d8   : > { %v9195_v60 = vpop.eup %9194  ;;  %9204 = vrsqrt.f32 %v799_v47 }
 0x1d9   : > { %v936_v49 = vadd.f32 %v10288_v11, %v897_v9  ;;  %v859_v63 = vmul.f32 %v9195_v60, %v10205_v57  ;;  %v802_v12 = vadd.f32 1e-05, %v770_v53 }
 0x1db   : > { %v10382_v3 = vpack.c.bf16 %v936_v49, %v935_v56  ;;  %v898_v6 = vmul.f32 %v10276_v38, %v859_v63  ;;  %9206 = vrsqrt.f32 %v802_v12 }
 0x1dc   : > { %v9197_v44 = vpop.eup %9196  ;;  %9208 = vrsqrt.f32 %v801_v23 }
 0x1dd   : > { %v860_v34 = vmul.f32 %v9197_v44, %v10211_v62  ;;  %v9199_v5 = vpop.eup %9198  ;;  %v937_v41 = vadd.f32 %v10288_v11, %v898_v6 }
 0x1de   : > { %1216 = vmatmul.mubr.bf16.gmra.mxu0 %v10382_v3  ;;  %v861_v62 = vmul.f32 %v9199_v5, %v10217_v4 }
 0x1df   : > { %1225 = vmatprep.mubr.bf16.mxu0 %v13484_v55  ;;  %v899_v57 = vmul.f32 %v10276_v38, %v860_v34 }
 0x1e0   : > { %v9201_v7 = vpop.eup %9200  ;;  %v900_v33 = vmul.f32 %v10276_v38, %v861_v62 }
 0x1e1   : > { %v938_v24 = vadd.f32 %v10288_v11, %v899_v57  ;;  %v862_v26 = vmul.f32 %v9201_v7, %v10225_v13 }
 0x1e2   : > { %v939_v13 = vadd.f32 %v10288_v11, %v900_v33 }
 0x1e3   : > { %v10393_v15 = vpack.c.bf16 %v938_v24, %v937_v41  ;;  %v901_v27 = vmul.f32 %v10276_v38, %v862_v26 }
 0x1e4   : > { %v9203_v32 = vpop.eup %9202 }
 0x1e5   : > { %v9205_v17 = vpop.eup %9204  ;;  %v940_v36 = vadd.f32 %v10288_v11, %v901_v27  ;;  %v864_v8 = vmul.f32 %v9203_v32, %v10238_v28 }
 0x1e6   : > { %1226 = vmatmul.mubr.bf16.gmra.mxu0 %v10393_v15  ;;  %v863_v4 = vmul.f32 %v9205_v17, %v10231_v14 }
 0x1e7   : > { %1235 = vmatprep.mubr.bf16.mxu0 %v13484_v55  ;;  %v10403_v45 = vpack.c.bf16 %v940_v36, %v939_v13  ;;  %v903_v18 = vmul.f32 %v10276_v38, %v864_v8 }
 0x1e8   : > { %v9207_v22 = vpop.eup %9206  ;;  %v902_v43 = vmul.f32 %v10276_v38, %v863_v4 }
 0x1e9   : > { %v9209_v58 = vpop.eup %9208  ;;  %v942_v46 = vadd.f32 %v10288_v11, %v903_v18  ;;  %v866_v28 = vmul.f32 %v9207_v22, %v10248_v35 }
 0x1ea   : > { %v941_v25 = vadd.f32 %v10288_v11, %v902_v43  ;;  %v865_v14 = vmul.f32 %v9209_v58, %v10241_v29 }
 0x1eb   : > { %v905_v19 = vmul.f32 %v10276_v38, %v866_v28 }
 0x1ec   : > { %v10413_v47 = vpack.c.bf16 %v942_v46, %v941_v25  ;;  %v904_v50 = vmul.f32 %v10276_v38, %v865_v14 }
 0x1ed   : > { %v944_v9 = vadd.f32 %v10288_v11, %v905_v19 }
 0x1ee   : > { %1236 = vmatmul.mubr.bf16.gmra.mxu0 %v10403_v45  ;;  %v943_v60 = vadd.f32 %v10288_v11, %v904_v50 }
 0x1ef   : > { %1245 = vmatprep.mubr.bf16.mxu0 %v13484_v55 }
 0x1f0   : > { %v10421_v53 = vpack.c.bf16 %v944_v9, %v943_v60 }
 0x1f6   : > { %1246 = vmatmul.mubr.bf16.gmra.mxu0 %v10413_v47 }
 0x1f7   : > { %1255 = vmatprep.mubr.bf16.mxu0 %v13484_v55 }
 0x1fe   : > { %1256 = vmatmul.mubr.bf16.gmra.mxu0 %v10421_v53 }
 0x1ff   : > { %1265 = vmatprep.mubr.bf16.mxu0 %v13484_v55 }
 0x22a   : > { %v728_v29 = vpop.xlane.xlu0 %727 }
 0x22b   : > { %v771_v35 = vmul.f32 0.0078125, %v728_v29 }
 0x22d   : > { %v803_v56 = vadd.f32 1e-05, %v771_v35 }
 0x22e   : > { %v730_v49 = vpop.xlane.xlu1 %729 }
 0x22f   : > { %9210 = vrsqrt.f32 %v803_v56  ;;  %v772_v63 = vmul.f32 0.0078125, %v730_v49 }
 0x231   : > { %v804_v0 = vadd.f32 1e-05, %v772_v63 }
 0x232   : > { %v732_v44 = vpop.xlane.xlu0 %731 }
 0x233   : > { %9212 = vrsqrt.f32 %v804_v0  ;;  %v773_v12 = vmul.f32 0.0078125, %v732_v44 }
 0x235   : > { %v805_v34 = vadd.f32 1e-05, %v773_v12 }
 0x236   : > { %v734_v6 = vpop.xlane.xlu1 %733 }
 0x237   : > { %9214 = vrsqrt.f32 %v805_v34  ;;  %v774_v23 = vmul.f32 0.0078125, %v734_v6 }
 0x239   : > { %v806_v5 = vadd.f32 1e-05, %v774_v23 }
 0x23a   : > { %v736_v57 = vpop.xlane.xlu0 %735 }
 0x23b   : > { %9216 = vrsqrt.f32 %v806_v5  ;;  %v775_v7 = vmul.f32 0.0078125, %v736_v57 }
 0x23c   : > { %v9211_v41 = vpop.eup %9210 }
 0x23d   : > { %v807_v24 = vadd.f32 1e-05, %v775_v7  ;;  %v867_v26 = vmul.f32 %v9211_v41, %v10253_v48 }
 0x23e   : > { %v738_v62 = vpop.xlane.xlu1 %737 }
 0x23f   : > { %9218 = vrsqrt.f32 %v807_v24  ;;  %v776_v27 = vmul.f32 0.0078125, %v738_v62  ;;  %v906_v36 = vmul.f32 %v10276_v38, %v867_v26 }
 0x240   : > { %v9213_v32 = vpop.eup %9212 }
 0x241   : > { %v808_v33 = vadd.f32 1e-05, %v776_v27  ;;  %v868_v17 = vmul.f32 %v9213_v32, %v10258_v61  ;;  %v945_v43 = vadd.f32 %v10288_v11, %v906_v36 }
 0x242   : > { %v740_v8 = vpop.xlane.xlu0 %739 }
 0x243   : > { %9220 = vrsqrt.f32 %v808_v33  ;;  %v777_v13 = vmul.f32 0.0078125, %v740_v8  ;;  %v907_v4 = vmul.f32 %v10276_v38, %v868_v17 }
 0x244   : > { %v9215_v18 = vpop.eup %9214 }
 0x245   : > { %v809_v22 = vadd.f32 1e-05, %v777_v13  ;;  %v946_v48 = vadd.f32 %v10288_v11, %v907_v4  ;;  %v869_v58 = vmul.f32 %v9215_v18, %v10263_v20  ;;  %v9076_v4 = vld [vmem:[#allocation5 + $0x80] ss:$12 sps:$4 sm:$0xff]  }
 0x246   : > { %v742_v46 = vpop.xlane.xlu1 %741 }
 0x247   : > { %9222 = vrsqrt.f32 %v809_v22  ;;  %v778_v28 = vmul.f32 0.0078125, %v742_v46  ;;  %v10432_v25 = vpack.c.bf16 %v946_v48, %v945_v43  ;;  %v908_v50 = vmul.f32 %v10276_v38, %v869_v58  ;;  %v9077_v58 = vld [vmem:[#allocation5 + $0x68] ss:$12 sps:$4 sm:$0xff]  }
 0x248   : > { %v9217_v61 = vpop.eup %9216 }
 0x249   : > { %v810_v14 = vadd.f32 1e-05, %v778_v28  ;;  %1266 = vmatmul.mubr.bf16.gmra.mxu0 %v10432_v25  ;;  %v870_v19 = vmul.f32 %v9217_v61, %v10268_v16  ;;  %v947_v56 = vadd.f32 %v10288_v11, %v908_v50 }
 0x24a   : > { %v744_v9 = vpop.xlane.xlu0 %743  ;;  %1275 = vmatprep.mubr.bf16.mxu0 %v13484_v55 }
 0x24b   : > { %9224 = vrsqrt.f32 %v810_v14  ;;  %v779_v60 = vmul.f32 0.0078125, %v744_v9  ;;  %v909_v20 = vmul.f32 %v10276_v38, %v870_v19  ;;  %v9078_v14 = vld [vmem:[#allocation5 + $0x50] ss:$12 sps:$4 sm:$0xff]  }
 0x24c   : > { %v9219_v29 = vpop.eup %9218 }
 0x24d   : > { %v811_v35 = vadd.f32 1e-05, %v779_v60  ;;  %v948_v49 = vadd.f32 %v10288_v11, %v909_v20  ;;  %v871_v63 = vmul.f32 %v9219_v29, %v10279_v52 }
 0x24e   : > { %v746_v0 = vpop.xlane.xlu1 %745 }
 0x24f   : > { %9226 = vrsqrt.f32 %v811_v35  ;;  %v780_v16 = vmul.f32 0.0078125, %v746_v0  ;;  %v10442_v44 = vpack.c.bf16 %v948_v49, %v947_v56  ;;  %v910_v23 = vmul.f32 %v10276_v38, %v871_v63  ;;  %v9080_v49 = vld [vmem:[#allocation5 + $0x20] ss:$12 sps:$4 sm:$0xff]  }
 0x250   : > { %v9221_v12 = vpop.eup %9220 }
 0x251   : > { %v812_v34 = vadd.f32 1e-05, %v780_v16  ;;  %1276 = vmatmul.mubr.bf16.gmra.mxu0 %v10442_v44  ;;  %v872_v6 = vmul.f32 %v9221_v12, %v10292_v31  ;;  %v949_v24 = vadd.f32 %v10288_v11, %v910_v23  ;;  %v9075_v31 = vld [vmem:[#allocation5 + $0x98] ss:$12 sps:$4 sm:$0xff]   ;;  %v9081_v16 = vld [vmem:[#allocation5 + $0x8] ss:$12 sps:$4 sm:$0xff]  }
 0x252   : > { %v748_v5 = vpop.xlane.xlu0 %747 }
 0x253   : > { %9228 = vrsqrt.f32 %v812_v34  ;;  %v781_v57 = vmul.f32 0.0078125, %v748_v5  ;;  %v911_v7 = vmul.f32 %v10276_v38, %v872_v6 }
 0x254   : > { %v9223_v41 = vpop.eup %9222 }
 0x255   : > { %v813_v52 = vadd.f32 1e-05, %v781_v57  ;;  %v950_v26 = vadd.f32 %v10288_v11, %v911_v7  ;;  %v873_v62 = vmul.f32 %v9223_v41, %v10302_v2 }
 0x256   : > { %v750_v27 = vpop.xlane.xlu1 %749 }
 0x257   : > { %9230 = vrsqrt.f32 %v813_v52  ;;  %v782_v32 = vmul.f32 0.0078125, %v750_v27  ;;  %v10451_v33 = vpack.c.bf16 %v950_v26, %v949_v24  ;;  %v912_v13 = vmul.f32 %v10276_v38, %v873_v62 }
 0x258   : > { %v9225_v17 = vpop.eup %9224 }
 0x259   : > { %v814_v36 = vadd.f32 1e-05, %v782_v32  ;;  %1286 = vmatmul.mubr.bf16.vlgmr.msra.gmra.mxu1 %v10451_v33  ;;  %v874_v8 = vmul.f32 %v9225_v17, %v10312_v39  ;;  %v951_v22 = vadd.f32 %v10288_v11, %v912_v13 }
 0x25a   : > { %8232 = vmatpush3.bf16.msra.mxu1 %v10376_v54  ;;  %1295 = vmatprep.mubr.bf16.mxu1 %v13484_v55 }
 0x25b   : > { %9232 = vrsqrt.f32 %v814_v36  ;;  %8233 = vmatprep.subr.bf16.mxu1 %v9075_v31  ;;  %v913_v2 = vmul.f32 %v10276_v38, %v874_v8 }
 0x25c   : > { %v9227_v18 = vpop.eup %9226 }
 0x25d   : > { %v952_v43 = vadd.f32 %v10288_v11, %v913_v2  ;;  %v875_v48 = vmul.f32 %v9227_v18, %v10322_v30 }
 0x25e   : > { %8234 = vmatpush3.bf16.msra.mxu1 %v9075_v31 }
 0x25f   : > { %v10462_v39 = vpack.c.bf16 %v952_v43, %v951_v22  ;;  %8235 = vmatprep.subr.bf16.mxu1 %v9076_v4  ;;  %v914_v28 = vmul.f32 %v10276_v38, %v875_v48 }
 0x260   : > { %v9229_v54 = vpop.eup %9228 }
 0x261   : > { %1296 = vmatmul.mubr.bf16.gmra.mxu1 %v10462_v39  ;;  %v876_v46 = vmul.f32 %v9229_v54, %v10332_v51  ;;  %v953_v19 = vadd.f32 %v10288_v11, %v914_v28  ;;  %v9079_v51 = vld [vmem:[#allocation5 + $0x38] ss:$12 sps:$4 sm:$0xff]  }
 0x262   : > { %8236 = vmatpush3.bf16.msra.mxu1 %v9076_v4  ;;  %1305 = vmatprep.mubr.bf16.mxu1 %v13484_v55 }
 0x263   : > { %8237 = vmatprep.subr.bf16.mxu1 %v9077_v58  ;;  %v915_v61 = vmul.f32 %v10276_v38, %v876_v46 }
 0x264   : > { %v9231_v30 = vpop.eup %9230 }
 0x265   : > { %v954_v50 = vadd.f32 %v10288_v11, %v915_v61  ;;  %v877_v9 = vmul.f32 %v9231_v30, %v10342_v10 }
 0x266   : > { %8238 = vmatpush3.bf16.msra.mxu1 %v9077_v58 }
 0x267   : > { %v10472_v60 = vpack.c.bf16 %v954_v50, %v953_v19  ;;  %8239 = vmatprep.subr.bf16.mxu1 %v9078_v14  ;;  %v916_v35 = vmul.f32 %v10276_v38, %v877_v9 }
 0x268   : > { %v9233_v20 = vpop.eup %9232 }
 0x269   : > { %1306 = vmatmul.mubr.bf16.gmra.mxu1 %v10472_v60  ;;  %v878_v29 = vmul.f32 %v9233_v20, %v10352_v1  ;;  %v955_v10 = vadd.f32 %v10288_v11, %v916_v35 }
 0x26a   : > { %8240 = vmatpush3.bf16.msra.mxu1 %v9078_v14  ;;  %1315 = vmatprep.mubr.bf16.mxu1 %v13484_v55 }
 0x26b   : > { %8241 = vmatprep.subr.bf16.mxu1 %v9079_v51  ;;  %v917_v56 = vmul.f32 %v10276_v38, %v878_v29 }
 0x26d   : > { %v956_v63 = vadd.f32 %v10288_v11, %v917_v56 }
 0x26e   : > { %8242 = vmatpush3.bf16.msra.mxu1 %v9079_v51 }
 0x26f   : > { %v10481_v0 = vpack.c.bf16 %v956_v63, %v955_v10  ;;  %8243 = vmatprep.subr.bf16.mxu1 %v9080_v49 }
 0x271   : > { %1316 = vmatmul.mubr.bf16.gmra.mxu1 %v10481_v0 }
 0x272   : > { %8244 = vmatpush3.bf16.msra.mxu1 %v9080_v49  ;;  %8247 = vmatprep.mubr.bf16.mxu1 %v10299_v40 }
 0x273   : > { %8245 = vmatprep.subr.bf16.mxu1 %v9081_v16 }
 0x276   : > { %v10485_v1 = vpop.f32.mrf.mxu0  ;;  %8246 = vmatpush3.bf16.msra.mxu1 %v9081_v16 }
 0x278   : > { %v1169_v38 = vpop.f32.mrf.mxu0 }
 0x279   : > { %8248 = vmatmul.mubr.bf16.vlgmr.msra.gmra.mxu1 %v10319_v59 }
 0x27a   : > { %v10488_v12 = vpop.f32.mrf.mxu0  ;;  %8251 = vmatprep.mubr.bf16.mxu1 %v10339_v37 }
 0x27b   : > { %v1615_v14 = vpack.c.bf16 %v10488_v12, %v10485_v1 }
 0x27c   : > { %v1173_v11 = vpop.f32.mrf.mxu0 }
 0x27d   : > { %v8745_v24 = vpack.i.bf16 %v1173_v11, %v1169_v38 }
 0x27e   : > { %v10491_v34 = vpop.f32.mrf.mxu0 }
 0x280   : > { %v1179_v6 = vpop.f32.mrf.mxu0 }
 0x281   : > { %8252 = vmatmul.mubr.bf16.gmra.mxu1 %v10359_v21 }
 0x282   : > { %v10494_v23 = vpop.f32.mrf.mxu0  ;;  %8255 = vmatprep.mubr.bf16.mxu1 %v10369_v42 }
 0x283   : > { %v8755_v31 = vpack.i.bf16 %v10494_v23, %v10491_v34  ;;  %v1616_v29 = vpack.c.bf16 %v10494_v23, %v10491_v34 }
 0x284   : > { %v1183_v40 = vpop.f32.mrf.mxu0 }
 0x285   : > { %v8740_v52 = vpack.i.bf16 %v1183_v40, %v1179_v6  ;;  %v1776_v13 = vpack.c.bf16 %v1183_v40, %v1179_v6 }
 0x286   : > { %v10497_v5 = vpop.f32.mrf.mxu0 }
 0x287   : > { %v1984_v48 = vsel %vm1967_vm0, %v1776_v13, 0 }
 0x288   : > { %v1189_v57 = vpop.f32.mrf.mxu0 }
 0x289   : > { %8256 = vmatmul.mubr.bf16.gmra.mxu1 %v10382_v3 }
 0x28a   : > { %v10500_v59 = vpop.f32.mrf.mxu0  ;;  %8259 = vmatprep.mubr.bf16.mxu1 %v10393_v15 }
 0x28b   : > { %v8770_v49 = vpack.i.bf16 %v10500_v59, %v10497_v5  ;;  %v1617_v10 = vpack.c.bf16 %v10500_v59, %v10497_v5 }
 0x28c   : > { %v1193_v37 = vpop.f32.mrf.mxu0 }
 0x28d   : > { %v8735_v7 = vpack.i.bf16 %v1193_v37, %v1189_v57 }
 0x28e   : > { %v10503_v41 = vpop.f32.mrf.mxu0 }
 0x28f   : > { %8736 = vrot.lane.b32.xlu1 %v8735_v7, %s9806_s14 }
 0x290   : > { %v1199_v21 = vpop.f32.mrf.mxu0 }
 0x291   : > { %8260 = vmatmul.mubr.bf16.gmra.mxu1 %v10403_v45  ;;  %v1777_v45 = vpack.c.bf16 %v1193_v37, %v1189_v57 }
 0x292   : > { %v10507_v42 = vpop.f32.mrf.mxu0  ;;  %8263 = vmatprep.mubr.bf16.mxu1 %v10413_v47  ;;  %v8750_v47 = vpack.i.bf16 %v10488_v12, %v10485_v1 }
 0x293   : > { %8741 = vrot.lane.b32.xlu1 %v8740_v52, %s9806_s14  ;;  %v1987_v4 = vsel %vm1967_vm0, %v1777_v45, 0 }
 0x294   : > { %v1203_v3 = vpop.f32.mrf.mxu0 }
 0x295   : > { %v8730_v15 = vpack.i.bf16 %v1203_v3, %v1199_v21  ;;  %v1778_v26 = vpack.c.bf16 %v1203_v3, %v1199_v21 }
 0x296   : > { %v10511_v62 = vpop.f32.mrf.mxu0 }
 0x297   : > { %8746 = vrot.lane.b32.xlu1 %v8745_v24, %s9806_s14  ;;  %8731 = vrot.lane.b32.xlu0 %v8730_v15, %s9806_s14  ;;  %v1990_v27 = vsel %vm1967_vm0, %v1778_v26, 0 }
 0x298   : > { %8599 = vmatprep.subr.msk.bf16.mxu1 %vm1967_vm0, %v1778_v26  ;;  %v10517_v32 = vpop.f32.mrf.mxu0 }
 0x299   : > { %8280 = vmatpush3.bf16.xpose.msra.mxu1 %v1990_v27 }
 0x29a   : > { %8600 = vmatprep.subr.msk.bf16.mxu1 %vm1967_vm0, %v1777_v45  ;;  %v10524_v17 = vpop.f32.mrf.mxu0  ;;  %8264 = vmatmul.mubr.bf16.gmra.mxu1 %v10421_v53 }
 0x29b   : > { %8756 = vrot.lane.b32.xlu1 %v8755_v31, %s9806_s14  ;;  %8751 = vrot.lane.b32.xlu0 %v8750_v47, %s9806_s14  ;;  %v1619_v34 = vpack.c.bf16 %v10524_v17, %v10511_v62  ;;  %v8790_v6 = vpack.i.bf16 %v10524_v17, %v10511_v62 }
 0x29c   : > { %8267 = vmatprep.mubr.bf16.mxu1 %v10432_v25  ;;  %v10530_v36 = vpop.f32.mrf.mxu0  ;;  %v1775_v25 = vpack.c.bf16 %v1173_v11, %v1169_v38  ;;  %v1618_v11 = vpack.c.bf16 %v10507_v42, %v10503_v41 }
 0x29d   : > { %v8785_v9 = vpack.i.bf16 %v10530_v36, %v10517_v32  ;;  %v1779_v5 = vpack.c.bf16 %v10530_v36, %v10517_v32 }
 0x29e   : > { %v10532_v8 = vpop.f32.mrf.mxu0  ;;  %v1981_v61 = vsel %vm1967_vm0, %v1775_v25, 0 }
 0x29f   : > { %v2070_v59 = vsel %vm1967_vm0, %v1779_v5, 0 }
 0x2a0   : > { %v1219_v2 = vpop.f32.mrf.mxu0 }
 0x2a1   : > { %8282 = vmatpush3.bf16.xpose.msra.mxu1 %v1987_v4 }
 0x2a2   : > { %8601 = vmatprep.subr.msk.bf16.mxu1 %vm1967_vm0, %v1776_v13  ;;  %v10536_v18 = vpop.f32.mrf.mxu0  ;;  %8268 = vmatmul.mubr.bf16.gmra.mxu1 %v10442_v44 }
 0x2a3   : > { %8271 = vmatprep.mubr.bf16.mxu1 %v10451_v33  ;;  %v8795_v56 = vpack.i.bf16 %v10536_v18, %v10532_v8  ;;  %v1620_v37 = vpack.c.bf16 %v10536_v18, %v10532_v8 }
 0x2a4   : > { %v1223_v53 = vpop.f32.mrf.mxu0 }
 0x2a5   : > { %v8780_v12 = vpack.i.bf16 %v1223_v53, %v1219_v2  ;;  %v1780_v23 = vpack.c.bf16 %v1223_v53, %v1219_v2 }
 0x2a6   : > { %v10540_v22 = vpop.f32.mrf.mxu0 }
 0x2a7   : > { %v2073_v57 = vsel %vm1967_vm0, %v1780_v23, 0 }
 0x2a8   : > { %v1229_v43 = vpop.f32.mrf.mxu0 }
 0x2a9   : > { %8284 = vmatpush3.bf16.xpose.msra.mxu1 %v1984_v48 }
 0x2aa   : > { %8602 = vmatprep.subr.msk.bf16.mxu1 %vm1967_vm0, %v1775_v25  ;;  %v10544_v58 = vpop.f32.mrf.mxu0  ;;  %8272 = vmatmul.mubr.bf16.gmra.mxu1 %v10462_v39  ;;  %v8775_v39 = vpack.i.bf16 %v10507_v42, %v10503_v41 }
 0x2ab   : > { %v8810_v54 = vpack.i.bf16 %v10544_v58, %v10540_v22  ;;  %8275 = vmatprep.mubr.bf16.mxu1 %v10472_v60  ;;  %v1621_v7 = vpack.c.bf16 %v10544_v58, %v10540_v22 }
 0x2ac   : > { %v1233_v44 = vpop.f32.mrf.mxu0 }
 0x2ad   : > { %v8765_v33 = vpack.i.bf16 %v1233_v44, %v1229_v43  ;;  %v1781_v16 = vpack.c.bf16 %v1233_v44, %v1229_v43 }
 0x2ae   : > { %v10550_v46 = vpop.f32.mrf.mxu0 }
 0x2af   : > { %8766 = vrot.lane.b32.xlu1 %v8765_v33, %s9806_s14  ;;  %v2076_v40 = vsel %vm1967_vm0, %v1781_v16, 0 }
 0x2b0   : > { %v1239_v28 = vpop.f32.mrf.mxu0 }
 0x2b1   : > { %8286 = vmatpush3.bf16.xpose.msra.mxu1 %v1981_v61 }
 0x2b2   : > { %v10558_v30 = vpop.f32.mrf.mxu0  ;;  %8276 = vmatmul.mubr.bf16.gmra.mxu1 %v10481_v0 }
 0x2b3   : > { %v8815_v19 = vpack.i.bf16 %v10558_v30, %v10550_v46  ;;  %8776 = vrot.lane.b32.xlu1 %v8775_v39, %s9806_s14  ;;  %8287 = vmatprep.mubr.msk.bf16.mxu1 %vm1967_vm0, %v1615_v14  ;;  %v1622_v41 = vpack.c.bf16 %v10558_v30, %v10550_v46 }
 0x2b4   : > { %v1243_v50 = vpop.f32.mrf.mxu0 }
 0x2b5   : > { %v8760_v60 = vpack.i.bf16 %v1243_v50, %v1239_v28  ;;  %v1782_v51 = vpack.c.bf16 %v1243_v50, %v1239_v28 }
 0x2b6   : > { %v10567_v20 = vpop.f32.mrf.mxu0 }
 0x2b7   : > { %8786 = vrot.lane.b32.xlu1 %v8785_v9, %s9806_s14  ;;  %8761 = vrot.lane.b32.xlu0 %v8760_v60, %s9806_s14  ;;  %v2079_v0 = vsel %vm1967_vm0, %v1782_v51, 0 }
 0x2b8   : > { %8603 = vmatprep.subr.msk.bf16.mxu1 %vm1967_vm0, %v1782_v51  ;;  %v10574_v35 = vpop.f32.mrf.mxu0 }
 0x2ba   : > { %v10582_v63 = vpop.f32.mrf.mxu0  ;;  %8288 = vmatmul.mubr.msk.bf16.vlgmr.msra.gmra.mxu1 %vm1967_vm0, %v1616_v29 }
 0x2bb   : > { %v8830_v1 = vpack.i.bf16 %v10582_v63, %v10567_v20  ;;  %v1623_v38 = vpack.c.bf16 %v10582_v63, %v10567_v20  ;;  %8296 = vmatpush3.bf16.xpose.msra.mxu1 %v2079_v0  ;;  %8796 = vrot.lane.b32.xlu1 %v8795_v56, %s9806_s14 }
 0x2bc   : > { %8771 = vrot.lane.b32.xlu0 %v8770_v49, %s9806_s14  ;;  %8291 = vmatprep.mubr.msk.bf16.mxu1 %vm1967_vm0, %v1617_v10  ;;  %v1253_v21 = vpop.f32.mrf.mxu0 }
 0x2bd   : > { %8604 = vmatprep.subr.msk.bf16.mxu1 %vm1967_vm0, %v1781_v16  ;;  %8319 = vmatprep.mubr.msk.bf16.mxu0 %vm1967_vm0, %v1623_v38  ;;  %v8825_v36 = vpack.i.bf16 %v1253_v21, %v10574_v35 }
 0x2be   : > { %v10621_v52 = vpop.f32.mrf.mxu0 }
 0x2c0   : > { %8781 = vrot.lane.b32.xlu0 %v8780_v12, %s9806_s14  ;;  %v1259_v42 = vpop.f32.mrf.mxu0 }
 0x2c2   : > { %8292 = vmatmul.mubr.msk.bf16.gmra.mxu1 %vm1967_vm0, %v1618_v11  ;;  %v10623_v3 = vpop.f32.mrf.mxu0 }
 0x2c3   : > { %8298 = vmatpush3.bf16.xpose.msra.mxu1 %v2076_v40  ;;  %8303 = vmatprep.mubr.msk.bf16.mxu1 %vm1967_vm0, %v1619_v34  ;;  %v8835_v25 = vpack.i.bf16 %v10623_v3, %v10621_v52 }
 0x2c4   : > { %8791 = vrot.lane.b32.xlu0 %v8790_v6, %s9806_s14  ;;  %8605 = vmatprep.subr.msk.bf16.mxu1 %vm1967_vm0, %v1780_v23  ;;  %v1263_v24 = vpop.f32.mrf.mxu0  ;;  %v1624_v23 = vpack.c.bf16 %v10623_v3, %v10621_v52 }
 0x2c5   : > { %v8820_v33 = vpack.i.bf16 %v1263_v24, %v1259_v42  ;;  %v1784_v61 = vpack.c.bf16 %v1263_v24, %v1259_v42 }
 0x2cb   : > { %8300 = vmatpush3.bf16.xpose.msra.mxu1 %v2073_v57 }
 0x2cc   : > { %8606 = vmatprep.subr.msk.bf16.mxu1 %vm1967_vm0, %v1779_v5 }
 0x2d3   : > { %8302 = vmatpush3.bf16.xpose.msra.mxu1 %v2070_v59 }
 0x2da   : > { %8304 = vmatmul.mubr.msk.bf16.vlgmr.msra.gmra.mxu1 %vm1967_vm0, %v1620_v37 }
 0x2db   : > { %8307 = vmatprep.mubr.msk.bf16.mxu1 %vm1967_vm0, %v1621_v7 }
 0x2e2   : > { %8308 = vmatmul.mubr.msk.bf16.gmra.mxu1 %vm1967_vm0, %v1622_v41 }
 0x301   : > { %v8737_v63 = vpop.permute.xlu1 %8736 }
 0x302   : > { %v8738_v12 = vunpack.i.l.bf16 %v8737_v63 }
 0x305   : > { %v8742_v42 = vpop.permute.xlu1 %8741 }
 0x309   : > { %v10625_v15 = vpop.f32.mrf.mxu0  ;;  %v8732_v50 = vpop.permute.xlu0 %8731 }
 0x30a   : > { %v8734_v60 = vunpack.i.h.bf16 %v8732_v50  ;;  %v8733_v51 = vunpack.i.l.bf16 %v8732_v50 }
 0x30b   : > { %v1269_v26 = vpop.f32.mrf.mxu0 }
 0x30c   : > { %v1794_v49 = vpack.c.bf16 %v8734_v60, %v8733_v51 }
 0x30d   : > { %v10627_v62 = vpop.f32.mrf.mxu0  ;;  %v8752_v59 = vpop.permute.xlu0 %8751 }
 0x30e   : > { %v1625_v5 = vpack.c.bf16 %v10627_v62, %v10625_v15  ;;  %v2346_v52 = vsel %vm1967_vm0, %v1794_v49, 0  ;;  %v8850_v3 = vpack.i.bf16 %v10627_v62, %v10625_v15  ;;  %v8744_v15 = vunpack.i.h.bf16 %v8742_v42 }
 0x30f   : > { %v1273_v27 = vpop.f32.mrf.mxu0  ;;  %v8743_v62 = vunpack.i.l.bf16 %v8742_v42 }
 0x310   : > { %v8805_v45 = vpack.i.bf16 %v1273_v27, %v1269_v26  ;;  %v1785_v53 = vpack.c.bf16 %v1273_v27, %v1269_v26  ;;  %v8754_v26 = vunpack.i.h.bf16 %v8752_v59  ;;  %v8753_v27 = vunpack.i.l.bf16 %v8752_v59 }
 0x311   : > { %v10629_v32 = vpop.f32.mrf.mxu0 }
 0x312   : > { %8806 = vrot.lane.b32.xlu1 %v8805_v45, %s9806_s14  ;;  %v2165_v14 = vsel %vm1967_vm0, %v1785_v53, 0 }
 0x313   : > { %v1279_v47 = vpop.f32.mrf.mxu0 }
 0x315   : > { %v10632_v31 = vpop.f32.mrf.mxu0 }
 0x316   : > { %8816 = vrot.lane.b32.xlu1 %v8815_v19, %s9806_s14  ;;  %v2162_v19 = vsel %vm1967_vm0, %v1784_v61, 0  ;;  %v8855_v0 = vpack.i.bf16 %v10632_v31, %v10629_v32 }
 0x317   : > { %v1283_v17 = vpop.f32.mrf.mxu0 }
 0x318   : > { %v8800_v8 = vpack.i.bf16 %v1283_v17, %v1279_v47  ;;  %v1786_v13 = vpack.c.bf16 %v1283_v17, %v1279_v47 }
 0x319   : > { %v10639_v2 = vpop.f32.mrf.mxu1 }
 0x31a   : > { %8826 = vrot.lane.b32.xlu1 %v8825_v36, %s9806_s14  ;;  %8801 = vrot.lane.b32.xlu0 %v8800_v8, %s9806_s14  ;;  %v2168_v18 = vsel %vm1967_vm0, %v1786_v13, 0  ;;  %v1626_v36 = vpack.c.bf16 %v10632_v31, %v10629_v32  ;;  %v8747_v31 = vpop.permute.xlu1 %8746 }
 0x31b   : > { %v10643_v4 = vpop.f32.mrf.mxu1  ;;  %8607 = vmatprep.subr.msk.bf16.mxu0 %vm1967_vm0, %v1786_v13 }
 0x31c   : > { %8312 = vmatpush3.bf16.xpose.msra.mxu0 %v2168_v18  ;;  %v1631_v18 = vpack.c.bf16 %v8754_v26, %v8753_v27 }
 0x31d   : > { %v10649_v43 = vpop.f32.mrf.mxu1  ;;  %8608 = vmatprep.subr.msk.bf16.mxu0 %vm1967_vm0, %v1785_v53 }
 0x31e   : > { %v1627_v48 = vpack.c.bf16 %v10649_v43, %v10639_v2  ;;  %8836 = vrot.lane.b32.xlu1 %v8835_v25, %s9806_s14  ;;  %8811 = vrot.lane.b32.xlu0 %v8810_v54, %s9806_s14  ;;  %v1783_v54 = vpack.c.bf16 %v1253_v21, %v10574_v35 }
 0x31f   : > { %v10659_v44 = vpop.f32.mrf.mxu1 }
 0x320   : > { %8335 = vmatprep.mubr.msk.bf16.mxu1 %vm1967_vm0, %v1627_v48  ;;  %v2159_v35 = vsel %vm1967_vm0, %v1783_v54, 0  ;;  %v8865_v11 = vpack.i.bf16 %v10659_v44, %v10643_v4  ;;  %v1787_v60 = vpack.c.bf16 %v10659_v44, %v10643_v4 }
 0x321   : > { %v10662_v46 = vpop.f32.mrf.mxu1 }
 0x322   : > { %8821 = vrot.lane.b32.xlu0 %v8820_v33, %s9806_s14  ;;  %v1792_v33 = vpack.c.bf16 %v8744_v15, %v8743_v62 }
 0x323   : > { %v10665_v28 = vpop.f32.mrf.mxu1 }
 0x324   : > { %8314 = vmatpush3.bf16.xpose.msra.mxu0 %v2165_v14 }
 0x325   : > { %v10668_v39 = vpop.f32.mrf.mxu1  ;;  %8609 = vmatprep.subr.msk.bf16.mxu0 %vm1967_vm0, %v1784_v61  ;;  %v8870_v61 = vpack.i.bf16 %v10649_v43, %v10639_v2 }
 0x326   : > { %8831 = vrot.lane.b32.xlu0 %v8830_v1, %s9806_s14  ;;  %v8739_v1 = vunpack.i.h.bf16 %v8737_v63  ;;  %v8875_v21 = vpack.i.bf16 %v10668_v39, %v10662_v46 }
 0x327   : > { %v10675_v22 = vpop.f32.mrf.mxu1 }
 0x328   : > { %v1793_v41 = vpack.c.bf16 %v8739_v1, %v8738_v12  ;;  %v8860_v8 = vpack.i.bf16 %v10675_v22, %v10665_v28  ;;  %v1788_v53 = vpack.c.bf16 %v10675_v22, %v10665_v28  ;;  %v8757_v12 = vpop.permute.xlu1 %8756 }
 0x329   : > { %v10677_v58 = vpop.f32.mrf.mxu1  ;;  %v8762_v50 = vpop.permute.xlu0 %8761 }
 0x32a   : > { %v2343_v32 = vsel %vm1967_vm0, %v1793_v41, 0  ;;  %v8764_v44 = vunpack.i.h.bf16 %v8762_v50 }
 0x32b   : > { %v1309_v30 = vpop.f32.mrf.mxu1 }
 0x32c   : > { %8316 = vmatpush3.bf16.xpose.msra.mxu0 %v2162_v19 }
 0x32d   : > { %8610 = vmatprep.subr.msk.bf16.mxu0 %vm1967_vm0, %v1783_v54  ;;  %v10682_v9 = vpop.f32.mrf.mxu1  ;;  %v8749_v54 = vunpack.i.h.bf16 %v8747_v31 }
 0x32e   : > { %v8880_v2 = vpack.i.bf16 %v10682_v9, %v10677_v58  ;;  %v8772_v1 = vpop.permute.xlu0 %8771 }
 0x32f   : > { %v1313_v29 = vpop.f32.mrf.mxu1 }
 0x330   : > { %v8845_v20 = vpack.i.bf16 %v1313_v29, %v1309_v30  ;;  %v1789_v37 = vpack.c.bf16 %v1313_v29, %v1309_v30  ;;  %v8748_v30 = vunpack.i.l.bf16 %v8747_v31  ;;  %v2251_v29 = vsel %vm1967_vm0, %v1788_v53, 0 }
 0x331   : > { %v10684_v56 = vpop.f32.mrf.mxu1 }
 0x332   : > { %8846 = vrot.lane.b32.xlu1 %v8845_v20, %s9806_s14  ;;  %v2254_v48 = vsel %vm1967_vm0, %v1789_v37, 0  ;;  %v1791_v20 = vpack.c.bf16 %v8749_v54, %v8748_v30 }
 0x333   : > { %v1319_v10 = vpop.f32.mrf.mxu1 }
 0x334   : > { %8318 = vmatpush3.bf16.xpose.msra.mxu0 %v2159_v35  ;;  %v2337_v59 = vsel %vm1967_vm0, %v1791_v20, 0 }
 0x335   : > { %8615 = vmatprep.subr.msk.bf16.mxu0 %vm1967_vm0, %v1794_v49  ;;  %v10691_v16 = vpop.f32.mrf.mxu1 }
 0x336   : > { %8856 = vrot.lane.b32.xlu1 %v8855_v0, %s9806_s14  ;;  %v8885_v17 = vpack.i.bf16 %v10691_v16, %v10684_v56  ;;  %v8763_v0 = vunpack.i.l.bf16 %v8762_v50 }
 0x337   : > { %v1323_v38 = vpop.f32.mrf.mxu1 }
 0x338   : > { %v8840_v34 = vpack.i.bf16 %v1323_v38, %v1319_v10  ;;  %v1790_v6 = vpack.c.bf16 %v1323_v38, %v1319_v10  ;;  %v2340_v10 = vsel %vm1967_vm0, %v1792_v33, 0 }
 0x339   : > { %v10698_v40 = vpop.f32.mrf.mxu1 }
 0x33a   : > { %8866 = vrot.lane.b32.xlu1 %v8865_v11, %s9806_s14  ;;  %8841 = vrot.lane.b32.xlu0 %v8840_v34, %s9806_s14  ;;  %v2257_v57 = vsel %vm1967_vm0, %v1790_v6, 0 }
 0x33b   : > { %8320 = vmatmul.mubr.msk.bf16.vlgmr.msra.gmra.mxu0 %vm1967_vm0, %v1624_v23  ;;  %8611 = vmatprep.subr.msk.bf16.mxu1 %vm1967_vm0, %v1790_v6  ;;  %v10707_v7 = vpop.f32.mrf.mxu1  ;;  %v1798_v6 = vpack.c.bf16 %v8764_v44, %v8763_v0 }
 0x33c   : > { %8323 = vmatprep.mubr.msk.bf16.mxu0 %vm1967_vm0, %v1625_v5  ;;  %8328 = vmatpush3.bf16.xpose.msra.mxu1 %v2257_v57  ;;  %v2248_v5 = vsel %vm1967_vm0, %v1787_v60, 0  ;;  %v8767_v57 = vpop.permute.xlu1 %8766 }
 0x33d   : > { %8344 = vmatpush3.bf16.xpose.msra.mxu0 %v2346_v52  ;;  %8612 = vmatprep.subr.msk.bf16.mxu1 %vm1967_vm0, %v1789_v37  ;;  %v10716_v24 = vpop.f32.mrf.mxu1  ;;  %v8782_v37 = vpop.permute.xlu0 %8781  ;;  %v8758_v52 = vunpack.i.l.bf16 %v8757_v12  ;;  %v8769_v27 = vunpack.i.h.bf16 %v8767_v57  ;;  %v8768_v15 = vunpack.i.l.bf16 %v8767_v57 }
 0x33e   : > { %8616 = vmatprep.subr.msk.bf16.mxu0 %vm1967_vm0, %v1793_v41  ;;  %v10721_v45 = vpack.c.bf16 %v10716_v24, %v10698_v40  ;;  %8876 = vrot.lane.b32.xlu1 %v8875_v21, %s9806_s14  ;;  %v8900_v11 = vpack.i.bf16 %v10716_v24, %v10698_v40  ;;  %v8759_v21 = vunpack.i.h.bf16 %v8757_v12  ;;  %v8773_v24 = vunpack.i.l.bf16 %v8772_v1 }
 0x33f   : > { %8851 = vrot.lane.b32.xlu0 %v8850_v3, %s9806_s14  ;;  %v10725_v47 = vpop.f32.mrf.mxu1  ;;  %v8774_v3 = vunpack.i.h.bf16 %v8772_v1  ;;  %v8784_v50 = vunpack.i.h.bf16 %v8782_v37 }
 0x340   : > { %v8905_v49 = vpack.i.bf16 %v10725_v47, %v10707_v7 }
 0x341   : > { %v8253_v13 = vpop.f32.mrf.mxu1 }
 0x342   : > { %8886 = vrot.lane.b32.xlu1 %v8885_v17, %s9806_s14  ;;  %v1628_v17 = vpack.c.bf16 %v10668_v39, %v10662_v46  ;;  %v2435_v46 = vsel %vm1967_vm0, %v1798_v6, 0 }
 0x343   : > { %8324 = vmatmul.mubr.msk.bf16.gmra.mxu0 %vm1967_vm0, %v1626_v36  ;;  %8861 = vrot.lane.b32.xlu0 %v8860_v8, %s9806_s14  ;;  %v10738_v25 = vpop.f32.mrf.mxu1  ;;  %v1632_v8 = vpack.c.bf16 %v8759_v21, %v8758_v52 }
 0x344   : > { %8330 = vmatpush3.bf16.xpose.msra.mxu1 %v2254_v48  ;;  %8351 = vmatprep.mubr.msk.bf16.mxu0 %vm1967_vm0, %v1631_v18  ;;  %v1629_v18 = vpack.c.bf16 %v10682_v9, %v10677_v58  ;;  %v8792_v48 = vpop.permute.xlu0 %8791 }
 0x345   : > { %8346 = vmatpush3.bf16.xpose.msra.mxu0 %v2343_v32  ;;  %8613 = vmatprep.subr.msk.bf16.mxu1 %vm1967_vm0, %v1788_v53  ;;  %v8254_v28 = vpop.f32.mrf.mxu1  ;;  %v1633_v53 = vpack.c.bf16 %v8774_v3, %v8773_v24  ;;  %v1797_v32 = vpack.c.bf16 %v8769_v27, %v8768_v15  ;;  %v8793_v54 = vunpack.i.l.bf16 %v8792_v48 }
 0x346   : > { %8617 = vmatprep.subr.msk.bf16.mxu0 %vm1967_vm0, %v1792_v33  ;;  %v10747_v14 = vpack.c.bf16 %v8254_v28, %v8253_v13  ;;  %v8890_v35 = vpack.i.bf16 %v8254_v28, %v8253_v13  ;;  %v8777_v13 = vpop.permute.xlu1 %8776  ;;  %v8794_v28 = vunpack.i.h.bf16 %v8792_v48 }
 0x347   : > { %8871 = vrot.lane.b32.xlu0 %v8870_v61, %s9806_s14  ;;  %v10750_v22 = vpop.f32.mrf.mxu1  ;;  %v8779_v39 = vunpack.i.h.bf16 %v8777_v13  ;;  %v8778_v61 = vunpack.i.l.bf16 %v8777_v13 }
 0x348   : > { %v8895_v19 = vpack.i.bf16 %v10750_v22, %v10738_v25 }
 0x349   : > { %v10756_v43 = vpop.f32.mrf.mxu1 }
 0x34a   : > { %8896 = vrot.lane.b32.xlu1 %v8895_v19, %s9806_s14 }
 0x34b   : > { %8881 = vrot.lane.b32.xlu0 %v8880_v2, %s9806_s14  ;;  %v10762_v51 = vpop.f32.mrf.mxu1  ;;  %v8783_v2 = vunpack.i.l.bf16 %v8782_v37 }
 0x34c   : > { %8332 = vmatpush3.bf16.xpose.msra.mxu1 %v2251_v29  ;;  %v1634_v29 = vpack.c.bf16 %v8779_v39, %v8778_v61 }
 0x34d   : > { %8348 = vmatpush3.bf16.xpose.msra.mxu0 %v2340_v10  ;;  %8614 = vmatprep.subr.msk.bf16.mxu1 %vm1967_vm0, %v1787_v60  ;;  %v8258_v63 = vpop.f32.mrf.mxu1  ;;  %v1796_v10 = vpack.c.bf16 %v8784_v50, %v8783_v2 }
 0x34e   : > { %8618 = vmatprep.subr.msk.bf16.mxu0 %vm1967_vm0, %v1791_v20  ;;  %v10771_v4 = vpack.c.bf16 %v8258_v63, %v10756_v43  ;;  %8906 = vrot.lane.b32.xlu1 %v8905_v49, %s9806_s14  ;;  %v8920_v31 = vpack.i.bf16 %v8258_v63, %v10756_v43  ;;  %v1630_v43 = vpack.c.bf16 %v10691_v16, %v10684_v56  ;;  %v8787_v63 = vpop.permute.xlu1 %8786 }
 0x34f   : > { %8891 = vrot.lane.b32.xlu0 %v8890_v35, %s9806_s14  ;;  %v10775_v38 = vpop.f32.mrf.mxu1  ;;  %v1635_v20 = vpack.c.bf16 %v8794_v28, %v8793_v54  ;;  %v2432_v35 = vsel %vm1967_vm0, %v1797_v32, 0  ;;  %v8789_v1 = vunpack.i.h.bf16 %v8787_v63  ;;  %v8788_v12 = vunpack.i.l.bf16 %v8787_v63 }
 0x350   : > { %v8925_v58 = vpack.i.bf16 %v10775_v38, %v10762_v51  ;;  %v2429_v37 = vsel %vm1967_vm0, %v1796_v10, 0 }
 0x351   : > { %v8261_v34 = vpop.f32.mrf.mxu1  ;;  %v1795_v57 = vpack.c.bf16 %v8789_v1, %v8788_v12 }
 0x352   : > { %v8797_v24 = vpop.permute.xlu1 %8796 }
 0x353   : > { %8901 = vrot.lane.b32.xlu0 %v8900_v11, %s9806_s14  ;;  %v10780_v23 = vpop.f32.mrf.mxu1  ;;  %v2426_v15 = vsel %vm1967_vm0, %v1795_v57, 0 }
 0x354   : > { %8334 = vmatpush3.bf16.xpose.msra.mxu1 %v2248_v5 }
 0x355   : > { %8350 = vmatpush3.bf16.xpose.msra.mxu0 %v2337_v59  ;;  %8619 = vmatprep.subr.msk.bf16.mxu1 %vm1967_vm0, %v1798_v6  ;;  %v8262_v41 = vpop.f32.mrf.mxu1 }
 0x356   : > { %v8910_v40 = vpack.i.bf16 %v8262_v41, %v8261_v34  ;;  %v10785_v42 = vpack.c.bf16 %v8262_v41, %v8261_v34 }
 0x357   : > { %v10787_v26 = vpop.f32.mrf.mxu1 }
 0x358   : > { %v8915_v62 = vpack.i.bf16 %v10787_v26, %v10780_v23  ;;  %8911 = vrot.lane.b32.xlu0 %v8910_v40, %s9806_s14 }
 0x35a   : > { %v8265_v36 = vpop.f32.mrf.mxu1  ;;  %8916 = vrot.lane.b32.xlu1 %v8915_v62, %s9806_s14 }
 0x35b   : > { %8336 = vmatmul.mubr.msk.bf16.vlgmr.msra.gmra.mxu1 %vm1967_vm0, %v1628_v17  ;;  %v8799_v17 = vunpack.i.h.bf16 %v8797_v24 }
 0x35c   : > { %v10798_v33 = vpop.f32.mrf.mxu1  ;;  %8352 = vmatmul.mubr.msk.bf16.vlgmr.msra.gmra.mxu0 %vm1967_vm0, %v1632_v8  ;;  %8339 = vmatprep.mubr.msk.bf16.mxu1 %vm1967_vm0, %v1629_v18 }
 0x35d   : > { %13601 = vst [vmem:[#allocation18_spill] sm:$0xff] %v10798_v33  ;;  %8355 = vmatprep.mubr.msk.bf16.mxu0 %vm1967_vm0, %v1633_v53  ;;  %8360 = vmatpush3.bf16.xpose.msra.mxu1 %v2435_v46 }
 0x35e   : > { %v8266_v9 = vpop.f32.mrf.mxu1  ;;  %8921 = vrot.lane.b32.xlu0 %v8920_v31, %s9806_s14  ;;  %8620 = vmatprep.subr.msk.bf16.mxu1 %vm1967_vm0, %v1797_v32 }
 0x35f   : > { %v10809_v30 = vpack.c.bf16 %v8266_v9, %v8265_v36  ;;  %8926 = vrot.lane.b32.xlu1 %v8925_v58, %s9806_s14  ;;  %v8940_v6 = vpack.i.bf16 %v8266_v9, %v8265_v36  ;;  %v8798_v36 = vunpack.i.l.bf16 %v8797_v24 }
 0x360   : > { %v10812_v19 = vpop.f32.mrf.mxu1 }
 0x361   : > { %13602 = vst [vmem:[#allocation19_spill] sm:$0xff] %v10809_v30  ;;  %13603 = vst [vmem:[#allocation20_spill] sm:$0xff] %v10812_v19  ;;  %v8945_v59 = vpack.i.bf16 %v10812_v19, %v10798_v33  ;;  %v1636_v53 = vpack.c.bf16 %v8799_v17, %v8798_v36 }
 0x362   : > { %v8269_v60 = vpop.f32.mrf.mxu1 }
 0x363   : > { %8340 = vmatmul.mubr.msk.bf16.gmra.mxu1 %vm1967_vm0, %v1630_v43 }
 0x364   : > { %v10817_v49 = vpop.f32.mrf.mxu1  ;;  %8356 = vmatmul.mubr.msk.bf16.gmra.mxu0 %vm1967_vm0, %v1634_v29  ;;  %8367 = vmatprep.mubr.msk.bf16.mxu1 %vm1967_vm0, %v1635_v20 }
 0x365   : > { %8362 = vmatpush3.bf16.xpose.msra.mxu1 %v2432_v35 }
 0x366   : > { %v8270_v44 = vpop.f32.mrf.mxu1  ;;  %8621 = vmatprep.subr.msk.bf16.mxu1 %vm1967_vm0, %v1796_v10 }
 0x367   : > { %v8930_v56 = vpack.i.bf16 %v8270_v44, %v8269_v60  ;;  %v10823_v16 = vpack.c.bf16 %v8270_v44, %v8269_v60 }
 0x368   : > { %v10825_v0 = vpop.f32.mrf.mxu1 }
 0x369   : > { %v8935_v11 = vpack.i.bf16 %v10825_v0, %v10817_v49  ;;  %8931 = vrot.lane.b32.xlu0 %v8930_v56, %s9806_s14 }
 0x36a   : > { %v10830_v34 = vpop.f32.mrf.mxu1 }
 0x36b   : > { %13604 = vst [vmem:[#allocation21_spill] sm:$0xff] %v10830_v34  ;;  %8936 = vrot.lane.b32.xlu1 %v8935_v11, %s9806_s14 }
 0x36c   : > { %v10833_v5 = vpop.f32.mrf.mxu1 }
 0x36d   : > { %13605 = vst [vmem:[#allocation22_spill] sm:$0xff] %v10833_v5  ;;  %8941 = vrot.lane.b32.xlu0 %v8940_v6, %s9806_s14  ;;  %8364 = vmatpush3.bf16.xpose.msra.mxu1 %v2429_v37 }
 0x36e   : > { %v10839_v41 = vpop.f32.mrf.mxu1  ;;  %8622 = vmatprep.subr.msk.bf16.mxu1 %vm1967_vm0, %v1795_v57 }
 0x36f   : > { %13606 = vst [vmem:[#allocation23_spill] sm:$0xff] %v10839_v41  ;;  %v10846_v52 = vpack.c.bf16 %v10839_v41, %v10830_v34  ;;  %8946 = vrot.lane.b32.xlu1 %v8945_v59, %s9806_s14 }
 0x370   : > { %v10849_v40 = vpop.f32.mrf.mxu1 }
 0x371   : > { %13607 = vst [vmem:[#allocation24_spill] sm:$0xff] %v10846_v52  ;;  %13608 = vst [vmem:[#allocation25_spill] sm:$0xff] %v10849_v40 }
 0x372   : > { %v10851_v3 = vpop.f32.mrf.mxu1 }
 0x373   : > { %13609 = vst [vmem:[#allocation26_spill] sm:$0xff] %v10851_v3 }
 0x374   : > { %v10853_v27 = vpop.f32.mrf.mxu1 }
 0x375   : > { %13610 = vst [vmem:[#allocation27_spill] sm:$0xff] %v10853_v27  ;;  %8366 = vmatpush3.bf16.xpose.msra.mxu1 %v2426_v15 }
 0x376   : > { %v10856_v62 = vpop.f32.mrf.mxu1 }
 0x377   : > { %13611 = vst [vmem:[#allocation28_spill] sm:$0xff] %v10856_v62  ;;  %v10862_v13 = vpack.c.bf16 %v10856_v62, %v10851_v3 }
 0x378   : > { %v10864_v18 = vpop.f32.mrf.mxu1 }
 0x379   : > { %13612 = vst [vmem:[#allocation29_spill] sm:$0xff] %v10862_v13  ;;  %13613 = vst [vmem:[#allocation30_spill] sm:$0xff] %v10864_v18 }
 0x37a   : > { %v10866_v48 = vpop.f32.mrf.mxu1 }
 0x37b   : > { %v2686_v9 = vsel %vm1967_vm0, %v10866_v48, -inf }
 0x37c   : > { %8368 = vmatmul.mubr.msk.bf16.vlgmr.msra.gmra.mxu1 %vm1967_vm0, %v1636_v53  ;;  %v10869_v32 = vpop.f32.mrf.mxu1 }
 0x37d   : > { %v2680_v29 = vsel %vm1967_vm0, %v10869_v32, -inf }
 0x37e   : > { %v10871_v31 = vpop.f32.mrf.mxu1 }
 0x37f   : > { %v2689_v57 = vsel %vm1967_vm0, %v10871_v31, -inf }
 0x380   : > { %v10873_v46 = vpop.f32.mrf.mxu1 }
 0x381   : > { %v2683_v1 = vsel %vm1967_vm0, %v10873_v46, -inf }
 0x382   : > { %v10875_v58 = vpop.f32.mrf.mxu1 }
 0x384   : > { %v8807_v39 = vpop.permute.xlu1 %8806  ;;  %v10879_v2 = vpop.f32.mrf.mxu1 }
 0x385   : > { %v8809_v43 = vunpack.i.h.bf16 %v8807_v39  ;;  %v8808_v60 = vunpack.i.l.bf16 %v8807_v39  ;;  %v2698_v39 = vsel %vm1967_vm0, %v10875_v58, -inf }
 0x386   : > { %v10886_v11 = vpop.f32.mrf.mxu1 }
 0x387   : > { %v1801_v12 = vpack.c.bf16 %v8809_v43, %v8808_v60  ;;  %v2701_v15 = vsel %vm1967_vm0, %v10886_v11, -inf }
 0x388   : > { %v8817_v28 = vpop.permute.xlu1 %8816  ;;  %v10895_v17 = vpop.f32.mrf.mxu1 }
 0x389   : > { %v8819_v10 = vunpack.i.h.bf16 %v8817_v28  ;;  %v8818_v35 = vunpack.i.l.bf16 %v8817_v28  ;;  %v2521_v60 = vsel %vm1967_vm0, %v1801_v12, 0 }
 0x38b   : > { %v1638_v37 = vpack.c.bf16 %v8819_v10, %v8818_v35 }
 0x38c   : > { %2687 = vmax.xlane.f32.xlu0 %v2686_v9  ;;  %v8802_v61 = vpop.permute.xlu0 %8801 }
 0x38d   : > { %v8804_v54 = vunpack.i.h.bf16 %v8802_v61  ;;  %v8803_v50 = vunpack.i.l.bf16 %v8802_v61 }
 0x38f   : > { %v1802_v20 = vpack.c.bf16 %v8804_v54, %v8803_v50  ;;  %v2695_v50 = vsel %vm1967_vm0, %v10895_v17, -inf }
 0x390   : > { %2681 = vmax.xlane.f32.xlu0 %v2680_v29  ;;  %v8812_v63 = vpop.permute.xlu0 %8811  ;;  %v2692_v29 = vsel %vm1967_vm0, %v10879_v2, -inf }
 0x391   : > { %v8814_v44 = vunpack.i.h.bf16 %v8812_v63  ;;  %v8813_v56 = vunpack.i.l.bf16 %v8812_v63  ;;  %8623 = vmatprep.subr.msk.bf16.mxu0 %vm1967_vm0, %v1802_v20  ;;  %v2524_v6 = vsel %vm1967_vm0, %v1802_v20, 0  ;;  %v8827_v20 = vpop.permute.xlu1 %8826 }
 0x392   : > { %8376 = vmatpush3.bf16.xpose.msra.mxu0 %v2524_v6 }
 0x393   : > { %2684 = vmax.xlane.f32.xlu1 %v2683_v1  ;;  %v1637_v59 = vpack.c.bf16 %v8814_v44, %v8813_v56  ;;  %8624 = vmatprep.subr.msk.bf16.mxu0 %vm1967_vm0, %v1801_v12  ;;  %v8829_v44 = vunpack.i.h.bf16 %v8827_v20  ;;  %v8828_v56 = vunpack.i.l.bf16 %v8827_v20 }
 0x394   : > { %2690 = vmax.xlane.f32.xlu0 %v2689_v57  ;;  %v8822_v24 = vpop.permute.xlu0 %8821 }
 0x395   : > { %8371 = vmatprep.mubr.msk.bf16.mxu1 %vm1967_vm0, %v1637_v59  ;;  %v8824_v36 = vunpack.i.h.bf16 %v8822_v24  ;;  %v8823_v53 = vunpack.i.l.bf16 %v8822_v24  ;;  %v1799_v59 = vpack.c.bf16 %v8829_v44, %v8828_v56 }
 0x396   : > { %8372 = vmatmul.mubr.msk.bf16.gmra.mxu1 %vm1967_vm0, %v1638_v37 }
 0x397   : > { %2702 = vmax.xlane.f32.xlu1 %v2701_v15  ;;  %v1800_v43 = vpack.c.bf16 %v8824_v36, %v8823_v53 }
 0x398   : > { %2699 = vmax.xlane.f32.xlu0 %v2698_v39  ;;  %v8832_v9 = vpop.permute.xlu0 %8831  ;;  %v8837_v39 = vpop.permute.xlu1 %8836 }
 0x399   : > { %v8834_v28 = vunpack.i.h.bf16 %v8832_v9  ;;  %v8833_v54 = vunpack.i.l.bf16 %v8832_v9  ;;  %v2518_v24 = vsel %vm1967_vm0, %v1800_v43, 0  ;;  %v8839_v20 = vunpack.i.h.bf16 %v8837_v39 }
 0x39a   : > { %v10900_v61 = vpop.f32.mrf.mxu1  ;;  %8378 = vmatpush3.bf16.xpose.msra.mxu0 %v2521_v60  ;;  %v2515_v60 = vsel %vm1967_vm0, %v1799_v59, 0 }
 0x39b   : > { %2696 = vmax.xlane.f32.xlu1 %v2695_v50  ;;  %v1639_v10 = vpack.c.bf16 %v8834_v28, %v8833_v54  ;;  %8625 = vmatprep.subr.msk.bf16.mxu0 %vm1967_vm0, %v1800_v43  ;;  %v2710_v12 = vsel %vm1967_vm0, %v10900_v61, -inf }
 0x39c   : > { %v10907_v35 = vpop.f32.mrf.mxu1  ;;  %2693 = vmax.xlane.f32.xlu0 %v2692_v29 }
 0x39d   : > { %8383 = vmatprep.mubr.msk.bf16.mxu0 %vm1967_vm0, %v1639_v10  ;;  %v2704_v36 = vsel %vm1967_vm0, %v10907_v35, -inf  ;;  %v8838_v10 = vunpack.i.l.bf16 %v8837_v39  ;;  %v1937_v39 = vpack.c.bf16 %v10750_v22, %v10738_v25 }
 0x39e   : > { %v10910_v63 = vpop.f32.mrf.mxu1 }
 0x39f   : > { %v2713_v1 = vsel %vm1967_vm0, %v10910_v63, -inf }
 0x3a0   : > { %2714 = vmax.xlane.f32.xlu1 %v2713_v1  ;;  %v10917_v6 = vpop.f32.mrf.mxu1  ;;  %2711 = vmax.xlane.f32.xlu0 %v2710_v12 }
 0x3a1   : > { %v2707_v37 = vsel %vm1967_vm0, %v10917_v6, -inf }
 0x3a2   : > { %v10919_v57 = vpop.f32.mrf.mxu1  ;;  %8380 = vmatpush3.bf16.xpose.msra.mxu0 %v2518_v24 }
 0x3a3   : > { %8626 = vmatprep.subr.msk.bf16.mxu0 %vm1967_vm0, %v1799_v59  ;;  %v2722_v54 = vsel %vm1967_vm0, %v10919_v57, -inf }
 0x3a4   : > { %2708 = vmax.xlane.f32.xlu1 %v2707_v37  ;;  %v10924_v15 = vpop.f32.mrf.mxu1  ;;  %2705 = vmax.xlane.f32.xlu0 %v2704_v36  ;;  %v8847_v50 = vpop.permute.xlu1 %8846  ;;  %v1640_v36 = vpack.c.bf16 %v8839_v20, %v8838_v10 }
 0x3a5   : > { %v2716_v29 = vsel %vm1967_vm0, %v10924_v15, -inf  ;;  %v8849_v56 = vunpack.i.h.bf16 %v8847_v50  ;;  %v8848_v1 = vunpack.i.l.bf16 %v8847_v50 }
 0x3a6   : > { %v10929_v53 = vpop.f32.mrf.mxu1 }
 0x3a7   : > { %v2725_v9 = vsel %vm1967_vm0, %v10929_v53, -inf }
 0x3a8   : > { %2726 = vmax.xlane.f32.xlu1 %v2725_v9  ;;  %v10933_v28 = vpop.f32.mrf.mxu1  ;;  %2723 = vmax.xlane.f32.xlu0 %v2722_v54  ;;  %v1805_v9 = vpack.c.bf16 %v8849_v56, %v8848_v1  ;;  %v8857_v54 = vpop.permute.xlu1 %8856 }
 0x3a9   : > { %v2719_v43 = vsel %vm1967_vm0, %v10933_v28, -inf  ;;  %v8859_v50 = vunpack.i.h.bf16 %v8857_v54  ;;  %v8858_v20 = vunpack.i.l.bf16 %v8857_v54 }
 0x3aa   : > { %8382 = vmatpush3.bf16.xpose.msra.mxu0 %v2515_v60 }
 0x3ab   : > { %8407 = vmatprep.subr.bf16.mxu0 %v10747_v14  ;;  %v1642_v25 = vpack.c.bf16 %v8859_v50, %v8858_v20 }
 0x3ac   : > { %2720 = vmax.xlane.f32.xlu1 %v2719_v43  ;;  %2717 = vmax.xlane.f32.xlu0 %v2716_v29  ;;  %v8842_v44 = vpop.permute.xlu0 %8841 }
 0x3ad   : > { %v8844_v12 = vunpack.i.h.bf16 %v8842_v44  ;;  %v8843_v37 = vunpack.i.l.bf16 %v8842_v44 }
 0x3af   : > { %v1806_v24 = vpack.c.bf16 %v8844_v12, %v8843_v37  ;;  %v2610_v37 = vsel %vm1967_vm0, %v1805_v9, 0 }
 0x3b1   : > { %v8852_v59 = vpop.permute.xlu0 %8851  ;;  %8627 = vmatprep.subr.msk.bf16.mxu1 %vm1967_vm0, %v1806_v24  ;;  %v2613_v43 = vsel %vm1967_vm0, %v1806_v24, 0  ;;  %8384 = vmatmul.mubr.msk.bf16.vlgmr.msra.gmra.mxu0 %vm1967_vm0, %v1640_v36  ;;  %v8867_v24 = vpop.permute.xlu1 %8866 }
 0x3b2   : > { %v8854_v60 = vunpack.i.h.bf16 %v8852_v59  ;;  %v8853_v29 = vunpack.i.l.bf16 %v8852_v59  ;;  %8392 = vmatpush3.bf16.xpose.msra.mxu1 %v2613_v43  ;;  %8408 = vmatpush3.bf16.msra.mxu0 %v10747_v14  ;;  %v1935_v14 = vpack.c.bf16 %v10725_v47, %v10707_v7  ;;  %v8869_v43 = vunpack.i.h.bf16 %v8867_v24 }
 0x3b3   : > { %8628 = vmatprep.subr.msk.bf16.mxu1 %vm1967_vm0, %v1805_v9  ;;  %8409 = vmatprep.subr.bf16.mxu0 %v1937_v39 }
 0x3b4   : > { %v1641_v10 = vpack.c.bf16 %v8854_v60, %v8853_v29 }
 0x3b5   : > { %v8862_v44 = vpop.permute.xlu0 %8861  ;;  %v8877_v9 = vpop.permute.xlu1 %8876 }
 0x3b6   : > { %v8864_v56 = vunpack.i.h.bf16 %v8862_v44  ;;  %v8863_v1 = vunpack.i.l.bf16 %v8862_v44  ;;  %8387 = vmatprep.mubr.msk.bf16.mxu0 %vm1967_vm0, %v1641_v10  ;;  %8410 = vmatpush3.bf16.msra.mxu0 %v1937_v39  ;;  %v8868_v39 = vunpack.i.l.bf16 %v8867_v24  ;;  %v8879_v29 = vunpack.i.h.bf16 %v8877_v9 }
 0x3b7   : > { %8411 = vmatprep.subr.bf16.mxu0 %v10721_v45  ;;  %v8878_v50 = vunpack.i.l.bf16 %v8877_v9 }
 0x3b8   : > { %v1804_v22 = vpack.c.bf16 %v8864_v56, %v8863_v1  ;;  %v1803_v7 = vpack.c.bf16 %v8869_v43, %v8868_v39 }
 0x3b9   : > { %v8872_v12 = vpop.permute.xlu0 %8871  ;;  %8388 = vmatmul.mubr.msk.bf16.gmra.mxu0 %vm1967_vm0, %v1642_v25  ;;  %v1644_v44 = vpack.c.bf16 %v8879_v29, %v8878_v50  ;;  %v8887_v56 = vpop.permute.xlu1 %8886  ;;  %v1941_v25 = vpack.c.bf16 %v10787_v26, %v10780_v23 }
 0x3ba   : > { %v8874_v36 = vunpack.i.h.bf16 %v8872_v12  ;;  %v8873_v54 = vunpack.i.l.bf16 %v8872_v12  ;;  %8394 = vmatpush3.bf16.xpose.msra.mxu1 %v2610_v37  ;;  %8412 = vmatpush3.bf16.msra.mxu0 %v10721_v45  ;;  %v2607_v47 = vsel %vm1967_vm0, %v1804_v22, 0  ;;  %v2604_v45 = vsel %vm1967_vm0, %v1803_v7, 0 }
 0x3bb   : > { %8629 = vmatprep.subr.msk.bf16.mxu1 %vm1967_vm0, %v1804_v22  ;;  %8413 = vmatprep.subr.bf16.mxu0 %v1935_v14  ;;  %v8889_v22 = vunpack.i.h.bf16 %v8887_v56  ;;  %v8888_v12 = vunpack.i.l.bf16 %v8887_v56 }
 0x3bc   : > { %v1643_v59 = vpack.c.bf16 %v8874_v36, %v8873_v54 }
 0x3bd   : > { %v8882_v60 = vpop.permute.xlu0 %8881  ;;  %v1646_v37 = vpack.c.bf16 %v8889_v22, %v8888_v12 }
 0x3be   : > { %8399 = vmatprep.mubr.msk.bf16.mxu1 %vm1967_vm0, %v1643_v59  ;;  %8414 = vmatpush3.bf16.msra.mxu0 %v1935_v14  ;;  %v8884_v20 = vunpack.i.h.bf16 %v8882_v60  ;;  %v8883_v10 = vunpack.i.l.bf16 %v8882_v60  ;;  %v1939_v14 = vpack.c.bf16 %v10775_v38, %v10762_v51 }
 0x3bf   : > { %8439 = vmatprep.subr.bf16.mxu0 %v10823_v16 }
 0x3c0   : > { %v1645_v1 = vpack.c.bf16 %v8884_v20, %v8883_v10 }
 0x3c2   : > { %8396 = vmatpush3.bf16.xpose.msra.mxu1 %v2607_v47 }
 0x3c3   : > { %8630 = vmatprep.subr.msk.bf16.mxu1 %vm1967_vm0, %v1803_v7 }
 0x3ca   : > { %8398 = vmatpush3.bf16.xpose.msra.mxu1 %v2604_v45 }
 0x3cb   : > { %8423 = vmatprep.subr.bf16.mxu1 %v10785_v42 }
 0x3d1   : > { %8400 = vmatmul.mubr.msk.bf16.vlgmr.msra.gmra.mxu1 %vm1967_vm0, %v1644_v44 }
 0x3d2   : > { %8403 = vmatprep.mubr.msk.bf16.mxu1 %vm1967_vm0, %v1645_v1  ;;  %8424 = vmatpush3.bf16.msra.mxu1 %v10785_v42 }
 0x3d3   : > { %8425 = vmatprep.subr.bf16.mxu1 %v1941_v25 }
 0x3d6   : > { %8426 = vmatpush3.bf16.msra.mxu1 %v1941_v25 }
 0x3d7   : > { %8427 = vmatprep.subr.bf16.mxu1 %v10771_v4 }
 0x3d9   : > { %8404 = vmatmul.mubr.msk.bf16.gmra.mxu1 %vm1967_vm0, %v1646_v37  ;;  %v11029_v37 = vpop.permute.xlu1 %8896 }
 0x3da   : > { %8428 = vmatpush3.bf16.msra.mxu1 %v10771_v4  ;;  %v10987_v4 = vpop.permute.xlu0 %8891  ;;  %13617 = vst [vmem:[#allocation34_spill] sm:$0xff] %v11029_v37 }
 0x3db   : > { %8429 = vmatprep.subr.bf16.mxu1 %v1939_v14  ;;  %13614 = vst [vmem:[#allocation31_spill] sm:$0xff] %v10987_v4 }
 0x3de   : > { %8430 = vmatpush3.bf16.msra.mxu1 %v1939_v14  ;;  %v11001_v47 = vpop.permute.xlu0 %8901 }
 0x3df   : > { %8455 = vmatprep.subr.bf16.mxu1 %v10862_v13  ;;  %13615 = vst [vmem:[#allocation32_spill] sm:$0xff] %v11001_v47 }
 0x3e2   : > { %v11011_v50 = vpop.permute.xlu0 %8911 }
 0x3e3   : > { %13616 = vst [vmem:[#allocation33_spill] sm:$0xff] %v11011_v50 }
 0x3e6   : > { %v11031_v14 = vpop.permute.xlu0 %8921 }
 0x3e7   : > { %13618 = vst [vmem:[#allocation35_spill] sm:$0xff] %v11031_v14 }
 0x3fb   : > { %v10975_v23 = vpop.f32.mrf.mxu0 }
 0x3fc   : > { %v2734_v42 = vsel %vm1967_vm0, %v10975_v23, -inf }
 0x3fd   : > { %v10979_v26 = vpop.f32.mrf.mxu0  ;;  %2735 = vmax.xlane.f32.xlu0 %v2734_v42 }
 0x3fe   : > { %v2728_v9 = vsel %vm1967_vm0, %v10979_v26, -inf }
 0x3ff   : > { %v10981_v24 = vpop.f32.mrf.mxu0 }
 0x400   : > { %v2737_v51 = vsel %vm1967_vm0, %v10981_v24, -inf }
 0x401   : > { %2738 = vmax.xlane.f32.xlu1 %v2737_v51  ;;  %v10985_v38 = vpop.f32.mrf.mxu0 }
 0x402   : > { %v2731_v10 = vsel %vm1967_vm0, %v10985_v38, -inf }
 0x403   : > { %v10989_v36 = vpop.f32.mrf.mxu0 }
 0x404   : > { %v2746_v1 = vsel %vm1967_vm0, %v10989_v36, -inf }
 0x405   : > { %v10997_v39 = vpop.f32.mrf.mxu0 }
 0x407   : > { %v11009_v29 = vpop.f32.mrf.mxu0 }
 0x408   : > { %v2749_v42 = vsel %vm1967_vm0, %v11009_v29, -inf }
 0x409   : > { %v11019_v56 = vpop.f32.mrf.mxu0 }
 0x41b   : > { %v10991_v54 = vpop.f32.mrf.mxu1 }
 0x41c   : > { %v2758_v59 = vsel %vm1967_vm0, %v10991_v54, -inf  ;;  %v11025_v22 = vpop.f32.mrf.mxu0 }
 0x41d   : > { %2759 = vmax.xlane.f32.xlu0 %v2758_v59  ;;  %v10995_v43 = vpop.f32.mrf.mxu1 }
 0x41e   : > { %v2752_v20 = vsel %vm1967_vm0, %v10995_v43, -inf  ;;  %v11037_v59 = vpop.f32.mrf.mxu0 }
 0x41f   : > { %v10999_v7 = vpop.f32.mrf.mxu1  ;;  %v2776_v14 = vsel %vm1967_vm0, %v11037_v59, -inf }
 0x420   : > { %v2761_v60 = vsel %vm1967_vm0, %v10999_v7, -inf }
 0x421   : > { %2729 = vmax.xlane.f32.xlu0 %v2728_v9  ;;  %2762 = vmax.xlane.f32.xlu1 %v2761_v60  ;;  %v11007_v45 = vpop.f32.mrf.mxu1  ;;  %v11041_v60 = vpop.permute.xlu0 %8931 }
 0x422   : > { %v2755_v25 = vsel %vm1967_vm0, %v11007_v45, -inf  ;;  %13619 = vst [vmem:[#allocation36_spill] sm:$0xff] %v11041_v60 }
 0x423   : > { %v11017_v44 = vpop.f32.mrf.mxu1 }
 0x424   : > { %v2770_v51 = vsel %vm1967_vm0, %v11017_v44, -inf }
 0x425   : > { %2753 = vmax.xlane.f32.xlu0 %v2752_v20  ;;  %2732 = vmax.xlane.f32.xlu1 %v2731_v10  ;;  %v11027_v12 = vpop.f32.mrf.mxu1  ;;  %v11043_v20 = vpop.permute.xlu1 %8906  ;;  %v2740_v10 = vsel %vm1967_vm0, %v10997_v39, -inf }
 0x426   : > { %13620 = vst [vmem:[#allocation37_spill] sm:$0xff] %v11043_v20  ;;  %v11053_v21 = vpop.permute.xlu0 %8941 }
 0x427   : > { %v11039_v9 = vpop.f32.mrf.mxu1  ;;  %13622 = vst [vmem:[#allocation39_spill] sm:$0xff] %v11053_v21 }
 0x429   : > { %2747 = vmax.xlane.f32.xlu0 %v2746_v1  ;;  %2756 = vmax.xlane.f32.xlu1 %v2755_v25  ;;  %v2773_v1 = vsel %vm1967_vm0, %v11039_v9, -inf  ;;  %v11049_v25 = vpop.f32.mrf.mxu0  ;;  %v11051_v55 = vpop.permute.xlu1 %8916 }
 0x42a   : > { %13621 = vst [vmem:[#allocation38_spill] sm:$0xff] %v11051_v55  ;;  %v11061_v34 = vpop.f32.mrf.mxu1  ;;  %v2688_v41 = vpop.xlane.xlu0 %2687 }
 0x42b   : > { %v11059_v8 = vpop.f32.mrf.mxu0  ;;  %v2874_v5 = vsub.f32 %v10866_v48, %v2688_v41 }
 0x42c   : > { %v2779_v47 = vsel %vm1967_vm0, %v11059_v8, -inf }
 0x42d   : > { %2750 = vmax.xlane.f32.xlu1 %v2749_v42  ;;  %2771 = vmax.xlane.f32.xlu0 %v2770_v51  ;;  %v2764_v42 = vsel %vm1967_vm0, %v11027_v12, -inf  ;;  %v2743_v51 = vsel %vm1967_vm0, %v11019_v56, -inf  ;;  %v11067_v21 = vpop.f32.mrf.mxu0  ;;  %v11069_v60 = vpop.permute.xlu1 %8926  ;;  %v2940_v62 = vmul.f32 1.442695, %v2874_v5 }
 0x42e   : > { %13623 = vst [vmem:[#allocation40_spill] sm:$0xff] %v11069_v60  ;;  %v2682_v55 = vpop.xlane.xlu0 %2681 }
 0x42f   : > { %v2872_v13 = vsub.f32 %v10869_v32, %v2682_v55  ;;  %9234 = vpow2.f32 %v2940_v62 }
 0x431   : > { %2741 = vmax.xlane.f32.xlu0 %v2740_v10  ;;  %2774 = vmax.xlane.f32.xlu1 %v2773_v1  ;;  %v2767_v10 = vsel %vm1967_vm0, %v11061_v34, -inf  ;;  %v2782_v1 = vsel %vm1967_vm0, %v11025_v22, -inf  ;;  %v11077_v20 = vpop.permute.xlu1 %8936  ;;  %v2936_v18 = vmul.f32 1.442695, %v2872_v13 }
 0x432   : > { %13624 = vst [vmem:[#allocation41_spill] sm:$0xff] %v11077_v20  ;;  %v2691_v50 = vpop.xlane.xlu0 %2690 }
 0x433   : > { %9236 = vpow2.f32 %v2936_v18 }
 0x435   : > { %2765 = vmax.xlane.f32.xlu0 %v2764_v42  ;;  %2744 = vmax.xlane.f32.xlu1 %v2743_v51  ;;  %v2785_v42 = vsel %vm1967_vm0, %v11049_v25, -inf  ;;  %v11075_v51 = vpop.f32.mrf.mxu0  ;;  %v11087_v37 = vpop.permute.xlu1 %8946 }
 0x436   : > { %13625 = vst [vmem:[#allocation42_spill] sm:$0xff] %v11087_v37  ;;  %v2700_v3 = vpop.xlane.xlu0 %2699 }
 0x437   : > { %v2878_v5 = vsub.f32 %v10875_v58, %v2700_v3 }
 0x439   : > { %2768 = vmax.xlane.f32.xlu1 %v2767_v10  ;;  %2783 = vmax.xlane.f32.xlu0 %v2782_v1  ;;  %v2794_v10 = vsel %vm1967_vm0, %v11067_v21, -inf  ;;  %v11083_v1 = vpop.f32.mrf.mxu0  ;;  %v2685_v52 = vpop.xlane.xlu1 %2684 }
 0x43a   : > { %v2694_v32 = vpop.xlane.xlu0 %2693 }
 0x43b   : > { %v11093_v20 = vpop.f32.mrf.mxu0  ;;  %v2876_v13 = vsub.f32 %v10879_v2, %v2694_v32 }
 0x43c   : > { %v11085_v60 = vpop.f32.mrf.mxu1 }
 0x43d   : > { %2777 = vmax.xlane.f32.xlu0 %v2776_v14  ;;  %2786 = vmax.xlane.f32.xlu1 %v2785_v42  ;;  %v2788_v14 = vsel %vm1967_vm0, %v11075_v51, -inf  ;;  %v2797_v42 = vsel %vm1967_vm0, %v11083_v1, -inf }
 0x43e   : > { %v11095_v40 = vpop.f32.mrf.mxu1 }
 0x43f   : > { %v2800_v41 = vsel %vm1967_vm0, %v11095_v40, -inf }
 0x440   : > { %v11102_v37 = vpop.f32.mrf.mxu1 }
 0x441   : > { %2780 = vmax.xlane.f32.xlu1 %v2779_v47  ;;  %2795 = vmax.xlane.f32.xlu0 %v2794_v10  ;;  %v2806_v47 = vsel %vm1967_vm0, %v11085_v60, -inf  ;;  %v2791_v10 = vsel %vm1967_vm0, %v11093_v20, -inf  ;;  %v2809_v48 = vsel %vm1967_vm0, %v11102_v37, -inf }
 0x445   : > { %2789 = vmax.xlane.f32.xlu0 %v2788_v14  ;;  %2798 = vmax.xlane.f32.xlu1 %v2797_v42  ;;  %v2875_v14 = vsub.f32 %v10871_v31, %v2691_v50  ;;  %v11110_v42 = vpop.f32.mrf.mxu1 }
 0x446   : > { %v2803_v31 = vsel %vm1967_vm0, %v11110_v42, -inf }
 0x447   : > { %v2942_v55 = vmul.f32 1.442695, %v2875_v14 }
 0x449   : > { %2807 = vmax.xlane.f32.xlu0 %v2806_v47  ;;  %2792 = vmax.xlane.f32.xlu1 %v2791_v10  ;;  %v2873_v47 = vsub.f32 %v10873_v46, %v2685_v52  ;;  %v2703_v10 = vpop.xlane.xlu1 %2702  ;;  %9238 = vpow2.f32 %v2942_v55  ;;  %v2944_v46 = vmul.f32 1.442695, %v2876_v13 }
 0x44a   : > { %v2879_v27 = vsub.f32 %v10886_v11, %v2703_v10 }
 0x44b   : > { %v2938_v50 = vmul.f32 1.442695, %v2873_v47  ;;  %v11131_v47 = vpop.eup %9234 }
 0x44c   : > { %v2950_v52 = vmul.f32 1.442695, %v2879_v27  ;;  %v11135_v10 = vpop.eup %9236  ;;  %v3070_v55 = vsel %vm1967_vm0, %v11131_v47, 0.0 }
 0x44d   : > { %2801 = vmax.xlane.f32.xlu0 %v2800_v41  ;;  %2810 = vmax.xlane.f32.xlu1 %v2809_v48  ;;  %v2948_v41 = vmul.f32 1.442695, %v2878_v5  ;;  %v2697_v48 = vpop.xlane.xlu1 %2696  ;;  %9240 = vpow2.f32 %v2938_v50  ;;  %v3064_v50 = vsel %vm1967_vm0, %v11135_v10, 0.0 }
 0x44e   : > { %v2877_v3 = vsub.f32 %v10895_v17, %v2697_v48 }
 0x44f   : > { %9242 = vpow2.f32 %v2948_v41 }
 0x450   : > { %9244 = vpow2.f32 %v2950_v52  ;;  %v2946_v14 = vmul.f32 1.442695, %v2877_v3 }
 0x451   : > { %2804 = vmax.xlane.f32.xlu1 %v2803_v31  ;;  %9246 = vpow2.f32 %v2944_v46  ;;  %v2715_v4 = vpop.xlane.xlu1 %2714 }
 0x452   : > { %9248 = vpow2.f32 %v2946_v14 }
 0x456   : > { %v11118_v62 = vpop.f32.mrf.mxu1  ;;  %v11141_v32 = vpop.eup %9238 }
 0x457   : > { %v2818_v58 = vsel %vm1967_vm0, %v11118_v62, -inf  ;;  %v3073_v41 = vsel %vm1967_vm0, %v11141_v32, 0.0 }
 0x458   : > { %v11123_v18 = vpop.f32.mrf.mxu1  ;;  %2819 = vmax.xlane.f32.xlu0 %v2818_v58 }
 0x459   : > { %v2812_v27 = vsel %vm1967_vm0, %v11123_v18, -inf }
 0x45a   : > { %v11125_v11 = vpop.f32.mrf.mxu1  ;;  %v11143_v31 = vpop.eup %9240 }
 0x45b   : > { %v2821_v2 = vsel %vm1967_vm0, %v11125_v11, -inf  ;;  %v3067_v3 = vsel %vm1967_vm0, %v11143_v31, 0.0 }
 0x45c   : > { %v11133_v17 = vpop.f32.mrf.mxu1  ;;  %2813 = vmax.xlane.f32.xlu0 %v2812_v27  ;;  %2822 = vmax.xlane.f32.xlu1 %v2821_v2  ;;  %v11149_v13 = vpop.eup %9242 }
 0x45d   : > { %v2815_v5 = vsel %vm1967_vm0, %v11133_v17, -inf  ;;  %13626 = vst [vmem:[#allocation43_spill] sm:$0xff] %v11149_v13  ;;  %v11151_v48 = vpop.eup %9244  ;;  %v3082_v52 = vsel %vm1967_vm0, %v11149_v13, 0.0 }
 0x45e   : > { %13627 = vst [vmem:[#allocation44_spill] sm:$0xff] %v11151_v48  ;;  %v11157_v46 = vpop.eup %9246  ;;  %v3085_v14 = vsel %vm1967_vm0, %v11151_v48, 0.0  ;;  %v2709_v48 = vpop.xlane.xlu1 %2708 }
 0x45f   : > { %v3076_v58 = vsel %vm1967_vm0, %v11157_v46, 0.0  ;;  %v11163_v27 = vpop.eup %9248 }
 0x460   : > { %3071 = vadd.xlane.f32.xlu0 %v3070_v55  ;;  %2816 = vmax.xlane.f32.xlu1 %v2815_v5  ;;  %v3079_v2 = vsel %vm1967_vm0, %v11163_v27, 0.0 }
 0x464   : > { %3065 = vadd.xlane.f32.xlu0 %v3064_v50  ;;  %3074 = vadd.xlane.f32.xlu1 %v3073_v41 }
 0x468   : > { %3083 = vadd.xlane.f32.xlu0 %v3082_v52  ;;  %3068 = vadd.xlane.f32.xlu1 %v3067_v3  ;;  %v2712_v3 = vpop.xlane.xlu0 %2711 }
 0x46c   : > { %3077 = vadd.xlane.f32.xlu0 %v3076_v58  ;;  %3086 = vadd.xlane.f32.xlu1 %v3085_v14  ;;  %v2706_v58 = vpop.xlane.xlu0 %2705  ;;  %v2882_v14 = vsub.f32 %v10900_v61, %v2712_v3 }
 0x46d   : > { %v2880_v30 = vsub.f32 %v10907_v35, %v2706_v58 }
 0x46e   : > { %v2956_v33 = vmul.f32 1.442695, %v2882_v14 }
 0x46f   : > { %v2952_v61 = vmul.f32 1.442695, %v2880_v30 }
 0x470   : > { %3080 = vadd.xlane.f32.xlu1 %v3079_v2  ;;  %v2724_v2 = vpop.xlane.xlu0 %2723  ;;  %9250 = vpow2.f32 %v2956_v33 }
 0x471   : > { %v11167_v55 = vpop.f32.mrf.mxu0  ;;  %9252 = vpow2.f32 %v2952_v61 }
 0x472   : > { %v2830_v5 = vsel %vm1967_vm0, %v11167_v55, -inf }
 0x473   : > { %2831 = vmax.xlane.f32.xlu0 %v2830_v5  ;;  %v11171_v50 = vpop.f32.mrf.mxu0 }
 0x474   : > { %13628 = vst [vmem:[#allocation45_spill] sm:$0xff] %v11171_v50  ;;  %v2824_v14 = vsel %vm1967_vm0, %v11171_v50, -inf  ;;  %v2718_v58 = vpop.xlane.xlu0 %2717 }
 0x475   : > { %v11173_v41 = vpop.f32.mrf.mxu0 }
 0x476   : > { %13629 = vst [vmem:[#allocation46_spill] sm:$0xff] %v11173_v41  ;;  %v2833_v52 = vsel %vm1967_vm0, %v11173_v41, -inf  ;;  %v2886_v41 = vsub.f32 %v10919_v57, %v2724_v2  ;;  %v2884_v57 = vsub.f32 %v10924_v15, %v2718_v58 }
 0x477   : > { %2834 = vmax.xlane.f32.xlu1 %v2833_v52  ;;  %v11188_v3 = vpop.f32.mrf.mxu0 }
 0x478   : > { %13632 = vst [vmem:[#allocation49_spill] sm:$0xff] %v11188_v3  ;;  %v2827_v30 = vsel %vm1967_vm0, %v11188_v3, -inf }
 0x479   : > { %v11195_v2 = vpop.f32.mrf.mxu0 }
 0x47a   : > { %13633 = vst [vmem:[#allocation50_spill] sm:$0xff] %v11195_v2 }
 0x47b   : > { %v11209_v58 = vpop.f32.mrf.mxu0 }
 0x47c   : > { %13634 = vst [vmem:[#allocation51_spill] sm:$0xff] %v11209_v58 }
 0x491   : > { %v11178_v19 = vpop.f32.mrf.mxu1 }
 0x492   : > { %13630 = vst [vmem:[#allocation47_spill] sm:$0xff] %v11178_v19  ;;  %v2854_v5 = vsel %vm1967_vm0, %v11178_v19, -inf  ;;  %v2964_v19 = vmul.f32 1.442695, %v2886_v41  ;;  %v2960_v41 = vmul.f32 1.442695, %v2884_v57 }
 0x493   : > { %v11183_v13 = vpop.f32.mrf.mxu1  ;;  %2855 = vmax.xlane.f32.xlu0 %v2854_v5  ;;  %v2736_v5 = vpop.xlane.xlu0 %2735 }
 0x494   : > { %v2848_v33 = vsel %vm1967_vm0, %v11183_v13, -inf  ;;  %9254 = vpow2.f32 %v2964_v19  ;;  %v2890_v15 = vsub.f32 %v10975_v23, %v2736_v5  ;;  %v2836_v23 = vsel %vm1967_vm0, %v11209_v58, -inf }
 0x495   : > { %v11186_v52 = vpop.f32.mrf.mxu1  ;;  %9256 = vpow2.f32 %v2960_v41  ;;  %v2881_v5 = vsub.f32 %v10917_v6, %v2709_v48 }
 0x496   : > { %13631 = vst [vmem:[#allocation48_spill] sm:$0xff] %v11186_v52  ;;  %v2857_v35 = vsel %vm1967_vm0, %v11186_v52, -inf  ;;  %v2727_v52 = vpop.xlane.xlu1 %2726 }
 0x497   : > { %2825 = vmax.xlane.f32.xlu0 %v2824_v14  ;;  %2858 = vmax.xlane.f32.xlu1 %v2857_v35  ;;  %v11201_v50 = vpop.f32.mrf.mxu1  ;;  %v2883_v14 = vsub.f32 %v10910_v63, %v2715_v4  ;;  %v2842_v35 = vsel %vm1967_vm0, %v11195_v2, -inf  ;;  %v2972_v63 = vmul.f32 1.442695, %v2890_v15  ;;  %v11217_v4 = vpop.eup %9250  ;;  %v2887_v6 = vsub.f32 %v10929_v53, %v2727_v52 }
 0x498   : > { %v2851_v61 = vsel %vm1967_vm0, %v11201_v50, -inf  ;;  %13636 = vst [vmem:[#allocation53_spill] sm:$0xff] %v11217_v4  ;;  %v3094_v15 = vsel %vm1967_vm0, %v11217_v4, 0.0 }
 0x499   : > { %v11211_v3 = vpop.f32.mrf.mxu1  ;;  %v2966_v53 = vmul.f32 1.442695, %v2887_v6 }
 0x49a   : > { %13635 = vst [vmem:[#allocation52_spill] sm:$0xff] %v11211_v3  ;;  %v2866_v19 = vsel %vm1967_vm0, %v11211_v3, -inf  ;;  %v11228_v3 = vpop.f32.mrf.mxu0 }
 0x49b   : > { %2849 = vmax.xlane.f32.xlu0 %v2848_v33  ;;  %2828 = vmax.xlane.f32.xlu1 %v2827_v30  ;;  %v2958_v33 = vmul.f32 1.442695, %v2883_v14  ;;  %v2721_v30 = vpop.xlane.xlu1 %2720  ;;  %v11219_v57 = vpop.f32.mrf.mxu1  ;;  %13638 = vst [vmem:[#allocation55_spill] sm:$0xff] %v11228_v3 }
 0x49c   : > { %13637 = vst [vmem:[#allocation54_spill] sm:$0xff] %v11219_v57  ;;  %v2860_v41 = vsel %vm1967_vm0, %v11219_v57, -inf  ;;  %v2845_v57 = vsel %vm1967_vm0, %v11228_v3, -inf }
 0x49d   : > { %9258 = vpow2.f32 %v2958_v33  ;;  %v2954_v33 = vmul.f32 1.442695, %v2881_v5  ;;  %v11240_v2 = vpop.f32.mrf.mxu1 }
 0x49e   : > { %9260 = vpow2.f32 %v2972_v63 }
 0x49f   : > { %2852 = vmax.xlane.f32.xlu1 %v2851_v61  ;;  %2843 = vmax.xlane.f32.xlu0 %v2842_v35  ;;  %v2739_v14 = vpop.xlane.xlu1 %2738  ;;  %v11226_v35 = vpop.eup %9252 }
 0x4a0   : > { %v3088_v4 = vsel %vm1967_vm0, %v11226_v35, 0.0 }
 0x4a1   : > { %v11232_v63 = vpop.eup %9254 }
 0x4a2   : > { %v11248_v3 = vpop.eup %9256 }
 0x4a3   : > { %2867 = vmax.xlane.f32.xlu1 %v2866_v19  ;;  %2837 = vmax.xlane.f32.xlu0 %v2836_v23 }
 0x4a6   : > { %v2760_v61 = vpop.xlane.xlu0 %2759 }
 0x4a7   : > { %v2898_v58 = vsub.f32 %v10991_v54, %v2760_v61  ;;  %2861 = vmax.xlane.f32.xlu1 %v2860_v41  ;;  %3095 = vadd.xlane.f32.xlu0 %v3094_v15  ;;  %v3106_v41 = vsel %vm1967_vm0, %v11232_v63, 0.0  ;;  %v2869_v15 = vsel %vm1967_vm0, %v11240_v2, -inf }
 0x4a9   : > { %v2988_v48 = vmul.f32 1.442695, %v2898_v58  ;;  %v2885_v58 = vsub.f32 %v10933_v28, %v2721_v30 }
 0x4aa   : > { %v11234_v19 = vpop.xlane.xlu1 %2762  ;;  %v2730_v23 = vpop.xlane.xlu0 %2729 }
 0x4ab   : > { %9262 = vpow2.f32 %v2988_v48  ;;  %v2888_v54 = vsub.f32 %v10979_v26, %v2730_v23  ;;  %3089 = vadd.xlane.f32.xlu0 %v3088_v4  ;;  %2846 = vmax.xlane.f32.xlu1 %v2845_v57  ;;  %v11250_v48 = vpop.f32.mrf.mxu0  ;;  %v11252_v26 = vpop.eup %9258  ;;  %v2962_v4 = vmul.f32 1.442695, %v2885_v58 }
 0x4ac   : > { %9264 = vpow2.f32 %v2954_v33  ;;  %13639 = vst [vmem:[#allocation56_spill] sm:$0xff] %v11250_v48  ;;  %v3100_v33 = vsel %vm1967_vm0, %v11248_v3, 0.0  ;;  %v2839_v6 = vsel %vm1967_vm0, %v11250_v48, -inf  ;;  %v11259_v23 = vpop.eup %9260  ;;  %v11269_v48 = vpop.f32.mrf.mxu1 }
 0x4ad   : > { %v2968_v52 = vmul.f32 1.442695, %v2888_v54  ;;  %13640 = vst [vmem:[#allocation57_spill] sm:$0xff] %v11259_v23 }
 0x4ae   : > { %v2733_v5 = vpop.xlane.xlu1 %2732  ;;  %v2754_v61 = vpop.xlane.xlu0 %2753 }
 0x4af   : > { %3107 = vadd.xlane.f32.xlu0 %v3106_v41  ;;  %2870 = vmax.xlane.f32.xlu1 %v2869_v15  ;;  %9266 = vpow2.f32 %v2968_v52  ;;  %v2896_v28 = vsub.f32 %v10995_v43, %v2754_v61  ;;  %v3118_v41 = vsel %vm1967_vm0, %v11259_v23, 0.0  ;;  %v3097_v15 = vsel %vm1967_vm0, %v11252_v26, 0.0 }
 0x4b0   : > { %9268 = vpow2.f32 %v2966_v53  ;;  %v2891_v53 = vsub.f32 %v10981_v24, %v2739_v14 }
 0x4b1   : > { %9270 = vpow2.f32 %v2962_v4  ;;  %v2984_v58 = vmul.f32 1.442695, %v2896_v28  ;;  %v2899_v4 = vsub.f32 %v10999_v7, %v11234_v19 }
 0x4b2   : > { %v2757_v30 = vpop.xlane.xlu1 %2756  ;;  %v2748_v57 = vpop.xlane.xlu0 %2747  ;;  %v2974_v24 = vmul.f32 1.442695, %v2891_v53  ;;  %v2889_v53 = vsub.f32 %v10985_v38, %v2733_v5 }
 0x4b3   : > { %v2894_v54 = vsub.f32 %v10989_v36, %v2748_v57  ;;  %3101 = vadd.xlane.f32.xlu0 %v3100_v33  ;;  %2840 = vmax.xlane.f32.xlu1 %v2839_v6  ;;  %v2863_v6 = vsel %vm1967_vm0, %v11269_v48, -inf  ;;  %v2897_v5 = vsub.f32 %v11007_v45, %v2757_v30 }
 0x4b4   : > { %v2970_v38 = vmul.f32 1.442695, %v2889_v53 }
 0x4b5   : > { %v2980_v52 = vmul.f32 1.442695, %v2894_v54 }
 0x4b6   : > { %v11263_v43 = vpop.xlane.xlu1 %2750  ;;  %v2772_v61 = vpop.xlane.xlu0 %2771 }
 0x4b7   : > { %3119 = vadd.xlane.f32.xlu0 %v3118_v41  ;;  %3098 = vadd.xlane.f32.xlu1 %v3097_v15  ;;  %9272 = vpow2.f32 %v2980_v52  ;;  %v2902_v45 = vsub.f32 %v11017_v44, %v2772_v61  ;;  %v2895_v44 = vsub.f32 %v11009_v29, %v11263_v43 }
 0x4b8   : > { %v11271_v36 = vpop.eup %9262  ;;  %9274 = vpow2.f32 %v2984_v58  ;;  %v2990_v58 = vmul.f32 1.442695, %v2899_v4 }
 0x4b9   : > { %13641 = vst [vmem:[#allocation58_spill] sm:$0xff] %v11271_v36  ;;  %v11273_v14 = vpop.eup %9264  ;;  %v3142_v33 = vsel %vm1967_vm0, %v11271_v36, 0.0  ;;  %9276 = vpow2.f32 %v2974_v24  ;;  %v2996_v61 = vmul.f32 1.442695, %v2902_v45 }
 0x4ba   : > { %v2775_v28 = vpop.xlane.xlu1 %2774  ;;  %v2742_v57 = vpop.xlane.xlu0 %2741  ;;  %v3091_v7 = vsel %vm1967_vm0, %v11273_v14, 0.0 }
 0x4bb   : > { %v2892_v54 = vsub.f32 %v10997_v39, %v2742_v57  ;;  %3143 = vadd.xlane.f32.xlu0 %v3142_v33  ;;  %2864 = vmax.xlane.f32.xlu1 %v2863_v6  ;;  %v2903_v15 = vsub.f32 %v11039_v9, %v2775_v28 }
 0x4bc   : > { %v11282_v52 = vpop.eup %9266 }
 0x4bd   : > { %v2976_v41 = vmul.f32 1.442695, %v2892_v54  ;;  %v11287_v19 = vpop.eup %9268  ;;  %v3112_v39 = vsel %vm1967_vm0, %v11282_v52, 0.0  ;;  %v2998_v6 = vmul.f32 1.442695, %v2903_v15 }
 0x4be   : > { %v2745_v36 = vpop.xlane.xlu1 %2744  ;;  %v2766_v23 = vpop.xlane.xlu0 %2765  ;;  %v3109_v9 = vsel %vm1967_vm0, %v11287_v19, 0.0 }
 0x4bf   : > { %v2900_v57 = vsub.f32 %v11027_v12, %v2766_v23  ;;  %3113 = vadd.xlane.f32.xlu0 %v3112_v39  ;;  %3092 = vadd.xlane.f32.xlu1 %v3091_v7  ;;  %9278 = vpow2.f32 %v2976_v41  ;;  %v11296_v28 = vpop.eup %9270  ;;  %v2986_v23 = vmul.f32 1.442695, %v2897_v5  ;;  %v2893_v29 = vsub.f32 %v11019_v56, %v2745_v36 }
 0x4c0   : > { %9280 = vpow2.f32 %v2990_v58  ;;  %v3103_v58 = vsel %vm1967_vm0, %v11296_v28, 0.0 }
 0x4c1   : > { %v2992_v33 = vmul.f32 1.442695, %v2900_v57  ;;  %v2978_v56 = vmul.f32 1.442695, %v2893_v29 }
 0x4c2   : > { %v2769_v24 = vpop.xlane.xlu1 %2768  ;;  %v2784_v4 = vpop.xlane.xlu0 %2783 }
 0x4c3   : > { %v2906_v54 = vsub.f32 %v11025_v22, %v2784_v4  ;;  %3110 = vadd.xlane.f32.xlu1 %v3109_v9  ;;  %9282 = vpow2.f32 %v2992_v33  ;;  %v2982_v4 = vmul.f32 1.442695, %v2895_v44  ;;  %v2901_v36 = vsub.f32 %v11061_v34, %v2769_v24 }
 0x4c4   : > { %v11299_v12 = vpop.eup %9272  ;;  %9284 = vpow2.f32 %v2970_v38 }
 0x4c5   : > { %9286 = vpow2.f32 %v2998_v6  ;;  %v3004_v30 = vmul.f32 1.442695, %v2906_v54  ;;  %v3130_v7 = vsel %vm1967_vm0, %v11299_v12, 0.0  ;;  %v11306_v15 = vpop.eup %9274  ;;  %v2994_v34 = vmul.f32 1.442695, %v2901_v36 }
 0x4c6   : > { %v2778_v53 = vpop.xlane.xlu0 %2777  ;;  %v2787_v41 = vpop.xlane.xlu1 %2786  ;;  %3131 = vadd.xlane.f32.xlu0 %v3130_v7  ;;  %9288 = vpow2.f32 %v2986_v23  ;;  %v3136_v5 = vsel %vm1967_vm0, %v11306_v15, 0.0 }
 0x4c7   : > { %v2904_v22 = vsub.f32 %v11037_v59, %v2778_v53  ;;  %3104 = vadd.xlane.f32.xlu1 %v3103_v58  ;;  %9290 = vpow2.f32 %v3004_v30  ;;  %v11315_v33 = vpop.eup %9276  ;;  %v2907_v24 = vsub.f32 %v11049_v25, %v2787_v41 }
 0x4c8   : > { %9292 = vpow2.f32 %v2996_v61  ;;  %v3121_v45 = vsel %vm1967_vm0, %v11315_v33, 0.0 }
 0x4c9   : > { %v3000_v39 = vmul.f32 1.442695, %v2904_v22  ;;  %v3006_v25 = vmul.f32 1.442695, %v2907_v24 }
 0x4ca   : > { %v11311_v57 = vpop.xlane.xlu1 %2780  ;;  %v2796_v38 = vpop.xlane.xlu0 %2795 }
 0x4cb   : > { %v2910_v6 = vsub.f32 %v11067_v21, %v2796_v38  ;;  %3137 = vadd.xlane.f32.xlu1 %v3136_v5  ;;  %9294 = vpow2.f32 %v3000_v39  ;;  %v2905_v41 = vsub.f32 %v11059_v8, %v11311_v57 }
 0x4cc   : > { %v11318_v59 = vpop.eup %9278  ;;  %9296 = vpow2.f32 %v2982_v4 }
 0x4cd   : > { %v3012_v43 = vmul.f32 1.442695, %v2910_v6  ;;  %v3124_v23 = vsel %vm1967_vm0, %v11318_v59, 0.0  ;;  %v11327_v30 = vpop.eup %9280 }
 0x4ce   : > { %v11321_v9 = vpop.xlane.xlu0 %2789  ;;  %v2799_v54 = vpop.xlane.xlu1 %2798  ;;  %3125 = vadd.xlane.f32.xlu0 %v3124_v23 }
 0x4cf   : > { %v2911_v21 = vsub.f32 %v11083_v1, %v2799_v54  ;;  %3122 = vadd.xlane.f32.xlu1 %v3121_v45  ;;  %9298 = vpow2.f32 %v3012_v43  ;;  %v3145_v1 = vsel %vm1967_vm0, %v11327_v30, 0.0  ;;  %v2908_v8 = vsub.f32 %v11075_v51, %v11321_v9 }
 0x4d0   : > { %v11330_v53 = vpop.eup %9282  ;;  %9300 = vpow2.f32 %v2978_v56 }
 0x4d1   : > { %v11333_v7 = vpop.eup %9284  ;;  %v3014_v58 = vmul.f32 1.442695, %v2911_v21  ;;  %v3148_v61 = vsel %vm1967_vm0, %v11330_v53, 0.0 }
 0x4d2   : > { %v2808_v22 = vpop.xlane.xlu0 %2807  ;;  %v2793_v44 = vpop.xlane.xlu1 %2792  ;;  %3149 = vadd.xlane.f32.xlu0 %v3148_v61  ;;  %v3115_v54 = vsel %vm1967_vm0, %v11333_v7, 0.0  ;;  %v3002_v61 = vmul.f32 1.442695, %v2905_v41 }
 0x4d3   : > { %v11339_v39 = vpop.eup %9286  ;;  %v2914_v38 = vsub.f32 %v11085_v60, %v2808_v22  ;;  %3146 = vadd.xlane.f32.xlu1 %v3145_v1  ;;  %9302 = vpow2.f32 %v3014_v58  ;;  %v2909_v51 = vsub.f32 %v11093_v20, %v2793_v44 }
 0x4d4   : > { %v11343_v5 = vpop.eup %9288  ;;  %v3157_v43 = vsel %vm1967_vm0, %v11339_v39, 0.0  ;;  %9304 = vpow2.f32 %v2994_v34 }
 0x4d5   : > { %v3020_v6 = vmul.f32 1.442695, %v2914_v38  ;;  %v11349_v23 = vpop.eup %9290  ;;  %v3139_v45 = vsel %vm1967_vm0, %v11343_v5, 0.0 }
 0x4d6   : > { %v2802_v4 = vpop.xlane.xlu0 %2801  ;;  %v2811_v29 = vpop.xlane.xlu1 %2810  ;;  %3158 = vadd.xlane.f32.xlu0 %v3157_v43  ;;  %v3166_v58 = vsel %vm1967_vm0, %v11349_v23, 0.0 }
 0x4d7   : > { %v2912_v60 = vsub.f32 %v11095_v40, %v2802_v4  ;;  %3116 = vadd.xlane.f32.xlu1 %v3115_v54  ;;  %v11356_v21 = vpop.eup %9292  ;;  %9306 = vpow2.f32 %v3020_v6  ;;  %v2915_v36 = vsub.f32 %v11102_v37, %v2811_v29  ;;  %v3008_v6 = vmul.f32 1.442695, %v2908_v8 }
 0x4d8   : > { %v11361_v40 = vpop.eup %9294  ;;  %9308 = vpow2.f32 %v3006_v25  ;;  %v3154_v57 = vsel %vm1967_vm0, %v11356_v21, 0.0  ;;  %v3010_v25 = vmul.f32 1.442695, %v2909_v51 }
 0x4d9   : > { %v3016_v56 = vmul.f32 1.442695, %v2912_v60  ;;  %v11367_v1 = vpop.eup %9296  ;;  %v3022_v37 = vmul.f32 1.442695, %v2915_v36  ;;  %v3160_v34 = vsel %vm1967_vm0, %v11361_v40, 0.0 }
 0x4da   : > { %v2805_v22 = vpop.xlane.xlu1 %2804  ;;  %3167 = vadd.xlane.f32.xlu0 %v3166_v58  ;;  %v3133_v4 = vsel %vm1967_vm0, %v11367_v1, 0.0 }
 0x4db   : > { %3140 = vadd.xlane.f32.xlu1 %v3139_v45  ;;  %9310 = vpow2.f32 %v3016_v56  ;;  %v2913_v38 = vsub.f32 %v11110_v42, %v2805_v22 }
 0x4dc   : > { %v11372_v24 = vpop.eup %9298  ;;  %9312 = vpow2.f32 %v3002_v61 }
 0x4dd   : > { %13642 = vst [vmem:[#allocation59_spill] sm:$0xff] %v11372_v24  ;;  %v11377_v29 = vpop.eup %9300  ;;  %9314 = vpow2.f32 %v3022_v37  ;;  %v3018_v43 = vmul.f32 1.442695, %v2913_v38  ;;  %v3178_v54 = vsel %vm1967_vm0, %v11372_v24, 0.0 }
 0x4de   : > { %3161 = vadd.xlane.f32.xlu0 %v3160_v34  ;;  %9316 = vpow2.f32 %v3008_v6  ;;  %v3127_v41 = vsel %vm1967_vm0, %v11377_v29, 0.0 }
 0x4df   : > { %3155 = vadd.xlane.f32.xlu1 %v3154_v57  ;;  %9318 = vpow2.f32 %v3018_v43 }
 0x4e0   : > { %v11382_v60 = vpop.eup %9302  ;;  %9320 = vpow2.f32 %v3010_v25 }
 0x4e1   : > { %v2820_v9 = vpop.xlane.xlu0 %2819  ;;  %13643 = vst [vmem:[#allocation60_spill] sm:$0xff] %v11382_v60  ;;  %v11386_v45 = vpop.eup %9304  ;;  %v3181_v36 = vsel %vm1967_vm0, %v11382_v60, 0.0 }
 0x4e2   : > { %v2918_v42 = vsub.f32 %v11118_v62, %v2820_v9  ;;  %3179 = vadd.xlane.f32.xlu0 %v3178_v54 }
 0x4e3   : > { %3134 = vadd.xlane.f32.xlu1 %v3133_v4 }
 0x4e4   : > { %v3028_v56 = vmul.f32 1.442695, %v2918_v42  ;;  %v11391_v58 = vpop.eup %9306 }
 0x4e5   : > { %v2814_v20 = vpop.xlane.xlu0 %2813  ;;  %v2823_v44 = vpop.xlane.xlu1 %2822  ;;  %13644 = vst [vmem:[#allocation61_spill] sm:$0xff] %v11391_v58  ;;  %v3190_v38 = vsel %vm1967_vm0, %v11391_v58, 0.0 }
 0x4e6   : > { %v2916_v62 = vsub.f32 %v11123_v18, %v2814_v20  ;;  %v2919_v22 = vsub.f32 %v11125_v11, %v2823_v44  ;;  %3182 = vadd.xlane.f32.xlu0 %v3181_v36  ;;  %v11394_v57 = vpop.eup %9308  ;;  %9322 = vpow2.f32 %v3028_v56  ;;  %v3151_v18 = vsel %vm1967_vm0, %v11386_v45, 0.0 }
 0x4e7   : > { %3128 = vadd.xlane.f32.xlu1 %v3127_v41  ;;  %v3169_v42 = vsel %vm1967_vm0, %v11394_v57, 0.0 }
 0x4e8   : > { %v3024_v37 = vmul.f32 1.442695, %v2916_v62  ;;  %v11400_v34 = vpop.eup %9310  ;;  %v3030_v6 = vmul.f32 1.442695, %v2919_v22 }
 0x4e9   : > { %v3072_v61 = vpop.xlane.xlu0 %3071  ;;  %v2817_v8 = vpop.xlane.xlu1 %2816  ;;  %v3184_v43 = vsel %vm1967_vm0, %v11400_v34, 0.0 }
 0x4ea   : > { %3191 = vadd.xlane.f32.xlu0 %v3190_v38  ;;  %v11402_v9 = vpop.eup %9312  ;;  %9324 = vpow2.f32 %v3024_v37  ;;  %v2917_v4 = vsub.f32 %v11133_v17, %v2817_v8 }
 0x4eb   : > { %3152 = vadd.xlane.f32.xlu1 %v3151_v18  ;;  %v11409_v54 = vpop.eup %9314  ;;  %9326 = vpow2.f32 %v3030_v6  ;;  %v3163_v56 = vsel %vm1967_vm0, %v11402_v9, 0.0 }
 0x4ec   : > { %v11411_v44 = vpop.eup %9316  ;;  %v3026_v41 = vmul.f32 1.442695, %v2917_v4  ;;  %v3193_v17 = vsel %vm1967_vm0, %v11409_v54, 0.0 }
 0x4ed   : > { %v3066_v11 = vpop.xlane.xlu0 %3065  ;;  %v3075_v51 = vpop.xlane.xlu1 %3074  ;;  %13645 = vst [vmem:[#allocation62_spill] sm:$0xff] %v11411_v44  ;;  %v3172_v37 = vsel %vm1967_vm0, %v11411_v44, 0.0 }
 0x4ee   : > { %3185 = vadd.xlane.f32.xlu0 %v3184_v43  ;;  %9328 = vrcp.f32 %v3075_v51  ;;  %v11417_v62 = vpop.eup %9318 }
 0x4ef   : > { %3170 = vadd.xlane.f32.xlu1 %v3169_v42  ;;  %9330 = vrcp.f32 %v3066_v11  ;;  %13646 = vst [vmem:[#allocation63_spill] sm:$0xff] %v11417_v62  ;;  %v11419_v8 = vpop.eup %9320 }
 0x4f0   : > { %9332 = vrcp.f32 %v3072_v61  ;;  %13647 = vst [vmem:[#allocation64_spill] sm:$0xff] %v11419_v8  ;;  %v3187_v61 = vsel %vm1967_vm0, %v11417_v62, 0.0  ;;  %v3175_v11 = vsel %vm1967_vm0, %v11419_v8, 0.0  ;;  %v13677_v8 = vld [vmem:[#allocation53_spill] sm:$0xff] }
 0x4f1   : > { %v3084_v25 = vpop.xlane.xlu0 %3083  ;;  %v3069_v20 = vpop.xlane.xlu1 %3068 }
 0x4f2   : > { %9334 = vrcp.f32 %v3069_v20  ;;  %3194 = vadd.xlane.f32.xlu0 %v3193_v17 }
 0x4f3   : > { %3164 = vadd.xlane.f32.xlu1 %v3163_v56  ;;  %9336 = vpow2.f32 %v3026_v41  ;;  %v11425_v38 = vpop.eup %9322 }
 0x4f4   : > { %13648 = vst [vmem:[#allocation65_spill] sm:$0xff] %v11425_v38  ;;  %v3202_v6 = vsel %vm1967_vm0, %v11425_v38, 0.0 }
 0x4f5   : > { %v3078_v36 = vpop.xlane.xlu0 %3077  ;;  %v3087_v22 = vpop.xlane.xlu1 %3086 }
 0x4f6   : > { %9338 = vrcp.f32 %v3078_v36  ;;  %3188 = vadd.xlane.f32.xlu0 %v3187_v61 }
 0x4f7   : > { %3173 = vadd.xlane.f32.xlu1 %v3172_v37  ;;  %9340 = vrcp.f32 %v3087_v22  ;;  %v11431_v51 = vpop.eup %9324 }
 0x4f8   : > { %9342 = vrcp.f32 %v3084_v25  ;;  %13649 = vst [vmem:[#allocation66_spill] sm:$0xff] %v11431_v51  ;;  %v11433_v4 = vpop.eup %9326  ;;  %v3196_v25 = vsel %vm1967_vm0, %v11431_v51, 0.0 }
 0x4f9   : > { %v3081_v18 = vpop.xlane.xlu1 %3080  ;;  %13650 = vst [vmem:[#allocation67_spill] sm:$0xff] %v11433_v4 }
 0x4fa   : > { %9344 = vrcp.f32 %v3081_v18  ;;  %3203 = vadd.xlane.f32.xlu0 %v3202_v6  ;;  %v3205_v6 = vsel %vm1967_vm0, %v11433_v4, 0.0 }
 0x4fb   : > { %3176 = vadd.xlane.f32.xlu1 %v3175_v11  ;;  %v9329_v43 = vpop.eup %9328 }
 0x4fc   : > { %v2832_v42 = vpop.xlane.xlu0 %2831  ;;  %v9331_v20 = vpop.eup %9330  ;;  %v3323_v36 = vmul.f32 %v9329_v43, %v11141_v32 }
 0x4fd   : > { %v2922_v41 = vsub.f32 %v11167_v55, %v2832_v42  ;;  %v9333_v17 = vpop.eup %9332  ;;  %v3320_v61 = vmul.f32 %v9331_v20, %v11135_v10  ;;  %v1945_v10 = vpack.c.bf16 %v10825_v0, %v10817_v49  ;;  %v13654_v49 = vld [vmem:[#allocation19_spill] sm:$0xff] }
 0x4fe   : > { %v3322_v18 = vmul.f32 %v9333_v17, %v11131_v47 }
 0x4ff   : > { %3197 = vadd.xlane.f32.xlu1 %v3196_v25  ;;  %v9335_v56 = vpop.eup %9334  ;;  %v3036_v22 = vmul.f32 1.442695, %v2922_v41  ;;  %v13652_v41 = vld [vmem:[#allocation44_spill] sm:$0xff] }
 0x500   : > { %v3321_v37 = vmul.f32 %v9335_v56, %v11143_v31  ;;  %v11444_v55 = vpop.eup %9336  ;;  %v3385_v25 = vpack.c.bf16 %v3323_v36, %v3322_v18  ;;  %v13653_v36 = vld [vmem:[#allocation43_spill] sm:$0xff] }
 0x501   : > { %9346 = vpow2.f32 %v3036_v22  ;;  %13651 = vst [vmem:[#allocation68_spill] sm:$0xff] %v11444_v55  ;;  %v3199_v47 = vsel %vm1967_vm0, %v11444_v55, 0.0  ;;  %v13657_v18 = vld [vmem:[#allocation31_spill] sm:$0xff] }
 0x502   : > { %v3384_v11 = vpack.c.bf16 %v3321_v37, %v3320_v61  ;;  %v13655_v61 = vld [vmem:[#allocation18_spill] sm:$0xff]  ;;  %v13656_v37 = vld [vmem:[#allocation20_spill] sm:$0xff] }
 0x503   : > { %3206 = vadd.xlane.f32.xlu1 %v3205_v6  ;;  %v9339_v42 = vpop.eup %9338  ;;  %v8894_v6 = vunpack.i.h.bf16 %v13657_v18 }
 0x504   : > { %v9341_v38 = vpop.eup %9340  ;;  %8415 = vmatprep.mubr.msk.bf16.mxu0 %vm1967_vm0, %v3384_v11  ;;  %v3324_v43 = vmul.f32 %v9339_v42, %v11157_v46  ;;  %v8893_v46 = vunpack.i.l.bf16 %v13657_v18  ;;  %v2835_v42 = vpop.xlane.xlu1 %2834  ;;  %v13663_v18 = vld [vmem:[#allocation48_spill] sm:$0xff] }
 0x505   : > { %v9343_v32 = vpop.eup %9342  ;;  %8416 = vmatmul.mubr.msk.bf16.vlgmr.msra.gmra.mxu0 %vm1967_vm0, %v3385_v25  ;;  %v3327_v17 = vmul.f32 %v9341_v38, %v13652_v41 }
 0x506   : > { %8440 = vmatpush3.bf16.msra.mxu0 %v10823_v16  ;;  %v3326_v22 = vmul.f32 %v9343_v32, %v13653_v36  ;;  %v1943_v16 = vpack.c.bf16 %v13656_v37, %v13655_v61  ;;  %v11469_v11 = vpack.c.bf16 %v8894_v6, %v8893_v46  ;;  %v13659_v32 = vld [vmem:[#allocation47_spill] sm:$0xff]  ;;  %v13662_v61 = vld [vmem:[#allocation49_spill] sm:$0xff] }
 0x507   : > { %v9345_v31 = vpop.eup %9344  ;;  %3200 = vadd.xlane.f32.xlu1 %v3199_v47  ;;  %8441 = vmatprep.subr.bf16.mxu0 %v1945_v10 }
 0x508   : > { %v3325_v20 = vmul.f32 %v9345_v31, %v11163_v27  ;;  %v3387_v0 = vpack.c.bf16 %v3327_v17, %v3326_v22  ;;  %v13661_v17 = vld [vmem:[#allocation46_spill] sm:$0xff] }
 0x50a   : > { %v3386_v56 = vpack.c.bf16 %v3325_v20, %v3324_v43  ;;  %8442 = vmatpush3.bf16.msra.mxu0 %v1945_v10  ;;  %v13660_v20 = vld [vmem:[#allocation45_spill] sm:$0xff] }
 0x50b   : > { %8443 = vmatprep.subr.bf16.mxu0 %v13654_v49 }
 0x50c   : > { %8419 = vmatprep.mubr.msk.bf16.mxu0 %vm1967_vm0, %v3386_v56  ;;  %v2923_v56 = vsub.f32 %v13661_v17, %v2835_v42 }
 0x50d   : > { %8420 = vmatmul.mubr.msk.bf16.gmra.mxu0 %vm1967_vm0, %v3387_v0 }
 0x50e   : > { %v11464_v27 = vpop.eup %9346  ;;  %8444 = vmatpush3.bf16.msra.mxu0 %v13654_v49 }
 0x50f   : > { %13658 = vst [vmem:[#allocation44_spill] sm:$0xff] %v11464_v27  ;;  %8445 = vmatprep.subr.bf16.mxu0 %v1943_v16  ;;  %v3214_v38 = vsel %vm1967_vm0, %v11464_v27, 0.0 }
 0x510   : > { %3215 = vadd.xlane.f32.xlu0 %v3214_v38 }
 0x512   : > { %8446 = vmatpush3.bf16.msra.mxu0 %v1943_v16  ;;  %v3038_v16 = vmul.f32 1.442695, %v2923_v56 }
 0x513   : > { %8471 = vmatprep.subr.bf16.mxu0 %v11469_v11 }
 0x51c   : > { %v2856_v25 = vpop.xlane.xlu0 %2855 }
 0x51d   : > { %v2930_v10 = vsub.f32 %v13659_v32, %v2856_v25 }
 0x51f   : > { %v3052_v47 = vmul.f32 1.442695, %v2930_v10 }
 0x520   : > { %v2826_v31 = vpop.xlane.xlu0 %2825  ;;  %v2859_v43 = vpop.xlane.xlu1 %2858 }
 0x521   : > { %9348 = vpow2.f32 %v3052_v47  ;;  %v2920_v41 = vsub.f32 %v13660_v20, %v2826_v31  ;;  %v2931_v6 = vsub.f32 %v13663_v18, %v2859_v43  ;;  %v13664_v31 = vld [vmem:[#allocation50_spill] sm:$0xff] }
 0x523   : > { %v3032_v36 = vmul.f32 1.442695, %v2920_v41  ;;  %v3054_v42 = vmul.f32 1.442695, %v2931_v6 }
 0x524   : > { %v2850_v22 = vpop.xlane.xlu0 %2849  ;;  %v2829_v49 = vpop.xlane.xlu1 %2828 }
 0x525   : > { %9350 = vpow2.f32 %v3032_v36  ;;  %v2928_v0 = vsub.f32 %v11183_v13, %v2850_v22  ;;  %v2921_v37 = vsub.f32 %v13662_v61, %v2829_v49 }
 0x527   : > { %v3048_v46 = vmul.f32 1.442695, %v2928_v0  ;;  %v3034_v38 = vmul.f32 1.442695, %v2921_v37 }
 0x528   : > { %v2853_v25 = vpop.xlane.xlu1 %2852  ;;  %v2844_v32 = vpop.xlane.xlu0 %2843 }
 0x529   : > { %9352 = vpow2.f32 %v3048_v46  ;;  %v2929_v10 = vsub.f32 %v11201_v50, %v2853_v25  ;;  %v2926_v20 = vsub.f32 %v13664_v31, %v2844_v32 }
 0x52a   : > { %9354 = vpow2.f32 %v3034_v38 }
 0x52b   : > { %9356 = vpow2.f32 %v3038_v16  ;;  %v3050_v47 = vmul.f32 1.442695, %v2929_v10  ;;  %v3044_v43 = vmul.f32 1.442695, %v2926_v20 }
 0x52c   : > { %v11480_v41 = vpop.xlane.xlu1 %2867  ;;  %v11482_v13 = vpop.xlane.xlu0 %2837 }
 0x52d   : > { %9358 = vpow2.f32 %v3050_v47 }
 0x52e   : > { %v11484_v17 = vpop.eup %9348  ;;  %9360 = vpow2.f32 %v3054_v42 }
 0x52f   : > { %13665 = vst [vmem:[#allocation43_spill] sm:$0xff] %v11484_v17  ;;  %v3238_v56 = vsel %vm1967_vm0, %v11484_v17, 0.0  ;;  %9362 = vpow2.f32 %v3044_v43 }
 0x530   : > { %v11488_v36 = vpop.xlane.xlu1 %2861  ;;  %3239 = vadd.xlane.f32.xlu0 %v3238_v56  ;;  %v3096_v50 = vpop.xlane.xlu0 %3095 }
 0x532   : > { %v11490_v22 = vpop.eup %9350 }
 0x533   : > { %13666 = vst [vmem:[#allocation19_spill] sm:$0xff] %v11490_v22  ;;  %v3208_v49 = vsel %vm1967_vm0, %v11490_v22, 0.0 }
 0x534   : > { %3209 = vadd.xlane.f32.xlu0 %v3208_v49  ;;  %v3090_v0 = vpop.xlane.xlu0 %3089  ;;  %v11494_v61 = vpop.xlane.xlu1 %2846 }
 0x536   : > { %v11496_v37 = vpop.eup %9352 }
 0x537   : > { %13667 = vst [vmem:[#allocation18_spill] sm:$0xff] %v11496_v37  ;;  %v11498_v16 = vpop.eup %9354  ;;  %v3232_v18 = vsel %vm1967_vm0, %v11496_v37, 0.0 }
 0x538   : > { %13668 = vst [vmem:[#allocation20_spill] sm:$0xff] %v11498_v16  ;;  %v11502_v6 = vpop.eup %9356  ;;  %3233 = vadd.xlane.f32.xlu0 %v3232_v18  ;;  %v3108_v46 = vpop.xlane.xlu0 %3107  ;;  %v3211_v25 = vsel %vm1967_vm0, %v11498_v16, 0.0  ;;  %v13676_v16 = vld [vmem:[#allocation54_spill] sm:$0xff] }
 0x539   : > { %13669 = vst [vmem:[#allocation31_spill] sm:$0xff] %v11502_v6  ;;  %v11504_v38 = vpop.xlane.xlu1 %2870  ;;  %3212 = vadd.xlane.f32.xlu1 %v3211_v25  ;;  %v3217_v10 = vsel %vm1967_vm0, %v11502_v6, 0.0  ;;  %v2932_v22 = vsub.f32 %v13676_v16, %v11488_v36 }
 0x53a   : > { %v11508_v32 = vpop.eup %9358 }
 0x53b   : > { %13670 = vst [vmem:[#allocation47_spill] sm:$0xff] %v11508_v32  ;;  %v3235_v42 = vsel %vm1967_vm0, %v11508_v32, 0.0  ;;  %v11514_v47 = vpop.eup %9360  ;;  %v13673_v32 = vld [vmem:[#allocation27_spill] sm:$0xff]  ;;  %v3056_v24 = vmul.f32 1.442695, %v2932_v22 }
 0x53c   : > { %13671 = vst [vmem:[#allocation45_spill] sm:$0xff] %v11514_v47  ;;  %3218 = vadd.xlane.f32.xlu0 %v3217_v10  ;;  %v3102_v20 = vpop.xlane.xlu0 %3101  ;;  %v3241_v43 = vsel %vm1967_vm0, %v11514_v47, 0.0  ;;  %v11520_v56 = vpop.eup %9362  ;;  %v13674_v47 = vld [vmem:[#allocation30_spill] sm:$0xff] }
 0x53d   : > { %v11516_v31 = vpop.xlane.xlu1 %2840  ;;  %3236 = vadd.xlane.f32.xlu1 %v3235_v42  ;;  %13672 = vst [vmem:[#allocation46_spill] sm:$0xff] %v11520_v56  ;;  %v3226_v18 = vsel %vm1967_vm0, %v11520_v56, 0.0  ;;  %v8955_v37 = vpack.i.bf16 %v13674_v47, %v13673_v32 }
 0x540   : > { %3242 = vadd.xlane.f32.xlu0 %v3241_v43  ;;  %v3120_v25 = vpop.xlane.xlu0 %3119 }
 0x541   : > { %v3099_v49 = vpop.xlane.xlu1 %3098 }
 0x542   : > { %9364 = vrcp.f32 %v3099_v49 }
 0x543   : > { %9366 = vrcp.f32 %v3090_v0 }
 0x544   : > { %3227 = vadd.xlane.f32.xlu0 %v3226_v18  ;;  %9368 = vrcp.f32 %v3096_v50  ;;  %v11526_v42 = vpop.xlane.xlu0 %3143  ;;  %v13675_v50 = vld [vmem:[#allocation51_spill] sm:$0xff] }
 0x545   : > { %v11524_v17 = vpop.xlane.xlu1 %2864  ;;  %v2924_v27 = vsub.f32 %v13675_v50, %v11482_v13  ;;  %v13678_v13 = vld [vmem:[#allocation28_spill] sm:$0xff]  ;;  %v13679_v50 = vld [vmem:[#allocation26_spill] sm:$0xff] }
 0x546   : > { %v13680_v60 = vpack.i.bf16 %v13678_v13, %v13679_v50 }
 0x548   : > { %v3114_v43 = vpop.xlane.xlu0 %3113 }
 0x549   : > { %v3093_v10 = vpop.xlane.xlu1 %3092 }
 0x54a   : > { %9370 = vrcp.f32 %v3093_v10 }
 0x54b   : > { %9372 = vrcp.f32 %v3102_v20 }
 0x54d   : > { %v3111_v6 = vpop.xlane.xlu1 %3110 }
 0x54e   : > { %8956 = vrot.lane.b32.xlu1 %v8955_v37, %s9806_s14  ;;  %9374 = vrcp.f32 %v3111_v6 }
 0x54f   : > { %9376 = vrcp.f32 %v3108_v46  ;;  %v11531_v18 = vpop.xlane.xlu0 %3131  ;;  %v9365_v0 = vpop.eup %9364  ;;  %v3040_v46 = vmul.f32 1.442695, %v2924_v27 }
 0x550   : > { %v9367_v10 = vpop.eup %9366  ;;  %v3331_v37 = vmul.f32 %v9365_v0, %v11252_v26 }
 0x551   : > { %v3105_v56 = vpop.xlane.xlu1 %3104  ;;  %v9369_v55 = vpop.eup %9368 }
 0x552   : > { %9378 = vrcp.f32 %v3105_v56  ;;  %v3328_v56 = vmul.f32 %v9367_v10, %v11226_v35  ;;  %v3330_v44 = vmul.f32 %v9369_v55, %v13677_v8 }
 0x553   : > { %9380 = vpow2.f32 %v3040_v46  ;;  %v13687_v46 = vld [vmem:[#allocation33_spill] sm:$0xff] }
 0x554   : > { %v3389_v26 = vpack.c.bf16 %v3331_v37, %v3330_v44  ;;  %9382 = vpow2.f32 %v3056_v24  ;;  %v2935_v37 = vsub.f32 %v11240_v2, %v11504_v38  ;;  %v8913_v2 = vunpack.i.l.bf16 %v13687_v46 }
 0x555   : > { %v3138_v49 = vpop.xlane.xlu1 %3137 }
 0x556   : > { %v3062_v50 = vmul.f32 1.442695, %v2935_v37  ;;  %v13690_v37 = vld [vmem:[#allocation57_spill] sm:$0xff] }
 0x557   : > { %v9371_v51 = vpop.eup %9370  ;;  %v11538_v20 = vpop.xlane.xlu0 %3125 }
 0x558   : > { %v3329_v4 = vmul.f32 %v9371_v51, %v11273_v14  ;;  %v9373_v16 = vpop.eup %9372  ;;  %v1949_v14 = vpack.c.bf16 %v13674_v47, %v13673_v32  ;;  %v13683_v32 = vld [vmem:[#allocation55_spill] sm:$0xff] }
 0x559   : > { %v3123_v6 = vpop.xlane.xlu1 %3122  ;;  %v3332_v27 = vmul.f32 %v9373_v16, %v11248_v3  ;;  %v2927_v47 = vsub.f32 %v13683_v32, %v11494_v61  ;;  %v13684_v3 = vld [vmem:[#allocation24_spill] sm:$0xff]  ;;  %v13685_v61 = vld [vmem:[#allocation22_spill] sm:$0xff] }
 0x55a   : > { %8951 = vrot.lane.b32.xlu0 %v13680_v60, %s9806_s14  ;;  %v3388_v36 = vpack.c.bf16 %v3329_v4, %v3328_v56  ;;  %v13681_v60 = vld [vmem:[#allocation52_spill] sm:$0xff]  ;;  %9384 = vrcp.f32 %v3123_v6  ;;  %v13682_v4 = vld [vmem:[#allocation29_spill] sm:$0xff] }
 0x55b   : > { %v11547_v58 = vpop.xlane.xlu0 %3149  ;;  %v9375_v62 = vpop.eup %9374  ;;  %v2934_v51 = vsub.f32 %v13681_v60, %v11480_v41  ;;  %9386 = vrcp.f32 %v3114_v43  ;;  %v13688_v56 = vld [vmem:[#allocation56_spill] sm:$0xff]  ;;  %v3046_v38 = vmul.f32 1.442695, %v2927_v47 }
 0x55c   : > { %8431 = vmatprep.mubr.msk.bf16.mxu1 %vm1967_vm0, %v3388_v36  ;;  %v9377_v35 = vpop.eup %9376  ;;  %v3335_v24 = vmul.f32 %v9375_v62, %v11287_v19  ;;  %9388 = vrcp.f32 %v3120_v25  ;;  %v13686_v25 = vld [vmem:[#allocation25_spill] sm:$0xff]  ;;  %v2925_v13 = vsub.f32 %v13688_v56, %v11516_v31 }
 0x55d   : > { %v3147_v0 = vpop.xlane.xlu1 %3146  ;;  %8432 = vmatmul.mubr.msk.bf16.vlgmr.msra.gmra.mxu1 %vm1967_vm0, %v3389_v26  ;;  %v3334_v10 = vmul.f32 %v9377_v35, %v11232_v63  ;;  %v3060_v43 = vmul.f32 1.442695, %v2934_v51  ;;  %v1947_v6 = vpack.c.bf16 %v13686_v25, %v13685_v61  ;;  %v8914_v63 = vunpack.i.h.bf16 %v13687_v46 }
 0x55e   : > { %8456 = vmatpush3.bf16.msra.mxu1 %v13682_v4  ;;  %v3042_v31 = vmul.f32 1.442695, %v2925_v13  ;;  %v13689_v4 = vld [vmem:[#allocation34_spill] sm:$0xff] }
 0x55f   : > { %v9379_v8 = vpop.eup %9378  ;;  %8457 = vmatprep.subr.bf16.mxu1 %v1949_v14  ;;  %v11556_v44 = vpop.xlane.xlu0 %3158  ;;  %v3391_v19 = vpack.c.bf16 %v3335_v24, %v3334_v10 }
 0x560   : > { %v3333_v22 = vmul.f32 %v9379_v8, %v11296_v28  ;;  %v11583_v26 = vpop.eup %9380 }
 0x561   : > { %v3117_v55 = vpop.xlane.xlu1 %3116  ;;  %v11587_v35 = vpop.eup %9382 }
 0x562   : > { %9390 = vrcp.f32 %v3117_v55  ;;  %v3390_v41 = vpack.c.bf16 %v3333_v22, %v3332_v27  ;;  %8458 = vmatpush3.bf16.msra.mxu1 %v1949_v14  ;;  %v8899_v55 = vunpack.i.h.bf16 %v13689_v4  ;;  %v8898_v27 = vunpack.i.l.bf16 %v13689_v4 }
 0x563   : > { %9392 = vrcp.f32 %v3147_v0  ;;  %8459 = vmatprep.subr.bf16.mxu1 %v13684_v3  ;;  %v11567_v28 = vpop.xlane.xlu0 %3167  ;;  %v11585_v0 = vpack.c.bf16 %v8914_v63, %v8913_v2  ;;  %v13691_v63 = vld [vmem:[#allocation32_spill] sm:$0xff] }
 0x564   : > { %9394 = vrcp.f32 %v3138_v49  ;;  %8435 = vmatprep.mubr.msk.bf16.mxu1 %vm1967_vm0, %v3390_v41  ;;  %v2933_v49 = vsub.f32 %v11269_v48, %v11524_v17 }
 0x565   : > { %v3141_v62 = vpop.xlane.xlu1 %3140  ;;  %9396 = vrcp.f32 %v11526_v42  ;;  %8436 = vmatmul.mubr.msk.bf16.gmra.mxu1 %vm1967_vm0, %v3391_v19  ;;  %v3220_v19 = vsel %vm1967_vm0, %v11583_v26, 0.0 }
 0x566   : > { %9398 = vrcp.f32 %v3141_v62  ;;  %8460 = vmatpush3.bf16.msra.mxu1 %v13684_v3  ;;  %v3058_v42 = vmul.f32 1.442695, %v2933_v49  ;;  %v13692_v49 = vld [vmem:[#allocation58_spill] sm:$0xff] }
 0x567   : > { %9400 = vpow2.f32 %v3060_v43  ;;  %8461 = vmatprep.subr.bf16.mxu1 %v1947_v6  ;;  %v11581_v36 = vpop.xlane.xlu0 %3161  ;;  %v9385_v48 = vpop.eup %9384 }
 0x568   : > { %9402 = vpow2.f32 %v3046_v38  ;;  %v9387_v8 = vpop.eup %9386  ;;  %v3339_v22 = vmul.f32 %v9385_v48, %v11315_v33 }
 0x569   : > { %v3156_v16 = vpop.xlane.xlu1 %3155  ;;  %9404 = vpow2.f32 %v3062_v50  ;;  %v9389_v60 = vpop.eup %9388  ;;  %v3336_v41 = vmul.f32 %v9387_v8, %v11282_v52  ;;  %v1953_v52 = vpack.c.bf16 %v8899_v55, %v8898_v27 }
 0x56a   : > { %8462 = vmatpush3.bf16.msra.mxu1 %v1947_v6  ;;  %9406 = vpow2.f32 %v3042_v31  ;;  %v3338_v3 = vmul.f32 %v9389_v60, %v13690_v37 }
 0x56b   : > { %8487 = vmatprep.subr.bf16.mxu1 %v11585_v0  ;;  %v11590_v17 = vpop.xlane.xlu0 %3179  ;;  %9408 = vpow2.f32 %v3058_v42 }
 0x56c   : > { %v3393_v46 = vpack.c.bf16 %v3339_v22, %v3338_v3 }
 0x56d   : > { %v3135_v14 = vpop.xlane.xlu1 %3134 }
 0x56e   : > { %9410 = vrcp.f32 %v3135_v14  ;;  %v13694_v14 = vld [vmem:[#allocation37_spill] sm:$0xff] }
 0x56f   : > { %v9391_v51 = vpop.eup %9390  ;;  %9412 = vrcp.f32 %v11538_v20  ;;  %v11596_v32 = vpop.xlane.xlu0 %3182  ;;  %v8908_v8 = vunpack.i.l.bf16 %v13694_v14 }
 0x570   : > { %v9393_v24 = vpop.eup %9392  ;;  %v3337_v10 = vmul.f32 %v9391_v51, %v11333_v7  ;;  %9414 = vrcp.f32 %v11531_v18  ;;  %v8904_v7 = vunpack.i.h.bf16 %v13691_v63 }
 0x571   : > { %v3129_v47 = vpop.xlane.xlu1 %3128  ;;  %v9395_v43 = vpop.eup %9394  ;;  %v3347_v6 = vmul.f32 %v9393_v24, %v11327_v30  ;;  %v8903_v30 = vunpack.i.l.bf16 %v13691_v63 }
 0x572   : > { %v9397_v33 = vpop.eup %9396  ;;  %9416 = vrcp.f32 %v3129_v47  ;;  %3221 = vadd.xlane.f32.xlu1 %v3220_v19  ;;  %v3392_v62 = vpack.c.bf16 %v3337_v10, %v3336_v41  ;;  %v3344_v13 = vmul.f32 %v9395_v43, %v11306_v15 }
 0x573   : > { %v9399_v20 = vpop.eup %9398  ;;  %9418 = vrcp.f32 %v3156_v16  ;;  %v11607_v56 = vpop.xlane.xlu0 %3191  ;;  %v3346_v50 = vmul.f32 %v9397_v33, %v13692_v49  ;;  %v13693_v16 = vld [vmem:[#allocation38_spill] sm:$0xff]  ;;  %v1952_v24 = vpack.c.bf16 %v8904_v7, %v8903_v30 }
 0x574   : > { %9420 = vrcp.f32 %v11547_v58  ;;  %8447 = vmatprep.mubr.msk.bf16.mxu0 %vm1967_vm0, %v3392_v62  ;;  %v3345_v2 = vmul.f32 %v9399_v20, %v11343_v5  ;;  %v11612_v38 = vpop.eup %9400  ;;  %v3244_v58 = vsel %vm1967_vm0, %v11587_v35, 0.0  ;;  %v8919_v31 = vunpack.i.h.bf16 %v13693_v16  ;;  %v13696_v62 = vld [vmem:[#allocation40_spill] sm:$0xff] }
 0x575   : > { %v3153_v18 = vpop.xlane.xlu1 %3152  ;;  %9422 = vrcp.f32 %v11556_v44  ;;  %8448 = vmatmul.mubr.msk.bf16.vlgmr.msra.gmra.mxu0 %vm1967_vm0, %v3393_v46  ;;  %v8918_v42 = vunpack.i.l.bf16 %v13693_v16  ;;  %v11623_v5 = vpop.eup %9402  ;;  %v3397_v48 = vpack.c.bf16 %v3347_v6, %v3346_v50  ;;  %v8909_v44 = vunpack.i.h.bf16 %v13694_v14 }
 0x576   : > { %8472 = vmatpush3.bf16.msra.mxu0 %v11469_v11  ;;  %9424 = vrcp.f32 %v3153_v18  ;;  %3245 = vadd.xlane.f32.xlu1 %v3244_v58  ;;  %v3396_v15 = vpack.c.bf16 %v3345_v2, %v3344_v13  ;;  %v3250_v4 = vsel %vm1967_vm0, %v11612_v38, 0.0  ;;  %v11630_v55 = vpop.eup %9404  ;;  %v13695_v11 = vld [vmem:[#allocation35_spill] sm:$0xff]  ;;  %v3229_v41 = vsel %vm1967_vm0, %v11623_v5, 0.0 }
 0x577   : > { %8473 = vmatprep.subr.bf16.mxu0 %v1953_v52  ;;  %v3186_v60 = vpop.xlane.xlu0 %3185  ;;  %v8924_v27 = vunpack.i.h.bf16 %v13695_v11  ;;  %v8923_v22 = vunpack.i.l.bf16 %v13695_v11  ;;  %v11635_v47 = vpop.eup %9406  ;;  %9426 = vrcp.f32 %v11567_v28  ;;  %v1957_v10 = vpack.c.bf16 %v8919_v31, %v8918_v42 }
 0x578   : > { %8463 = vmatprep.mubr.msk.bf16.mxu1 %vm1967_vm0, %v3396_v15  ;;  %v11641_v43 = vpop.eup %9408  ;;  %v1951_v33 = vpack.c.bf16 %v8909_v44, %v8908_v8  ;;  %v8929_v20 = vunpack.i.h.bf16 %v13696_v62 }
 0x579   : > { %v3171_v51 = vpop.xlane.xlu1 %3170  ;;  %8464 = vmatmul.mubr.msk.bf16.vlgmr.msra.gmra.mxu1 %vm1967_vm0, %v3397_v48  ;;  %3251 = vadd.xlane.f32.xlu0 %v3250_v4  ;;  %v1956_v6 = vpack.c.bf16 %v8924_v27, %v8923_v22 }
 0x57a   : > { %8474 = vmatpush3.bf16.msra.mxu0 %v1953_v52  ;;  %8488 = vmatpush3.bf16.msra.mxu1 %v11585_v0  ;;  %9428 = vrcp.f32 %v3171_v51  ;;  %v8928_v0 = vunpack.i.l.bf16 %v13696_v62  ;;  %v13697_v52 = vld [vmem:[#allocation36_spill] sm:$0xff] }
 0x57b   : > { %3230 = vadd.xlane.f32.xlu1 %v3229_v41  ;;  %8475 = vmatprep.subr.bf16.mxu0 %v1952_v24  ;;  %v9411_v37 = vpop.eup %9410  ;;  %9430 = vrcp.f32 %v11581_v36  ;;  %v3195_v3 = vpop.xlane.xlu0 %3194  ;;  %v8934_v63 = vunpack.i.h.bf16 %v13697_v52  ;;  %v8933_v7 = vunpack.i.l.bf16 %v13697_v52  ;;  %v3223_v36 = vsel %vm1967_vm0, %v11635_v47, 0.0 }
 0x57c   : > { %8489 = vmatprep.subr.bf16.mxu1 %v1957_v10  ;;  %v9413_v28 = vpop.eup %9412  ;;  %9432 = vrcp.f32 %v3195_v3  ;;  %v3343_v13 = vmul.f32 %v9411_v37, %v11367_v1  ;;  %v1955_v31 = vpack.c.bf16 %v8929_v20, %v8928_v0  ;;  %v3253_v1 = vsel %vm1967_vm0, %v11630_v55, 0.0  ;;  %v13698_v3 = vld [vmem:[#allocation41_spill] sm:$0xff] }
 0x57d   : > { %v3165_v19 = vpop.xlane.xlu1 %3164  ;;  %v9415_v46 = vpop.eup %9414  ;;  %v3340_v50 = vmul.f32 %v9413_v28, %v11318_v59  ;;  %v1962_v48 = vpack.c.bf16 %v8934_v63, %v8933_v7  ;;  %v13702_v63 = vld [vmem:[#allocation63_spill] sm:$0xff] }
 0x57e   : > { %8476 = vmatpush3.bf16.msra.mxu0 %v1952_v24  ;;  %8490 = vmatpush3.bf16.msra.mxu1 %v1957_v10  ;;  %9434 = vrcp.f32 %v3165_v19  ;;  %v3342_v42 = vmul.f32 %v9415_v46, %v11299_v12  ;;  %v8939_v19 = vunpack.i.h.bf16 %v13698_v3  ;;  %v13700_v46 = vld [vmem:[#allocation21_spill] sm:$0xff] }
 0x57f   : > { %v9417_v18 = vpop.eup %9416  ;;  %9436 = vrcp.f32 %v3186_v60  ;;  %3224 = vadd.xlane.f32.xlu1 %v3223_v36  ;;  %8477 = vmatprep.subr.bf16.mxu0 %v1951_v33  ;;  %v3189_v30 = vpop.xlane.xlu0 %3188 }
 0x580   : > { %v9419_v2 = vpop.eup %9418  ;;  %9438 = vrcp.f32 %v11607_v56  ;;  %8491 = vmatprep.subr.bf16.mxu1 %v1956_v6  ;;  %v3341_v58 = vmul.f32 %v9417_v18, %v11377_v29  ;;  %v3395_v59 = vpack.c.bf16 %v3343_v13, %v3342_v42  ;;  %v13703_v18 = vld [vmem:[#allocation39_spill] sm:$0xff]  ;;  %v13704_v13 = vld [vmem:[#allocation61_spill] sm:$0xff]  ;;  %v13705_v42 = vld [vmem:[#allocation60_spill] sm:$0xff] }
 0x581   : > { %v3174_v49 = vpop.xlane.xlu1 %3173  ;;  %v9421_v16 = vpop.eup %9420  ;;  %9440 = vrcp.f32 %v3189_v30  ;;  %v3350_v29 = vmul.f32 %v9419_v2, %v11356_v21  ;;  %v3247_v21 = vsel %vm1967_vm0, %v11641_v43, 0.0 }
 0x582   : > { %v9423_v15 = vpop.eup %9422  ;;  %8478 = vmatpush3.bf16.msra.mxu0 %v1951_v33  ;;  %8492 = vmatpush3.bf16.msra.mxu1 %v1956_v6  ;;  %v3394_v56 = vpack.c.bf16 %v3341_v58, %v3340_v50  ;;  %9442 = vrcp.f32 %v11596_v32  ;;  %v3348_v44 = vmul.f32 %v9421_v16, %v11330_v53  ;;  %v8938_v33 = vunpack.i.l.bf16 %v13698_v3 }
 0x583   : > { %v9425_v14 = vpop.eup %9424  ;;  %3254 = vadd.xlane.f32.xlu1 %v3253_v1  ;;  %8493 = vmatprep.subr.bf16.mxu1 %v1955_v31  ;;  %9444 = vrcp.f32 %v3174_v49  ;;  %v3351_v32 = vmul.f32 %v9423_v15, %v11339_v39  ;;  %v3204_v62 = vpop.xlane.xlu0 %3203  ;;  %v8943_v49 = vunpack.i.l.bf16 %v13703_v18  ;;  %v13706_v1 = vld [vmem:[#allocation62_spill] sm:$0xff] }
 0x584   : > { %8503 = vmatprep.subr.bf16.mxu0 %v1962_v48  ;;  %8451 = vmatprep.mubr.msk.bf16.mxu0 %vm1967_vm0, %v3394_v56  ;;  %v3349_v8 = vmul.f32 %v9425_v14, %v11386_v45  ;;  %9446 = vrcp.f32 %v11590_v17  ;;  %v9427_v51 = vpop.eup %9426  ;;  %v1961_v58 = vpack.c.bf16 %v8939_v19, %v8938_v33  ;;  %v13707_v14 = vld [vmem:[#allocation64_spill] sm:$0xff] }
 0x585   : > { %v3177_v12 = vpop.xlane.xlu1 %3176  ;;  %8452 = vmatmul.mubr.msk.bf16.gmra.mxu0 %vm1967_vm0, %v3395_v59  ;;  %v3399_v4 = vpack.c.bf16 %v3351_v32, %v3350_v29  ;;  %v3354_v28 = vmul.f32 %v9427_v51, %v11349_v23  ;;  %v8944_v23 = vunpack.i.h.bf16 %v13703_v18  ;;  %v13708_v29 = vld [vmem:[#allocation42_spill] sm:$0xff]  ;;  %v13709_v32 = vld [vmem:[#allocation59_spill] sm:$0xff] }
 0x586   : > { %8494 = vmatpush3.bf16.msra.mxu1 %v1955_v31  ;;  %9448 = vrcp.f32 %v3177_v12  ;;  %v3398_v60 = vpack.c.bf16 %v3349_v8, %v3348_v44  ;;  %v8949_v12 = vunpack.i.h.bf16 %v13708_v29  ;;  %v8948_v44 = vunpack.i.l.bf16 %v13708_v29  ;;  %v13719_v29 = vld [vmem:[#allocation47_spill] sm:$0xff] }
 0x587   : > { %3248 = vadd.xlane.f32.xlu1 %v3247_v21  ;;  %v9429_v11 = vpop.eup %9428  ;;  %v1960_v8 = vpack.c.bf16 %v8944_v23, %v8943_v49  ;;  %v8965_v21 = vpack.i.bf16 %v13686_v25, %v13685_v61  ;;  %v13711_v25 = vld [vmem:[#allocation66_spill] sm:$0xff]  ;;  %v13715_v23 = vld [vmem:[#allocation20_spill] sm:$0xff] }
 0x588   : > { %8467 = vmatprep.mubr.msk.bf16.mxu1 %vm1967_vm0, %v3398_v60  ;;  %v9431_v45 = vpop.eup %9430  ;;  %v3355_v39 = vmul.f32 %v9429_v11, %v11394_v57  ;;  %v13699_v57 = vld [vmem:[#allocation23_spill] sm:$0xff] }
 0x589   : > { %v3198_v53 = vpop.xlane.xlu1 %3197  ;;  %8468 = vmatmul.mubr.msk.bf16.gmra.mxu1 %vm1967_vm0, %v3399_v4  ;;  %v9433_v17 = vpop.eup %9432  ;;  %v3352_v41 = vmul.f32 %v9431_v45, %v11361_v40  ;;  %v13701_v40 = vpack.i.bf16 %v13699_v57, %v13700_v46  ;;  %v1959_v4 = vpack.c.bf16 %v8949_v12, %v8948_v44 }
 0x58a   : > { %v3363_v0 = vmul.f32 %v9433_v17, %v11409_v54 }
 0x58b   : > { %v9435_v27 = vpop.eup %9434 }
 0x58c   : > { %v9437_v22 = vpop.eup %9436  ;;  %v3353_v10 = vmul.f32 %v9435_v27, %v11402_v9  ;;  %v3401_v9 = vpack.c.bf16 %v3355_v39, %v3354_v28  ;;  %v13710_v27 = vld [vmem:[#allocation67_spill] sm:$0xff] }
 0x58d   : > { %v3207_v24 = vpop.xlane.xlu1 %3206  ;;  %v9439_v37 = vpop.eup %9438  ;;  %v3360_v52 = vmul.f32 %v9437_v22, %v11400_v34  ;;  %v13712_v22 = vld [vmem:[#allocation68_spill] sm:$0xff] }
 0x58e   : > { %v9441_v20 = vpop.eup %9440  ;;  %9450 = vrcp.f32 %v3207_v24  ;;  %v3400_v6 = vpack.c.bf16 %v3353_v10, %v3352_v41  ;;  %v3362_v2 = vmul.f32 %v9439_v37, %v13704_v13  ;;  %v13713_v41 = vld [vmem:[#allocation65_spill] sm:$0xff] }
 0x58f   : > { %9452 = vrcp.f32 %v3198_v53  ;;  %8961 = vrot.lane.b32.xlu0 %v13701_v40, %s9806_s14  ;;  %v3361_v7 = vmul.f32 %v9441_v20, %v13702_v63  ;;  %v9443_v36 = vpop.eup %9442 }
 0x590   : > { %9454 = vrcp.f32 %v3204_v62  ;;  %8479 = vmatprep.mubr.msk.bf16.mxu0 %vm1967_vm0, %v3400_v6  ;;  %v9445_v30 = vpop.eup %9444  ;;  %v3405_v16 = vpack.c.bf16 %v3363_v0, %v3362_v2  ;;  %v3359_v15 = vmul.f32 %v9443_v36, %v13705_v42  ;;  %v13714_v36 = vld [vmem:[#allocation19_spill] sm:$0xff] }
 0x591   : > { %v3201_v54 = vpop.xlane.xlu1 %3200  ;;  %8480 = vmatmul.mubr.msk.bf16.vlgmr.msra.gmra.mxu0 %vm1967_vm0, %v3401_v9  ;;  %v3404_v50 = vpack.c.bf16 %v3361_v7, %v3360_v52  ;;  %v9447_v34 = vpop.eup %9446  ;;  %v3356_v56 = vmul.f32 %v9445_v30, %v13706_v1 }
 0x592   : > { %9456 = vrcp.f32 %v3201_v54  ;;  %8504 = vmatpush3.bf16.msra.mxu0 %v1962_v48  ;;  %v3358_v48 = vmul.f32 %v9447_v34, %v13709_v32 }
 0x593   : > { %v9449_v31 = vpop.eup %9448  ;;  %8495 = vmatprep.mubr.msk.bf16.mxu1 %vm1967_vm0, %v3404_v50  ;;  %8505 = vmatprep.subr.bf16.mxu0 %v1961_v58 }
 0x594   : > { %8496 = vmatmul.mubr.msk.bf16.vlgmr.msra.gmra.mxu1 %vm1967_vm0, %v3405_v16  ;;  %v3357_v59 = vmul.f32 %v9449_v31, %v13707_v14  ;;  %v3403_v51 = vpack.c.bf16 %v3359_v15, %v3358_v48  ;;  %v13716_v31 = vld [vmem:[#allocation44_spill] sm:$0xff]  ;;  %v13717_v15 = vld [vmem:[#allocation31_spill] sm:$0xff]  ;;  %v13718_v14 = vld [vmem:[#allocation18_spill] sm:$0xff] }
 0x596   : > { %8506 = vmatpush3.bf16.msra.mxu0 %v1961_v58  ;;  %v3402_v60 = vpack.c.bf16 %v3357_v59, %v3356_v56 }
 0x597   : > { %8507 = vmatprep.subr.bf16.mxu0 %v1960_v8 }
 0x598   : > { %8966 = vrot.lane.b32.xlu1 %v8965_v21, %s9806_s14  ;;  %8483 = vmatprep.mubr.msk.bf16.mxu0 %vm1967_vm0, %v3402_v60 }
 0x599   : > { %8484 = vmatmul.mubr.msk.bf16.gmra.mxu0 %vm1967_vm0, %v3403_v51  ;;  %v3216_v19 = vpop.xlane.xlu0 %3215 }
 0x59a   : > { %8508 = vmatpush3.bf16.msra.mxu0 %v1960_v8 }
 0x59b   : > { %v9451_v11 = vpop.eup %9450  ;;  %8509 = vmatprep.subr.bf16.mxu0 %v1959_v4 }
 0x59c   : > { %v9453_v53 = vpop.eup %9452  ;;  %v3367_v61 = vmul.f32 %v9451_v11, %v13710_v27 }
 0x59d   : > { %v9455_v45 = vpop.eup %9454  ;;  %v3364_v39 = vmul.f32 %v9453_v53, %v13711_v25 }
 0x59e   : > { %8510 = vmatpush3.bf16.msra.mxu0 %v1959_v4  ;;  %v3366_v10 = vmul.f32 %v9455_v45, %v13713_v41 }
 0x59f   : > { %v9457_v17 = vpop.eup %9456 }
 0x5a0   : > { %v3365_v24 = vmul.f32 %v9457_v17, %v13712_v22  ;;  %v3407_v3 = vpack.c.bf16 %v3367_v61, %v3366_v10 }
 0x5a2   : > { %v3406_v37 = vpack.c.bf16 %v3365_v24, %v3364_v39 }
 0x5a4   : > { %8499 = vmatprep.mubr.msk.bf16.mxu1 %vm1967_vm0, %v3406_v37 }
 0x5a5   : > { %8500 = vmatmul.mubr.msk.bf16.gmra.mxu1 %vm1967_vm0, %v3407_v3 }
 0x5b9   : > { %v3240_v33 = vpop.xlane.xlu0 %3239 }
 0x5bd   : > { %v3210_v28 = vpop.xlane.xlu0 %3209 }
 0x5be   : > { %9458 = vrcp.f32 %v3210_v28  ;;  %v13720_v28 = vld [vmem:[#allocation45_spill] sm:$0xff] }
 0x5c1   : > { %v3234_v62 = vpop.xlane.xlu0 %3233 }
 0x5c2   : > { %v3213_v20 = vpop.xlane.xlu1 %3212 }
 0x5c3   : > { %9460 = vrcp.f32 %v3213_v20 }
 0x5c4   : > { %9462 = vrcp.f32 %v3216_v19 }
 0x5c5   : > { %9464 = vrcp.f32 %v3234_v62  ;;  %v3219_v0 = vpop.xlane.xlu0 %3218 }
 0x5c6   : > { %9466 = vrcp.f32 %v3219_v0  ;;  %v3237_v6 = vpop.xlane.xlu1 %3236 }
 0x5c7   : > { %9468 = vrcp.f32 %v3237_v6 }
 0x5c8   : > { %9470 = vrcp.f32 %v3240_v33 }
 0x5c9   : > { %v3243_v57 = vpop.xlane.xlu0 %3242 }
 0x5ca   : > { %v8957_v9 = vpop.permute.xlu1 %8956  ;;  %9472 = vrcp.f32 %v3243_v57  ;;  %v13721_v57 = vld [vmem:[#allocation46_spill] sm:$0xff] }
 0x5cb   : > { %v9459_v40 = vpop.eup %9458  ;;  %v8959_v54 = vunpack.i.h.bf16 %v8957_v9  ;;  %v8958_v30 = vunpack.i.l.bf16 %v8957_v9 }
 0x5cc   : > { %v3368_v18 = vmul.f32 %v9459_v40, %v13714_v36  ;;  %v13722_v40 = vld [vmem:[#allocation43_spill] sm:$0xff] }
 0x5cd   : > { %v3228_v46 = vpop.xlane.xlu0 %3227  ;;  %v1965_v8 = vpack.c.bf16 %v8959_v54, %v8958_v30 }
 0x5d0   : > { %v9461_v52 = vpop.eup %9460 }
 0x5d1   : > { %v9463_v63 = vpop.eup %9462  ;;  %v8952_v7 = vpop.permute.xlu0 %8951  ;;  %v3369_v13 = vmul.f32 %v9461_v52, %v13715_v23 }
 0x5d2   : > { %v9465_v2 = vpop.eup %9464  ;;  %v8954_v49 = vunpack.i.h.bf16 %v8952_v7  ;;  %v8953_v50 = vunpack.i.l.bf16 %v8952_v7  ;;  %v3370_v42 = vmul.f32 %v9463_v63, %v13716_v31  ;;  %v11721_v52 = vpop.f32.mrf.mxu0  ;;  %v9083_v31 = vld [vmem:[#allocation7 + $0x30] sm:$0xff]  }
 0x5d3   : > { %v9467_v58 = vpop.eup %9466  ;;  %v3408_v34 = vpack.c.bf16 %v3369_v13, %v3368_v18  ;;  %v3376_v59 = vmul.f32 %v9465_v2, %v13718_v14 }
 0x5d4   : > { %v9469_v16 = vpop.eup %9468  ;;  %v3371_v1 = vmul.f32 %v9467_v58, %v13717_v15  ;;  %v1966_v56 = vpack.c.bf16 %v8954_v49, %v8953_v50  ;;  %v11725_v23 = vpop.f32.mrf.mxu0 }
 0x5d5   : > { %8511 = vmatprep.mubr.msk.bf16.mxu0 %vm1967_vm0, %v3408_v34  ;;  %v3377_v12 = vmul.f32 %v9469_v16, %v13719_v29  ;;  %v9471_v25 = vpop.eup %9470  ;;  %v9082_v16 = vld [vmem:[#allocation7 + $0x38] sm:$0xff]  }
 0x5d6   : > { %v3409_v44 = vpack.c.bf16 %v3371_v1, %v3370_v42  ;;  %8519 = vmatprep.subr.bf16.mxu1 %v1966_v56  ;;  %v3378_v9 = vmul.f32 %v9471_v25, %v13722_v40  ;;  %v11733_v49 = vpop.f32.mrf.mxu0  ;;  %8535 = vmatprep.subr.bf16.mxu0 %v9082_v16  ;;  %v9086_v29 = vld [vmem:[#allocation7 + $0x18] sm:$0xff]  }
 0x5d7   : > { %8520 = vmatpush3.bf16.msra.mxu1 %v1966_v56  ;;  %v3412_v32 = vpack.c.bf16 %v3377_v12, %v3376_v59  ;;  %v9473_v39 = vpop.eup %9472  ;;  %v9085_v56 = vld [vmem:[#allocation7 + $0x20] sm:$0xff]  }
 0x5d8   : > { %8512 = vmatmul.mubr.msk.bf16.vlgmr.msra.gmra.mxu0 %vm1967_vm0, %v3409_v44  ;;  %8521 = vmatprep.subr.bf16.mxu1 %v1965_v8  ;;  %v3379_v62 = vmul.f32 %v9473_v39, %v13720_v28  ;;  %v11739_v15 = vpop.f32.mrf.mxu0 }
 0x5d9   : > { %8527 = vmatprep.mubr.msk.bf16.mxu1 %vm1967_vm0, %v3412_v32  ;;  %8536 = vmatpush3.bf16.msra.mxu0 %v9082_v16 }
 0x5da   : > { %v3413_v18 = vpack.c.bf16 %v3379_v62, %v3378_v9  ;;  %8537 = vmatprep.subr.bf16.mxu0 %v9083_v31  ;;  %v11745_v1 = vpop.f32.mrf.mxu0 }
 0x5db   : > { %8522 = vmatpush3.bf16.msra.mxu1 %v1965_v8  ;;  %v9087_v8 = vld [vmem:[#allocation7 + $0x10] sm:$0xff]  }
 0x5dc   : > { %v11749_v14 = vpop.f32.mrf.mxu0 }
 0x5dd   : > { %8538 = vmatpush3.bf16.msra.mxu0 %v9083_v31 }
 0x5de   : > { %v11753_v12 = vpop.f32.mrf.mxu0 }
 0x5e0   : > { %v11757_v32 = vpop.f32.mrf.mxu0 }
 0x5fb   : > { %v3222_v48 = vpop.xlane.xlu1 %3221 }
 0x5ff   : > { %v3246_v21 = vpop.xlane.xlu1 %3245 }
 0x602   : > { %v3252_v60 = vpop.xlane.xlu0 %3251 }
 0x604   : > { %v3231_v51 = vpop.xlane.xlu1 %3230 }
 0x605   : > { %9474 = vrcp.f32 %v3231_v51 }
 0x606   : > { %v8962_v4 = vpop.permute.xlu0 %8961  ;;  %9476 = vrcp.f32 %v3222_v48 }
 0x607   : > { %v8964_v11 = vunpack.i.h.bf16 %v8962_v4  ;;  %v8963_v53 = vunpack.i.l.bf16 %v8962_v4  ;;  %9478 = vrcp.f32 %v3228_v46 }
 0x608   : > { %v3225_v45 = vpop.xlane.xlu1 %3224 }
 0x609   : > { %v1964_v17 = vpack.c.bf16 %v8964_v11, %v8963_v53  ;;  %9480 = vrcp.f32 %v3225_v45 }
 0x60a   : > { %9482 = vrcp.f32 %v3246_v21 }
 0x60b   : > { %8523 = vmatprep.subr.bf16.mxu1 %v1964_v17 }
 0x60c   : > { %v3255_v27 = vpop.xlane.xlu1 %3254  ;;  %8524 = vmatpush3.bf16.msra.mxu1 %v1964_v17 }
 0x60d   : > { %9484 = vrcp.f32 %v3255_v27 }
 0x60e   : > { %9486 = vrcp.f32 %v3252_v60 }
 0x610   : > { %v3249_v61 = vpop.xlane.xlu1 %3248 }
 0x611   : > { %9488 = vrcp.f32 %v3249_v61 }
 0x612   : > { %v9475_v22 = vpop.eup %9474 }
 0x613   : > { %v9477_v24 = vpop.eup %9476  ;;  %v3375_v33 = vmul.f32 %v9475_v22, %v11623_v5 }
 0x614   : > { %v8967_v41 = vpop.permute.xlu1 %8966  ;;  %v9479_v10 = vpop.eup %9478  ;;  %v3372_v0 = vmul.f32 %v9477_v24, %v11583_v26 }
 0x615   : > { %v8969_v37 = vunpack.i.h.bf16 %v8967_v41  ;;  %v8968_v3 = vunpack.i.l.bf16 %v8967_v41  ;;  %v3374_v46 = vmul.f32 %v9479_v10, %v13721_v57  ;;  %v9088_v41 = vld [vmem:[#allocation7 + $0x8] sm:$0xff]  }
 0x616   : > { %v9481_v19 = vpop.eup %9480 }
 0x617   : > { %v1963_v20 = vpack.c.bf16 %v8969_v37, %v8968_v3  ;;  %v3373_v6 = vmul.f32 %v9481_v19, %v11635_v47  ;;  %v3411_v7 = vpack.c.bf16 %v3375_v33, %v3374_v46  ;;  %v9483_v36 = vpop.eup %9482  ;;  %v9089_v19 = vld [vmem:[#allocation7] sm:$0xff]  }
 0x618   : > { %v3380_v2 = vmul.f32 %v9483_v36, %v11587_v35 }
 0x619   : > { %8525 = vmatprep.subr.bf16.mxu1 %v1963_v20  ;;  %v3410_v63 = vpack.c.bf16 %v3373_v6, %v3372_v0 }
 0x61a   : > { %8526 = vmatpush3.bf16.msra.mxu1 %v1963_v20  ;;  %v9485_v5 = vpop.eup %9484 }
 0x61b   : > { %8515 = vmatprep.mubr.msk.bf16.mxu0 %vm1967_vm0, %v3410_v63  ;;  %v9487_v26 = vpop.eup %9486  ;;  %v3383_v30 = vmul.f32 %v9485_v5, %v11630_v55  ;;  %v9084_v55 = vld [vmem:[#allocation7 + $0x28] sm:$0xff]  }
 0x61c   : > { %8516 = vmatmul.mubr.msk.bf16.gmra.mxu0 %vm1967_vm0, %v3411_v7  ;;  %v3382_v34 = vmul.f32 %v9487_v26, %v11612_v38  ;;  %8539 = vmatprep.subr.bf16.mxu0 %v9084_v55 }
 0x61d   : > { %8528 = vmatmul.mubr.msk.bf16.vlgmr.msra.gmra.mxu1 %vm1967_vm0, %v3413_v18  ;;  %v11728_v13 = vpop.f32.mrf.mxu1  ;;  %8540 = vmatpush3.bf16.msra.mxu0 %v9084_v55 }
 0x61e   : > { %v9489_v47 = vpop.eup %9488  ;;  %v3415_v42 = vpack.c.bf16 %v3383_v30, %v3382_v34  ;;  %8541 = vmatprep.subr.bf16.mxu0 %v9085_v56 }
 0x61f   : > { %v3381_v54 = vmul.f32 %v9489_v47, %v11641_v43  ;;  %v11735_v50 = vpop.f32.mrf.mxu1  ;;  %v13723_v43 = vmov 0  }
 0x621   : > { %v3414_v58 = vpack.c.bf16 %v3381_v54, %v3380_v2  ;;  %v11741_v35 = vpop.f32.mrf.mxu1  ;;  %8542 = vmatpush3.bf16.msra.mxu0 %v9085_v56 }
 0x622   : > { %8543 = vmatprep.subr.bf16.mxu0 %v9086_v29 }
 0x623   : > { %8531 = vmatprep.mubr.msk.bf16.mxu1 %vm1967_vm0, %v3414_v58  ;;  %v11747_v38 = vpop.f32.mrf.mxu1 }
 0x625   : > { %8532 = vmatmul.mubr.msk.bf16.gmra.mxu1 %vm1967_vm0, %v3415_v42  ;;  %v11751_v59 = vpop.f32.mrf.mxu1  ;;  %8544 = vmatpush3.bf16.msra.mxu0 %v9086_v29 }
 0x626   : > { %5164 = vmatprep.mubr.bf16.mxu1 %v13723_v43  ;;  %8545 = vmatprep.subr.bf16.mxu0 %v9087_v8 }
 0x627   : > { %v11755_v44 = vpop.f32.mrf.mxu1 }
 0x629   : > { %v11759_v48 = vpop.f32.mrf.mxu1  ;;  %8546 = vmatpush3.bf16.msra.mxu0 %v9087_v8 }
 0x62a   : > { %8547 = vmatprep.subr.bf16.mxu0 %v9088_v41 }
 0x62b   : > { %v11763_v60 = vpop.f32.mrf.mxu1 }
 0x62d   : > { %8548 = vmatpush3.bf16.msra.mxu0 %v9088_v41 }
 0x62e   : > { %8549 = vmatprep.subr.bf16.mxu0 %v9089_v19 }
 0x631   : > { %8550 = vmatpush3.bf16.msra.mxu0 %v9089_v19 }
 0x635   : > { %v11761_v21 = vpop.f32.mrf.mxu0 }
 0x637   : > { %v11765_v51 = vpop.f32.mrf.mxu0 }
 0x639   : > { %v11767_v4 = vpop.f32.mrf.mxu1  ;;  %v11769_v11 = vpop.f32.mrf.mxu0 }
 0x63b   : > { %v11771_v53 = vpop.f32.mrf.mxu1  ;;  %v11773_v45 = vpop.f32.mrf.mxu0 }
 0x63d   : > { %v11775_v17 = vpop.f32.mrf.mxu1 }
 0x63f   : > { %v11779_v61 = vpop.f32.mrf.mxu1 }
 0x645   : > { %v11777_v27 = vpop.f32.mrf.mxu0 }
 0x647   : > { %v11781_v25 = vpop.f32.mrf.mxu0 }
 0x649   : > { %v11783_v39 = vpop.f32.mrf.mxu1  ;;  %v11785_v22 = vpop.f32.mrf.mxu0 }
 0x64b   : > { %v11787_v24 = vpop.f32.mrf.mxu1  ;;  %v11789_v10 = vpop.f32.mrf.mxu0 }
 0x64d   : > { %v11791_v37 = vpop.f32.mrf.mxu1 }
 0x64f   : > { %v11793_v33 = vpop.f32.mrf.mxu1 }
 0x651   : > { %v8481_v3 = vpop.f32.mrf.mxu0 }
 0x653   : > { %v3770_v28 = vpop.f32.mrf.mxu0 }
 0x654   : > { %v8497_v62 = vpop.f32.mrf.mxu1 }
 0x655   : > { %v8482_v20 = vpop.f32.mrf.mxu0 }
 0x656   : > { %v3847_v57 = vpop.f32.mrf.mxu1  ;;  %v8975_v9 = vpack.i.bf16 %v8482_v20, %v8481_v3 }
 0x657   : > { %v3773_v0 = vpop.f32.mrf.mxu0 }
 0x658   : > { %v8970_v6 = vpack.i.bf16 %v3773_v0, %v3770_v28  ;;  %v8498_v63 = vpop.f32.mrf.mxu1 }
 0x659   : > { %v8485_v46 = vpop.f32.mrf.mxu0  ;;  %v8995_v47 = vpack.i.bf16 %v8498_v63, %v8497_v62 }
 0x65a   : > { %8971 = vrot.lane.b32.xlu0 %v8970_v6, %s9806_s14  ;;  %v3850_v26 = vpop.f32.mrf.mxu1 }
 0x65b   : > { %v3786_v40 = vpop.f32.mrf.mxu0  ;;  %v8990_v2 = vpack.i.bf16 %v3850_v26, %v3847_v57 }
 0x65d   : > { %v8486_v7 = vpop.f32.mrf.mxu0 }
 0x65e   : > { %v8985_v36 = vpack.i.bf16 %v8486_v7, %v8485_v46  ;;  %8976 = vrot.lane.b32.xlu0 %v8975_v9, %s9806_s14 }
 0x65f   : > { %v3789_v18 = vpop.f32.mrf.mxu0 }
 0x660   : > { %v8980_v5 = vpack.i.bf16 %v3789_v18, %v3786_v40  ;;  %8986 = vrot.lane.b32.xlu1 %v8985_v36, %s9806_s14 }
 0x662   : > { %8981 = vrot.lane.b32.xlu0 %v8980_v5, %s9806_s14 }
 0x664   : > { %8996 = vrot.lane.b32.xlu1 %v8995_v47, %s9806_s14 }
 0x665   : > { %v8501_v54 = vpop.f32.mrf.mxu1 }
 0x666   : > { %8991 = vrot.lane.b32.xlu0 %v8990_v2, %s9806_s14 }
 0x667   : > { %v3863_v30 = vpop.f32.mrf.mxu1 }
 0x669   : > { %v8502_v58 = vpop.f32.mrf.mxu1 }
 0x66a   : > { %v9005_v34 = vpack.i.bf16 %v8502_v58, %v8501_v54 }
 0x66b   : > { %v3866_v16 = vpop.f32.mrf.mxu1 }
 0x66c   : > { %v9000_v31 = vpack.i.bf16 %v3866_v16, %v3863_v30  ;;  %9006 = vrot.lane.b32.xlu1 %v9005_v34, %s9806_s14 }
 0x66e   : > { %9001 = vrot.lane.b32.xlu0 %v9000_v31, %s9806_s14 }
 0x698   : > { %v8513_v42 = vpop.f32.mrf.mxu0 }
 0x69a   : > { %v3924_v55 = vpop.f32.mrf.mxu0 }
 0x69c   : > { %v8514_v56 = vpop.f32.mrf.mxu0 }
 0x69d   : > { %v9015_v29 = vpack.i.bf16 %v8514_v56, %v8513_v42 }
 0x69e   : > { %v3927_v8 = vpop.f32.mrf.mxu0 }
 0x69f   : > { %v9010_v41 = vpack.i.bf16 %v3927_v8, %v3924_v55  ;;  %9016 = vrot.lane.b32.xlu1 %v9015_v29, %s9806_s14 }
 0x6a1   : > { %9011 = vrot.lane.b32.xlu0 %v9010_v41, %s9806_s14 }
 0x6cc   : > { %v8972_v3 = vpop.permute.xlu0 %8971 }
 0x6cd   : > { %v8974_v19 = vunpack.i.h.bf16 %v8972_v3  ;;  %v8973_v28 = vunpack.i.l.bf16 %v8972_v3 }
 0x6cf   : > { %v4160_v62 = vsel %vm1967_vm0, %v11725_v23, %v8973_v28  ;;  %v4161_v20 = vsel %vm1967_vm0, %v11739_v15, %v8974_v19 }
 0x6d0   : > { %v8977_v0 = vpop.permute.xlu0 %8976  ;;  %v4192_v6 = vpack.c.bf16 %v4161_v20, %v4160_v62 }
 0x6d1   : > { %v8979_v57 = vunpack.i.h.bf16 %v8977_v0  ;;  %v8978_v46 = vunpack.i.l.bf16 %v8977_v0 }
 0x6d2   : > { %8551 = vmatprep.mubr.bf16.mxu0 %v4192_v6  ;;  %v8987_v40 = vpop.permute.xlu1 %8986 }
 0x6d3   : > { %v4163_v9 = vsel %vm1967_vm0, %v11733_v49, %v8979_v57  ;;  %v4162_v63 = vsel %vm1967_vm0, %v11721_v52, %v8978_v46  ;;  %v8989_v18 = vunpack.i.h.bf16 %v8987_v40  ;;  %v8988_v5 = vunpack.i.l.bf16 %v8987_v40 }
 0x6d4   : > { %v4193_v7 = vpack.c.bf16 %v4163_v9, %v4162_v63  ;;  %v8982_v36 = vpop.permute.xlu0 %8981 }
 0x6d5   : > { %v8984_v23 = vunpack.i.h.bf16 %v8982_v36  ;;  %v8983_v26 = vunpack.i.l.bf16 %v8982_v36  ;;  %v4166_v52 = vsel %vm1967_vm0, %v11745_v1, %v8988_v5  ;;  %v4167_v58 = vsel %vm1967_vm0, %v11753_v12, %v8989_v18 }
 0x6d6   : > { %8552 = vmatmul.mubr.bf16.vlgmr.msra.gmra.mxu0 %v4193_v7  ;;  %v8997_v34 = vpop.permute.xlu1 %8996 }
 0x6d7   : > { %v4164_v15 = vsel %vm1967_vm0, %v11749_v14, %v8983_v26  ;;  %v4165_v47 = vsel %vm1967_vm0, %v11757_v32, %v8984_v23  ;;  %v4195_v32 = vpack.c.bf16 %v4167_v58, %v4166_v52  ;;  %v8999_v55 = vunpack.i.h.bf16 %v8997_v34 }
 0x6d8   : > { %v8992_v2 = vpop.permute.xlu0 %8991  ;;  %v4194_v54 = vpack.c.bf16 %v4165_v47, %v4164_v15  ;;  %v8998_v56 = vunpack.i.l.bf16 %v8997_v34 }
 0x6d9   : > { %v8994_v30 = vunpack.i.h.bf16 %v8992_v2  ;;  %v8993_v49 = vunpack.i.l.bf16 %v8992_v2 }
 0x6da   : > { %8555 = vmatprep.mubr.bf16.mxu0 %v4194_v54 }
 0x6db   : > { %v4168_v16 = vsel %vm1967_vm0, %v11735_v50, %v8993_v49  ;;  %v4169_v14 = vsel %vm1967_vm0, %v11747_v38, %v8994_v30  ;;  %v4171_v50 = vsel %vm1967_vm0, %v11741_v35, %v8999_v55  ;;  %v4170_v38 = vsel %vm1967_vm0, %v11728_v13, %v8998_v56 }
 0x6dc   : > { %v8517_v31 = vpop.f32.mrf.mxu0  ;;  %v4196_v42 = vpack.c.bf16 %v4169_v14, %v4168_v16  ;;  %v4197_v63 = vpack.c.bf16 %v4171_v50, %v4170_v38 }
 0x6dd   : > { %v8529_v29 = vpop.f32.mrf.mxu1 }
 0x6de   : > { %v3940_v8 = vpop.f32.mrf.mxu0  ;;  %8556 = vmatmul.mubr.bf16.gmra.mxu0 %v4195_v32  ;;  %v9007_v20 = vpop.permute.xlu1 %9006 }
 0x6df   : > { %v4001_v1 = vpop.f32.mrf.mxu1  ;;  %8559 = vmatprep.mubr.bf16.mxu0 %v4196_v42  ;;  %v9009_v35 = vunpack.i.h.bf16 %v9007_v20  ;;  %v9008_v7 = vunpack.i.l.bf16 %v9007_v20 }
 0x6e0   : > { %v9002_v41 = vpop.permute.xlu0 %9001  ;;  %v8518_v12 = vpop.f32.mrf.mxu0 }
 0x6e1   : > { %v9004_v3 = vunpack.i.h.bf16 %v9002_v41  ;;  %v9003_v19 = vunpack.i.l.bf16 %v9002_v41  ;;  %v9025_v28 = vpack.i.bf16 %v8518_v12, %v8517_v31  ;;  %v8530_v62 = vpop.f32.mrf.mxu1  ;;  %v4174_v5 = vsel %vm1967_vm0, %v11751_v59, %v9008_v7 }
 0x6e2   : > { %v3943_v0 = vpop.f32.mrf.mxu0  ;;  %v9035_v36 = vpack.i.bf16 %v8530_v62, %v8529_v29 }
 0x6e3   : > { %v4172_v6 = vsel %vm1967_vm0, %v11755_v44, %v9003_v19  ;;  %v4173_v57 = vsel %vm1967_vm0, %v11763_v60, %v9004_v3  ;;  %v9020_v46 = vpack.i.bf16 %v3943_v0, %v3940_v8  ;;  %9026 = vrot.lane.b32.xlu1 %v9025_v28, %s9806_s14  ;;  %v4004_v40 = vpop.f32.mrf.mxu1  ;;  %v4175_v60 = vsel %vm1967_vm0, %v11759_v48, %v9009_v35 }
 0x6e4   : > { %v4198_v9 = vpack.c.bf16 %v4173_v57, %v4172_v6  ;;  %v9030_v18 = vpack.i.bf16 %v4004_v40, %v4001_v1  ;;  %v4199_v47 = vpack.c.bf16 %v4175_v60, %v4174_v5 }
 0x6e5   : > { %9021 = vrot.lane.b32.xlu0 %v9020_v46, %s9806_s14  ;;  %v8533_v13 = vpop.f32.mrf.mxu1 }
 0x6e6   : > { %8560 = vmatmul.mubr.bf16.gmra.mxu0 %v4197_v63 }
 0x6e7   : > { %9036 = vrot.lane.b32.xlu1 %v9035_v36, %s9806_s14  ;;  %v4017_v44 = vpop.f32.mrf.mxu1  ;;  %8563 = vmatprep.mubr.bf16.mxu0 %v4198_v9 }
 0x6e9   : > { %9031 = vrot.lane.b32.xlu0 %v9030_v18, %s9806_s14  ;;  %v8534_v23 = vpop.f32.mrf.mxu1 }
 0x6ea   : > { %v9045_v26 = vpack.i.bf16 %v8534_v23, %v8533_v13 }
 0x6eb   : > { %v4020_v15 = vpop.f32.mrf.mxu1 }
 0x6ec   : > { %v9040_v2 = vpack.i.bf16 %v4020_v15, %v4017_v44  ;;  %9046 = vrot.lane.b32.xlu1 %v9045_v26, %s9806_s14  ;;  %v9555_v26 = vld [vmem:[%s10024_s30 + $0x10] sm:$0xff] }
 0x6ee   : > { %9041 = vrot.lane.b32.xlu0 %v9040_v2, %s9806_s14  ;;  %8564 = vmatmul.mubr.bf16.gmra.mxu0 %v4199_v47  ;;  %v9556_v2 = vld [vmem:[%s10024_s30 + $0x8] sm:$0xff] }
 0x711   : > { %v9017_v54 = vpop.permute.xlu1 %9016 }
 0x712   : > { %v9019_v30 = vunpack.i.h.bf16 %v9017_v54  ;;  %v9018_v49 = vunpack.i.l.bf16 %v9017_v54 }
 0x713   : > { %v9012_v52 = vpop.permute.xlu0 %9011 }
 0x714   : > { %v9014_v48 = vunpack.i.h.bf16 %v9012_v52  ;;  %v9013_v58 = vunpack.i.l.bf16 %v9012_v52  ;;  %v4179_v59 = vsel %vm1967_vm0, %v11769_v11, %v9019_v30  ;;  %v4178_v34 = vsel %vm1967_vm0, %v11761_v21, %v9018_v49  ;;  %v9557_v52 = vld [vmem:[%s10024_s30 + $0x18] sm:$0xff] }
 0x715   : > { %v4201_v32 = vpack.c.bf16 %v4179_v59, %v4178_v34 }
 0x716   : > { %v4176_v16 = vsel %vm1967_vm0, %v11765_v51, %v9013_v58  ;;  %v4177_v14 = vsel %vm1967_vm0, %v11773_v45, %v9014_v48 }
 0x717   : > { %v4200_v31 = vpack.c.bf16 %v4177_v14, %v4176_v16 }
 0x719   : > { %8567 = vmatprep.mubr.bf16.mxu0 %v4200_v31  ;;  %v9558_v31 = vld [vmem:[%s10024_s30 + $0x20] sm:$0xff] }
 0x71a   : > { %8568 = vmatmul.mubr.bf16.gmra.mxu0 %v4201_v32 }
 0x755   : > { %v9027_v42 = vpop.permute.xlu1 %9026 }
 0x756   : > { %v9029_v55 = vunpack.i.h.bf16 %v9027_v42  ;;  %v9028_v56 = vunpack.i.l.bf16 %v9027_v42 }
 0x757   : > { %v9022_v29 = vpop.permute.xlu0 %9021 }
 0x758   : > { %v9024_v8 = vunpack.i.h.bf16 %v9022_v29  ;;  %v9023_v1 = vunpack.i.l.bf16 %v9022_v29  ;;  %v4183_v11 = vsel %vm1967_vm0, %v11785_v22, %v9029_v55  ;;  %v4182_v21 = vsel %vm1967_vm0, %v11777_v27, %v9028_v56  ;;  %v9559_v55 = vld [vmem:[%s10024_s30 + $0x28] sm:$0xff] }
 0x759   : > { %v9037_v51 = vpop.permute.xlu1 %9036  ;;  %v4203_v19 = vpack.c.bf16 %v4183_v11, %v4182_v21  ;;  %v9561_v21 = vld [vmem:[%s10024_s30 + $0x38] sm:$0xff] }
 0x75a   : > { %v4180_v45 = vsel %vm1967_vm0, %v11781_v25, %v9023_v1  ;;  %v4181_v41 = vsel %vm1967_vm0, %v11789_v10, %v9024_v8  ;;  %v9039_v28 = vunpack.i.h.bf16 %v9037_v51  ;;  %v9038_v62 = vunpack.i.l.bf16 %v9037_v51  ;;  %v9560_v1 = vld [vmem:[%s10024_s30 + $0x30] sm:$0xff] }
 0x75b   : > { %v9032_v12 = vpop.permute.xlu0 %9031  ;;  %v4202_v3 = vpack.c.bf16 %v4181_v41, %v4180_v45 }
 0x75c   : > { %v9034_v50 = vunpack.i.h.bf16 %v9032_v12  ;;  %v9033_v38 = vunpack.i.l.bf16 %v9032_v12  ;;  %v4187_v10 = vsel %vm1967_vm0, %v11775_v17, %v9039_v28  ;;  %v4186_v0 = vsel %vm1967_vm0, %v11767_v4, %v9038_v62  ;;  %v9563_v62 = vld [vmem:[%s10024_s30 + $0x48] sm:$0xff] }
 0x75d   : > { %8571 = vmatprep.mubr.bf16.mxu0 %v4202_v3  ;;  %v4205_v9 = vpack.c.bf16 %v4187_v10, %v4186_v0  ;;  %v9565_v0 = vld [vmem:[%s10024_s30 + $0x58] sm:$0xff] }
 0x75e   : > { %8572 = vmatmul.mubr.bf16.gmra.mxu0 %v4203_v19  ;;  %v4184_v22 = vsel %vm1967_vm0, %v11771_v53, %v9033_v38  ;;  %v4185_v27 = vsel %vm1967_vm0, %v11779_v61, %v9034_v50  ;;  %v9047_v46 = vpop.permute.xlu1 %9046  ;;  %v9562_v50 = vld [vmem:[%s10024_s30 + $0x40] sm:$0xff] }
 0x75f   : > { %v4204_v20 = vpack.c.bf16 %v4185_v27, %v4184_v22  ;;  %v9049_v63 = vunpack.i.h.bf16 %v9047_v46  ;;  %v9048_v35 = vunpack.i.l.bf16 %v9047_v46 }
 0x760   : > { %v9042_v25 = vpop.permute.xlu0 %9041 }
 0x761   : > { %v9044_v6 = vunpack.i.h.bf16 %v9042_v25  ;;  %v9043_v57 = vunpack.i.l.bf16 %v9042_v25  ;;  %8575 = vmatprep.mubr.bf16.mxu0 %v4204_v20  ;;  %v4191_v4 = vsel %vm1967_vm0, %v11791_v37, %v9049_v63  ;;  %v4190_v17 = vsel %vm1967_vm0, %v11783_v39, %v9048_v35  ;;  %v9554_v39 = vld [vmem:[%s10024_s30] sm:$0xff]  ;;  %v9564_v25 = vld [vmem:[%s10024_s30 + $0x50] sm:$0xff]  ;;  %v9567_v35 = vld [vmem:[%s10024_s30 + $0x68] sm:$0xff] }
 0x762   : > { %v4207_v7 = vpack.c.bf16 %v4191_v4, %v4190_v17  ;;  %v9568_v17 = vld [vmem:[%s10024_s30 + $0x70] sm:$0xff] }
 0x763   : > { %v4188_v40 = vsel %vm1967_vm0, %v11787_v24, %v9043_v57  ;;  %v4189_v53 = vsel %vm1967_vm0, %v11793_v33, %v9044_v6  ;;  %v11879_v33 = vld [vmem:[%s13470_s5] ss:$0 sm:$0xff] }
 0x764   : > { %v4206_v61 = vpack.c.bf16 %v4189_v53, %v4188_v40 }
 0x766   : > { %8576 = vmatmul.mubr.bf16.gmra.mxu0 %v4205_v9  ;;  %v9566_v9 = vld [vmem:[%s10024_s30 + $0x60] sm:$0xff] }
 0x767   : > { %8579 = vmatprep.mubr.bf16.mxu0 %v4206_v61 }
 0x76e   : > { %8580 = vmatmul.mubr.bf16.gmra.mxu0 %v4207_v7 }
 0x76f   : > { %5357 = vmatprep.mubr.bf16.mxu0 %v13723_v43 }
 0x796   : > { %v8553_v24 = vpop.f32.mrf.mxu0 }
 0x797   : > { %v4322_v37 = vadd.f32 %v8553_v24, %v11879_v33  ;;  %v9569_v24 = vld [vmem:[%s10024_s30 + $0x78] sm:$0xff] }
 0x798   : > { %v4313_v36 = vpop.f32.mrf.mxu0 }
 0x799   : > { %v4314_v13 = vadd.f32 %v11879_v33, %v4313_v36  ;;  %v11889_v15 = vadd.f32 %v9555_v26, %v4322_v37 }
 0x79a   : > { %v8554_v18 = vpop.f32.mrf.mxu0 }
 0x79b   : > { %v11884_v44 = vadd.f32 %v9554_v39, %v4314_v13  ;;  %13725 = vst [vmem:[#allocation48_spill] sm:$0xff] %v11889_v15  ;;  %v4325_v47 = vadd.f32 %v8554_v18, %v11879_v33 }
 0x79c   : > { %v4316_v60 = vpop.f32.mrf.mxu0 }
 0x79d   : > { %13724 = vst [vmem:[#allocation49_spill] sm:$0xff] %v11884_v44  ;;  %v4317_v5 = vadd.f32 %v11879_v33, %v4316_v60  ;;  %4472 = vadd.xlane.f32.xlu0 %v11884_v44  ;;  %v11898_v48 = vadd.f32 %v9557_v52, %v4325_v47  ;;  %v9572_v52 = vld [vmem:[%s10024_s30 + $0x88] sm:$0xff] }
 0x79e   : > { %v8557_v23 = vpop.f32.mrf.mxu0 }
 0x79f   : > { %v11893_v54 = vadd.f32 %v9556_v2, %v4317_v5  ;;  %13727 = vst [vmem:[#allocation27_spill] sm:$0xff] %v11898_v48  ;;  %v4338_v14 = vadd.f32 %v8557_v23, %v11879_v33  ;;  %v9570_v5 = vld [vmem:[%s10024_s30 + $0x80] sm:$0xff]  ;;  %v9571_v2 = vld [vmem:[%s10024_s30 + $0x90] sm:$0xff] }
 0x7a0   : > { %v4329_v30 = vpop.f32.mrf.mxu0 }
 0x7a1   : > { %13726 = vst [vmem:[#allocation50_spill] sm:$0xff] %v11893_v54  ;;  %4474 = vadd.xlane.f32.xlu1 %v11893_v54  ;;  %4476 = vadd.xlane.f32.xlu0 %v11889_v15  ;;  %v4330_v58 = vadd.f32 %v11879_v33, %v4329_v30  ;;  %v11914_v11 = vadd.f32 %v9560_v1, %v4338_v14  ;;  %v9092_v14 = vld [vmem:[#allocation8 + $0xe4] ss:$16 sps:$4 sm:$0xff]  }
 0x7a2   : > { %v8558_v49 = vpop.f32.mrf.mxu0  ;;  %5132 = vmatprep.subr.bf16.mxu1 %v9092_v14  ;;  %v9098_v14 = vld [vmem:[#allocation8 + $0xc4] ss:$16 sps:$4 sm:$0xff]  }
 0x7a3   : > { %v11905_v32 = vadd.f32 %v9558_v31, %v4330_v58  ;;  %v4341_v42 = vadd.f32 %v8558_v49, %v11879_v33  ;;  %13730 = vst [vmem:[#allocation54_spill] sm:$0xff] %v11914_v11  ;;  %v9093_v31 = vld [vmem:[#allocation8 + $0xe8] ss:$16 sps:$4 sm:$0xff]  }
 0x7a4   : > { %v4332_v59 = vpop.f32.mrf.mxu0 }
 0x7a5   : > { %v4333_v34 = vadd.f32 %v11879_v33, %v4332_v59  ;;  %4478 = vadd.xlane.f32.xlu0 %v11898_v48  ;;  %13728 = vst [vmem:[#allocation30_spill] sm:$0xff] %v11905_v32  ;;  %v11917_v51 = vadd.f32 %v9561_v21, %v4341_v42  ;;  %v9573_v59 = vld [vmem:[%s10024_s30 + $0x98] sm:$0xff] }
 0x7a6   : > { %v8561_v16 = vpop.f32.mrf.mxu0  ;;  %v9095_v42 = vld [vmem:[#allocation8 + $0xec] ss:$16 sps:$4 sm:$0xff]  }
 0x7a7   : > { %v11909_v56 = vadd.f32 %v9559_v55, %v4333_v34  ;;  %13731 = vst [vmem:[#allocation53_spill] sm:$0xff] %v11917_v51  ;;  %v4354_v19 = vadd.f32 %v8561_v16, %v11879_v33  ;;  %v9090_v16 = vld [vmem:[#allocation8 + $0xe0] ss:$16 sps:$4 sm:$0xff]   ;;  %5325 = vmatprep.subr.bf16.mxu0 %v9095_v42 }
 0x7a8   : > { %v4345_v29 = vpop.f32.mrf.mxu0  ;;  %5133 = vmatpush1.bf16.msra.mxu1 %v9090_v16  ;;  %5326 = vmatpush1.bf16.msra.mxu0 %v9093_v31  ;;  %v9101_v31 = vld [vmem:[#allocation8 + $0xcc] ss:$16 sps:$4 sm:$0xff]  }
 0x7a9   : > { %13729 = vst [vmem:[#allocation51_spill] sm:$0xff] %v11909_v56  ;;  %4482 = vadd.xlane.f32.xlu1 %v11909_v56  ;;  %4480 = vadd.xlane.f32.xlu0 %v11905_v32  ;;  %v4346_v45 = vadd.f32 %v11879_v33, %v4345_v29  ;;  %v11934_v10 = vadd.f32 %v9564_v25, %v4354_v19 }
 0x7aa   : > { %v8562_v8 = vpop.f32.mrf.mxu0  ;;  %5134 = vmatprep.subr.bf16.mxu1 %v9098_v14  ;;  %5327 = vmatprep.subr.bf16.mxu0 %v9101_v31 }
 0x7ab   : > { %v11925_v38 = vadd.f32 %v9562_v50, %v4346_v45  ;;  %v4357_v28 = vadd.f32 %v8562_v8, %v11879_v33  ;;  %13734 = vst [vmem:[#allocation52_spill] sm:$0xff] %v11934_v10 }
 0x7ac   : > { %v4348_v41 = vpop.f32.mrf.mxu0 }
 0x7ad   : > { %v4349_v12 = vadd.f32 %v11879_v33, %v4348_v41  ;;  %4486 = vadd.xlane.f32.xlu1 %v11917_v51  ;;  %4484 = vadd.xlane.f32.xlu0 %v11914_v11  ;;  %13732 = vst [vmem:[#allocation28_spill] sm:$0xff] %v11925_v38  ;;  %v11937_v6 = vadd.f32 %v9565_v0, %v4357_v28 }
 0x7ae   : > { %v8565_v3 = vpop.f32.mrf.mxu0 }
 0x7af   : > { %v11929_v22 = vadd.f32 %v9563_v62, %v4349_v12  ;;  %13735 = vst [vmem:[#allocation29_spill] sm:$0xff] %v11937_v6  ;;  %v4370_v53 = vadd.f32 %v8565_v3, %v11879_v33 }
 0x7b0   : > { %v4361_v27 = vpop.f32.mrf.mxu0 }
 0x7b1   : > { %13733 = vst [vmem:[#allocation26_spill] sm:$0xff] %v11929_v22  ;;  %4490 = vadd.xlane.f32.xlu1 %v11929_v22  ;;  %4488 = vadd.xlane.f32.xlu0 %v11925_v38  ;;  %v4362_v57 = vadd.f32 %v11879_v33, %v4361_v27  ;;  %v11954_v7 = vadd.f32 %v9568_v17, %v4370_v53 }
 0x7b2   : > { %v8566_v20 = vpop.f32.mrf.mxu0 }
 0x7b3   : > { %v11945_v61 = vadd.f32 %v9566_v9, %v4362_v57  ;;  %v4373_v63 = vadd.f32 %v8566_v20, %v11879_v33  ;;  %13738 = vst [vmem:[#allocation22_spill] sm:$0xff] %v11954_v7  ;;  %v9574_v20 = vld [vmem:[%s10024_s30 + $0xa0] sm:$0xff] }
 0x7b4   : > { %v4364_v46 = vpop.f32.mrf.mxu0 }
 0x7b5   : > { %v4365_v40 = vadd.f32 %v11879_v33, %v4364_v46  ;;  %4494 = vadd.xlane.f32.xlu1 %v11937_v6  ;;  %4492 = vadd.xlane.f32.xlu0 %v11934_v10  ;;  %13736 = vst [vmem:[#allocation55_spill] sm:$0xff] %v11945_v61  ;;  %v11957_v36 = vadd.f32 %v9569_v24, %v4373_v63 }
 0x7b7   : > { %v11949_v4 = vadd.f32 %v9567_v35, %v4365_v40  ;;  %13739 = vst [vmem:[#allocation25_spill] sm:$0xff] %v11957_v36  ;;  %v9575_v35 = vld [vmem:[%s10024_s30 + $0xa8] sm:$0xff] }
 0x7b9   : > { %13737 = vst [vmem:[#allocation24_spill] sm:$0xff] %v11949_v4  ;;  %4498 = vadd.xlane.f32.xlu1 %v11949_v4  ;;  %4496 = vadd.xlane.f32.xlu0 %v11945_v61 }
 0x7bd   : > { %4502 = vadd.xlane.f32.xlu1 %v11957_v36  ;;  %4500 = vadd.xlane.f32.xlu0 %v11954_v7 }
 0x7da   : > { %v8569_v13 = vpop.f32.mrf.mxu0 }
 0x7db   : > { %v4386_v60 = vadd.f32 %v8569_v13, %v11879_v33 }
 0x7dc   : > { %v4377_v18 = vpop.f32.mrf.mxu0 }
 0x7dd   : > { %v4378_v37 = vadd.f32 %v11879_v33, %v4377_v18  ;;  %v11969_v30 = vadd.f32 %v9571_v2, %v4386_v60 }
 0x7de   : > { %v8570_v39 = vpop.f32.mrf.mxu0 }
 0x7df   : > { %v11964_v23 = vadd.f32 %v9570_v5, %v4378_v37  ;;  %13741 = vst [vmem:[#allocation56_spill] sm:$0xff] %v11969_v30  ;;  %v4389_v49 = vadd.f32 %v8570_v39, %v11879_v33  ;;  %v9576_v5 = vld [vmem:[%s10024_s30 + $0xb0] sm:$0xff] }
 0x7e0   : > { %v4380_v26 = vpop.f32.mrf.mxu0 }
 0x7e1   : > { %13740 = vst [vmem:[#allocation33_spill] sm:$0xff] %v11964_v23  ;;  %v4381_v47 = vadd.f32 %v11879_v33, %v4380_v26  ;;  %4504 = vadd.xlane.f32.xlu0 %v11964_v23  ;;  %v11978_v34 = vadd.f32 %v9573_v59, %v4389_v49 }
 0x7e3   : > { %v11973_v58 = vadd.f32 %v9572_v52, %v4381_v47  ;;  %13743 = vst [vmem:[#allocation57_spill] sm:$0xff] %v11978_v34 }
 0x7e5   : > { %13742 = vst [vmem:[#allocation34_spill] sm:$0xff] %v11973_v58  ;;  %4506 = vadd.xlane.f32.xlu1 %v11973_v58  ;;  %4508 = vadd.xlane.f32.xlu0 %v11969_v30 }
 0x7e9   : > { %4510 = vadd.xlane.f32.xlu1 %v11978_v34 }
 0x81e   : > { %v8573_v55 = vpop.f32.mrf.mxu0 }
 0x81f   : > { %v4402_v63 = vadd.f32 %v8573_v55, %v11879_v33  ;;  %v9096_v55 = vld [vmem:[#allocation8 + $0xc0] ss:$16 sps:$4 sm:$0xff]  }
 0x820   : > { %v4393_v29 = vpop.f32.mrf.mxu0  ;;  %5135 = vmatpush1.bf16.msra.mxu1 %v9096_v55 }
 0x821   : > { %v4394_v12 = vadd.f32 %v11879_v33, %v4393_v29  ;;  %v12013_v26 = vadd.f32 %v9576_v5, %v4402_v63  ;;  %v9099_v29 = vld [vmem:[#allocation8 + $0xc8] ss:$16 sps:$4 sm:$0xff]   ;;  %v9108_v5 = vld [vmem:[#allocation8 + $0x80] ss:$16 sps:$4 sm:$0xff]  }
 0x822   : > { %v8574_v21 = vpop.f32.mrf.mxu0  ;;  %5328 = vmatpush1.bf16.msra.mxu0 %v9099_v29  ;;  %v9119_v29 = vld [vmem:[#allocation8 + $0x6c] ss:$16 sps:$4 sm:$0xff]  }
 0x823   : > { %v11991_v25 = vadd.f32 %v9574_v20, %v4394_v12  ;;  %13746 = vst [vmem:[#allocation38_spill] sm:$0xff] %v12013_v26  ;;  %v4405_v47 = vadd.f32 %v8574_v21, %v11879_v33 }
 0x824   : > { %v4396_v28 = vpop.f32.mrf.mxu0 }
 0x825   : > { %13744 = vst [vmem:[#allocation32_spill] sm:$0xff] %v11991_v25  ;;  %v4397_v0 = vadd.f32 %v11879_v33, %v4396_v28  ;;  %v9107_v28 = vld [vmem:[#allocation8 + $0xac] ss:$16 sps:$4 sm:$0xff]  }
 0x826   : > { %v4473_v8 = vpop.xlane.xlu0 %4472  ;;  %v11999_v53 = vpop.f32.mrf.mxu0  ;;  %5329 = vmatprep.subr.bf16.mxu0 %v9107_v28 }
 0x827   : > { %v4536_v1 = vmul.f32 0.0078125, %v4473_v8  ;;  %v12004_v17 = vadd.f32 %v9575_v35, %v4397_v0  ;;  %v9577_v8 = vld [vmem:[%s10024_s30 + $0xb8] sm:$0xff]  ;;  %v9102_v0 = vld [vmem:[#allocation8 + $0xa0] ss:$16 sps:$4 sm:$0xff]  }
 0x828   : > { %v4409_v37 = vpop.f32.mrf.mxu0 }
 0x829   : > { %v11982_v45 = vsub.f32 %v11884_v44, %v4536_v1  ;;  %13745 = vst [vmem:[#allocation58_spill] sm:$0xff] %v12004_v17  ;;  %v4410_v42 = vadd.f32 %v11879_v33, %v4409_v37  ;;  %v12026_v1 = vadd.f32 %v9577_v8, %v4405_v47  ;;  %v9110_v37 = vld [vmem:[#allocation8 + $0x84] ss:$16 sps:$4 sm:$0xff]   ;;  %v9111_v47 = vld [vmem:[#allocation8 + $0x88] ss:$16 sps:$4 sm:$0xff]  }
 0x82a   : > { %v4475_v41 = vpop.xlane.xlu1 %4474  ;;  %v4477_v19 = vpop.xlane.xlu0 %4476  ;;  %v9580_v8 = vld [vmem:[%s10024_s30 + $0xd0] sm:$0xff] }
 0x82b   : > { %v4537_v3 = vmul.f32 0.0078125, %v4475_v41  ;;  %v4600_v50 = vmul.f32 %v11982_v45, %v11982_v45  ;;  %v4538_v62 = vmul.f32 0.0078125, %v4477_v19  ;;  %v12021_v59 = vpop.f32.mrf.mxu0  ;;  %13747 = vst [vmem:[#allocation37_spill] sm:$0xff] %v12026_v1 }
 0x82d   : > { %v11988_v27 = vsub.f32 %v11893_v54, %v4537_v3  ;;  %4632 = vadd.xlane.f32.xlu0 %v4600_v50  ;;  %v11995_v57 = vsub.f32 %v11889_v15, %v4538_v62  ;;  %v4412_v3 = vpop.f32.mrf.mxu0  ;;  %v9104_v50 = vld [vmem:[#allocation8 + $0xa4] ss:$16 sps:$4 sm:$0xff]  }
 0x82e   : > { %v4479_v46 = vpop.xlane.xlu0 %4478  ;;  %v9578_v62 = vld [vmem:[%s10024_s30 + $0xc0] sm:$0xff]  ;;  %5136 = vmatprep.subr.bf16.mxu1 %v9104_v50 }
 0x82f   : > { %v4601_v40 = vmul.f32 %v11988_v27, %v11988_v27  ;;  %v4539_v9 = vmul.f32 0.0078125, %v4479_v46  ;;  %v4602_v18 = vmul.f32 %v11995_v57, %v11995_v57  ;;  %v12035_v20 = vadd.f32 %v9578_v62, %v4410_v42  ;;  %v9105_v46 = vld [vmem:[#allocation8 + $0xa8] ss:$16 sps:$4 sm:$0xff]   ;;  %5137 = vmatpush1.bf16.msra.mxu1 %v9102_v0 }
 0x830   : > { %5330 = vmatpush1.bf16.msra.mxu0 %v9105_v46  ;;  %5138 = vmatprep.subr.bf16.mxu1 %v9110_v37  ;;  %v9581_v37 = vld [vmem:[%s10024_s30 + $0xd8] sm:$0xff] }
 0x831   : > { %4634 = vadd.xlane.f32.xlu1 %v4601_v40  ;;  %4512 = vadd.xlane.f32.xlu0 %v11991_v25  ;;  %v12007_v24 = vsub.f32 %v11898_v48, %v4539_v9  ;;  %13748 = vst [vmem:[#allocation35_spill] sm:$0xff] %v12035_v20  ;;  %v4413_v40 = vadd.f32 %v11879_v33, %v4412_v3  ;;  %v9117_v3 = vld [vmem:[#allocation8 + $0x68] ss:$16 sps:$4 sm:$0xff]  }
 0x832   : > { %v4481_v13 = vpop.xlane.xlu0 %4480  ;;  %v4483_v39 = vpop.xlane.xlu1 %4482 }
 0x833   : > { %v4540_v60 = vmul.f32 0.0078125, %v4481_v13  ;;  %v4541_v2 = vmul.f32 0.0078125, %v4483_v39  ;;  %v4603_v52 = vmul.f32 %v12007_v24, %v12007_v24  ;;  %v12043_v13 = vpop.f32.mrf.mxu0  ;;  %v9113_v39 = vld [vmem:[#allocation8 + $0x8c] ss:$16 sps:$4 sm:$0xff]   ;;  %5139 = vmatpush1.bf16.msra.mxu1 %v9108_v5 }
 0x834   : > { %5331 = vmatprep.subr.bf16.mxu0 %v9113_v39 }
 0x835   : > { %4514 = vadd.xlane.f32.xlu1 %v12004_v17  ;;  %4636 = vadd.xlane.f32.xlu0 %v4602_v18  ;;  %v12017_v49 = vsub.f32 %v11905_v32, %v4540_v60  ;;  %v12029_v21 = vsub.f32 %v11909_v56, %v4541_v2  ;;  %v4418_v60 = vadd.f32 %v11999_v53, %v11879_v33  ;;  %v9579_v2 = vld [vmem:[%s10024_s30 + $0xc8] sm:$0xff]  ;;  %v4425_v42 = vpop.f32.mrf.mxu0  ;;  %v9116_v53 = vld [vmem:[#allocation8 + $0x64] ss:$16 sps:$4 sm:$0xff]  }
 0x836   : > { %v4485_v16 = vpop.xlane.xlu0 %4484  ;;  %v4487_v19 = vpop.xlane.xlu1 %4486  ;;  %5332 = vmatpush1.bf16.msra.mxu0 %v9111_v47  ;;  %5140 = vmatprep.subr.bf16.mxu1 %v9116_v53 }
 0x837   : > { %v4542_v41 = vmul.f32 0.0078125, %v4485_v16  ;;  %v4604_v12 = vmul.f32 %v12017_v49, %v12017_v49  ;;  %v4543_v9 = vmul.f32 0.0078125, %v4487_v19  ;;  %v4605_v35 = vmul.f32 %v12029_v21, %v12029_v21  ;;  %5333 = vmatprep.subr.bf16.mxu0 %v9119_v29  ;;  %v8582_v0 = vpop.f32.mrf.mxu0 }
 0x838   : > { %v4421_v19 = vadd.f32 %v12021_v59, %v11879_v33  ;;  %v4426_v59 = vadd.f32 %v11879_v33, %v4425_v42  ;;  %v9131_v42 = vld [vmem:[#allocation8 + $0x2c] ss:$16 sps:$4 sm:$0xff]  }
 0x839   : > { %4516 = vadd.xlane.f32.xlu0 %v12013_v26  ;;  %4638 = vadd.xlane.f32.xlu1 %v4603_v52  ;;  %v12039_v63 = vsub.f32 %v11914_v11, %v4542_v41  ;;  %v12049_v52 = vadd.f32 %v9579_v2, %v4413_v40  ;;  %v12052_v16 = vsub.f32 %v11917_v51, %v4543_v9  ;;  %v9122_v40 = vld [vmem:[#allocation8 + $0x44] ss:$16 sps:$4 sm:$0xff]   ;;  %v9125_v9 = vld [vmem:[#allocation8 + $0x4c] ss:$16 sps:$4 sm:$0xff]   ;;  %v4428_v2 = vpop.f32.mrf.mxu0 }
 0x83a   : > { %v4489_v18 = vpop.xlane.xlu0 %4488  ;;  %v4491_v55 = vpop.xlane.xlu1 %4490  ;;  %v12058_v41 = vadd.f32 %v9580_v8, %v4418_v60  ;;  %5334 = vmatpush1.bf16.msra.mxu0 %v9117_v3  ;;  %v12070_v39 = vadd.f32 %v9581_v37, %v4421_v19  ;;  %v9126_v8 = vld [vmem:[#allocation8 + $0x20] ss:$16 sps:$4 sm:$0xff]   ;;  %v4429_v3 = vadd.f32 %v11879_v33, %v4428_v2  ;;  %v9583_v37 = vld [vmem:[%s10024_s30 + $0xe8] sm:$0xff] }
 0x83b   : > { %13749 = vst [vmem:[#allocation40_spill] sm:$0xff] %v12049_v52  ;;  %v4544_v14 = vmul.f32 0.0078125, %v4489_v18  ;;  %v4606_v31 = vmul.f32 %v12039_v63, %v12039_v63  ;;  %v4545_v50 = vmul.f32 0.0078125, %v4491_v55  ;;  %v4607_v62 = vmul.f32 %v12052_v16, %v12052_v16  ;;  %v9123_v18 = vld [vmem:[#allocation8 + $0x48] ss:$16 sps:$4 sm:$0xff]   ;;  %5335 = vmatprep.subr.bf16.mxu0 %v9125_v9  ;;  %v9582_v55 = vld [vmem:[%s10024_s30 + $0xe0] sm:$0xff] }
 0x83c   : > { %13750 = vst [vmem:[#allocation36_spill] sm:$0xff] %v12058_v41  ;;  %13751 = vst [vmem:[#allocation41_spill] sm:$0xff] %v12070_v39  ;;  %v12079_v53 = vadd.f32 %v9582_v55, %v4426_v59  ;;  %v4434_v9 = vadd.f32 %v12043_v13, %v11879_v33  ;;  %v9584_v13 = vld [vmem:[%s10024_s30 + $0xf0] sm:$0xff]  ;;  %v4437_v55 = vadd.f32 %v8582_v0, %v11879_v33 }
 0x83d   : > { %4518 = vadd.xlane.f32.xlu1 %v12026_v1  ;;  %4640 = vadd.xlane.f32.xlu0 %v4604_v12  ;;  %v9114_v12 = vld [vmem:[#allocation8 + $0x60] ss:$16 sps:$4 sm:$0xff]   ;;  %v12063_v28 = vsub.f32 %v11925_v38, %v4544_v14  ;;  %v12073_v60 = vsub.f32 %v11929_v22, %v4545_v50 }
 0x83e   : > { %v4493_v46 = vpop.xlane.xlu0 %4492  ;;  %5141 = vmatpush1.bf16.msra.mxu1 %v9114_v12  ;;  %v4495_v14 = vpop.xlane.xlu1 %4494  ;;  %5336 = vmatpush1.bf16.msra.mxu0 %v9123_v18  ;;  %13752 = vst [vmem:[#allocation23_spill] sm:$0xff] %v12079_v53  ;;  %v9129_v12 = vld [vmem:[#allocation8 + $0x28] ss:$16 sps:$4 sm:$0xff]  }
 0x83f   : > { %v4546_v5 = vmul.f32 0.0078125, %v4493_v46  ;;  %v4608_v47 = vmul.f32 %v12063_v28, %v12063_v28  ;;  %5142 = vmatprep.subr.bf16.mxu1 %v9122_v40  ;;  %v4547_v19 = vmul.f32 0.0078125, %v4495_v14  ;;  %5337 = vmatprep.subr.bf16.mxu0 %v9131_v42  ;;  %v9134_v46 = vld [vmem:[#allocation8 + $0x4] ss:$16 sps:$4 sm:$0xff]   ;;  %v9137_v40 = vld [vmem:[#allocation8 + $0xc] ss:$16 sps:$4 sm:$0xff]   ;;  %v12100_v42 = vadd.f32 %v9584_v13, %v4434_v9 }
 0x840   : > { %v9135_v18 = vld [vmem:[#allocation8 + $0x8] ss:$16 sps:$4 sm:$0xff]  }
 0x841   : > { %4642 = vadd.xlane.f32.xlu1 %v4605_v35  ;;  %4520 = vadd.xlane.f32.xlu0 %v12035_v20  ;;  %v9120_v35 = vld [vmem:[#allocation8 + $0x40] ss:$16 sps:$4 sm:$0xff]   ;;  %v12083_v50 = vsub.f32 %v11934_v10, %v4546_v5  ;;  %v12091_v5 = vadd.f32 %v9583_v37, %v4429_v3  ;;  %13754 = vst [vmem:[#allocation63_spill] sm:$0xff] %v12100_v42 }
 0x842   : > { %5143 = vmatpush1.bf16.msra.mxu1 %v9120_v35  ;;  %v4497_v29 = vpop.xlane.xlu0 %4496  ;;  %5338 = vmatpush1.bf16.msra.mxu0 %v9129_v12  ;;  %v4499_v59 = vpop.xlane.xlu1 %4498  ;;  %v9132_v35 = vld [vmem:[#allocation8] ss:$16 sps:$4 sm:$0xff]  }
 0x843   : > { %13753 = vst [vmem:[#allocation21_spill] sm:$0xff] %v12091_v5  ;;  %v4548_v2 = vmul.f32 0.0078125, %v4497_v29  ;;  %v4610_v14 = vmul.f32 %v12083_v50, %v12083_v50  ;;  %5339 = vmatprep.subr.bf16.mxu0 %v9137_v40 }
 0x845   : > { %4522 = vadd.xlane.f32.xlu1 %v12049_v52  ;;  %4644 = vadd.xlane.f32.xlu0 %v4606_v31  ;;  %v9128_v31 = vld [vmem:[#allocation8 + $0x24] ss:$16 sps:$4 sm:$0xff]   ;;  %v12104_v29 = vsub.f32 %v11945_v61, %v4548_v2 }
 0x846   : > { %5144 = vmatprep.subr.bf16.mxu1 %v9128_v31  ;;  %v4501_v31 = vpop.xlane.xlu0 %4500  ;;  %5340 = vmatpush1.bf16.msra.mxu0 %v9135_v18 }
 0x847   : > { %5145 = vmatpush1.bf16.msra.mxu1 %v9126_v8  ;;  %v4549_v8 = vmul.f32 0.0078125, %v4499_v59  ;;  %v4550_v12 = vmul.f32 0.0078125, %v4501_v31  ;;  %v4612_v0 = vmul.f32 %v12104_v29, %v12104_v29 }
 0x848   : > { %5146 = vmatprep.subr.bf16.mxu1 %v9134_v46 }
 0x849   : > { %4646 = vadd.xlane.f32.xlu1 %v4607_v62  ;;  %4524 = vadd.xlane.f32.xlu0 %v12058_v41  ;;  %v4609_v62 = vmul.f32 %v12073_v60, %v12073_v60  ;;  %v12113_v40 = vsub.f32 %v11949_v4, %v4549_v8  ;;  %v12116_v33 = vsub.f32 %v11954_v7, %v4550_v12 }
 0x84b   : > { %5147 = vmatpush1.bf16.msra.mxu1 %v9132_v35  ;;  %v4613_v35 = vmul.f32 %v12113_v40, %v12113_v40  ;;  %v4614_v18 = vmul.f32 %v12116_v33, %v12116_v33 }
 0x84d   : > { %4526 = vadd.xlane.f32.xlu1 %v12070_v39  ;;  %4648 = vadd.xlane.f32.xlu0 %v4608_v47  ;;  %v12094_v47 = vsub.f32 %v11937_v6, %v4547_v19  ;;  %v4503_v19 = vpop.xlane.xlu1 %4502 }
 0x84e   : > { %v4551_v9 = vmul.f32 0.0078125, %v4503_v19 }
 0x84f   : > { %v4611_v3 = vmul.f32 %v12094_v47, %v12094_v47 }
 0x850   : > { %v12122_v59 = vsub.f32 %v11957_v36, %v4551_v9 }
 0x851   : > { %4650 = vadd.xlane.f32.xlu1 %v4609_v62  ;;  %4528 = vadd.xlane.f32.xlu0 %v12079_v53  ;;  %v9585_v62 = vld [vmem:[%s10024_s30 + $0xf8] sm:$0xff] }
 0x852   : > { %v12110_v46 = vadd.f32 %v9585_v62, %v4437_v55  ;;  %v4615_v37 = vmul.f32 %v12122_v59, %v12122_v59 }
 0x854   : > { %13755 = vst [vmem:[#allocation39_spill] sm:$0xff] %v12110_v46 }
 0x855   : > { %4530 = vadd.xlane.f32.xlu1 %v12091_v5  ;;  %4652 = vadd.xlane.f32.xlu0 %v4610_v14 }
 0x859   : > { %4654 = vadd.xlane.f32.xlu1 %v4611_v3  ;;  %4532 = vadd.xlane.f32.xlu0 %v12100_v42 }
 0x85d   : > { %4534 = vadd.xlane.f32.xlu1 %v12110_v46  ;;  %4656 = vadd.xlane.f32.xlu0 %v4612_v0 }
 0x861   : > { %4658 = vadd.xlane.f32.xlu1 %v4613_v35  ;;  %4660 = vadd.xlane.f32.xlu0 %v4614_v18 }
 0x865   : > { %4662 = vadd.xlane.f32.xlu1 %v4615_v37 }
 0x86a   : > { %v4505_v2 = vpop.xlane.xlu0 %4504 }
 0x86b   : > { %v4552_v14 = vmul.f32 0.0078125, %v4505_v2 }
 0x86d   : > { %v12131_v31 = vsub.f32 %v11964_v23, %v4552_v14 }
 0x86e   : > { %v4507_v13 = vpop.xlane.xlu1 %4506  ;;  %v4509_v55 = vpop.xlane.xlu0 %4508 }
 0x86f   : > { %v4553_v8 = vmul.f32 0.0078125, %v4507_v13  ;;  %v4554_v12 = vmul.f32 0.0078125, %v4509_v55  ;;  %v4616_v3 = vmul.f32 %v12131_v31, %v12131_v31 }
 0x871   : > { %v12136_v19 = vsub.f32 %v11973_v58, %v4553_v8  ;;  %v12139_v62 = vsub.f32 %v11969_v30, %v4554_v12  ;;  %4664 = vadd.xlane.f32.xlu0 %v4616_v3 }
 0x872   : > { %v4511_v9 = vpop.xlane.xlu1 %4510 }
 0x873   : > { %v4555_v0 = vmul.f32 0.0078125, %v4511_v9  ;;  %v4617_v35 = vmul.f32 %v12136_v19, %v12136_v19  ;;  %v4618_v18 = vmul.f32 %v12139_v62, %v12139_v62 }
 0x875   : > { %v12146_v37 = vsub.f32 %v11978_v34, %v4555_v0  ;;  %4666 = vadd.xlane.f32.xlu1 %v4617_v35  ;;  %4668 = vadd.xlane.f32.xlu0 %v4618_v18 }
 0x877   : > { %v4619_v2 = vmul.f32 %v12146_v37, %v12146_v37 }
 0x879   : > { %4670 = vadd.xlane.f32.xlu1 %v4619_v2 }
 0x8b6   : > { %v4633_v14 = vpop.xlane.xlu0 %4632 }
 0x8b7   : > { %v4696_v13 = vmul.f32 0.0078125, %v4633_v14 }
 0x8b9   : > { %v4728_v55 = vadd.f32 1e-05, %v4696_v13 }
 0x8ba   : > { %v4635_v8 = vpop.xlane.xlu1 %4634  ;;  %v4513_v12 = vpop.xlane.xlu0 %4512 }
 0x8bb   : > { %9490 = vrsqrt.f32 %v4728_v55  ;;  %v4697_v3 = vmul.f32 0.0078125, %v4635_v8  ;;  %v4556_v9 = vmul.f32 0.0078125, %v4513_v12 }
 0x8bd   : > { %v4729_v30 = vadd.f32 1e-05, %v4697_v3  ;;  %v12151_v58 = vsub.f32 %v11991_v25, %v4556_v9 }
 0x8be   : > { %v4515_v0 = vpop.xlane.xlu1 %4514  ;;  %v4637_v34 = vpop.xlane.xlu0 %4636 }
 0x8bf   : > { %9492 = vrsqrt.f32 %v4729_v30  ;;  %v4557_v35 = vmul.f32 0.0078125, %v4515_v0  ;;  %v4698_v18 = vmul.f32 0.0078125, %v4637_v34  ;;  %v4620_v2 = vmul.f32 %v12151_v58, %v12151_v58 }
 0x8c1   : > { %v12156_v14 = vsub.f32 %v12004_v17, %v4557_v35  ;;  %v4730_v13 = vadd.f32 1e-05, %v4698_v18  ;;  %4672 = vadd.xlane.f32.xlu0 %v4620_v2 }
 0x8c2   : > { %v4639_v55 = vpop.xlane.xlu1 %4638  ;;  %v4517_v8 = vpop.xlane.xlu0 %4516 }
 0x8c3   : > { %9494 = vrsqrt.f32 %v4730_v13  ;;  %v4699_v12 = vmul.f32 0.0078125, %v4639_v55  ;;  %v4558_v3 = vmul.f32 0.0078125, %v4517_v8  ;;  %v4621_v9 = vmul.f32 %v12156_v14, %v12156_v14 }
 0x8c5   : > { %v4731_v25 = vadd.f32 1e-05, %v4699_v12  ;;  %v12161_v30 = vsub.f32 %v12013_v26, %v4558_v3  ;;  %4674 = vadd.xlane.f32.xlu1 %v4621_v9  ;;  %v12172_v12 = vld [vmem:[%s13471_s6] ss:$0 sm:$0xff] }
 0x8c6   : > { %v4519_v34 = vpop.xlane.xlu1 %4518  ;;  %v4641_v0 = vpop.xlane.xlu0 %4640 }
 0x8c7   : > { %9496 = vrsqrt.f32 %v4731_v25  ;;  %v4559_v35 = vmul.f32 0.0078125, %v4519_v34  ;;  %v4700_v17 = vmul.f32 0.0078125, %v4641_v0  ;;  %v4622_v18 = vmul.f32 %v12161_v30, %v12161_v30 }
 0x8c8   : > { %v9491_v2 = vpop.eup %9490 }
 0x8c9   : > { %v4792_v13 = vmul.f32 %v9491_v2, %v11982_v45  ;;  %v12167_v55 = vsub.f32 %v12026_v1, %v4559_v35  ;;  %v4732_v8 = vadd.f32 1e-05, %v4700_v17  ;;  %4676 = vadd.xlane.f32.xlu0 %v4622_v18 }
 0x8ca   : > { %v4643_v3 = vpop.xlane.xlu1 %4642  ;;  %v4521_v25 = vpop.xlane.xlu0 %4520 }
 0x8cb   : > { %9498 = vrsqrt.f32 %v4732_v8  ;;  %v4701_v9 = vmul.f32 0.0078125, %v4643_v3  ;;  %v4560_v34 = vmul.f32 0.0078125, %v4521_v25  ;;  %v4623_v26 = vmul.f32 %v12167_v55, %v12167_v55  ;;  %v12184_v8 = vld [vmem:[%s13472_s7] ss:$0 sm:$0xff] }
 0x8cc   : > { %v9493_v0 = vpop.eup %9492  ;;  %v4831_v45 = vmul.f32 %v12172_v12, %v4792_v13 }
 0x8cd   : > { %v4793_v35 = vmul.f32 %v9493_v0, %v11988_v27  ;;  %v4733_v17 = vadd.f32 1e-05, %v4701_v9  ;;  %v12179_v18 = vsub.f32 %v12035_v20, %v4560_v34  ;;  %4678 = vadd.xlane.f32.xlu1 %v4623_v26 }
 0x8ce   : > { %v4523_v2 = vpop.xlane.xlu1 %4522  ;;  %v4645_v1 = vpop.xlane.xlu0 %4644  ;;  %v4870_v34 = vadd.f32 %v12184_v8, %v4831_v45 }
 0x8cf   : > { %v4832_v3 = vmul.f32 %v12172_v12, %v4793_v35  ;;  %9500 = vrsqrt.f32 %v4733_v17  ;;  %v4561_v25 = vmul.f32 0.0078125, %v4523_v2  ;;  %v4702_v23 = vmul.f32 0.0078125, %v4645_v1 }
 0x8d0   : > { %v9495_v13 = vpop.eup %9494  ;;  %v4624_v27 = vmul.f32 %v12179_v18, %v12179_v18 }
 0x8d1   : > { %v12190_v9 = vsub.f32 %v12049_v52, %v4561_v25  ;;  %v4734_v26 = vadd.f32 1e-05, %v4702_v23  ;;  %v4871_v0 = vadd.f32 %v12184_v8, %v4832_v3  ;;  %v4794_v35 = vmul.f32 %v9495_v13, %v11995_v57 }
 0x8d2   : > { %4680 = vadd.xlane.f32.xlu0 %v4624_v27  ;;  %v4647_v20 = vpop.xlane.xlu1 %4646  ;;  %v4525_v36 = vpop.xlane.xlu0 %4524 }
 0x8d3   : > { %9502 = vrsqrt.f32 %v4734_v26  ;;  %v4703_v17 = vmul.f32 0.0078125, %v4647_v20  ;;  %v4562_v1 = vmul.f32 0.0078125, %v4525_v36  ;;  %v4902_v2 = vpack.c.bf16 %v4871_v0, %v4870_v34 }
 0x8d4   : > { %v9497_v7 = vpop.eup %9496  ;;  %v4625_v4 = vmul.f32 %v12190_v9, %v12190_v9  ;;  %v4833_v36 = vmul.f32 %v12172_v12, %v4794_v35 }
 0x8d5   : > { %v4735_v25 = vadd.f32 1e-05, %v4703_v17  ;;  %v12198_v23 = vsub.f32 %v12058_v41, %v4562_v1  ;;  %5165 = vmatmul.mubr.bf16.vlgmr.msra.gmra.mxu1 %v4902_v2  ;;  %5358 = vmatmul.mubr.bf16.vlgmr.msra.gmra.mxu0 %v4902_v2  ;;  %v4795_v45 = vmul.f32 %v9497_v7, %v12007_v24 }
 0x8d6   : > { %4682 = vadd.xlane.f32.xlu1 %v4625_v4  ;;  %v4527_v3 = vpop.xlane.xlu1 %4526  ;;  %v4649_v27 = vpop.xlane.xlu0 %4648  ;;  %5174 = vmatprep.mubr.bf16.mxu1 %v13723_v43  ;;  %v4872_v35 = vadd.f32 %v12184_v8, %v4833_v36 }
 0x8d7   : > { %9504 = vrsqrt.f32 %v4735_v25  ;;  %v4563_v57 = vmul.f32 0.0078125, %v4527_v3  ;;  %v4704_v20 = vmul.f32 0.0078125, %v4649_v27  ;;  %v4626_v13 = vmul.f32 %v12198_v23, %v12198_v23  ;;  %5367 = vmatprep.mubr.bf16.mxu0 %v13723_v43 }
 0x8d8   : > { %v9499_v26 = vpop.eup %9498  ;;  %v4834_v34 = vmul.f32 %v12172_v12, %v4795_v45 }
 0x8d9   : > { %v12208_v7 = vsub.f32 %v12070_v39, %v4563_v57  ;;  %v4736_v4 = vadd.f32 1e-05, %v4704_v20  ;;  %4684 = vadd.xlane.f32.xlu0 %v4626_v13  ;;  %v4796_v1 = vmul.f32 %v9499_v26, %v12017_v49 }
 0x8da   : > { %v4651_v24 = vpop.xlane.xlu1 %4650  ;;  %v4529_v0 = vpop.xlane.xlu0 %4528  ;;  %v4873_v17 = vadd.f32 %v12184_v8, %v4834_v34 }
 0x8db   : > { %9506 = vrsqrt.f32 %v4736_v4  ;;  %v4705_v2 = vmul.f32 0.0078125, %v4651_v24  ;;  %v4564_v25 = vmul.f32 0.0078125, %v4529_v0  ;;  %v4627_v3 = vmul.f32 %v12208_v7, %v12208_v7 }
 0x8dc   : > { %v9501_v45 = vpop.eup %9500  ;;  %v4903_v27 = vpack.c.bf16 %v4873_v17, %v4872_v35  ;;  %v4835_v49 = vmul.f32 %v12172_v12, %v4796_v1 }
 0x8dd   : > { %v4737_v57 = vadd.f32 1e-05, %v4705_v2  ;;  %v12216_v20 = vsub.f32 %v12079_v53, %v4564_v25  ;;  %4686 = vadd.xlane.f32.xlu1 %v4627_v3  ;;  %v4797_v13 = vmul.f32 %v9501_v45, %v12029_v21 }
 0x8de   : > { %5175 = vmatmul.mubr.bf16.gmra.mxu1 %v4903_v27  ;;  %5368 = vmatmul.mubr.bf16.gmra.mxu0 %v4903_v27  ;;  %v4531_v36 = vpop.xlane.xlu1 %4530  ;;  %v4653_v34 = vpop.xlane.xlu0 %4652  ;;  %v4874_v25 = vadd.f32 %v12184_v8, %v4835_v49 }
 0x8df   : > { %9508 = vrsqrt.f32 %v4737_v57  ;;  %v4565_v26 = vmul.f32 0.0078125, %v4531_v36  ;;  %v4706_v4 = vmul.f32 0.0078125, %v4653_v34  ;;  %v4628_v24 = vmul.f32 %v12216_v20, %v12216_v20  ;;  %5184 = vmatprep.mubr.bf16.mxu1 %v13723_v43  ;;  %5377 = vmatprep.mubr.bf16.mxu0 %v13723_v43 }
 0x8e0   : > { %v9503_v0 = vpop.eup %9502  ;;  %v4836_v35 = vmul.f32 %v12172_v12, %v4797_v13 }
 0x8e1   : > { %v12226_v21 = vsub.f32 %v12091_v5, %v4565_v26  ;;  %v4738_v17 = vadd.f32 1e-05, %v4706_v4  ;;  %4688 = vadd.xlane.f32.xlu0 %v4628_v24  ;;  %v4798_v45 = vmul.f32 %v9503_v0, %v12039_v63 }
 0x8e2   : > { %v4655_v2 = vpop.xlane.xlu1 %4654  ;;  %v4533_v1 = vpop.xlane.xlu0 %4532  ;;  %v4875_v3 = vadd.f32 %v12184_v8, %v4836_v35 }
 0x8e3   : > { %9510 = vrsqrt.f32 %v4738_v17  ;;  %v4707_v27 = vmul.f32 0.0078125, %v4655_v2  ;;  %v4566_v57 = vmul.f32 0.0078125, %v4533_v1  ;;  %v4629_v36 = vmul.f32 %v12226_v21, %v12226_v21 }
 0x8e4   : > { %v9505_v13 = vpop.eup %9504  ;;  %v4904_v34 = vpack.c.bf16 %v4875_v3, %v4874_v25  ;;  %v4837_v63 = vmul.f32 %v12172_v12, %v4798_v45 }
 0x8e5   : > { %v4739_v26 = vadd.f32 1e-05, %v4707_v27  ;;  %v12234_v4 = vsub.f32 %v12100_v42, %v4566_v57  ;;  %4690 = vadd.xlane.f32.xlu1 %v4629_v36  ;;  %v4799_v24 = vmul.f32 %v9505_v13, %v12052_v16 }
 0x8e6   : > { %5185 = vmatmul.mubr.bf16.gmra.mxu1 %v4904_v34  ;;  %5378 = vmatmul.mubr.bf16.gmra.mxu0 %v4904_v34  ;;  %v4535_v49 = vpop.xlane.xlu1 %4534  ;;  %v4657_v35 = vpop.xlane.xlu0 %4656  ;;  %v4876_v36 = vadd.f32 %v12184_v8, %v4837_v63 }
 0x8e7   : > { %9512 = vrsqrt.f32 %v4739_v26  ;;  %v4567_v0 = vmul.f32 0.0078125, %v4535_v49  ;;  %v4708_v17 = vmul.f32 0.0078125, %v4657_v35  ;;  %v4630_v2 = vmul.f32 %v12234_v4, %v12234_v4  ;;  %5194 = vmatprep.mubr.bf16.mxu1 %v13723_v43  ;;  %5387 = vmatprep.mubr.bf16.mxu0 %v13723_v43 }
 0x8e8   : > { %v9507_v1 = vpop.eup %9506  ;;  %v4838_v25 = vmul.f32 %v12172_v12, %v4799_v24 }
 0x8e9   : > { %v12244_v16 = vsub.f32 %v12110_v46, %v4567_v0  ;;  %v4740_v3 = vadd.f32 1e-05, %v4708_v17  ;;  %4692 = vadd.xlane.f32.xlu0 %v4630_v2  ;;  %v4800_v45 = vmul.f32 %v9507_v1, %v12063_v28 }
 0x8ea   : > { %v4659_v27 = vpop.xlane.xlu1 %4658  ;;  %v4661_v57 = vpop.xlane.xlu0 %4660  ;;  %v4877_v13 = vadd.f32 %v12184_v8, %v4838_v25 }
 0x8eb   : > { %9514 = vrsqrt.f32 %v4740_v3  ;;  %v4709_v34 = vmul.f32 0.0078125, %v4659_v27  ;;  %v4710_v26 = vmul.f32 0.0078125, %v4661_v57  ;;  %v4631_v49 = vmul.f32 %v12244_v16, %v12244_v16 }
 0x8ec   : > { %v9509_v24 = vpop.eup %9508  ;;  %v4905_v35 = vpack.c.bf16 %v4877_v13, %v4876_v36  ;;  %v4839_v28 = vmul.f32 %v12172_v12, %v4800_v45 }
 0x8ed   : > { %v4741_v0 = vadd.f32 1e-05, %v4709_v34  ;;  %4694 = vadd.xlane.f32.xlu1 %v4631_v49  ;;  %v4801_v17 = vmul.f32 %v9509_v24, %v12073_v60  ;;  %v4742_v2 = vadd.f32 1e-05, %v4710_v26 }
 0x8ee   : > { %5195 = vmatmul.mubr.bf16.gmra.mxu1 %v4905_v35  ;;  %5388 = vmatmul.mubr.bf16.gmra.mxu0 %v4905_v35  ;;  %v4663_v63 = vpop.xlane.xlu1 %4662  ;;  %v4878_v57 = vadd.f32 %v12184_v8, %v4839_v28 }
 0x8ef   : > { %9516 = vrsqrt.f32 %v4741_v0  ;;  %v4711_v1 = vmul.f32 0.0078125, %v4663_v63  ;;  %5204 = vmatprep.mubr.bf16.mxu1 %v13723_v43  ;;  %5397 = vmatprep.mubr.bf16.mxu0 %v13723_v43  ;;  %v4840_v25 = vmul.f32 %v12172_v12, %v4801_v17 }
 0x8f0   : > { %v9511_v3 = vpop.eup %9510  ;;  %9518 = vrsqrt.f32 %v4742_v2 }
 0x8f1   : > { %v4743_v27 = vadd.f32 1e-05, %v4711_v1  ;;  %v4879_v60 = vadd.f32 %v12184_v8, %v4840_v25  ;;  %v4802_v45 = vmul.f32 %v9511_v3, %v12083_v50 }
 0x8f3   : > { %9520 = vrsqrt.f32 %v4743_v27  ;;  %v4906_v36 = vpack.c.bf16 %v4879_v60, %v4878_v57  ;;  %v4841_v26 = vmul.f32 %v12172_v12, %v4802_v45 }
 0x8f4   : > { %v9513_v13 = vpop.eup %9512 }
 0x8f5   : > { %v4803_v34 = vmul.f32 %v9513_v13, %v12094_v47  ;;  %v4880_v35 = vadd.f32 %v12184_v8, %v4841_v26 }
 0x8f6   : > { %5205 = vmatmul.mubr.bf16.gmra.mxu1 %v4906_v36  ;;  %5398 = vmatmul.mubr.bf16.gmra.mxu0 %v4906_v36 }
 0x8f7   : > { %5214 = vmatprep.mubr.bf16.mxu1 %v13723_v43  ;;  %5407 = vmatprep.mubr.bf16.mxu0 %v13723_v43  ;;  %v4842_v49 = vmul.f32 %v12172_v12, %v4803_v34 }
 0x8f8   : > { %v9515_v24 = vpop.eup %9514 }
 0x8f9   : > { %v4881_v50 = vadd.f32 %v12184_v8, %v4842_v49  ;;  %v4804_v0 = vmul.f32 %v9515_v24, %v12104_v29 }
 0x8fa   : > { %v4665_v17 = vpop.xlane.xlu0 %4664 }
 0x8fb   : > { %v4712_v28 = vmul.f32 0.0078125, %v4665_v17  ;;  %v4907_v47 = vpack.c.bf16 %v4881_v50, %v4880_v35  ;;  %v4843_v63 = vmul.f32 %v12172_v12, %v4804_v0 }
 0x8fc   : > { %v9517_v2 = vpop.eup %9516 }
 0x8fd   : > { %v4744_v1 = vadd.f32 1e-05, %v4712_v28  ;;  %v4805_v25 = vmul.f32 %v9517_v2, %v12113_v40  ;;  %v9519_v57 = vpop.eup %9518  ;;  %v4882_v13 = vadd.f32 %v12184_v8, %v4843_v63 }
 0x8fe   : > { %5215 = vmatmul.mubr.bf16.gmra.mxu1 %v4907_v47  ;;  %5408 = vmatmul.mubr.bf16.gmra.mxu0 %v4907_v47  ;;  %v4667_v3 = vpop.xlane.xlu1 %4666  ;;  %v4669_v27 = vpop.xlane.xlu0 %4668  ;;  %v4806_v35 = vmul.f32 %v9519_v57, %v12116_v33 }
 0x8ff   : > { %9522 = vrsqrt.f32 %v4744_v1  ;;  %v4713_v60 = vmul.f32 0.0078125, %v4667_v3  ;;  %v4714_v45 = vmul.f32 0.0078125, %v4669_v27  ;;  %5224 = vmatprep.mubr.bf16.mxu1 %v13723_v43  ;;  %5417 = vmatprep.mubr.bf16.mxu0 %v13723_v43  ;;  %v4844_v29 = vmul.f32 %v12172_v12, %v4805_v25 }
 0x900   : > { %v9521_v36 = vpop.eup %9520  ;;  %v4845_v47 = vmul.f32 %v12172_v12, %v4806_v35 }
 0x901   : > { %v4745_v34 = vadd.f32 1e-05, %v4713_v60  ;;  %v4746_v26 = vadd.f32 1e-05, %v4714_v45  ;;  %v4883_v40 = vadd.f32 %v12184_v8, %v4844_v29  ;;  %v4807_v49 = vmul.f32 %v9521_v36, %v12122_v59  ;;  %v9138_v60 = vld [vmem:[#allocation10 + $0x78] sm:$0xff]  }
 0x902   : > { %v4671_v24 = vpop.xlane.xlu1 %4670  ;;  %v4884_v33 = vadd.f32 %v12184_v8, %v4845_v47  ;;  %v9139_v45 = vld [vmem:[#allocation10 + $0x38] sm:$0xff]   ;;  %8007 = vmatprep.subr.bf16.mxu1 %v9138_v60 }
 0x903   : > { %9524 = vrsqrt.f32 %v4745_v34  ;;  %v4715_v50 = vmul.f32 0.0078125, %v4671_v24  ;;  %v4908_v0 = vpack.c.bf16 %v4883_v40, %v4882_v13  ;;  %v4846_v17 = vmul.f32 %v12172_v12, %v4807_v49  ;;  %8008 = vmatpush3.bf16.msra.mxu1 %v9139_v45  ;;  %v9140_v40 = vld [vmem:[#allocation10 + $0xf8] sm:$0xff]  }
 0x904   : > { %9526 = vrsqrt.f32 %v4746_v26  ;;  %8119 = vmatprep.subr.bf16.mxu0 %v9140_v40  ;;  %v9155_v60 = vld [vmem:[#allocation10 + $0xd8] sm:$0xff]  }
 0x905   : > { %v4747_v28 = vadd.f32 1e-05, %v4715_v50  ;;  %v4885_v59 = vadd.f32 %v12184_v8, %v4846_v17  ;;  %v9142_v50 = vld [vmem:[#allocation10 + $0x70] sm:$0xff]   ;;  %v9156_v45 = vld [vmem:[#allocation10 + $0x18] sm:$0xff]  }
 0x906   : > { %5225 = vmatmul.mubr.bf16.gmra.mxu1 %v4908_v0  ;;  %5418 = vmatmul.mubr.bf16.gmra.mxu0 %v4908_v0  ;;  %v9143_v0 = vld [vmem:[#allocation10 + $0xf0] sm:$0xff]  }
 0x907   : > { %9528 = vrsqrt.f32 %v4747_v28  ;;  %5234 = vmatprep.mubr.bf16.mxu1 %v13723_v43  ;;  %5427 = vmatprep.mubr.bf16.mxu0 %v13723_v43  ;;  %v4909_v63 = vpack.c.bf16 %v4885_v59, %v4884_v33  ;;  %v9146_v59 = vld [vmem:[#allocation10 + $0x68] sm:$0xff]  }
 0x908   : > { %8009 = vmatprep.subr.bf16.mxu1 %v9142_v50  ;;  %v9147_v33 = vld [vmem:[#allocation10 + $0xe8] sm:$0xff]  }
 0x90c   : > { %v9523_v2 = vpop.eup %9522 }
 0x90d   : > { %v4808_v1 = vmul.f32 %v9523_v2, %v12131_v31  ;;  %v9148_v2 = vld [vmem:[#allocation10 + $0x28] sm:$0xff]  }
 0x90e   : > { %5235 = vmatmul.mubr.bf16.gmra.mxu1 %v4909_v63  ;;  %5428 = vmatmul.mubr.bf16.gmra.mxu0 %v4909_v63  ;;  %v9149_v63 = vld [vmem:[#allocation10 + $0xa8] sm:$0xff]  }
 0x90f   : > { %5244 = vmatprep.mubr.bf16.mxu1 %v13723_v43  ;;  %5437 = vmatprep.mubr.bf16.mxu0 %v13723_v43  ;;  %v4847_v27 = vmul.f32 %v12172_v12, %v4808_v1  ;;  %v9150_v1 = vld [vmem:[#allocation10 + $0x60] sm:$0xff]  }
 0x910   : > { %v9525_v25 = vpop.eup %9524 }
 0x911   : > { %v4809_v3 = vmul.f32 %v9525_v25, %v12136_v19  ;;  %v9527_v57 = vpop.eup %9526  ;;  %v4886_v31 = vadd.f32 %v12184_v8, %v4847_v27  ;;  %v9141_v19 = vld [vmem:[#allocation10 + $0xb8] sm:$0xff]   ;;  %v9151_v25 = vld [vmem:[#allocation10 + $0xe0] sm:$0xff]  }
 0x912   : > { %v4810_v34 = vmul.f32 %v9527_v57, %v12139_v62  ;;  %8120 = vmatpush3.bf16.msra.mxu0 %v9141_v19  ;;  %v9144_v62 = vld [vmem:[#allocation10 + $0x30] sm:$0xff]   ;;  %v9153_v27 = vld [vmem:[#allocation10 + $0xa0] sm:$0xff]   ;;  %v9154_v57 = vld [vmem:[#allocation10 + $0x58] sm:$0xff]  }
 0x913   : > { %v4848_v29 = vmul.f32 %v12172_v12, %v4809_v3  ;;  %8121 = vmatprep.subr.bf16.mxu0 %v9143_v0  ;;  %8010 = vmatpush3.bf16.msra.mxu1 %v9144_v62  ;;  %v9152_v3 = vld [vmem:[#allocation10 + $0x20] sm:$0xff]  }
 0x914   : > { %v9529_v36 = vpop.eup %9528  ;;  %v4849_v35 = vmul.f32 %v12172_v12, %v4810_v34  ;;  %8011 = vmatprep.subr.bf16.mxu1 %v9146_v59  ;;  %v9161_v34 = vld [vmem:[#allocation10 + $0x90] sm:$0xff]  }
 0x915   : > { %v4887_v13 = vadd.f32 %v12184_v8, %v4848_v29  ;;  %v4811_v26 = vmul.f32 %v9529_v36, %v12146_v37  ;;  %v9145_v37 = vld [vmem:[#allocation10 + $0xb0] sm:$0xff]   ;;  %v9157_v29 = vld [vmem:[#allocation10 + $0x98] sm:$0xff]  }
 0x916   : > { %8122 = vmatpush3.bf16.msra.mxu0 %v9145_v37  ;;  %v4888_v28 = vadd.f32 %v12184_v8, %v4849_v35  ;;  %v9158_v36 = vld [vmem:[#allocation10 + $0x50] sm:$0xff]   ;;  %v9162_v37 = vld [vmem:[#allocation10 + $0x48] sm:$0xff]  }
 0x917   : > { %v4910_v49 = vpack.c.bf16 %v4887_v13, %v4886_v31  ;;  %v4850_v24 = vmul.f32 %v12172_v12, %v4811_v26  ;;  %8123 = vmatprep.subr.bf16.mxu0 %v9147_v33  ;;  %8012 = vmatpush3.bf16.msra.mxu1 %v9148_v2  ;;  %v9159_v31 = vld [vmem:[#allocation10 + $0xd0] sm:$0xff]  }
 0x918   : > { %8013 = vmatprep.subr.bf16.mxu1 %v9150_v1  ;;  %v9160_v13 = vld [vmem:[#allocation10 + $0x10] sm:$0xff]   ;;  %v9167_v1 = vld [vmem:[#allocation10 + $0xc0] sm:$0xff]  }
 0x919   : > { %5245 = vmatmul.mubr.bf16.gmra.mxu1 %v4910_v49  ;;  %5438 = vmatmul.mubr.bf16.gmra.mxu0 %v4910_v49  ;;  %v4889_v17 = vadd.f32 %v12184_v8, %v4850_v24 }
 0x91a   : > { %5254 = vmatprep.mubr.bf16.mxu1 %v13723_v43  ;;  %5447 = vmatprep.mubr.bf16.mxu0 %v13723_v43 }
 0x91b   : > { %v4911_v47 = vpack.c.bf16 %v4889_v17, %v4888_v28  ;;  %8124 = vmatpush3.bf16.msra.mxu0 %v9149_v63  ;;  %8014 = vmatpush3.bf16.msra.mxu1 %v9152_v3  ;;  %v9163_v17 = vld [vmem:[#allocation10 + $0xc8] sm:$0xff]   ;;  %v9166_v63 = vld [vmem:[#allocation10 + $0x40] sm:$0xff]  }
 0x91c   : > { %8125 = vmatprep.subr.bf16.mxu0 %v9151_v25  ;;  %8015 = vmatprep.subr.bf16.mxu1 %v9154_v57  ;;  %v9164_v28 = vld [vmem:[#allocation10 + $0x8] sm:$0xff]   ;;  %v9168_v3 = vld [vmem:[#allocation10] sm:$0xff]  }
 0x91f   : > { %8126 = vmatpush3.bf16.msra.mxu0 %v9153_v27  ;;  %8016 = vmatpush3.bf16.msra.mxu1 %v9156_v45  ;;  %v9169_v27 = vld [vmem:[#allocation10 + $0x80] sm:$0xff]  }
 0x920   : > { %8127 = vmatprep.subr.bf16.mxu0 %v9155_v60  ;;  %8017 = vmatprep.subr.bf16.mxu1 %v9158_v36 }
 0x921   : > { %5255 = vmatmul.mubr.bf16.gmra.mxu1 %v4911_v47  ;;  %5448 = vmatmul.mubr.bf16.gmra.mxu0 %v4911_v47  ;;  %v9165_v47 = vld [vmem:[#allocation10 + $0x88] sm:$0xff]  }
 0x922   : > { %5264 = vmatprep.mubr.bf16.mxu1 %v13723_v43  ;;  %5457 = vmatprep.mubr.bf16.mxu0 %v13723_v43 }
 0x923   : > { %8128 = vmatpush3.bf16.msra.mxu0 %v9157_v29  ;;  %8018 = vmatpush3.bf16.msra.mxu1 %v9160_v13 }
 0x924   : > { %8129 = vmatprep.subr.bf16.mxu0 %v9159_v31  ;;  %8019 = vmatprep.subr.bf16.mxu1 %v9162_v37 }
 0x927   : > { %8130 = vmatpush3.bf16.msra.mxu0 %v9161_v34  ;;  %8020 = vmatpush3.bf16.msra.mxu1 %v9164_v28 }
 0x928   : > { %8131 = vmatprep.subr.bf16.mxu0 %v9163_v17  ;;  %8021 = vmatprep.subr.bf16.mxu1 %v9166_v63 }
 0x92b   : > { %8132 = vmatpush3.bf16.msra.mxu0 %v9165_v47  ;;  %8022 = vmatpush3.bf16.msra.mxu1 %v9168_v3 }
 0x92c   : > { %8133 = vmatprep.subr.bf16.mxu0 %v9167_v1 }
 0x92f   : > { %8134 = vmatpush3.bf16.msra.mxu0 %v9169_v27 }
 0x94a   : > { %v4673_v26 = vpop.xlane.xlu0 %4672 }
 0x94b   : > { %v4716_v40 = vmul.f32 0.0078125, %v4673_v26 }
 0x94d   : > { %v4748_v19 = vadd.f32 1e-05, %v4716_v40 }
 0x94e   : > { %v4675_v49 = vpop.xlane.xlu1 %4674 }
 0x94f   : > { %9530 = vrsqrt.f32 %v4748_v19  ;;  %v4717_v24 = vmul.f32 0.0078125, %v4675_v49 }
 0x951   : > { %v4749_v35 = vadd.f32 1e-05, %v4717_v24 }
 0x952   : > { %v4677_v50 = vpop.xlane.xlu0 %4676 }
 0x953   : > { %9532 = vrsqrt.f32 %v4749_v35  ;;  %v4718_v0 = vmul.f32 0.0078125, %v4677_v50 }
 0x955   : > { %v4750_v62 = vadd.f32 1e-05, %v4718_v0 }
 0x956   : > { %v4679_v59 = vpop.xlane.xlu1 %4678 }
 0x957   : > { %9534 = vrsqrt.f32 %v4750_v62  ;;  %v4719_v33 = vmul.f32 0.0078125, %v4679_v59 }
 0x959   : > { %v4751_v2 = vadd.f32 1e-05, %v4719_v33 }
 0x95b   : > { %v4681_v25 = vpop.xlane.xlu0 %4680  ;;  %9536 = vrsqrt.f32 %v4751_v2 }
 0x95c   : > { %v9531_v57 = vpop.eup %9530  ;;  %v4720_v60 = vmul.f32 0.0078125, %v4681_v25 }
 0x95d   : > { %v4812_v45 = vmul.f32 %v9531_v57, %v12151_v58 }
 0x95e   : > { %v4752_v29 = vadd.f32 1e-05, %v4720_v60 }
 0x95f   : > { %v4683_v36 = vpop.xlane.xlu1 %4682  ;;  %v4851_v26 = vmul.f32 %v12172_v12, %v4812_v45 }
 0x960   : > { %v9533_v31 = vpop.eup %9532  ;;  %9538 = vrsqrt.f32 %v4752_v29  ;;  %v4721_v13 = vmul.f32 0.0078125, %v4683_v36 }
 0x961   : > { %v4813_v34 = vmul.f32 %v9533_v31, %v12156_v14  ;;  %v4890_v58 = vadd.f32 %v12184_v8, %v4851_v26 }
 0x962   : > { %v4753_v40 = vadd.f32 1e-05, %v4721_v13  ;;  %v4685_v19 = vpop.xlane.xlu0 %4684 }
 0x963   : > { %v4722_v49 = vmul.f32 0.0078125, %v4685_v19  ;;  %v4852_v24 = vmul.f32 %v12172_v12, %v4813_v34 }
 0x964   : > { %v9535_v35 = vpop.eup %9534  ;;  %9540 = vrsqrt.f32 %v4753_v40 }
 0x965   : > { %v4754_v50 = vadd.f32 1e-05, %v4722_v49  ;;  %v4891_v0 = vadd.f32 %v12184_v8, %v4852_v24  ;;  %v4814_v37 = vmul.f32 %v9535_v35, %v12161_v30 }
 0x966   : > { %v4687_v62 = vpop.xlane.xlu1 %4686 }
 0x967   : > { %9542 = vrsqrt.f32 %v4754_v50  ;;  %v4723_v17 = vmul.f32 0.0078125, %v4687_v62  ;;  %v4912_v14 = vpack.c.bf16 %v4891_v0, %v4890_v58  ;;  %v4853_v2 = vmul.f32 %v12172_v12, %v4814_v37 }
 0x968   : > { %v9537_v28 = vpop.eup %9536 }
 0x969   : > { %v4755_v47 = vadd.f32 1e-05, %v4723_v17  ;;  %5265 = vmatmul.mubr.bf16.gmra.mxu1 %v4912_v14  ;;  %5458 = vmatmul.mubr.bf16.gmra.mxu0 %v4912_v14  ;;  %v4815_v33 = vmul.f32 %v9537_v28, %v12167_v55  ;;  %v4892_v27 = vadd.f32 %v12184_v8, %v4853_v2 }
 0x96a   : > { %v4689_v59 = vpop.xlane.xlu0 %4688  ;;  %5274 = vmatprep.mubr.bf16.mxu1 %v13723_v43  ;;  %5467 = vmatprep.mubr.bf16.mxu0 %v13723_v43 }
 0x96b   : > { %9544 = vrsqrt.f32 %v4755_v47  ;;  %v4724_v63 = vmul.f32 0.0078125, %v4689_v59  ;;  %v4854_v30 = vmul.f32 %v12172_v12, %v4815_v33 }
 0x96d   : > { %v9539_v1 = vpop.eup %9538  ;;  %v4756_v25 = vadd.f32 1e-05, %v4724_v63  ;;  %v4893_v57 = vadd.f32 %v12184_v8, %v4854_v30 }
 0x96e   : > { %v4691_v3 = vpop.xlane.xlu1 %4690  ;;  %v4816_v60 = vmul.f32 %v9539_v1, %v12179_v18 }
 0x96f   : > { %9546 = vrsqrt.f32 %v4756_v25  ;;  %v4725_v45 = vmul.f32 0.0078125, %v4691_v3  ;;  %v4913_v29 = vpack.c.bf16 %v4893_v57, %v4892_v27  ;;  %v4952_v27 = vlaneseq }
 0x970   : > { %v4855_v34 = vmul.f32 %v12172_v12, %v4816_v60 }
 0x971   : > { %v9541_v36 = vpop.eup %9540  ;;  %v4757_v55 = vadd.f32 1e-05, %v4725_v45  ;;  %5275 = vmatmul.mubr.bf16.gmra.mxu1 %v4913_v29  ;;  %5468 = vmatmul.mubr.bf16.gmra.mxu0 %v4913_v29  ;;  %v4953_v29 = vshrl.u32 %v4952_v27, 7 }
 0x972   : > { %v4693_v31 = vpop.xlane.xlu0 %4692  ;;  %v4817_v13 = vmul.f32 %v9541_v36, %v12190_v9  ;;  %5284 = vmatprep.mubr.bf16.mxu1 %v13723_v43  ;;  %5477 = vmatprep.mubr.bf16.mxu0 %v13723_v43  ;;  %v4894_v35 = vadd.f32 %v12184_v8, %v4855_v34 }
 0x973   : > { %9548 = vrsqrt.f32 %v4757_v55  ;;  %v4726_v26 = vmul.f32 0.0078125, %v4693_v31  ;;  %v4954_v31 = vsub.s32 0, %v4953_v29 }
 0x974   : > { %v9543_v40 = vpop.eup %9542  ;;  %v4856_v18 = vmul.f32 %v12172_v12, %v4817_v13  ;;  %v4962_v13 = vsub.s32 2, %v4953_v29 }
 0x975   : > { %v4758_v19 = vadd.f32 1e-05, %v4726_v26  ;;  %v4818_v49 = vmul.f32 %v9543_v40, %v12198_v23  ;;  %v4958_v26 = vsub.s32 1, %v4953_v29  ;;  %v4966_v40 = vsub.s32 3, %v4953_v29 }
 0x976   : > { %v4695_v24 = vpop.xlane.xlu1 %4694  ;;  %v4895_v50 = vadd.f32 %v12184_v8, %v4856_v18 }
 0x977   : > { %9550 = vrsqrt.f32 %v4758_v19  ;;  %v4727_v9 = vmul.f32 0.0078125, %v4695_v24  ;;  %v4857_v17 = vmul.f32 %v12172_v12, %v4818_v49 }
 0x978   : > { %v9545_v58 = vpop.eup %9544  ;;  %v4914_v0 = vpack.c.bf16 %v4895_v50, %v4894_v35 }
 0x979   : > { %v4759_v62 = vadd.f32 1e-05, %v4727_v9  ;;  %v4819_v37 = vmul.f32 %v9545_v58, %v12208_v7  ;;  %v4896_v28 = vadd.f32 %v12184_v8, %v4857_v17 }
 0x97a   : > { %5285 = vmatmul.mubr.bf16.gmra.mxu1 %v4914_v0  ;;  %5478 = vmatmul.mubr.bf16.gmra.mxu0 %v4914_v0 }
 0x97b   : > { %9552 = vrsqrt.f32 %v4759_v62  ;;  %5294 = vmatprep.mubr.bf16.mxu1 %v13723_v43  ;;  %5487 = vmatprep.mubr.bf16.mxu0 %v13723_v43  ;;  %v4858_v23 = vmul.f32 %v12172_v12, %v4819_v37 }
 0x97c   : > { %v9547_v14 = vpop.eup %9546 }
 0x97d   : > { %v4897_v47 = vadd.f32 %v12184_v8, %v4858_v23  ;;  %v4820_v59 = vmul.f32 %v9547_v14, %v12216_v20 }
 0x97f   : > { %v4915_v33 = vpack.c.bf16 %v4897_v47, %v4896_v28  ;;  %v4859_v63 = vmul.f32 %v12172_v12, %v4820_v59 }
 0x980   : > { %v9549_v7 = vpop.eup %9548 }
 0x981   : > { %v4821_v2 = vmul.f32 %v9549_v7, %v12226_v21  ;;  %v4898_v25 = vadd.f32 %v12184_v8, %v4859_v63 }
 0x982   : > { %5295 = vmatmul.mubr.bf16.gmra.mxu1 %v4915_v33  ;;  %5488 = vmatmul.mubr.bf16.gmra.mxu0 %v4915_v33 }
 0x983   : > { %5304 = vmatprep.mubr.bf16.mxu1 %v13723_v43  ;;  %5497 = vmatprep.mubr.bf16.mxu0 %v13723_v43  ;;  %v4860_v30 = vmul.f32 %v12172_v12, %v4821_v2 }
 0x984   : > { %v9551_v1 = vpop.eup %9550 }
 0x985   : > { %v4899_v3 = vadd.f32 %v12184_v8, %v4860_v30  ;;  %v4822_v20 = vmul.f32 %v9551_v1, %v12234_v4 }
 0x987   : > { %v4916_v57 = vpack.c.bf16 %v4899_v3, %v4898_v25  ;;  %v4861_v45 = vmul.f32 %v12172_v12, %v4822_v20 }
 0x988   : > { %v9553_v21 = vpop.eup %9552 }
 0x989   : > { %v4823_v60 = vmul.f32 %v9553_v21, %v12244_v16  ;;  %v4900_v55 = vadd.f32 %v12184_v8, %v4861_v45  ;;  %v4950_v16 = vld [vmem:[%s13474_s9] sm:$0xf] }
 0x98a   : > { %5305 = vmatmul.mubr.bf16.gmra.mxu1 %v4916_v57  ;;  %5498 = vmatmul.mubr.bf16.gmra.mxu0 %v4916_v57  ;;  %v12349_v18 = vrot.slane %v4950_v16, %v4954_v31  ;;  %v12355_v19 = vrot.slane %v4950_v16, %v4966_v40 }
 0x98b   : > { %5314 = vmatprep.mubr.bf16.mxu1 %v13723_v43  ;;  %5507 = vmatprep.mubr.bf16.mxu0 %v13723_v43  ;;  %v4862_v36 = vmul.f32 %v12172_v12, %v4823_v60  ;;  %v12351_v43 = vrot.slane %v4950_v16, %v4962_v13  ;;  %v12353_v12 = vrot.slane %v4950_v16, %v4958_v26 }
 0x98d   : > { %v4901_v4 = vadd.f32 %v12184_v8, %v4862_v36 }
 0x98f   : > { %v4917_v34 = vpack.c.bf16 %v4901_v4, %v4900_v55 }
 0x992   : > { %5315 = vmatmul.mubr.bf16.gmra.mxu1 %v4917_v34  ;;  %5508 = vmatmul.mubr.bf16.gmra.mxu0 %v4917_v34 }
 0x995   : > { %v5166_v8 = vpop.f32.mrf.mxu1  ;;  %v5359_v49 = vpop.f32.mrf.mxu0 }
 0x996   : > { %v5167_v24 = vadd.f32 %v5166_v8, %v12349_v18  ;;  %v5360_v35 = vadd.f32 %v5359_v49, %v12351_v43 }
 0x997   : > { %v5168_v50 = vpop.f32.mrf.mxu1  ;;  %v5361_v9 = vpop.f32.mrf.mxu0 }
 0x998   : > { %v5518_v58 = vadd.f32 3.0, %v5167_v24  ;;  %v5520_v0 = vadd.f32 3.0, %v5360_v35  ;;  %v5169_v62 = vadd.f32 %v5168_v50, %v12353_v12  ;;  %v5362_v37 = vadd.f32 %v5361_v9, %v12355_v19 }
 0x999   : > { %v5170_v17 = vpop.f32.mrf.mxu1  ;;  %v5363_v23 = vpop.f32.mrf.mxu0 }
 0x99a   : > { %v5646_v14 = vmax.f32 %v5518_v58, 0.0  ;;  %v5648_v28 = vmax.f32 %v5520_v0, 0.0  ;;  %v5519_v47 = vadd.f32 3.0, %v5169_v62  ;;  %v5521_v59 = vadd.f32 3.0, %v5362_v37 }
 0x99b   : > { %v5171_v33 = vadd.f32 %v5170_v17, %v12349_v18  ;;  %v5364_v7 = vadd.f32 %v5363_v23, %v12351_v43  ;;  %v5172_v2 = vpop.f32.mrf.mxu1  ;;  %v5365_v63 = vpop.f32.mrf.mxu0 }
 0x99c   : > { %v5774_v30 = vmin.f32 %v5646_v14, 6.0  ;;  %v5776_v1 = vmin.f32 %v5648_v28, 6.0  ;;  %v5647_v25 = vmax.f32 %v5519_v47, 0.0  ;;  %v5649_v3 = vmax.f32 %v5521_v59, 0.0 }
 0x99d   : > { %v5522_v20 = vadd.f32 3.0, %v5171_v33  ;;  %v5524_v27 = vadd.f32 3.0, %v5364_v7  ;;  %v5173_v57 = vadd.f32 %v5172_v2, %v12353_v12  ;;  %v5366_v21 = vadd.f32 %v5365_v63, %v12355_v19 }
 0x99e   : > { %v5902_v60 = vmul.f32 %v5774_v30, %v5167_v24  ;;  %v5904_v45 = vmul.f32 %v5776_v1, %v5360_v35  ;;  %v5775_v29 = vmin.f32 %v5647_v25, 6.0  ;;  %v5777_v36 = vmin.f32 %v5649_v3, 6.0  ;;  %v5176_v30 = vpop.f32.mrf.mxu1  ;;  %v5369_v1 = vpop.f32.mrf.mxu0 }
 0x99f   : > { %v5650_v55 = vmax.f32 %v5522_v20, 0.0  ;;  %v5652_v4 = vmax.f32 %v5524_v27, 0.0  ;;  %v5523_v31 = vadd.f32 3.0, %v5173_v57  ;;  %v5525_v13 = vadd.f32 3.0, %v5366_v21 }
 0x9a0   : > { %v6030_v34 = vmul.f32 0.16666667, %v5902_v60  ;;  %v6032_v16 = vmul.f32 0.16666667, %v5904_v45  ;;  %v5903_v26 = vmul.f32 %v5775_v29, %v5169_v62  ;;  %v5905_v40 = vmul.f32 %v5777_v36, %v5362_v37 }
 0x9a1   : > { %v5778_v8 = vmin.f32 %v5650_v55, 6.0  ;;  %v5780_v49 = vmin.f32 %v5652_v4, 6.0  ;;  %v5651_v50 = vmax.f32 %v5523_v31, 0.0  ;;  %v5653_v9 = vmax.f32 %v5525_v13, 0.0 }
 0x9a2   : > { %v6158_v58 = vadd.f32 3.0, %v6030_v34  ;;  %v6160_v0 = vadd.f32 3.0, %v6032_v16  ;;  %v6031_v17 = vmul.f32 0.16666667, %v5903_v26  ;;  %v6033_v23 = vmul.f32 0.16666667, %v5905_v40  ;;  %v5178_v26 = vpop.f32.mrf.mxu1  ;;  %v5371_v40 = vpop.f32.mrf.mxu0 }
 0x9a3   : > { %v5906_v24 = vmul.f32 %v5778_v8, %v5171_v33  ;;  %v5908_v35 = vmul.f32 %v5780_v49, %v5364_v7  ;;  %v5779_v14 = vmin.f32 %v5651_v50, 6.0  ;;  %v5781_v28 = vmin.f32 %v5653_v9, 6.0 }
 0x9a4   : > { %v6286_v47 = vmax.f32 %v6158_v58, 0.0  ;;  %v6288_v59 = vmax.f32 %v6160_v0, 0.0  ;;  %v6159_v2 = vadd.f32 3.0, %v6031_v17  ;;  %v6161_v63 = vadd.f32 3.0, %v6033_v23 }
 0x9a5   : > { %v6034_v62 = vmul.f32 0.16666667, %v5906_v24  ;;  %v6036_v37 = vmul.f32 0.16666667, %v5908_v35  ;;  %v5907_v25 = vmul.f32 %v5779_v14, %v5173_v57  ;;  %v5909_v3 = vmul.f32 %v5781_v28, %v5366_v21 }
 0x9a6   : > { %v6414_v20 = vmin.f32 %v6286_v47, 6.0  ;;  %v6416_v27 = vmin.f32 %v6288_v59, 6.0  ;;  %v6287_v60 = vmax.f32 %v6159_v2, 0.0  ;;  %v6289_v45 = vmax.f32 %v6161_v63, 0.0  ;;  %v5180_v47 = vpop.f32.mrf.mxu1  ;;  %v5373_v59 = vpop.f32.mrf.mxu0 }
 0x9a7   : > { %v6162_v29 = vadd.f32 3.0, %v6034_v62  ;;  %v6164_v36 = vadd.f32 3.0, %v6036_v37  ;;  %v6035_v33 = vmul.f32 0.16666667, %v5907_v25  ;;  %v12365_v7 = vmul.f32 0.16666667, %v5909_v3 }
 0x9a8   : > { %v6542_v55 = vmul.f32 %v6414_v20, %v6030_v34  ;;  %v6544_v4 = vmul.f32 %v6416_v27, %v6032_v16  ;;  %v6415_v31 = vmin.f32 %v6287_v60, 6.0  ;;  %v6417_v13 = vmin.f32 %v6289_v45, 6.0 }
 0x9a9   : > { %v6290_v8 = vmax.f32 %v6162_v29, 0.0  ;;  %v6292_v49 = vmax.f32 %v6164_v36, 0.0  ;;  %v6163_v50 = vadd.f32 3.0, %v6035_v33  ;;  %v6165_v57 = vadd.f32 3.0, %v12365_v7 }
 0x9aa   : > { %v6543_v21 = vmul.f32 %v6415_v31, %v6031_v17  ;;  %v6545_v9 = vmul.f32 %v6417_v13, %v6033_v23  ;;  %v12368_v14 = vmul.f32 0.16666667, %v6542_v55  ;;  %v12370_v28 = vmul.f32 0.16666667, %v6544_v4  ;;  %v5182_v4 = vpop.f32.mrf.mxu1 }
 0x9ab   : > { %v6418_v58 = vmin.f32 %v6290_v8, 6.0  ;;  %v6420_v0 = vmin.f32 %v6292_v49, 6.0  ;;  %v6291_v24 = vmax.f32 %v6163_v50, 0.0  ;;  %v6293_v35 = vmax.f32 %v6165_v57, 0.0 }
 0x9ac   : > { %v5177_v34 = vadd.f32 %v5176_v30, %v12349_v18  ;;  %v5370_v16 = vadd.f32 %v5369_v1, %v12351_v43  ;;  %v12374_v2 = vmul.f32 0.16666667, %v6543_v21  ;;  %v5179_v20 = vadd.f32 %v5178_v26, %v12353_v12 }
 0x9ad   : > { %v6546_v63 = vmul.f32 %v6418_v58, %v6034_v62  ;;  %v6548_v25 = vmul.f32 %v6420_v0, %v6036_v37  ;;  %v6419_v17 = vmin.f32 %v6291_v24, 6.0  ;;  %v5372_v27 = vadd.f32 %v5371_v40, %v12355_v19  ;;  %v5375_v62 = vpop.f32.mrf.mxu0 }
 0x9ae   : > { %v5526_v23 = vadd.f32 3.0, %v5177_v34  ;;  %v5528_v3 = vadd.f32 3.0, %v5370_v16  ;;  %v12378_v60 = vmul.f32 0.16666667, %v6545_v9  ;;  %v12382_v30 = vmin.f32 %v6293_v35, 6.0 }
 0x9af   : > { %v12380_v45 = vmul.f32 0.16666667, %v6546_v63  ;;  %v5527_v36 = vadd.f32 3.0, %v5179_v20  ;;  %v5529_v55 = vadd.f32 3.0, %v5372_v27  ;;  %v12384_v37 = vmul.f32 0.16666667, %v6548_v25 }
 0x9b0   : > { %v5654_v1 = vmax.f32 %v5526_v23, 0.0  ;;  %v5656_v29 = vmax.f32 %v5528_v3, 0.0  ;;  %v12386_v31 = vmul.f32 %v6419_v17, %v6035_v33  ;;  %v5181_v13 = vadd.f32 %v5180_v47, %v12349_v18 }
 0x9b1   : > { %v5374_v26 = vadd.f32 %v5373_v59, %v12351_v43  ;;  %v5655_v49 = vmax.f32 %v5527_v36, 0.0  ;;  %v5657_v50 = vmax.f32 %v5529_v55, 0.0  ;;  %v5183_v9 = vadd.f32 %v5182_v4, %v12353_v12 }
 0x9b2   : > { %v5782_v40 = vmin.f32 %v5654_v1, 6.0  ;;  %v5784_v8 = vmin.f32 %v5656_v29, 6.0  ;;  %v5530_v57 = vadd.f32 3.0, %v5181_v13  ;;  %v5376_v58 = vadd.f32 %v5375_v62, %v12355_v19 }
 0x9b3   : > { %v5532_v21 = vadd.f32 3.0, %v5374_v26  ;;  %v5783_v35 = vmin.f32 %v5655_v49, 6.0  ;;  %v5785_v63 = vmin.f32 %v5657_v50, 6.0  ;;  %v5531_v17 = vadd.f32 3.0, %v5183_v9 }
 0x9b4   : > { %v5910_v0 = vmul.f32 %v5782_v40, %v5177_v34  ;;  %v5912_v24 = vmul.f32 %v5784_v8, %v5370_v16  ;;  %v5658_v33 = vmax.f32 %v5530_v57, 0.0  ;;  %v5533_v47 = vadd.f32 3.0, %v5376_v58  ;;  %v5186_v34 = vpop.f32.mrf.mxu1  ;;  %v5379_v16 = vpop.f32.mrf.mxu0 }
 0x9b5   : > { %v5660_v25 = vmax.f32 %v5532_v21, 0.0  ;;  %v5911_v3 = vmul.f32 %v5783_v35, %v5179_v20  ;;  %v5913_v1 = vmul.f32 %v5785_v63, %v5372_v27  ;;  %v5659_v55 = vmax.f32 %v5531_v17, 0.0 }
 0x9b6   : > { %v6038_v23 = vmul.f32 0.16666667, %v5910_v0  ;;  %v6040_v59 = vmul.f32 0.16666667, %v5912_v24  ;;  %v5786_v29 = vmin.f32 %v5658_v33, 6.0  ;;  %v5661_v46 = vmax.f32 %v5533_v47, 0.0 }
 0x9b7   : > { %v5788_v36 = vmin.f32 %v5660_v25, 6.0  ;;  %v6039_v5 = vmul.f32 0.16666667, %v5911_v3  ;;  %v6041_v62 = vmul.f32 0.16666667, %v5913_v1  ;;  %v5787_v49 = vmin.f32 %v5659_v55, 6.0  ;;  %v5188_v3 = vpop.f32.mrf.mxu1  ;;  %v5381_v1 = vpop.f32.mrf.mxu0 }
 0x9b8   : > { %v6166_v42 = vadd.f32 3.0, %v6038_v23  ;;  %v6168_v4 = vadd.f32 3.0, %v6040_v59  ;;  %v5914_v40 = vmul.f32 %v5786_v29, %v5181_v13  ;;  %v5789_v50 = vmin.f32 %v5661_v46, 6.0 }
 0x9b9   : > { %v5916_v8 = vmul.f32 %v5788_v36, %v5374_v26  ;;  %v6167_v0 = vadd.f32 3.0, %v6039_v5  ;;  %v6169_v24 = vadd.f32 3.0, %v6041_v62  ;;  %v5915_v35 = vmul.f32 %v5787_v49, %v5183_v9 }
 0x9ba   : > { %v6294_v57 = vmax.f32 %v6166_v42, 0.0  ;;  %v6296_v21 = vmax.f32 %v6168_v4, 0.0  ;;  %v6042_v20 = vmul.f32 0.16666667, %v5914_v40  ;;  %v5917_v63 = vmul.f32 %v5789_v50, %v5376_v58 }
 0x9bb   : > { %v6044_v27 = vmul.f32 0.16666667, %v5916_v8  ;;  %v6295_v17 = vmax.f32 %v6167_v0, 0.0  ;;  %v6297_v47 = vmax.f32 %v6169_v24, 0.0  ;;  %v12392_v13 = vmul.f32 0.16666667, %v5915_v35 }
 0x9bc   : > { %v6422_v33 = vmin.f32 %v6294_v57, 6.0  ;;  %v6424_v25 = vmin.f32 %v6296_v21, 6.0  ;;  %v6170_v53 = vadd.f32 3.0, %v6042_v20  ;;  %v12394_v26 = vmul.f32 0.16666667, %v5917_v63  ;;  %v5190_v57 = vpop.f32.mrf.mxu1 }
 0x9bd   : > { %v6172_v39 = vadd.f32 3.0, %v6044_v27  ;;  %v6423_v29 = vmin.f32 %v6295_v17, 6.0  ;;  %v6425_v36 = vmin.f32 %v6297_v47, 6.0  ;;  %v6171_v9 = vadd.f32 3.0, %v12392_v13 }
 0x9be   : > { %v6550_v42 = vmul.f32 %v6422_v33, %v6038_v23  ;;  %v6552_v46 = vmul.f32 %v6424_v25, %v6040_v59  ;;  %v6298_v55 = vmax.f32 %v6170_v53, 0.0  ;;  %v6173_v58 = vadd.f32 3.0, %v12394_v26  ;;  %v5383_v23 = vpop.f32.mrf.mxu0 }
 0x9bf   : > { %v6300_v4 = vmax.f32 %v6172_v39, 0.0  ;;  %v12402_v8 = vmul.f32 %v12382_v30, %v12365_v7  ;;  %v6551_v49 = vmul.f32 %v6423_v29, %v6039_v5  ;;  %v6553_v50 = vmul.f32 %v6425_v36, %v6041_v62  ;;  %v5192_v29 = vpop.f32.mrf.mxu1 }
 0x9c0   : > { %v6426_v59 = vmin.f32 %v6298_v55, 6.0  ;;  %v6299_v0 = vmax.f32 %v6171_v9, 0.0  ;;  %v6301_v53 = vmax.f32 %v6173_v58, 0.0  ;;  %v12406_v24 = vmul.f32 0.16666667, %v6550_v42  ;;  %v5385_v42 = vpop.f32.mrf.mxu0 }
 0x9c1   : > { %v6428_v21 = vmin.f32 %v6300_v4, 6.0  ;;  %v5187_v35 = vadd.f32 %v5186_v34, %v12349_v18  ;;  %v5380_v63 = vadd.f32 %v5379_v16, %v12351_v43  ;;  %v12410_v33 = vmul.f32 0.16666667, %v6552_v46 }
 0x9c2   : > { %v12412_v7 = vmul.f32 0.16666667, %v6551_v49  ;;  %v12414_v5 = vmul.f32 0.16666667, %v6553_v50  ;;  %v6554_v30 = vmul.f32 %v6426_v59, %v6042_v20  ;;  %v5189_v17 = vadd.f32 %v5188_v3, %v12353_v12 }
 0x9c3   : > { %v5534_v62 = vadd.f32 3.0, %v5187_v35  ;;  %v5536_v25 = vadd.f32 3.0, %v5380_v63  ;;  %v5382_v47 = vadd.f32 %v5381_v1, %v12355_v19  ;;  %v12420_v34 = vmul.f32 %v6428_v21, %v6044_v27 }
 0x9c4   : > { %v12418_v36 = vmul.f32 0.16666667, %v6554_v30  ;;  %v12422_v16 = vmin.f32 %v6299_v0, 6.0  ;;  %v12424_v46 = vmin.f32 %v6301_v53, 6.0  ;;  %v5535_v9 = vadd.f32 3.0, %v5189_v17 }
 0x9c5   : > { %v5662_v55 = vmax.f32 %v5534_v62, 0.0  ;;  %v5664_v4 = vmax.f32 %v5536_v25, 0.0  ;;  %v5537_v20 = vadd.f32 3.0, %v5382_v47  ;;  %v5191_v58 = vadd.f32 %v5190_v57, %v12349_v18 }
 0x9c6   : > { %v5384_v3 = vadd.f32 %v5383_v23, %v12351_v43  ;;  %v5193_v1 = vadd.f32 %v5192_v29, %v12353_v12  ;;  %v5386_v49 = vadd.f32 %v5385_v42, %v12355_v19  ;;  %v5663_v27 = vmax.f32 %v5535_v9, 0.0 }
 0x9c7   : > { %v5790_v50 = vmin.f32 %v5662_v55, 6.0  ;;  %v5792_v59 = vmin.f32 %v5664_v4, 6.0  ;;  %v5665_v21 = vmax.f32 %v5537_v20, 0.0  ;;  %v5538_v0 = vadd.f32 3.0, %v5191_v58 }
 0x9c8   : > { %v5540_v30 = vadd.f32 3.0, %v5384_v3  ;;  %v5539_v53 = vadd.f32 3.0, %v5193_v1  ;;  %v5541_v39 = vadd.f32 3.0, %v5386_v49  ;;  %v5791_v40 = vmin.f32 %v5663_v27, 6.0 }
 0x9c9   : > { %v5918_v62 = vmul.f32 %v5790_v50, %v5187_v35  ;;  %v5920_v25 = vmul.f32 %v5792_v59, %v5380_v63  ;;  %v5793_v41 = vmin.f32 %v5665_v21, 6.0  ;;  %v5666_v52 = vmax.f32 %v5538_v0, 0.0  ;;  %v5196_v35 = vpop.f32.mrf.mxu1  ;;  %v5389_v63 = vpop.f32.mrf.mxu0 }
 0x9ca   : > { %v5668_v57 = vmax.f32 %v5540_v30, 0.0  ;;  %v5667_v61 = vmax.f32 %v5539_v53, 0.0  ;;  %v5669_v23 = vmax.f32 %v5541_v39, 0.0  ;;  %v5919_v10 = vmul.f32 %v5791_v40, %v5189_v17 }
 0x9cb   : > { %v6046_v6 = vmul.f32 0.16666667, %v5918_v62  ;;  %v6048_v29 = vmul.f32 0.16666667, %v5920_v25  ;;  %v5921_v42 = vmul.f32 %v5793_v41, %v5382_v47  ;;  %v5794_v55 = vmin.f32 %v5666_v52, 6.0  ;;  %v5198_v25 = vpop.f32.mrf.mxu1 }
 0x9cc   : > { %v5796_v4 = vmin.f32 %v5668_v57, 6.0  ;;  %v5795_v9 = vmin.f32 %v5667_v61, 6.0  ;;  %v5797_v20 = vmin.f32 %v5669_v23, 6.0  ;;  %v6047_v51 = vmul.f32 0.16666667, %v5919_v10  ;;  %v5391_v57 = vpop.f32.mrf.mxu0 }
 0x9cd   : > { %v6174_v22 = vadd.f32 3.0, %v6046_v6  ;;  %v6176_v38 = vadd.f32 3.0, %v6048_v29  ;;  %v6049_v11 = vmul.f32 0.16666667, %v5921_v42  ;;  %v5922_v50 = vmul.f32 %v5794_v55, %v5191_v58 }
 0x9ce   : > { %v5924_v59 = vmul.f32 %v5796_v4, %v5384_v3  ;;  %v5923_v27 = vmul.f32 %v5795_v9, %v5193_v1  ;;  %v5925_v21 = vmul.f32 %v5797_v20, %v5386_v49  ;;  %v6175_v30 = vadd.f32 3.0, %v6047_v51 }
 0x9cf   : > { %v6302_v0 = vmax.f32 %v6174_v22, 0.0  ;;  %v6304_v39 = vmax.f32 %v6176_v38, 0.0  ;;  %v6177_v53 = vadd.f32 3.0, %v6049_v11  ;;  %v6050_v40 = vmul.f32 0.16666667, %v5922_v50 }
 0x9d0   : > { %v6052_v41 = vmul.f32 0.16666667, %v5924_v59  ;;  %v6051_v52 = vmul.f32 0.16666667, %v5923_v27  ;;  %v5197_v61 = vadd.f32 %v5196_v35, %v12349_v18  ;;  %v6303_v62 = vmax.f32 %v6175_v30, 0.0 }
 0x9d1   : > { %v6430_v17 = vmin.f32 %v6302_v0, 6.0  ;;  %v6432_v47 = vmin.f32 %v6304_v39, 6.0  ;;  %v6305_v10 = vmax.f32 %v6177_v53, 0.0  ;;  %v6178_v23 = vadd.f32 3.0, %v6050_v40 }
 0x9d2   : > { %v6180_v58 = vadd.f32 3.0, %v6052_v41  ;;  %v6179_v3 = vadd.f32 3.0, %v6051_v52  ;;  %v12431_v1 = vmul.f32 0.16666667, %v5925_v21  ;;  %v6431_v49 = vmin.f32 %v6303_v62, 6.0  ;;  %v5200_v21 = vpop.f32.mrf.mxu1 }
 0x9d3   : > { %v6558_v22 = vmul.f32 %v6430_v17, %v6046_v6  ;;  %v6560_v38 = vmul.f32 %v6432_v47, %v6048_v29  ;;  %v6433_v42 = vmin.f32 %v6305_v10, 6.0  ;;  %v6306_v55 = vmax.f32 %v6178_v23, 0.0  ;;  %v5393_v6 = vpop.f32.mrf.mxu0 }
 0x9d4   : > { %v6308_v4 = vmax.f32 %v6180_v58, 0.0  ;;  %v6307_v9 = vmax.f32 %v6179_v3, 0.0  ;;  %v12434_v20 = vadd.f32 3.0, %v12431_v1  ;;  %v12437_v35 = vmul.f32 0.16666667, %v12420_v34  ;;  %v5202_v23 = vpop.f32.mrf.mxu1 }
 0x9d5   : > { %v12441_v50 = vmul.f32 %v12422_v16, %v12392_v13  ;;  %v6559_v59 = vmul.f32 %v6431_v49, %v6047_v51  ;;  %v6561_v27 = vmul.f32 %v6433_v42, %v6049_v11  ;;  %v12445_v29 = vmul.f32 %v12424_v46, %v12394_v26  ;;  %v5395_v58 = vpop.f32.mrf.mxu0 }
 0x9d6   : > { %v6434_v0 = vmin.f32 %v6306_v55, 6.0  ;;  %v6436_v39 = vmin.f32 %v6308_v4, 6.0  ;;  %v6435_v30 = vmin.f32 %v6307_v9, 6.0  ;;  %v12447_v53 = vmul.f32 0.16666667, %v6558_v22 }
 0x9d7   : > { %v12449_v17 = vmul.f32 0.16666667, %v6560_v38  ;;  %v5542_v34 = vadd.f32 3.0, %v5197_v61  ;;  %v5390_v47 = vadd.f32 %v5389_v63, %v12351_v43  ;;  %v12452_v13 = vmul.f32 0.16666667, %v6559_v59 }
 0x9d8   : > { %v12454_v51 = vmul.f32 0.16666667, %v6561_v27  ;;  %v6562_v11 = vmul.f32 %v6434_v0, %v6050_v40  ;;  %v6309_v16 = vmax.f32 %v12434_v20, 0.0  ;;  %v5199_v46 = vadd.f32 %v5198_v25, %v12353_v12 }
 0x9d9   : > { %v5670_v62 = vmax.f32 %v5542_v34, 0.0  ;;  %v5544_v26 = vadd.f32 3.0, %v5390_v47  ;;  %v5392_v10 = vadd.f32 %v5391_v57, %v12355_v19  ;;  %v6564_v22 = vmul.f32 %v6436_v39, %v6052_v41 }
 0x9da   : > { %v12459_v3 = vmul.f32 0.16666667, %v6562_v11  ;;  %v12461_v38 = vmul.f32 %v6435_v30, %v6051_v52  ;;  %v5201_v63 = vadd.f32 %v5200_v21, %v12349_v18  ;;  %v5543_v40 = vadd.f32 3.0, %v5199_v46 }
 0x9db   : > { %v5798_v49 = vmin.f32 %v5670_v62, 6.0  ;;  %v5672_v42 = vmax.f32 %v5544_v26, 0.0  ;;  %v5545_v55 = vadd.f32 3.0, %v5392_v10  ;;  %v5394_v9 = vadd.f32 %v5393_v6, %v12351_v43 }
 0x9dc   : > { %v5546_v4 = vadd.f32 3.0, %v5201_v63  ;;  %v5203_v25 = vadd.f32 %v5202_v23, %v12353_v12  ;;  %v5396_v57 = vadd.f32 %v5395_v58, %v12355_v19  ;;  %v5671_v27 = vmax.f32 %v5543_v40, 0.0 }
 0x9dd   : > { %v5926_v20 = vmul.f32 %v5798_v49, %v5197_v61  ;;  %v5800_v59 = vmin.f32 %v5672_v42, 6.0  ;;  %v5673_v0 = vmax.f32 %v5545_v55, 0.0  ;;  %v5548_v52 = vadd.f32 3.0, %v5394_v9 }
 0x9de   : > { %v5674_v41 = vmax.f32 %v5546_v4, 0.0  ;;  %v5547_v39 = vadd.f32 3.0, %v5203_v25  ;;  %v5549_v30 = vadd.f32 3.0, %v5396_v57  ;;  %v5799_v11 = vmin.f32 %v5671_v27, 6.0 }
 0x9df   : > { %v6054_v21 = vmul.f32 0.16666667, %v5926_v20  ;;  %v5928_v34 = vmul.f32 %v5800_v59, %v5390_v47  ;;  %v5801_v62 = vmin.f32 %v5673_v0, 6.0  ;;  %v5676_v56 = vmax.f32 %v5548_v52, 0.0  ;;  %v5206_v20 = vpop.f32.mrf.mxu1  ;;  %v5399_v47 = vpop.f32.mrf.mxu0 }
 0x9e0   : > { %v5802_v26 = vmin.f32 %v5674_v41, 6.0  ;;  %v5675_v32 = vmax.f32 %v5547_v39, 0.0  ;;  %v5677_v6 = vmax.f32 %v5549_v30, 0.0  ;;  %v5927_v15 = vmul.f32 %v5799_v11, %v5199_v46 }
 0x9e1   : > { %v6182_v48 = vadd.f32 3.0, %v6054_v21  ;;  %v6056_v23 = vmul.f32 0.16666667, %v5928_v34  ;;  %v5929_v58 = vmul.f32 %v5801_v62, %v5392_v10  ;;  %v5804_v49 = vmin.f32 %v5676_v56, 6.0  ;;  %v5208_v62 = vpop.f32.mrf.mxu1 }
 0x9e2   : > { %v5930_v61 = vmul.f32 %v5802_v26, %v5201_v63  ;;  %v5803_v42 = vmin.f32 %v5675_v32, 6.0  ;;  %v5805_v40 = vmin.f32 %v5677_v6, 6.0  ;;  %v6055_v54 = vmul.f32 0.16666667, %v5927_v15  ;;  %v5401_v26 = vpop.f32.mrf.mxu0 }
 0x9e3   : > { %v6310_v55 = vmax.f32 %v6182_v48, 0.0  ;;  %v6184_v4 = vadd.f32 3.0, %v6056_v23  ;;  %v6057_v44 = vmul.f32 0.16666667, %v5929_v58  ;;  %v5932_v27 = vmul.f32 %v5804_v49, %v5394_v9 }
 0x9e4   : > { %v6058_v59 = vmul.f32 0.16666667, %v5930_v61  ;;  %v5931_v0 = vmul.f32 %v5803_v42, %v5203_v25  ;;  %v5933_v41 = vmul.f32 %v5805_v40, %v5396_v57  ;;  %v6183_v30 = vadd.f32 3.0, %v6055_v54 }
 0x9e5   : > { %v6438_v52 = vmin.f32 %v6310_v55, 6.0  ;;  %v6312_v39 = vmax.f32 %v6184_v4, 0.0  ;;  %v6185_v34 = vadd.f32 3.0, %v6057_v44  ;;  %v6437_v46 = vmin.f32 %v6309_v16, 6.0 }
 0x9e6   : > { %v6186_v10 = vadd.f32 3.0, %v6058_v59  ;;  %v6060_v63 = vmul.f32 0.16666667, %v5932_v27  ;;  %v12467_v56 = vmul.f32 0.16666667, %v5931_v0  ;;  %v6311_v11 = vmax.f32 %v6183_v30, 0.0  ;;  %v5403_v30 = vpop.f32.mrf.mxu0 }
 0x9e7   : > { %v6566_v32 = vmul.f32 %v6438_v52, %v6054_v21  ;;  %v6440_v48 = vmin.f32 %v6312_v39, 6.0  ;;  %v6313_v15 = vmax.f32 %v6185_v34, 0.0  ;;  %v12470_v25 = vmul.f32 0.16666667, %v5933_v41  ;;  %v5210_v39 = vpop.f32.mrf.mxu1 }
 0x9e8   : > { %v6314_v6 = vmax.f32 %v6186_v10, 0.0  ;;  %v6188_v58 = vadd.f32 3.0, %v6060_v63  ;;  %v6187_v9 = vadd.f32 3.0, %v12467_v56  ;;  %v12472_v57 = vmul.f32 0.16666667, %v6564_v22 }
 0x9e9   : > { %v6568_v61 = vmul.f32 %v6440_v48, %v6056_v23  ;;  %v6439_v16 = vmin.f32 %v6311_v11, 6.0  ;;  %v6441_v49 = vmin.f32 %v6313_v15, 6.0  ;;  %v6189_v21 = vadd.f32 3.0, %v12470_v25 }
 0x9ea   : > { %v6442_v42 = vmin.f32 %v6314_v6, 6.0  ;;  %v6316_v40 = vmax.f32 %v6188_v58, 0.0  ;;  %v6315_v55 = vmax.f32 %v6187_v9, 0.0  ;;  %v6675_v0 = vmul.f32 0.16666667, %v12386_v31  ;;  %v5405_v9 = vpop.f32.mrf.mxu0 }
 0x9eb   : > { %v6567_v4 = vmul.f32 %v6439_v16, %v6055_v54  ;;  %v6569_v27 = vmul.f32 %v6441_v49, %v6057_v44  ;;  %v5207_v52 = vadd.f32 %v5206_v20, %v12349_v18  ;;  %v12477_v41 = vmul.f32 0.16666667, %v6566_v32 }
 0x9ec   : > { %v6570_v22 = vmul.f32 %v6442_v42, %v6058_v59  ;;  %v6444_v34 = vmin.f32 %v6316_v40, 6.0  ;;  %v6317_v23 = vmax.f32 %v6189_v21, 0.0  ;;  %v12479_v10 = vmul.f32 0.16666667, %v6568_v61 }
 0x9ed   : > { %v12481_v48 = vmin.f32 %v6315_v55, 6.0  ;;  %v6799_v11 = vpack.c.bf16 %v6675_v0, %v12374_v2  ;;  %v6677_v54 = vmul.f32 0.16666667, %v12402_v8  ;;  %v12486_v44 = vmul.f32 %v6437_v46, %v12431_v1  ;;  %v5212_v2 = vpop.f32.mrf.mxu1 }
 0x9ee   : > { %13756 = vst [vmem:[#allocation61_spill] sm:$0xff] %v12479_v10  ;;  %v12488_v31 = vmul.f32 0.16666667, %v6567_v4  ;;  %v12490_v20 = vmul.f32 0.16666667, %v6569_v27  ;;  %v5550_v15 = vadd.f32 3.0, %v5207_v52  ;;  %v5400_v6 = vadd.f32 %v5399_v47, %v12351_v43 }
 0x9ef   : > { %v12492_v32 = vmul.f32 0.16666667, %v6570_v22  ;;  %7157 = vmatprep.mubr.bf16.mxu1 %v6799_v11  ;;  %v6801_v59 = vpack.c.bf16 %v6677_v54, %v12378_v60  ;;  %v5209_v58 = vadd.f32 %v5208_v62, %v12353_v12  ;;  %v12497_v8 = vmul.f32 %v6444_v34, %v6060_v63 }
 0x9f0   : > { %13757 = vst [vmem:[#allocation60_spill] sm:$0xff] %v12490_v20  ;;  %v12499_v1 = vmin.f32 %v6317_v23, 6.0  ;;  %v13758_v46 = vpack.c.bf16 %v12380_v45, %v12368_v14  ;;  %v5402_v61 = vadd.f32 %v5401_v26, %v12355_v19  ;;  %v5211_v16 = vadd.f32 %v5210_v39, %v12349_v18 }
 0x9f1   : > { %7318 = vmatprep.mubr.bf16.mxu0 %v6801_v59  ;;  %v5678_v60 = vmax.f32 %v5550_v15, 0.0  ;;  %v5552_v49 = vadd.f32 3.0, %v5400_v6  ;;  %v5551_v47 = vadd.f32 3.0, %v5209_v58  ;;  %v5404_v62 = vadd.f32 %v5403_v30, %v12351_v43 }
 0x9f2   : > { %7158 = vmatmul.mubr.bf16.vlgmr.msra.gmra.mxu1 %v13758_v46  ;;  %v13759_v63 = vpack.c.bf16 %v12384_v37, %v12370_v28  ;;  %v5553_v42 = vadd.f32 3.0, %v5402_v61  ;;  %v5554_v40 = vadd.f32 3.0, %v5211_v16  ;;  %v5213_v55 = vadd.f32 %v5212_v2, %v12353_v12 }
 0x9f3   : > { %v5406_v14 = vadd.f32 %v5405_v9, %v12355_v19  ;;  %v5806_v45 = vmin.f32 %v5678_v60, 6.0  ;;  %v5680_v26 = vmax.f32 %v5552_v49, 0.0  ;;  %v5679_v21 = vmax.f32 %v5551_v47, 0.0 }
 0x9f4   : > { %7319 = vmatmul.mubr.bf16.vlgmr.msra.gmra.mxu0 %v13759_v63  ;;  %v5556_v4 = vadd.f32 3.0, %v5404_v62  ;;  %v5681_v27 = vmax.f32 %v5553_v42, 0.0  ;;  %v5682_v0 = vmax.f32 %v5554_v40, 0.0  ;;  %v5555_v39 = vadd.f32 3.0, %v5213_v55 }
 0x9f5   : > { %v5557_v22 = vadd.f32 3.0, %v5406_v14  ;;  %v5934_v34 = vmul.f32 %v5806_v45, %v5207_v52  ;;  %v5808_v30 = vmin.f32 %v5680_v26, 6.0  ;;  %v5807_v23 = vmin.f32 %v5679_v21, 6.0 }
 0x9f6   : > { %v5684_v11 = vmax.f32 %v5556_v4, 0.0  ;;  %v5809_v28 = vmin.f32 %v5681_v27, 6.0  ;;  %v5810_v37 = vmin.f32 %v5682_v0, 6.0  ;;  %v5683_v54 = vmax.f32 %v5555_v39, 0.0  ;;  %v5216_v4 = vpop.f32.mrf.mxu1  ;;  %v5409_v27 = vpop.f32.mrf.mxu0 }
 0x9f7   : > { %v5685_v59 = vmax.f32 %v5557_v22, 0.0  ;;  %v6062_v15 = vmul.f32 0.16666667, %v5934_v34  ;;  %v5936_v2 = vmul.f32 %v5808_v30, %v5400_v6  ;;  %v5935_v46 = vmul.f32 %v5807_v23, %v5209_v58 }
 0x9f8   : > { %v5812_v9 = vmin.f32 %v5684_v11, 6.0  ;;  %v5937_v60 = vmul.f32 %v5809_v28, %v5402_v61  ;;  %v5938_v49 = vmul.f32 %v5810_v37, %v5211_v16  ;;  %v5811_v47 = vmin.f32 %v5683_v54, 6.0 }
 0x9f9   : > { %v5813_v63 = vmin.f32 %v5685_v59, 6.0  ;;  %v6190_v42 = vadd.f32 3.0, %v6062_v15  ;;  %v6064_v40 = vmul.f32 0.16666667, %v5936_v2  ;;  %v6063_v10 = vmul.f32 0.16666667, %v5935_v46  ;;  %v5411_v59 = vpop.f32.mrf.mxu0 }
 0x9fa   : > { %v5940_v20 = vmul.f32 %v5812_v9, %v5404_v62  ;;  %v6065_v52 = vmul.f32 0.16666667, %v5937_v60  ;;  %v6066_v45 = vmul.f32 0.16666667, %v5938_v49  ;;  %v5939_v26 = vmul.f32 %v5811_v47, %v5213_v55 }
 0x9fb   : > { %v5941_v21 = vmul.f32 %v5813_v63, %v5406_v14  ;;  %v6318_v0 = vmax.f32 %v6190_v42, 0.0  ;;  %v6192_v39 = vadd.f32 3.0, %v6064_v40  ;;  %v6191_v22 = vadd.f32 3.0, %v6063_v10  ;;  %v5218_v14 = vpop.f32.mrf.mxu1 }
 0x9fc   : > { %v6068_v6 = vmul.f32 0.16666667, %v5940_v20  ;;  %v6193_v58 = vadd.f32 3.0, %v6065_v52  ;;  %v6194_v34 = vadd.f32 3.0, %v6066_v45  ;;  %v6067_v61 = vmul.f32 0.16666667, %v5939_v26 }
 0x9fd   : > { %v12512_v16 = vmul.f32 0.16666667, %v5941_v21  ;;  %v6446_v30 = vmin.f32 %v6318_v0, 6.0  ;;  %v6320_v23 = vmax.f32 %v6192_v39, 0.0  ;;  %v6319_v11 = vmax.f32 %v6191_v22, 0.0 }
 0x9fe   : > { %v6196_v28 = vadd.f32 3.0, %v6068_v6  ;;  %v6321_v62 = vmax.f32 %v6193_v58, 0.0  ;;  %v6322_v37 = vmax.f32 %v6194_v34, 0.0  ;;  %v6195_v54 = vadd.f32 3.0, %v6067_v61  ;;  %v5220_v34 = vpop.f32.mrf.mxu1 }
 0x9ff   : > { %v6197_v55 = vadd.f32 3.0, %v12512_v16  ;;  %v6574_v2 = vmul.f32 %v6446_v30, %v6062_v15  ;;  %v6448_v46 = vmin.f32 %v6320_v23, 6.0  ;;  %v6447_v9 = vmin.f32 %v6319_v11, 6.0  ;;  %v5413_v30 = vpop.f32.mrf.mxu0 }
 0xa00   : > { %v6324_v20 = vmax.f32 %v6196_v28, 0.0  ;;  %v6449_v60 = vmin.f32 %v6321_v62, 6.0  ;;  %v6450_v49 = vmin.f32 %v6322_v37, 6.0  ;;  %v6323_v47 = vmax.f32 %v6195_v54, 0.0  ;;  %v5222_v54 = vpop.f32.mrf.mxu1 }
 0xa01   : > { %v6325_v63 = vmax.f32 %v6197_v55, 0.0  ;;  %v12517_v42 = vmul.f32 %v12481_v48, %v12467_v56  ;;  %v6576_v26 = vmul.f32 %v6448_v46, %v6064_v40  ;;  %v6575_v21 = vmul.f32 %v6447_v9, %v6063_v10  ;;  %v5415_v55 = vpop.f32.mrf.mxu0 }
 0xa02   : > { %v6452_v0 = vmin.f32 %v6324_v20, 6.0  ;;  %v12520_v39 = vmul.f32 0.16666667, %v12497_v8  ;;  %v6577_v22 = vmul.f32 %v6449_v60, %v6065_v52  ;;  %v6578_v58 = vmul.f32 %v6450_v49, %v6066_v45 }
 0xa03   : > { %v6451_v15 = vmin.f32 %v6323_v47, 6.0  ;;  %v12522_v23 = vmul.f32 0.16666667, %v6574_v2  ;;  %v12524_v28 = vmin.f32 %v6325_v63, 6.0  ;;  %v6683_v62 = vmul.f32 0.16666667, %v12441_v50 }
 0xa04   : > { %v6580_v11 = vmul.f32 %v6452_v0, %v6068_v6  ;;  %v12529_v56 = vmul.f32 %v12499_v1, %v12470_v25  ;;  %v12531_v10 = vmul.f32 0.16666667, %v6576_v26  ;;  %v12533_v48 = vmul.f32 0.16666667, %v6575_v21 }
 0xa05   : > { %v12535_v8 = vmul.f32 0.16666667, %v6577_v22  ;;  %v12537_v40 = vmul.f32 0.16666667, %v6578_v58  ;;  %v6803_v52 = vpack.c.bf16 %v6683_v62, %v12412_v7  ;;  %v6685_v45 = vmul.f32 0.16666667, %v12445_v29 }
 0xa06   : > { %v5217_v6 = vadd.f32 %v5216_v4, %v12349_v18  ;;  %v12542_v37 = vmul.f32 0.16666667, %v6580_v11  ;;  %v12544_v50 = vmul.f32 %v6451_v15, %v6067_v61  ;;  %v5410_v25 = vadd.f32 %v5409_v27, %v12351_v43 }
 0xa07   : > { %v6802_v1 = vpack.c.bf16 %v12418_v36, %v12406_v24  ;;  %7165 = vmatprep.mubr.bf16.mxu1 %v6803_v52  ;;  %v6805_v2 = vpack.c.bf16 %v6685_v45, %v12414_v5  ;;  %v6804_v7 = vpack.c.bf16 %v12437_v35, %v12410_v33  ;;  %v5219_v29 = vadd.f32 %v5218_v14, %v12353_v12 }
 0xa08   : > { %v5558_v46 = vadd.f32 3.0, %v5217_v6  ;;  %v5560_v4 = vadd.f32 3.0, %v5410_v25  ;;  %v5412_v61 = vadd.f32 %v5411_v59, %v12355_v19  ;;  %v5221_v27 = vadd.f32 %v5220_v34, %v12349_v18 }
 0xa09   : > { %7166 = vmatmul.mubr.bf16.gmra.mxu1 %v6802_v1  ;;  %v5414_v9 = vadd.f32 %v5413_v30, %v12351_v43  ;;  %7326 = vmatprep.mubr.bf16.mxu0 %v6805_v2  ;;  %v5559_v36 = vadd.f32 3.0, %v5219_v29  ;;  %v5223_v20 = vadd.f32 %v5222_v54, %v12353_v12  ;;  %v5416_v5 = vadd.f32 %v5415_v55, %v12355_v19 }
 0xa0a   : > { %v5686_v24 = vmax.f32 %v5558_v46, 0.0  ;;  %v5688_v60 = vmax.f32 %v5560_v4, 0.0  ;;  %7327 = vmatmul.mubr.bf16.gmra.mxu0 %v6804_v7  ;;  %v5561_v33 = vadd.f32 3.0, %v5412_v61  ;;  %v5562_v35 = vadd.f32 3.0, %v5221_v27 }
 0xa0b   : > { %v5564_v14 = vadd.f32 3.0, %v5414_v9  ;;  %v5687_v47 = vmax.f32 %v5559_v36, 0.0  ;;  %v5563_v63 = vadd.f32 3.0, %v5223_v20  ;;  %v5565_v59 = vadd.f32 3.0, %v5416_v5 }
 0xa0c   : > { %v5814_v49 = vmin.f32 %v5686_v24, 6.0  ;;  %v5816_v26 = vmin.f32 %v5688_v60, 6.0  ;;  %v5689_v21 = vmax.f32 %v5561_v33, 0.0  ;;  %v5690_v0 = vmax.f32 %v5562_v35, 0.0 }
 0xa0d   : > { %v5692_v22 = vmax.f32 %v5564_v14, 0.0  ;;  %v5815_v15 = vmin.f32 %v5687_v47, 6.0  ;;  %v5691_v34 = vmax.f32 %v5563_v63, 0.0  ;;  %v5693_v30 = vmax.f32 %v5565_v59, 0.0  ;;  %v5419_v63 = vpop.f32.mrf.mxu0 }
 0xa0e   : > { %v5942_v58 = vmul.f32 %v5814_v49, %v5217_v6  ;;  %v5944_v11 = vmul.f32 %v5816_v26, %v5410_v25  ;;  %v5817_v62 = vmin.f32 %v5689_v21, 6.0  ;;  %v5818_v52 = vmin.f32 %v5690_v0, 6.0  ;;  %v5226_v6 = vpop.f32.mrf.mxu1 }
 0xa0f   : > { %v5820_v45 = vmin.f32 %v5692_v22, 6.0  ;;  %v5943_v54 = vmul.f32 %v5815_v15, %v5219_v29  ;;  %v5819_v55 = vmin.f32 %v5691_v34, 6.0  ;;  %v5821_v2 = vmin.f32 %v5693_v30, 6.0 }
 0xa10   : > { %v6070_v1 = vmul.f32 0.16666667, %v5942_v58  ;;  %v6072_v46 = vmul.f32 0.16666667, %v5944_v11  ;;  %v5945_v7 = vmul.f32 %v5817_v62, %v5412_v61  ;;  %v5946_v4 = vmul.f32 %v5818_v52, %v5221_v27  ;;  %v5228_v15 = vpop.f32.mrf.mxu1  ;;  %v5421_v11 = vpop.f32.mrf.mxu0 }
 0xa11   : > { %v5948_v24 = vmul.f32 %v5820_v45, %v5414_v9  ;;  %v6071_v60 = vmul.f32 0.16666667, %v5943_v54  ;;  %v5947_v33 = vmul.f32 %v5819_v55, %v5223_v20  ;;  %v5949_v35 = vmul.f32 %v5821_v2, %v5416_v5 }
 0xa12   : > { %v6198_v36 = vadd.f32 3.0, %v6070_v1  ;;  %v6581_v14 = vmul.f32 %v12524_v28, %v12512_v16  ;;  %v6200_v25 = vadd.f32 3.0, %v6072_v46  ;;  %v6073_v49 = vmul.f32 0.16666667, %v5945_v7 }
 0xa13   : > { %v6074_v47 = vmul.f32 0.16666667, %v5946_v4  ;;  %v6199_v29 = vadd.f32 3.0, %v6071_v60  ;;  %v6076_v26 = vmul.f32 0.16666667, %v5948_v24 }
 0xa14   : > { %v6326_v59 = vmax.f32 %v6198_v36, 0.0  ;;  %v6075_v21 = vmul.f32 0.16666667, %v5947_v33  ;;  %v6328_v0 = vmax.f32 %v6200_v25, 0.0  ;;  %v6201_v61 = vadd.f32 3.0, %v6073_v49  ;;  %v5230_v25 = vpop.f32.mrf.mxu1 }
 0xa15   : > { %v6202_v27 = vadd.f32 3.0, %v6074_v47  ;;  %v12560_v9 = vmul.f32 0.16666667, %v5949_v35  ;;  %v6327_v20 = vmax.f32 %v6199_v29, 0.0  ;;  %v6204_v5 = vadd.f32 3.0, %v6076_v26 }
 0xa16   : > { %v6454_v22 = vmin.f32 %v6326_v59, 6.0  ;;  %v6203_v58 = vadd.f32 3.0, %v6075_v21  ;;  %v6456_v34 = vmin.f32 %v6328_v0, 6.0  ;;  %v6329_v16 = vmax.f32 %v6201_v61, 0.0  ;;  %v5423_v61 = vpop.f32.mrf.mxu0 }
 0xa17   : > { %v6330_v28 = vmax.f32 %v6202_v27, 0.0  ;;  %v6205_v30 = vadd.f32 3.0, %v12560_v9  ;;  %v6455_v52 = vmin.f32 %v6327_v20, 6.0  ;;  %v6332_v45 = vmax.f32 %v6204_v5, 0.0 }
 0xa18   : > { %v6582_v62 = vmul.f32 %v6454_v22, %v6070_v1  ;;  %v6331_v54 = vmax.f32 %v6203_v58, 0.0  ;;  %v6584_v55 = vmul.f32 %v6456_v34, %v6072_v46  ;;  %v6457_v2 = vmin.f32 %v6329_v16, 6.0  ;;  %v5232_v34 = vpop.f32.mrf.mxu1 }
 0xa19   : > { %v6458_v7 = vmin.f32 %v6330_v28, 6.0  ;;  %v6333_v4 = vmax.f32 %v6205_v30, 0.0  ;;  %v6583_v24 = vmul.f32 %v6455_v52, %v6071_v60  ;;  %v6460_v36 = vmin.f32 %v6332_v45, 6.0  ;;  %v5425_v28 = vpop.f32.mrf.mxu0 }
 0xa1a   : > { %v6459_v33 = vmin.f32 %v6331_v54, 6.0  ;;  %v5227_v35 = vadd.f32 %v5226_v6, %v12349_v18  ;;  %v12565_v59 = vmul.f32 0.16666667, %v12544_v50  ;;  %v12567_v29 = vmul.f32 0.16666667, %v6581_v14 }
 0xa1b   : > { %v6585_v0 = vmul.f32 %v6457_v2, %v6073_v49  ;;  %v6586_v1 = vmul.f32 %v6458_v7, %v6074_v47  ;;  %v12569_v27 = vmul.f32 0.16666667, %v6582_v62  ;;  %v12571_v46 = vmul.f32 0.16666667, %v6584_v55 }
 0xa1c   : > { %v6588_v22 = vmul.f32 %v6460_v36, %v6076_v26  ;;  %v6691_v60 = vmul.f32 0.16666667, %v12461_v38  ;;  %v12574_v20 = vmul.f32 0.16666667, %v6583_v24  ;;  %v12576_v5 = vmul.f32 %v6459_v33, %v6075_v21 }
 0xa1d   : > { %v6461_v6 = vmin.f32 %v6333_v4, 6.0  ;;  %v6693_v50 = vmul.f32 0.16666667, %v12486_v44  ;;  %v12579_v58 = vmul.f32 0.16666667, %v6585_v0  ;;  %v5566_v47 = vadd.f32 3.0, %v5227_v35 }
 0xa1e   : > { %v12581_v14 = vmul.f32 0.16666667, %v6586_v1  ;;  %v6807_v49 = vpack.c.bf16 %v6691_v60, %v12452_v13  ;;  %v12584_v16 = vmul.f32 0.16666667, %v6588_v22  ;;  %v5420_v38 = vadd.f32 %v5419_v63, %v12351_v43 }
 0xa1f   : > { %v6809_v26 = vpack.c.bf16 %v6693_v50, %v12454_v51  ;;  %v6806_v21 = vpack.c.bf16 %v12459_v3, %v12447_v53  ;;  %v5694_v44 = vmax.f32 %v5566_v47, 0.0  ;;  %v6808_v30 = vpack.c.bf16 %v12472_v57, %v12449_v17 }
 0xa20   : > { %7173 = vmatprep.mubr.bf16.mxu1 %v6807_v49  ;;  %v5229_v62 = vadd.f32 %v5228_v15, %v12353_v12  ;;  %v5422_v13 = vadd.f32 %v5421_v11, %v12355_v19  ;;  %v5568_v52 = vadd.f32 3.0, %v5420_v38  ;;  %v5231_v51 = vadd.f32 %v5230_v25, %v12349_v18 }
 0xa21   : > { %7334 = vmatprep.mubr.bf16.mxu0 %v6809_v26  ;;  %7174 = vmatmul.mubr.bf16.gmra.mxu1 %v6806_v21  ;;  %v5424_v63 = vadd.f32 %v5423_v61, %v12351_v43  ;;  %v5233_v45 = vadd.f32 %v5232_v34, %v12353_v12  ;;  %v5822_v53 = vmin.f32 %v5694_v44, 6.0  ;;  %v5426_v55 = vadd.f32 %v5425_v28, %v12355_v19 }
 0xa22   : > { %7335 = vmatmul.mubr.bf16.gmra.mxu0 %v6808_v30  ;;  %v5567_v3 = vadd.f32 3.0, %v5229_v62  ;;  %v5569_v54 = vadd.f32 3.0, %v5422_v13  ;;  %v5696_v17 = vmax.f32 %v5568_v52, 0.0  ;;  %v5570_v57 = vadd.f32 3.0, %v5231_v51 }
 0xa23   : > { %v5572_v15 = vadd.f32 3.0, %v5424_v63  ;;  %v5571_v2 = vadd.f32 3.0, %v5233_v45  ;;  %v5950_v11 = vmul.f32 %v5822_v53, %v5227_v35  ;;  %v5573_v24 = vadd.f32 3.0, %v5426_v55 }
 0xa24   : > { %v5695_v7 = vmax.f32 %v5567_v3, 0.0  ;;  %v5697_v4 = vmax.f32 %v5569_v54, 0.0  ;;  %v5824_v36 = vmin.f32 %v5696_v17, 6.0  ;;  %v5698_v33 = vmax.f32 %v5570_v57, 0.0 }
 0xa25   : > { %v5700_v25 = vmax.f32 %v5572_v15, 0.0  ;;  %v5699_v0 = vmax.f32 %v5571_v2, 0.0  ;;  %v6078_v1 = vmul.f32 0.16666667, %v5950_v11  ;;  %v5701_v60 = vmax.f32 %v5573_v24, 0.0  ;;  %v5236_v15 = vpop.f32.mrf.mxu1  ;;  %v5429_v2 = vpop.f32.mrf.mxu0 }
 0xa26   : > { %v5823_v61 = vmin.f32 %v5695_v7, 6.0  ;;  %v5825_v22 = vmin.f32 %v5697_v4, 6.0  ;;  %v5952_v50 = vmul.f32 %v5824_v36, %v5420_v38  ;;  %v5826_v49 = vmin.f32 %v5698_v33, 6.0 }
 0xa27   : > { %v5828_v47 = vmin.f32 %v5700_v25, 6.0  ;;  %v5827_v34 = vmin.f32 %v5699_v0, 6.0  ;;  %v6206_v26 = vadd.f32 3.0, %v6078_v1  ;;  %v5829_v44 = vmin.f32 %v5701_v60, 6.0  ;;  %v5431_v60 = vpop.f32.mrf.mxu0 }
 0xa28   : > { %v5951_v21 = vmul.f32 %v5823_v61, %v5229_v62  ;;  %v5953_v28 = vmul.f32 %v5825_v22, %v5422_v13  ;;  %v6080_v35 = vmul.f32 0.16666667, %v5952_v50  ;;  %v5954_v30 = vmul.f32 %v5826_v49, %v5231_v51  ;;  %v5238_v22 = vpop.f32.mrf.mxu1 }
 0xa29   : > { %v5956_v52 = vmul.f32 %v5828_v47, %v5424_v63  ;;  %v5955_v53 = vmul.f32 %v5827_v34, %v5233_v45  ;;  %v6334_v3 = vmax.f32 %v6206_v26, 0.0  ;;  %v5957_v57 = vmul.f32 %v5829_v44, %v5426_v55 }
 0xa2a   : > { %v6079_v54 = vmul.f32 0.16666667, %v5951_v21  ;;  %v6081_v17 = vmul.f32 0.16666667, %v5953_v28  ;;  %v6589_v11 = vmul.f32 %v6461_v6, %v12560_v9  ;;  %v6208_v38 = vadd.f32 3.0, %v6080_v35 }
 0xa2b   : > { %v6082_v7 = vmul.f32 0.16666667, %v5954_v30  ;;  %v6084_v4 = vmul.f32 0.16666667, %v5956_v52  ;;  %v6462_v24 = vmin.f32 %v6334_v3, 6.0  ;;  %v5237_v55 = vadd.f32 %v5236_v15, %v12349_v18  ;;  %v5240_v15 = vpop.f32.mrf.mxu1 }
 0xa2c   : > { %v6207_v36 = vadd.f32 3.0, %v6079_v54  ;;  %v6209_v62 = vadd.f32 3.0, %v6081_v17  ;;  %v6083_v13 = vmul.f32 0.16666667, %v5955_v53  ;;  %v6336_v33 = vmax.f32 %v6208_v38, 0.0 }
 0xa2d   : > { %v6210_v25 = vadd.f32 3.0, %v6082_v7  ;;  %v6212_v51 = vadd.f32 3.0, %v6084_v4  ;;  %v6085_v63 = vmul.f32 0.16666667, %v5957_v57  ;;  %v6590_v47 = vmul.f32 %v6462_v24, %v6078_v1 }
 0xa2e   : > { %v6335_v45 = vmax.f32 %v6207_v36, 0.0  ;;  %v6337_v0 = vmax.f32 %v6209_v62, 0.0  ;;  %v6211_v61 = vadd.f32 3.0, %v6083_v13  ;;  %v6464_v50 = vmin.f32 %v6336_v33, 6.0  ;;  %v5433_v36 = vpop.f32.mrf.mxu0 }
 0xa2f   : > { %v6338_v9 = vmax.f32 %v6210_v25, 0.0  ;;  %v6340_v6 = vmax.f32 %v6212_v51, 0.0  ;;  %v6213_v49 = vadd.f32 3.0, %v6085_v63  ;;  %v6699_v38 = vmul.f32 0.16666667, %v12517_v42 }
 0xa30   : > { %v6463_v34 = vmin.f32 %v6335_v45, 6.0  ;;  %v6465_v26 = vmin.f32 %v6337_v0, 6.0  ;;  %v6339_v21 = vmax.f32 %v6211_v61, 0.0  ;;  %v6592_v28 = vmul.f32 %v6464_v50, %v6080_v35  ;;  %v5242_v61 = vpop.f32.mrf.mxu1  ;;  %v5435_v50 = vpop.f32.mrf.mxu0 }
 0xa31   : > { %v6466_v44 = vmin.f32 %v6338_v9, 6.0  ;;  %v6468_v30 = vmin.f32 %v6340_v6, 6.0  ;;  %v6341_v52 = vmax.f32 %v6213_v49, 0.0  ;;  %v12602_v62 = vmul.f32 0.16666667, %v12576_v5  ;;  %v13760_v9 = vld [vmem:[#allocation60_spill] sm:$0xff] }
 0xa32   : > { %v6591_v53 = vmul.f32 %v6463_v34, %v6079_v54  ;;  %v6593_v3 = vmul.f32 %v6465_v26, %v6081_v17  ;;  %v6467_v57 = vmin.f32 %v6339_v21, 6.0  ;;  %v12604_v33 = vmul.f32 0.16666667, %v6589_v11  ;;  %v13761_v49 = vld [vmem:[#allocation61_spill] sm:$0xff] }
 0xa33   : > { %v6469_v1 = vmin.f32 %v6341_v52, 6.0  ;;  %v12606_v24 = vmul.f32 0.16666667, %v6590_v47  ;;  %v12608_v25 = vmul.f32 0.16666667, %v6592_v28  ;;  %v12610_v35 = vmul.f32 %v6466_v44, %v6082_v7 }
 0xa34   : > { %v6811_v54 = vpack.c.bf16 %v6699_v38, %v12488_v31  ;;  %v12613_v17 = vmul.f32 0.16666667, %v6591_v53  ;;  %v12615_v51 = vmul.f32 0.16666667, %v6593_v3  ;;  %v12617_v42 = vmul.f32 %v6468_v30, %v6084_v4 }
 0xa35   : > { %v6701_v5 = vmul.f32 0.16666667, %v12529_v56  ;;  %v12620_v45 = vmul.f32 %v6467_v57, %v6083_v13  ;;  %v5574_v11 = vadd.f32 3.0, %v5237_v55  ;;  %v5430_v0 = vadd.f32 %v5429_v2, %v12351_v43 }
 0xa36   : > { %7181 = vmatprep.mubr.bf16.mxu1 %v6811_v54  ;;  %v6810_v7 = vpack.c.bf16 %v12492_v32, %v12477_v41  ;;  %v12625_v31 = vmul.f32 %v6469_v1, %v6085_v63  ;;  %v6812_v4 = vpack.c.bf16 %v12520_v39, %v13761_v49  ;;  %v5239_v56 = vadd.f32 %v5238_v22, %v12353_v12 }
 0xa37   : > { %v6813_v6 = vpack.c.bf16 %v6701_v5, %v13760_v9  ;;  %v5702_v13 = vmax.f32 %v5574_v11, 0.0  ;;  %v5576_v47 = vadd.f32 3.0, %v5430_v0  ;;  %v5432_v34 = vadd.f32 %v5431_v60, %v12355_v19 }
 0xa38   : > { %7182 = vmatmul.mubr.bf16.gmra.mxu1 %v6810_v7  ;;  %v5241_v2 = vadd.f32 %v5240_v15, %v12349_v18  ;;  %v5575_v41 = vadd.f32 3.0, %v5239_v56  ;;  %v5434_v32 = vadd.f32 %v5433_v36, %v12351_v43  ;;  %v5243_v63 = vadd.f32 %v5242_v61, %v12353_v12 }
 0xa39   : > { %7342 = vmatprep.mubr.bf16.mxu0 %v6813_v6  ;;  %v5436_v26 = vadd.f32 %v5435_v50, %v12355_v19  ;;  %v5830_v21 = vmin.f32 %v5702_v13, 6.0  ;;  %v5704_v28 = vmax.f32 %v5576_v47, 0.0  ;;  %v5577_v39 = vadd.f32 3.0, %v5432_v34 }
 0xa3a   : > { %7343 = vmatmul.mubr.bf16.gmra.mxu0 %v6812_v4  ;;  %v5578_v22 = vadd.f32 3.0, %v5241_v2  ;;  %v5703_v44 = vmax.f32 %v5575_v41, 0.0  ;;  %v5580_v30 = vadd.f32 3.0, %v5434_v32  ;;  %v5579_v52 = vadd.f32 3.0, %v5243_v63 }
 0xa3b   : > { %v5581_v53 = vadd.f32 3.0, %v5436_v26  ;;  %v5958_v60 = vmul.f32 %v5830_v21, %v5237_v55  ;;  %v5832_v3 = vmin.f32 %v5704_v28, 6.0  ;;  %v5705_v57 = vmax.f32 %v5577_v39, 0.0 }
 0xa3c   : > { %v5706_v38 = vmax.f32 %v5578_v22, 0.0  ;;  %v5831_v15 = vmin.f32 %v5703_v44, 6.0  ;;  %v5708_v1 = vmax.f32 %v5580_v30, 0.0  ;;  %v5707_v36 = vmax.f32 %v5579_v52, 0.0 }
 0xa3d   : > { %v5709_v54 = vmax.f32 %v5581_v53, 0.0  ;;  %v6086_v5 = vmul.f32 0.16666667, %v5958_v60  ;;  %v5960_v11 = vmul.f32 %v5832_v3, %v5430_v0  ;;  %v5833_v7 = vmin.f32 %v5705_v57, 6.0  ;;  %v5246_v3 = vpop.f32.mrf.mxu1 }
 0xa3e   : > { %v5834_v61 = vmin.f32 %v5706_v38, 6.0  ;;  %v5959_v50 = vmul.f32 %v5831_v15, %v5239_v56  ;;  %v5836_v9 = vmin.f32 %v5708_v1, 6.0  ;;  %v5835_v6 = vmin.f32 %v5707_v36, 6.0 }
 0xa3f   : > { %v5837_v49 = vmin.f32 %v5709_v54, 6.0  ;;  %v6214_v4 = vadd.f32 3.0, %v6086_v5  ;;  %v6088_v13 = vmul.f32 0.16666667, %v5960_v11  ;;  %v5961_v47 = vmul.f32 %v5833_v7, %v5432_v34 }
 0xa40   : > { %v5962_v41 = vmul.f32 %v5834_v61, %v5241_v2  ;;  %v6087_v55 = vmul.f32 0.16666667, %v5959_v50  ;;  %v5964_v21 = vmul.f32 %v5836_v9, %v5434_v32  ;;  %v5963_v28 = vmul.f32 %v5835_v6, %v5243_v63  ;;  %v5439_v2 = vpop.f32.mrf.mxu0 }
 0xa41   : > { %v5965_v39 = vmul.f32 %v5837_v49, %v5436_v26  ;;  %v6342_v22 = vmax.f32 %v6214_v4, 0.0  ;;  %v6216_v44 = vadd.f32 3.0, %v6088_v13  ;;  %v6089_v30 = vmul.f32 0.16666667, %v5961_v47 }
 0xa42   : > { %v6090_v52 = vmul.f32 0.16666667, %v5962_v41  ;;  %v6215_v53 = vadd.f32 3.0, %v6087_v55  ;;  %v6092_v0 = vmul.f32 0.16666667, %v5964_v21  ;;  %v6815_v56 = vpack.c.bf16 %v12565_v59, %v12533_v48  ;;  %v5248_v59 = vpop.f32.mrf.mxu1  ;;  %v5441_v41 = vpop.f32.mrf.mxu0 }
 0xa43   : > { %v6091_v60 = vmul.f32 0.16666667, %v5963_v28  ;;  %v6470_v57 = vmin.f32 %v6342_v22, 6.0  ;;  %v6344_v38 = vmax.f32 %v6216_v44, 0.0  ;;  %v6217_v15 = vadd.f32 3.0, %v6089_v30 }
 0xa44   : > { %v6218_v34 = vadd.f32 3.0, %v6090_v52  ;;  %v6343_v1 = vmax.f32 %v6215_v53, 0.0  ;;  %v6220_v32 = vadd.f32 3.0, %v6092_v0  ;;  %v12638_v26 = vmul.f32 0.16666667, %v5965_v39  ;;  %7189 = vmatprep.mubr.bf16.mxu1 %v6815_v56 }
 0xa45   : > { %v6219_v63 = vadd.f32 3.0, %v6091_v60  ;;  %v6598_v36 = vmul.f32 %v6470_v57, %v6086_v5  ;;  %v6472_v54 = vmin.f32 %v6344_v38, 6.0  ;;  %v6345_v11 = vmax.f32 %v6217_v15, 0.0  ;;  %v5250_v38 = vpop.f32.mrf.mxu1 }
 0xa46   : > { %v6346_v7 = vmax.f32 %v6218_v34, 0.0  ;;  %v6471_v61 = vmin.f32 %v6343_v1, 6.0  ;;  %v6348_v50 = vmax.f32 %v6220_v32, 0.0  ;;  %v6221_v48 = vadd.f32 3.0, %v12638_v26 }
 0xa47   : > { %v6347_v9 = vmax.f32 %v6219_v63, 0.0  ;;  %v12642_v6 = vmul.f32 0.16666667, %v12610_v35  ;;  %v6600_v49 = vmul.f32 %v6472_v54, %v6088_v13  ;;  %v6473_v4 = vmin.f32 %v6345_v11, 6.0 }
 0xa48   : > { %v6474_v47 = vmin.f32 %v6346_v7, 6.0  ;;  %v6599_v21 = vmul.f32 %v6471_v61, %v6087_v55  ;;  %v6476_v28 = vmin.f32 %v6348_v50, 6.0  ;;  %v6349_v5 = vmax.f32 %v6221_v48, 0.0 }
 0xa49   : > { %v6475_v39 = vmin.f32 %v6347_v9, 6.0  ;;  %v12645_v22 = vmul.f32 0.16666667, %v12617_v42  ;;  %v6601_v44 = vmul.f32 %v6473_v4, %v6089_v30  ;;  %v6817_v56 = vpack.c.bf16 %v12567_v29, %v12535_v8  ;;  %v5443_v29 = vpop.f32.mrf.mxu0 }
 0xa4a   : > { %v6602_v53 = vmul.f32 %v6474_v47, %v6090_v52  ;;  %v12650_v57 = vmul.f32 0.16666667, %v12620_v45  ;;  %v12653_v35 = vmul.f32 0.16666667, %v12625_v31  ;;  %v12655_v13 = vmul.f32 0.16666667, %v6598_v36 }
 0xa4b   : > { %v6604_v55 = vmul.f32 %v6476_v28, %v6092_v0  ;;  %v12657_v15 = vmul.f32 0.16666667, %v6600_v49  ;;  %v12659_v34 = vmul.f32 0.16666667, %v6599_v21  ;;  %7350 = vmatprep.mubr.bf16.mxu0 %v6817_v56  ;;  %v6814_v42 = vpack.c.bf16 %v12537_v40, %v12522_v23  ;;  %v5445_v11 = vpop.f32.mrf.mxu0 }
 0xa4c   : > { %v6816_v8 = vpack.c.bf16 %v12542_v37, %v12531_v10  ;;  %v12665_v45 = vmul.f32 0.16666667, %v6601_v44  ;;  %v12667_v31 = vmul.f32 %v6475_v39, %v6091_v60  ;;  %v6477_v30 = vmin.f32 %v6349_v5, 6.0 }
 0xa4d   : > { %v5247_v52 = vadd.f32 %v5246_v3, %v12349_v18  ;;  %v12670_v0 = vmul.f32 0.16666667, %v6602_v53  ;;  %7190 = vmatmul.mubr.bf16.gmra.mxu1 %v6814_v42  ;;  %v5440_v1 = vadd.f32 %v5439_v2, %v12351_v43  ;;  %v5249_v32 = vadd.f32 %v5248_v59, %v12353_v12  ;;  %v5252_v3 = vpop.f32.mrf.mxu1 }
 0xa4e   : > { %7351 = vmatmul.mubr.bf16.gmra.mxu0 %v6816_v8  ;;  %v5442_v23 = vadd.f32 %v5441_v41, %v12355_v19  ;;  %v12675_v40 = vmul.f32 0.16666667, %v6604_v55  ;;  %v6819_v37 = vpack.c.bf16 %v12602_v62, %v12574_v20  ;;  %v6821_v60 = vpack.c.bf16 %v12604_v33, %v12579_v58 }
 0xa4f   : > { %v5582_v10 = vadd.f32 3.0, %v5247_v52  ;;  %v5584_v63 = vadd.f32 3.0, %v5440_v1  ;;  %v5583_v36 = vadd.f32 3.0, %v5249_v32  ;;  %v6818_v2 = vpack.c.bf16 %v12581_v14, %v12569_v27 }
 0xa50   : > { %v5585_v54 = vadd.f32 3.0, %v5442_v23  ;;  %7197 = vmatprep.mubr.bf16.mxu1 %v6819_v37  ;;  %7358 = vmatprep.mubr.bf16.mxu0 %v6821_v60  ;;  %v6820_v61 = vpack.c.bf16 %v12584_v16, %v12571_v46  ;;  %v5251_v50 = vadd.f32 %v5250_v38, %v12349_v18  ;;  %v5444_v20 = vadd.f32 %v5443_v29, %v12351_v43 }
 0xa51   : > { %v5710_v7 = vmax.f32 %v5582_v10, 0.0  ;;  %v5712_v62 = vmax.f32 %v5584_v63, 0.0  ;;  %v5711_v58 = vmax.f32 %v5583_v36, 0.0  ;;  %v5253_v9 = vadd.f32 %v5252_v3, %v12353_v12 }
 0xa52   : > { %v5713_v33 = vmax.f32 %v5585_v54, 0.0  ;;  %v5586_v59 = vadd.f32 3.0, %v5251_v50  ;;  %v5588_v49 = vadd.f32 3.0, %v5444_v20  ;;  %v5446_v27 = vadd.f32 %v5445_v11, %v12355_v19 }
 0xa53   : > { %v5838_v48 = vmin.f32 %v5710_v7, 6.0  ;;  %v5840_v14 = vmin.f32 %v5712_v62, 6.0  ;;  %v5839_v4 = vmin.f32 %v5711_v58, 6.0  ;;  %v5587_v41 = vadd.f32 3.0, %v5253_v9 }
 0xa54   : > { %v5841_v47 = vmin.f32 %v5713_v33, 6.0  ;;  %v5714_v46 = vmax.f32 %v5586_v59, 0.0  ;;  %v5716_v16 = vmax.f32 %v5588_v49, 0.0  ;;  %v5589_v28 = vadd.f32 3.0, %v5446_v27 }
 0xa55   : > { %v5966_v21 = vmul.f32 %v5838_v48, %v5247_v52  ;;  %v5968_v39 = vmul.f32 %v5840_v14, %v5440_v1  ;;  %v5967_v5 = vmul.f32 %v5839_v4, %v5249_v32  ;;  %7198 = vmatmul.mubr.bf16.gmra.mxu1 %v6818_v2  ;;  %v5715_v53 = vmax.f32 %v5587_v41, 0.0 }
 0xa56   : > { %v5969_v44 = vmul.f32 %v5841_v47, %v5442_v23  ;;  %7359 = vmatmul.mubr.bf16.gmra.mxu0 %v6820_v61  ;;  %v5842_v55 = vmin.f32 %v5714_v46, 6.0  ;;  %v5844_v38 = vmin.f32 %v5716_v16, 6.0  ;;  %v5717_v42 = vmax.f32 %v5589_v28, 0.0 }
 0xa57   : > { %v6094_v56 = vmul.f32 0.16666667, %v5966_v21  ;;  %v6605_v8 = vmul.f32 %v6477_v30, %v12638_v26  ;;  %v6096_v29 = vmul.f32 0.16666667, %v5968_v39  ;;  %v6095_v10 = vmul.f32 0.16666667, %v5967_v5  ;;  %v5256_v26 = vpop.f32.mrf.mxu1  ;;  %v5449_v30 = vpop.f32.mrf.mxu0 }
 0xa58   : > { %v6097_v37 = vmul.f32 0.16666667, %v5969_v44  ;;  %v5970_v52 = vmul.f32 %v5842_v55, %v5251_v50  ;;  %v5972_v3 = vmul.f32 %v5844_v38, %v5444_v20  ;;  %v5843_v63 = vmin.f32 %v5715_v53, 6.0 }
 0xa59   : > { %v6222_v60 = vadd.f32 3.0, %v6094_v56  ;;  %v6224_v36 = vadd.f32 3.0, %v6096_v29  ;;  %v6223_v1 = vadd.f32 3.0, %v6095_v10  ;;  %v5845_v23 = vmin.f32 %v5717_v42, 6.0  ;;  %v5451_v44 = vpop.f32.mrf.mxu0 }
 0xa5a   : > { %v6225_v32 = vadd.f32 3.0, %v6097_v37  ;;  %v6098_v2 = vmul.f32 0.16666667, %v5970_v52  ;;  %v6100_v11 = vmul.f32 0.16666667, %v5972_v3  ;;  %v5971_v7 = vmul.f32 %v5843_v63, %v5253_v9 }
 0xa5b   : > { %v6350_v54 = vmax.f32 %v6222_v60, 0.0  ;;  %v6352_v61 = vmax.f32 %v6224_v36, 0.0  ;;  %v6351_v62 = vmax.f32 %v6223_v1, 0.0  ;;  %v5973_v33 = vmul.f32 %v5845_v23, %v5446_v27  ;;  %v5258_v27 = vpop.f32.mrf.mxu1 }
 0xa5c   : > { %v6353_v58 = vmax.f32 %v6225_v32, 0.0  ;;  %v6226_v59 = vadd.f32 3.0, %v6098_v2  ;;  %v6228_v49 = vadd.f32 3.0, %v6100_v11  ;;  %v6099_v50 = vmul.f32 0.16666667, %v5971_v7 }
 0xa5d   : > { %v6478_v48 = vmin.f32 %v6350_v54, 6.0  ;;  %v6480_v20 = vmin.f32 %v6352_v61, 6.0  ;;  %v6479_v14 = vmin.f32 %v6351_v62, 6.0  ;;  %v6101_v47 = vmul.f32 0.16666667, %v5973_v33  ;;  %v5453_v54 = vpop.f32.mrf.mxu0 }
 0xa5e   : > { %v6481_v4 = vmin.f32 %v6353_v58, 6.0  ;;  %v6354_v21 = vmax.f32 %v6226_v59, 0.0  ;;  %v6356_v46 = vmax.f32 %v6228_v49, 0.0  ;;  %v6227_v16 = vadd.f32 3.0, %v6099_v50 }
 0xa5f   : > { %v6606_v41 = vmul.f32 %v6478_v48, %v6094_v56  ;;  %v6608_v28 = vmul.f32 %v6480_v20, %v6096_v29  ;;  %v6607_v9 = vmul.f32 %v6479_v14, %v6095_v10  ;;  %v6229_v39 = vadd.f32 3.0, %v6101_v47 }
 0xa60   : > { %v5257_v5 = vadd.f32 %v5256_v26, %v12349_v18  ;;  %v6609_v53 = vmul.f32 %v6481_v4, %v6097_v37  ;;  %v6482_v55 = vmin.f32 %v6354_v21, 6.0  ;;  %v6484_v38 = vmin.f32 %v6356_v46, 6.0  ;;  %v5455_v21 = vpop.f32.mrf.mxu0 }
 0xa61   : > { %v6355_v42 = vmax.f32 %v6227_v16, 0.0  ;;  %v12692_v60 = vmul.f32 0.16666667, %v12667_v31  ;;  %v12694_v52 = vmul.f32 0.16666667, %v6605_v8  ;;  %v5450_v3 = vadd.f32 %v5449_v30, %v12351_v43  ;;  %v5260_v31 = vpop.f32.mrf.mxu1 }
 0xa62   : > { %v12696_v56 = vmul.f32 0.16666667, %v6606_v41  ;;  %v12699_v29 = vmul.f32 0.16666667, %v6608_v28  ;;  %v12701_v10 = vmul.f32 0.16666667, %v6607_v9  ;;  %v5259_v32 = vadd.f32 %v5258_v27, %v12353_v12 }
 0xa63   : > { %v6483_v63 = vmin.f32 %v6355_v42, 6.0  ;;  %v6357_v36 = vmax.f32 %v6229_v39, 0.0  ;;  %v5590_v1 = vadd.f32 3.0, %v5257_v5  ;;  %v5592_v37 = vadd.f32 3.0, %v5450_v3  ;;  %v5262_v41 = vpop.f32.mrf.mxu1 }
 0xa64   : > { %v5452_v23 = vadd.f32 %v5451_v44, %v12355_v19  ;;  %v12705_v8 = vmul.f32 0.16666667, %v6609_v53  ;;  %v6610_v7 = vmul.f32 %v6482_v55, %v6098_v2  ;;  %v12707_v61 = vmul.f32 %v6484_v38, %v6100_v11 }
 0xa65   : > { %v6485_v62 = vmin.f32 %v6357_v36, 6.0  ;;  %v5718_v58 = vmax.f32 %v5590_v1, 0.0  ;;  %v5720_v33 = vmax.f32 %v5592_v37, 0.0  ;;  %v5591_v26 = vadd.f32 3.0, %v5259_v32 }
 0xa66   : > { %v5593_v30 = vadd.f32 3.0, %v5452_v23  ;;  %v12709_v48 = vmul.f32 %v6483_v63, %v6099_v50  ;;  %v6823_v49 = vpack.c.bf16 %v12650_v57, %v12613_v17  ;;  %v6825_v20 = vpack.c.bf16 %v12653_v35, %v12615_v51 }
 0xa67   : > { %v12711_v59 = vmul.f32 %v6485_v62, %v6101_v47  ;;  %v5846_v14 = vmin.f32 %v5718_v58, 6.0  ;;  %v5848_v4 = vmin.f32 %v5720_v33, 6.0  ;;  %v5719_v2 = vmax.f32 %v5591_v26, 0.0  ;;  %v5266_v33 = vpop.f32.mrf.mxu1  ;;  %v12727_v26 = vpop.f32.mrf.mxu0 }
 0xa68   : > { %v5721_v11 = vmax.f32 %v5593_v30, 0.0  ;;  %v12717_v46 = vmul.f32 0.16666667, %v6610_v7  ;;  %7205 = vmatprep.mubr.bf16.mxu1 %v6823_v49  ;;  %7366 = vmatprep.mubr.bf16.mxu0 %v6825_v20  ;;  %v6822_v50 = vpack.c.bf16 %v12642_v6, %v12606_v24  ;;  %v6824_v47 = vpack.c.bf16 %v12645_v22, %v12608_v25 }
 0xa69   : > { %v5261_v17 = vadd.f32 %v5260_v31, %v12349_v18  ;;  %v5974_v57 = vmul.f32 %v5846_v14, %v5257_v5  ;;  %v5976_v51 = vmul.f32 %v5848_v4, %v5450_v3  ;;  %v5847_v35 = vmin.f32 %v5719_v2, 6.0 }
 0xa6a   : > { %v5849_v16 = vmin.f32 %v5721_v11, 6.0  ;;  %7206 = vmatmul.mubr.bf16.gmra.mxu1 %v6822_v50  ;;  %7367 = vmatmul.mubr.bf16.gmra.mxu0 %v6824_v47  ;;  %v5454_v9 = vadd.f32 %v5453_v54, %v12351_v43  ;;  %v5263_v39 = vadd.f32 %v5262_v41, %v12353_v12  ;;  %v5456_v27 = vadd.f32 %v5455_v21, %v12355_v19 }
 0xa6b   : > { %v5594_v28 = vadd.f32 3.0, %v5261_v17  ;;  %v6102_v44 = vmul.f32 0.16666667, %v5974_v57  ;;  %v6104_v24 = vmul.f32 0.16666667, %v5976_v51  ;;  %v5975_v6 = vmul.f32 %v5847_v35, %v5259_v32 }
 0xa6c   : > { %v5977_v53 = vmul.f32 %v5849_v16, %v5452_v23  ;;  %v5596_v22 = vadd.f32 3.0, %v5454_v9  ;;  %v5595_v55 = vadd.f32 3.0, %v5263_v39  ;;  %v5597_v5 = vadd.f32 3.0, %v5456_v27  ;;  %v5268_v16 = vpop.f32.mrf.mxu1 }
 0xa6d   : > { %v5722_v25 = vmax.f32 %v5594_v28, 0.0  ;;  %v6230_v38 = vadd.f32 3.0, %v6102_v44  ;;  %v6232_v42 = vadd.f32 3.0, %v6104_v24  ;;  %v6103_v3 = vmul.f32 0.16666667, %v5975_v6  ;;  %v5461_v28 = vpop.f32.mrf.mxu0 }
 0xa6e   : > { %v6105_v63 = vmul.f32 0.16666667, %v5977_v53  ;;  %v5724_v1 = vmax.f32 %v5596_v22, 0.0  ;;  %v5723_v37 = vmax.f32 %v5595_v55, 0.0  ;;  %v5725_v31 = vmax.f32 %v5597_v5, 0.0 }
 0xa6f   : > { %v5850_v36 = vmin.f32 %v5722_v25, 6.0  ;;  %v6358_v54 = vmax.f32 %v6230_v38, 0.0  ;;  %v6360_v7 = vmax.f32 %v6232_v42, 0.0  ;;  %v6231_v62 = vadd.f32 3.0, %v6103_v3 }
 0xa70   : > { %v6233_v58 = vadd.f32 3.0, %v6105_v63  ;;  %v5852_v23 = vmin.f32 %v5724_v1, 6.0  ;;  %v5851_v30 = vmin.f32 %v5723_v37, 6.0  ;;  %v5853_v49 = vmin.f32 %v5725_v31, 6.0 }
 0xa71   : > { %v5978_v32 = vmul.f32 %v5850_v36, %v5261_v17  ;;  %v6486_v20 = vmin.f32 %v6358_v54, 6.0  ;;  %v6488_v14 = vmin.f32 %v6360_v7, 6.0  ;;  %v6359_v4 = vmax.f32 %v6231_v62, 0.0 }
 0xa72   : > { %v6361_v2 = vmax.f32 %v6233_v58, 0.0  ;;  %v5980_v41 = vmul.f32 %v5852_v23, %v5454_v9  ;;  %v5979_v21 = vmul.f32 %v5851_v30, %v5263_v39  ;;  %v5981_v50 = vmul.f32 %v5853_v49, %v5456_v27 }
 0xa73   : > { %v6106_v11 = vmul.f32 0.16666667, %v5978_v32  ;;  %v12730_v47 = vmul.f32 0.16666667, %v12707_v61  ;;  %v6614_v57 = vmul.f32 %v6486_v20, %v6102_v44  ;;  %v6487_v51 = vmin.f32 %v6359_v4, 6.0 }
 0xa74   : > { %v6489_v35 = vmin.f32 %v6361_v2, 6.0  ;;  %v6108_v6 = vmul.f32 0.16666667, %v5980_v41  ;;  %v6107_v53 = vmul.f32 0.16666667, %v5979_v21  ;;  %v6827_v25 = vpack.c.bf16 %v12692_v60, %v12659_v34  ;;  %v5270_v60 = vpop.f32.mrf.mxu1 }
 0xa75   : > { %v6234_v17 = vadd.f32 3.0, %v6106_v11  ;;  %v6739_v22 = vmul.f32 0.16666667, %v12709_v48  ;;  %v6741_v9 = vmul.f32 0.16666667, %v12711_v59  ;;  %v6616_v27 = vmul.f32 %v6488_v14, %v6104_v24  ;;  %v5463_v48 = vpop.f32.mrf.mxu0 }
 0xa76   : > { %v12736_v39 = vmul.f32 0.16666667, %v6614_v57  ;;  %v6236_v55 = vadd.f32 3.0, %v6108_v6  ;;  %v6235_v44 = vadd.f32 3.0, %v6107_v53  ;;  %v6109_v5 = vmul.f32 0.16666667, %v5981_v50  ;;  %7213 = vmatprep.mubr.bf16.mxu1 %v6827_v25  ;;  %v5272_v23 = vpop.f32.mrf.mxu1 }
 0xa77   : > { %v6362_v61 = vmax.f32 %v6234_v17, 0.0  ;;  %v6615_v38 = vmul.f32 %v6487_v51, %v6103_v3  ;;  %v6617_v42 = vmul.f32 %v6489_v35, %v6105_v63  ;;  %v6829_v36 = vpack.c.bf16 %v12694_v52, %v12665_v45  ;;  %v5465_v30 = vpop.f32.mrf.mxu0 }
 0xa78   : > { %v6826_v34 = vpack.c.bf16 %v12670_v0, %v12655_v13  ;;  %v6364_v59 = vmax.f32 %v6236_v55, 0.0  ;;  %v6363_v37 = vmax.f32 %v6235_v44, 0.0  ;;  %v6237_v31 = vadd.f32 3.0, %v6109_v5  ;;  %v12761_v57 = vpop.f32.mrf.mxu1 }
 0xa79   : > { %v6490_v1 = vmin.f32 %v6362_v61, 6.0  ;;  %v12742_v24 = vmul.f32 0.16666667, %v6616_v27  ;;  %7374 = vmatprep.mubr.bf16.mxu0 %v6829_v36  ;;  %v6828_v3 = vpack.c.bf16 %v12675_v40, %v12657_v15  ;;  %v6831_v63 = vpack.c.bf16 %v6739_v22, %v12701_v10  ;;  %v12763_v51 = vpop.f32.mrf.mxu0 }
 0xa7a   : > { %7214 = vmatmul.mubr.bf16.gmra.mxu1 %v6826_v34  ;;  %v6833_v45 = vpack.c.bf16 %v6741_v9, %v12705_v8  ;;  %v6492_v54 = vmin.f32 %v6364_v59, 6.0  ;;  %v6491_v13 = vmin.f32 %v6363_v37, 6.0  ;;  %v6365_v0 = vmax.f32 %v6237_v31, 0.0 }
 0xa7b   : > { %v6618_v52 = vmul.f32 %v6490_v1, %v6106_v11  ;;  %v6743_v7 = vmul.f32 0.16666667, %v6615_v38  ;;  %v6745_v62 = vmul.f32 0.16666667, %v6617_v42  ;;  %7375 = vmatmul.mubr.bf16.gmra.mxu0 %v6828_v3  ;;  %7221 = vmatprep.mubr.bf16.mxu1 %v6831_v63  ;;  %v6830_v58 = vpack.c.bf16 %v12717_v46, %v12696_v56 }
 0xa7c   : > { %v5267_v32 = vadd.f32 %v5266_v33, %v12349_v18  ;;  %v6620_v40 = vmul.f32 %v6492_v54, %v6108_v6  ;;  %v6619_v10 = vmul.f32 %v6491_v13, %v6107_v53  ;;  %v6493_v8 = vmin.f32 %v6365_v0, 6.0  ;;  %7382 = vmatprep.mubr.bf16.mxu0 %v6833_v45 }
 0xa7d   : > { %v12751_v15 = vmul.f32 0.16666667, %v6618_v52  ;;  %v5460_v20 = vadd.f32 %v12727_v26, %v12351_v43  ;;  %v5269_v14 = vadd.f32 %v5268_v16, %v12353_v12  ;;  %v5462_v4 = vadd.f32 %v5461_v28, %v12355_v19 }
 0xa7e   : > { %v5598_v49 = vadd.f32 3.0, %v5267_v32  ;;  %v12757_v2 = vmul.f32 0.16666667, %v6620_v40  ;;  %v6747_v56 = vmul.f32 0.16666667, %v6619_v10  ;;  %v6621_v46 = vmul.f32 %v6493_v8, %v6109_v5  ;;  %v12772_v5 = vpop.f32.mrf.mxu0 }
 0xa7f   : > { %v6832_v33 = vpack.c.bf16 %v12730_v47, %v12699_v29  ;;  %v5600_v41 = vadd.f32 3.0, %v5460_v20  ;;  %v5599_v21 = vadd.f32 3.0, %v5269_v14  ;;  %v5601_v50 = vadd.f32 3.0, %v5462_v4 }
 0xa80   : > { %v5726_v11 = vmax.f32 %v5598_v49, 0.0  ;;  %v6749_v26 = vmul.f32 0.16666667, %v6621_v46  ;;  %v6835_v35 = vpack.c.bf16 %v6747_v56, %v6743_v7  ;;  %v6834_v16 = vpack.c.bf16 %v12751_v15, %v12736_v39  ;;  %v12770_v39 = vpop.f32.mrf.mxu1  ;;  %v12777_v7 = vpop.f32.mrf.mxu0 }
 0xa81   : > { %v5271_v28 = vadd.f32 %v5270_v60, %v12349_v18  ;;  %v5728_v6 = vmax.f32 %v5600_v41, 0.0  ;;  %v5727_v53 = vmax.f32 %v5599_v21, 0.0  ;;  %v5729_v29 = vmax.f32 %v5601_v50, 0.0 }
 0xa82   : > { %7222 = vmatmul.mubr.bf16.gmra.mxu1 %v6830_v58  ;;  %v5854_v17 = vmin.f32 %v5726_v11, 6.0  ;;  %v6837_v47 = vpack.c.bf16 %v6749_v26, %v6745_v62  ;;  %v5464_v22 = vadd.f32 %v5463_v48, %v12351_v43  ;;  %v5273_v9 = vadd.f32 %v5272_v23, %v12353_v12  ;;  %v5280_v0 = vpop.f32.mrf.mxu1  ;;  %v5475_v46 = vpop.f32.mrf.mxu0 }
 0xa83   : > { %7229 = vmatprep.mubr.bf16.mxu1 %v6835_v35  ;;  %v5602_v25 = vadd.f32 3.0, %v5271_v28  ;;  %7383 = vmatmul.mubr.bf16.gmra.mxu0 %v6832_v33  ;;  %v5856_v61 = vmin.f32 %v5728_v6, 6.0  ;;  %v5855_v55 = vmin.f32 %v5727_v53, 6.0  ;;  %v5857_v44 = vmin.f32 %v5729_v29, 6.0 }
 0xa84   : > { %v5982_v27 = vmul.f32 %v5854_v17, %v5267_v32  ;;  %7390 = vmatprep.mubr.bf16.mxu0 %v6837_v47  ;;  %v5604_v42 = vadd.f32 3.0, %v5464_v22  ;;  %v5603_v36 = vadd.f32 3.0, %v5273_v9  ;;  %v5466_v34 = vadd.f32 %v5465_v30, %v12355_v19  ;;  %v5282_v56 = vpop.f32.mrf.mxu1  ;;  %v12792_v53 = vpop.f32.mrf.mxu0 }
 0xa85   : > { %v5730_v38 = vmax.f32 %v5602_v25, 0.0  ;;  %v5984_v1 = vmul.f32 %v5856_v61, %v5460_v20  ;;  %v5983_v48 = vmul.f32 %v5855_v55, %v5269_v14  ;;  %v5985_v59 = vmul.f32 %v5857_v44, %v5462_v4 }
 0xa86   : > { %v6110_v60 = vmul.f32 0.16666667, %v5982_v27  ;;  %v5732_v31 = vmax.f32 %v5604_v42, 0.0  ;;  %v5731_v3 = vmax.f32 %v5603_v36, 0.0  ;;  %v5605_v63 = vadd.f32 3.0, %v5466_v34  ;;  %v12790_v6 = vpop.f32.mrf.mxu1 }
 0xa87   : > { %v5858_v37 = vmin.f32 %v5730_v38, 6.0  ;;  %v6836_v45 = vpack.c.bf16 %v12757_v2, %v12742_v24  ;;  %v6112_v54 = vmul.f32 0.16666667, %v5984_v1  ;;  %v6111_v13 = vmul.f32 0.16666667, %v5983_v48 }
 0xa88   : > { %v6238_v52 = vadd.f32 3.0, %v6110_v60  ;;  %v6113_v62 = vmul.f32 0.16666667, %v5985_v59  ;;  %v5860_v32 = vmin.f32 %v5732_v31, 6.0  ;;  %v5859_v23 = vmin.f32 %v5731_v3, 6.0  ;;  %v12802_v36 = vpop.f32.mrf.mxu1 }
 0xa89   : > { %v5986_v58 = vmul.f32 %v5858_v37, %v5271_v28  ;;  %v6240_v15 = vadd.f32 3.0, %v6112_v54  ;;  %v6239_v40 = vadd.f32 3.0, %v6111_v13  ;;  %v5733_v10 = vmax.f32 %v5605_v63, 0.0 }
 0xa8a   : > { %7230 = vmatmul.mubr.bf16.gmra.mxu1 %v6834_v16  ;;  %v6366_v30 = vmax.f32 %v6238_v52, 0.0  ;;  %v6241_v8 = vadd.f32 3.0, %v6113_v62  ;;  %v5988_v20 = vmul.f32 %v5860_v32, %v5464_v22  ;;  %v5987_v24 = vmul.f32 %v5859_v23, %v5273_v9  ;;  %v12816_v23 = vpop.f32.mrf.mxu1 }
 0xa8b   : > { %v12779_v49 = vmul.f32 0.16666667, %v5986_v58  ;;  %7391 = vmatmul.mubr.bf16.gmra.mxu0 %v6836_v45  ;;  %v6368_v4 = vmax.f32 %v6240_v15, 0.0  ;;  %v5861_v2 = vmin.f32 %v5733_v10, 6.0  ;;  %v6367_v33 = vmax.f32 %v6239_v40, 0.0 }
 0xa8c   : > { %v6494_v14 = vmin.f32 %v6366_v30, 6.0  ;;  %v6369_v11 = vmax.f32 %v6241_v8, 0.0  ;;  %v12781_v41 = vmul.f32 0.16666667, %v5988_v20  ;;  %v12783_v21 = vmul.f32 0.16666667, %v5987_v24 }
 0xa8d   : > { %v5989_v50 = vmul.f32 %v5861_v2, %v5466_v34  ;;  %v5277_v26 = vadd.f32 %v12761_v57, %v12349_v18  ;;  %v6242_v16 = vadd.f32 3.0, %v12779_v49  ;;  %v6496_v29 = vmin.f32 %v6368_v4, 6.0  ;;  %v12804_v34 = vpop.f32.mrf.mxu0 }
 0xa8e   : > { %v6622_v35 = vmul.f32 %v6494_v14, %v6110_v60  ;;  %v6244_v28 = vadd.f32 3.0, %v12781_v41  ;;  %v6243_v17 = vadd.f32 3.0, %v12783_v21  ;;  %v6495_v47 = vmin.f32 %v6367_v33, 6.0 }
 0xa8f   : > { %v6497_v25 = vmin.f32 %v6369_v11, 6.0  ;;  %v12794_v22 = vmul.f32 0.16666667, %v5989_v50  ;;  %v5606_v9 = vadd.f32 3.0, %v5277_v26  ;;  %v6370_v57 = vmax.f32 %v6242_v16, 0.0 }
 0xa90   : > { %v12796_v27 = vmul.f32 0.16666667, %v6622_v35  ;;  %v6372_v61 = vmax.f32 %v6244_v28, 0.0  ;;  %v6371_v55 = vmax.f32 %v6243_v17, 0.0  ;;  %v5470_v38 = vadd.f32 %v12763_v51, %v12351_v43  ;;  %v12824_v35 = vpop.f32.mrf.mxu1 }
 0xa91   : > { %v5734_v44 = vmax.f32 %v5606_v9, 0.0  ;;  %v5279_v42 = vadd.f32 %v12770_v39, %v12353_v12  ;;  %v12806_v60 = vmul.f32 %v6496_v29, %v6112_v54  ;;  %v12808_v1 = vmul.f32 %v6495_v47, %v6111_v13 }
 0xa92   : > { %v12810_v48 = vmul.f32 %v6497_v25, %v6113_v62  ;;  %v5472_v59 = vadd.f32 %v12772_v5, %v12355_v19  ;;  %v6245_v37 = vadd.f32 3.0, %v12794_v22  ;;  %v5608_v51 = vadd.f32 3.0, %v5470_v38  ;;  %v12818_v62 = vpop.f32.mrf.mxu0 }
 0xa93   : > { %v5862_v31 = vmin.f32 %v5734_v44, 6.0  ;;  %v5607_v3 = vadd.f32 3.0, %v5279_v42  ;;  %v6498_v63 = vmin.f32 %v6370_v57, 6.0  ;;  %v6500_v39 = vmin.f32 %v6372_v61, 6.0 }
 0xa94   : > { %v5609_v45 = vadd.f32 3.0, %v5472_v59  ;;  %v5281_v52 = vadd.f32 %v5280_v0, %v12349_v18  ;;  %v6499_v58 = vmin.f32 %v6371_v55, 6.0  ;;  %v5736_v32 = vmax.f32 %v5608_v51, 0.0  ;;  %v12826_v16 = vpop.f32.mrf.mxu0 }
 0xa95   : > { %v5990_v54 = vmul.f32 %v5862_v31, %v5277_v26  ;;  %v5735_v13 = vmax.f32 %v5607_v3, 0.0  ;;  %v5474_v15 = vadd.f32 %v12777_v7, %v12351_v43  ;;  %v5283_v40 = vadd.f32 %v5282_v56, %v12353_v12  ;;  %v12830_v31 = vpop.f32.mrf.mxu1 }
 0xa96   : > { %v5737_v30 = vmax.f32 %v5609_v45, 0.0  ;;  %v5610_v5 = vadd.f32 3.0, %v5281_v52  ;;  %v6373_v10 = vmax.f32 %v6245_v37, 0.0  ;;  %v5864_v20 = vmin.f32 %v5736_v32, 6.0  ;;  %v12832_v51 = vpop.f32.mrf.mxu0 }
 0xa97   : > { %v6118_v8 = vmul.f32 0.16666667, %v5990_v54  ;;  %v5863_v24 = vmin.f32 %v5735_v13, 6.0  ;;  %v5612_v4 = vadd.f32 3.0, %v5474_v15  ;;  %v5611_v2 = vadd.f32 3.0, %v5283_v40 }
 0xa98   : > { %v5865_v0 = vmin.f32 %v5737_v30, 6.0  ;;  %v5738_v14 = vmax.f32 %v5610_v5, 0.0  ;;  %v5992_v11 = vmul.f32 %v5864_v20, %v5470_v38  ;;  %v5476_v26 = vadd.f32 %v5475_v46, %v12355_v19 }
 0xa99   : > { %v6246_v33 = vadd.f32 3.0, %v6118_v8  ;;  %v5991_v50 = vmul.f32 %v5863_v24, %v5279_v42  ;;  %v5740_v56 = vmax.f32 %v5612_v4, 0.0  ;;  %v5739_v17 = vmax.f32 %v5611_v2, 0.0 }
 0xa9a   : > { %v5993_v7 = vmul.f32 %v5865_v0, %v5472_v59  ;;  %v5866_v28 = vmin.f32 %v5738_v14, 6.0  ;;  %v6120_v47 = vmul.f32 0.16666667, %v5992_v11  ;;  %v5613_v9 = vadd.f32 3.0, %v5476_v26 }
 0xa9b   : > { %v6374_v29 = vmax.f32 %v6246_v33, 0.0  ;;  %v6119_v25 = vmul.f32 0.16666667, %v5991_v50  ;;  %v5868_v55 = vmin.f32 %v5740_v56, 6.0  ;;  %v5867_v44 = vmin.f32 %v5739_v17, 6.0 }
 0xa9c   : > { %v12828_v57 = vmul.f32 0.16666667, %v5993_v7  ;;  %v5994_v61 = vmul.f32 %v5866_v28, %v5281_v52  ;;  %v6501_v38 = vmin.f32 %v6373_v10, 6.0  ;;  %v6248_v42 = vadd.f32 3.0, %v6120_v47 }
 0xa9d   : > { %v6247_v46 = vadd.f32 3.0, %v6119_v25  ;;  %v5741_v37 = vmax.f32 %v5613_v9, 0.0  ;;  %v6502_v59 = vmin.f32 %v6374_v29, 6.0  ;;  %v5996_v45 = vmul.f32 %v5868_v55, %v5474_v15 }
 0xa9e   : > { %v12834_v3 = vmul.f32 0.16666667, %v5994_v61  ;;  %v5995_v54 = vmul.f32 %v5867_v44, %v5283_v40  ;;  %v6626_v32 = vmul.f32 %v6498_v63, %v12779_v49  ;;  %v6628_v13 = vmul.f32 %v6500_v39, %v12781_v41  ;;  %v12850_v63 = vpop.f32.mrf.mxu1  ;;  %v12852_v41 = vpop.f32.mrf.mxu0 }
 0xa9f   : > { %v6249_v52 = vadd.f32 3.0, %v12828_v57  ;;  %v5869_v30 = vmin.f32 %v5741_v37, 6.0  ;;  %v6376_v5 = vmax.f32 %v6248_v42, 0.0  ;;  %v6375_v10 = vmax.f32 %v6247_v46, 0.0 }
 0xaa0   : > { %v12839_v20 = vmul.f32 0.16666667, %v5996_v45  ;;  %v12841_v24 = vmul.f32 0.16666667, %v5995_v54  ;;  %v12844_v0 = vmul.f32 0.16666667, %v12806_v60  ;;  %v6627_v15 = vmul.f32 %v6499_v58, %v12783_v21  ;;  %v12871_v28 = vpop.f32.mrf.mxu1 }
 0xaa1   : > { %v12847_v14 = vmul.f32 0.16666667, %v12808_v1  ;;  %v5997_v49 = vmul.f32 %v5869_v30, %v5476_v26  ;;  %v6629_v39 = vmul.f32 %v6501_v38, %v12794_v22  ;;  %v6630_v40 = vmul.f32 %v6502_v59, %v6118_v8 }
 0xaa2   : > { %v6250_v4 = vadd.f32 3.0, %v12834_v3  ;;  %v6252_v2 = vadd.f32 3.0, %v12839_v20  ;;  %v12858_v60 = vmul.f32 0.16666667, %v12810_v48  ;;  %v12860_v33 = vmul.f32 0.16666667, %v6626_v32  ;;  %v12873_v48 = vpop.f32.mrf.mxu0 }
 0xaa3   : > { %v6251_v1 = vadd.f32 3.0, %v12841_v24  ;;  %v5287_v21 = vadd.f32 %v12790_v6, %v12349_v18  ;;  %v12865_v58 = vmul.f32 0.16666667, %v6628_v13  ;;  %v6504_v11 = vmin.f32 %v6376_v5, 6.0  ;;  %v12890_v13 = vpop.f32.mrf.mxu1 }
 0xaa4   : > { %v6503_v50 = vmin.f32 %v6375_v10, 6.0  ;;  %v6377_v22 = vmax.f32 %v6249_v52, 0.0  ;;  %v12867_v8 = vmul.f32 0.16666667, %v6627_v15  ;;  %v12869_v26 = vmul.f32 0.16666667, %v5997_v49  ;;  %v12892_v52 = vpop.f32.mrf.mxu0 }
 0xaa5   : > { %v5614_v7 = vadd.f32 3.0, %v5287_v21  ;;  %v12875_v56 = vmul.f32 0.16666667, %v6629_v39  ;;  %v12877_v17 = vmul.f32 0.16666667, %v6630_v40  ;;  %v6378_v29 = vmax.f32 %v6250_v4, 0.0 }
 0xaa6   : > { %v6380_v6 = vmax.f32 %v6252_v2, 0.0  ;;  %v6379_v9 = vmax.f32 %v6251_v1, 0.0  ;;  %v5480_v55 = vadd.f32 %v12792_v53, %v12351_v43  ;;  %v5289_v44 = vadd.f32 %v12802_v36, %v12353_v12 }
 0xaa7   : > { %13762 = vst [vmem:[#allocation62_spill] sm:$0xff] %v12877_v17  ;;  %v5742_v61 = vmax.f32 %v5614_v7, 0.0  ;;  %v12883_v38 = vmul.f32 %v6504_v11, %v6120_v47  ;;  %v12885_v42 = vmul.f32 %v6503_v50, %v6119_v25  ;;  %v6505_v46 = vmin.f32 %v6377_v22, 6.0  ;;  %v12900_v50 = vpop.f32.mrf.mxu1  ;;  %v12902_v22 = vpop.f32.mrf.mxu0 }
 0xaa8   : > { %v5482_v37 = vadd.f32 %v12804_v34, %v12355_v19  ;;  %v6253_v59 = vadd.f32 3.0, %v12869_v26  ;;  %v5616_v54 = vadd.f32 3.0, %v5480_v55  ;;  %v5615_v32 = vadd.f32 3.0, %v5289_v44 }
 0xaa9   : > { %v5870_v45 = vmin.f32 %v5742_v61, 6.0  ;;  %v6506_v53 = vmin.f32 %v6378_v29, 6.0  ;;  %v6508_v30 = vmin.f32 %v6380_v6, 6.0  ;;  %v5291_v47 = vadd.f32 %v12816_v23, %v12349_v18 }
 0xaaa   : > { %v5617_v36 = vadd.f32 3.0, %v5482_v37  ;;  %v6507_v25 = vmin.f32 %v6379_v9, 6.0  ;;  %v5744_v10 = vmax.f32 %v5616_v54, 0.0  ;;  %v5743_v15 = vmax.f32 %v5615_v32, 0.0 }
 0xaab   : > { %v5998_v5 = vmul.f32 %v5870_v45, %v5287_v21  ;;  %v5618_v49 = vadd.f32 3.0, %v5291_v47  ;;  %v5484_v39 = vadd.f32 %v12818_v62, %v12351_v43  ;;  %v5293_v40 = vadd.f32 %v12824_v35, %v12353_v12 }
 0xaac   : > { %v5745_v34 = vmax.f32 %v5617_v36, 0.0  ;;  %v6381_v4 = vmax.f32 %v6253_v59, 0.0  ;;  %v5872_v1 = vmin.f32 %v5744_v10, 6.0  ;;  %v5871_v11 = vmin.f32 %v5743_v15, 6.0  ;;  %v12906_v15 = vpop.f32.mrf.mxu1 }
 0xaad   : > { %v6126_v2 = vmul.f32 0.16666667, %v5998_v5  ;;  %v5746_v21 = vmax.f32 %v5618_v49, 0.0  ;;  %v5620_v7 = vadd.f32 3.0, %v5484_v39  ;;  %v5619_v29 = vadd.f32 3.0, %v5293_v40 }
 0xaae   : > { %v5873_v23 = vmin.f32 %v5745_v34, 6.0  ;;  %v6000_v9 = vmul.f32 %v5872_v1, %v5480_v55  ;;  %v5999_v61 = vmul.f32 %v5871_v11, %v5289_v44  ;;  %v5486_v62 = vadd.f32 %v12826_v16, %v12355_v19  ;;  %v12908_v34 = vpop.f32.mrf.mxu0 }
 0xaaf   : > { %v6254_v6 = vadd.f32 3.0, %v6126_v2  ;;  %v5874_v35 = vmin.f32 %v5746_v21, 6.0  ;;  %v5748_v59 = vmax.f32 %v5620_v7, 0.0  ;;  %v5747_v54 = vmax.f32 %v5619_v29, 0.0  ;;  %13763 = vst [vmem:[#allocation64_spill] sm:$0xff] %v12908_v34  ;;  %v12917_v34 = vpop.f32.mrf.mxu1 }
 0xab0   : > { %v6001_v45 = vmul.f32 %v5873_v23, %v5482_v37  ;;  %v6128_v36 = vmul.f32 0.16666667, %v6000_v9  ;;  %v6127_v5 = vmul.f32 0.16666667, %v5999_v61  ;;  %v5621_v10 = vadd.f32 3.0, %v5486_v62 }
 0xab1   : > { %v6382_v32 = vmax.f32 %v6254_v6, 0.0  ;;  %v6002_v17 = vmul.f32 %v5874_v35, %v5291_v47  ;;  %v5876_v55 = vmin.f32 %v5748_v59, 6.0  ;;  %v5875_v44 = vmin.f32 %v5747_v54, 6.0  ;;  %v12919_v47 = vpop.f32.mrf.mxu0 }
 0xab2   : > { %v12910_v49 = vmul.f32 0.16666667, %v6001_v45  ;;  %v6509_v1 = vmin.f32 %v6381_v4, 6.0  ;;  %v6256_v11 = vadd.f32 3.0, %v6128_v36  ;;  %v6255_v16 = vadd.f32 3.0, %v6127_v5 }
 0xab3   : > { %v5749_v37 = vmax.f32 %v5621_v10, 0.0  ;;  %v6510_v23 = vmin.f32 %v6382_v32, 6.0  ;;  %v12912_v21 = vmul.f32 0.16666667, %v6002_v17  ;;  %v6004_v7 = vmul.f32 %v5876_v55, %v5484_v39  ;;  %v12942_v10 = vpop.f32.mrf.mxu1 }
 0xab4   : > { %v6003_v29 = vmul.f32 %v5875_v44, %v5293_v40  ;;  %v6633_v6 = vmul.f32 %v6505_v46, %v12828_v57  ;;  %v6634_v9 = vmul.f32 %v6506_v53, %v12834_v3  ;;  %v6636_v61 = vmul.f32 %v6508_v30, %v12839_v20 }
 0xab5   : > { %v5877_v45 = vmin.f32 %v5749_v37, 6.0  ;;  %v6384_v4 = vmax.f32 %v6256_v11, 0.0  ;;  %v6383_v35 = vmax.f32 %v6255_v16, 0.0  ;;  %v6257_v59 = vadd.f32 3.0, %v12910_v49 }
 0xab6   : > { %v12922_v54 = vmul.f32 0.16666667, %v6004_v7  ;;  %v12925_v17 = vmul.f32 0.16666667, %v12883_v38  ;;  %v12928_v57 = vmul.f32 0.16666667, %v12885_v42  ;;  %v6635_v3 = vmul.f32 %v6507_v25, %v12841_v24  ;;  %v12944_v24 = vpop.f32.mrf.mxu0 }
 0xab7   : > { %v6005_v20 = vmul.f32 %v5877_v45, %v5486_v62  ;;  %v6637_v46 = vmul.f32 %v6509_v1, %v12869_v26  ;;  %v6638_v53 = vmul.f32 %v6510_v23, %v6126_v2  ;;  %v6258_v30 = vadd.f32 3.0, %v12912_v21 }
 0xab8   : > { %13764 = vst [vmem:[#allocation42_spill] sm:$0xff] %v12925_v17  ;;  %v12933_v39 = vmul.f32 0.16666667, %v6003_v29  ;;  %v12935_v40 = vmul.f32 0.16666667, %v6633_v6  ;;  %v6260_v38 = vadd.f32 3.0, %v12922_v54  ;;  %v5297_v42 = vadd.f32 %v12830_v31, %v12349_v18 }
 0xab9   : > { %v12937_v32 = vmul.f32 0.16666667, %v6634_v9  ;;  %v12946_v25 = vmul.f32 0.16666667, %v6636_v61  ;;  %v6512_v26 = vmin.f32 %v6384_v4, 6.0  ;;  %v6511_v2 = vmin.f32 %v6383_v35, 6.0  ;;  %v12961_v9 = vpop.f32.mrf.mxu1  ;;  %v12963_v61 = vpop.f32.mrf.mxu0 }
 0xaba   : > { %13765 = vst [vmem:[#allocation59_spill] sm:$0xff] %v12935_v40  ;;  %v6385_v62 = vmax.f32 %v6257_v59, 0.0  ;;  %v12948_v55 = vmul.f32 0.16666667, %v6635_v3  ;;  %v12950_v44 = vmul.f32 0.16666667, %v6005_v20  ;;  %v5490_v29 = vadd.f32 %v12832_v51, %v12351_v43 }
 0xabb   : > { %13766 = vst [vmem:[#allocation67_spill] sm:$0xff] %v12937_v32  ;;  %13767 = vst [vmem:[#allocation66_spill] sm:$0xff] %v12946_v25  ;;  %v5622_v1 = vadd.f32 3.0, %v5297_v42  ;;  %v12952_v11 = vmul.f32 0.16666667, %v6637_v46  ;;  %v6386_v37 = vmax.f32 %v6258_v30, 0.0  ;;  %v5299_v6 = vadd.f32 %v12850_v63, %v12353_v12 }
 0xabc   : > { %v12954_v16 = vmul.f32 0.16666667, %v6638_v53  ;;  %v6259_v31 = vadd.f32 3.0, %v12933_v39  ;;  %v6388_v23 = vmax.f32 %v6260_v38, 0.0  ;;  %13770 = vst [vmem:[#allocation19_spill] sm:$0xff] %v12961_v9  ;;  %13771 = vst [vmem:[#allocation20_spill] sm:$0xff] %v12963_v61  ;;  %v12965_v45 = vmul.f32 %v6512_v26, %v6128_v36 }
 0xabd   : > { %13768 = vst [vmem:[#allocation68_spill] sm:$0xff] %v12952_v11  ;;  %v5750_v7 = vmax.f32 %v5622_v1, 0.0  ;;  %v12967_v4 = vmul.f32 %v6511_v2, %v6127_v5  ;;  %v6513_v35 = vmin.f32 %v6385_v62, 6.0  ;;  %v5492_v59 = vadd.f32 %v12852_v41, %v12355_v19  ;;  %v12974_v2 = vpop.f32.mrf.mxu1  ;;  %v12976_v62 = vpop.f32.mrf.mxu0 }
 0xabe   : > { %13769 = vst [vmem:[#allocation65_spill] sm:$0xff] %v12954_v16  ;;  %v6261_v3 = vadd.f32 3.0, %v12950_v44  ;;  %v5624_v46 = vadd.f32 3.0, %v5490_v29  ;;  %v5623_v51 = vadd.f32 3.0, %v5299_v6  ;;  %v6514_v53 = vmin.f32 %v6386_v37, 6.0  ;;  %13772 = vst [vmem:[#allocation44_spill] sm:$0xff] %v12974_v2 }
 0xabf   : > { %v5878_v20 = vmin.f32 %v5750_v7, 6.0  ;;  %v6387_v30 = vmax.f32 %v6259_v31, 0.0  ;;  %v5625_v63 = vadd.f32 3.0, %v5492_v59  ;;  %v5301_v38 = vadd.f32 %v12871_v28, %v12349_v18  ;;  %13773 = vst [vmem:[#allocation31_spill] sm:$0xff] %v12976_v62  ;;  %v12989_v32 = vpop.f32.mrf.mxu0 }
 0xac0   : > { %v6516_v1 = vmin.f32 %v6388_v23, 6.0  ;;  %v5752_v26 = vmax.f32 %v5624_v46, 0.0  ;;  %v5751_v5 = vmax.f32 %v5623_v51, 0.0  ;;  %v5494_v7 = vadd.f32 %v12873_v48, %v12351_v43  ;;  %v12987_v48 = vpop.f32.mrf.mxu1  ;;  %13775 = vst [vmem:[#allocation47_spill] sm:$0xff] %v12989_v32 }
 0xac1   : > { %v6006_v36 = vmul.f32 %v5878_v20, %v5297_v42  ;;  %v5753_v41 = vmax.f32 %v5625_v63, 0.0  ;;  %v5626_v16 = vadd.f32 3.0, %v5301_v38  ;;  %v5303_v37 = vadd.f32 %v12890_v13, %v12353_v12  ;;  %13774 = vst [vmem:[#allocation18_spill] sm:$0xff] %v12987_v48  ;;  %v12995_v32 = vpop.f32.mrf.mxu0 }
 0xac2   : > { %v6389_v31 = vmax.f32 %v6261_v3, 0.0  ;;  %v5880_v28 = vmin.f32 %v5752_v26, 6.0  ;;  %v5879_v23 = vmin.f32 %v5751_v5, 6.0  ;;  %v5628_v46 = vadd.f32 3.0, %v5494_v7  ;;  %v12993_v48 = vpop.f32.mrf.mxu1 }
 0xac3   : > { %v12982_v25 = vmul.f32 0.16666667, %v6006_v36  ;;  %v5881_v42 = vmin.f32 %v5753_v41, 6.0  ;;  %v5754_v20 = vmax.f32 %v5626_v16, 0.0  ;;  %v5627_v51 = vadd.f32 3.0, %v5303_v37 }
 0xac4   : > { %v6008_v62 = vmul.f32 %v5880_v28, %v5490_v29  ;;  %v6007_v63 = vmul.f32 %v5879_v23, %v5299_v6  ;;  %v5496_v17 = vadd.f32 %v12892_v52, %v12355_v19  ;;  %v5756_v36 = vmax.f32 %v5628_v46, 0.0 }
 0xac5   : > { %v6262_v2 = vadd.f32 3.0, %v12982_v25  ;;  %v6009_v13 = vmul.f32 %v5881_v42, %v5492_v59  ;;  %v5882_v3 = vmin.f32 %v5754_v20, 6.0  ;;  %v5755_v26 = vmax.f32 %v5627_v51, 0.0 }
 0xac6   : > { %v6515_v5 = vmin.f32 %v6387_v30, 6.0  ;;  %v6136_v41 = vmul.f32 0.16666667, %v6008_v62  ;;  %v6135_v16 = vmul.f32 0.16666667, %v6007_v63  ;;  %v5629_v61 = vadd.f32 3.0, %v5496_v17  ;;  %v13004_v63 = vpop.f32.mrf.mxu0 }
 0xac7   : > { %v12991_v9 = vmul.f32 0.16666667, %v6009_v13  ;;  %v6010_v11 = vmul.f32 %v5882_v3, %v5301_v38  ;;  %v5884_v29 = vmin.f32 %v5756_v36, 6.0  ;;  %v5883_v6 = vmin.f32 %v5755_v26, 6.0 }
 0xac8   : > { %v6517_v28 = vmin.f32 %v6389_v31, 6.0  ;;  %v6264_v23 = vadd.f32 3.0, %v6136_v41  ;;  %v6263_v52 = vadd.f32 3.0, %v6135_v16  ;;  %v5757_v40 = vmax.f32 %v5629_v61, 0.0  ;;  %v13002_v31 = vpop.f32.mrf.mxu1 }
 0xac9   : > { %v6390_v59 = vmax.f32 %v6262_v2, 0.0  ;;  %v12997_v42 = vmul.f32 0.16666667, %v6010_v11  ;;  %v6012_v30 = vmul.f32 %v5884_v29, %v5494_v7  ;;  %v6011_v62 = vmul.f32 %v5883_v6, %v5303_v37 }
 0xaca   : > { %v6641_v20 = vmul.f32 %v6513_v35, %v12910_v49  ;;  %v6642_v46 = vmul.f32 %v6514_v53, %v12912_v21  ;;  %v6265_v38 = vadd.f32 3.0, %v12991_v9  ;;  %v5885_v51 = vmin.f32 %v5757_v40, 6.0 }
 0xacb   : > { %v6392_v61 = vmax.f32 %v6264_v23, 0.0  ;;  %v6391_v13 = vmax.f32 %v6263_v52, 0.0  ;;  %v13006_v3 = vmul.f32 0.16666667, %v6012_v30  ;;  %v13008_v2 = vmul.f32 0.16666667, %v6011_v62 }
 0xacc   : > { %v13011_v11 = vmul.f32 0.16666667, %v12965_v45  ;;  %v6644_v49 = vmul.f32 %v6516_v1, %v12922_v54  ;;  %v6643_v21 = vmul.f32 %v6515_v5, %v12933_v39  ;;  %v6013_v35 = vmul.f32 %v5885_v51, %v5496_v17  ;;  %v13026_v1 = vpop.f32.mrf.mxu1  ;;  %v13028_v17 = vpop.f32.mrf.mxu0 }
 0xacd   : > { %v6645_v40 = vmul.f32 %v6517_v28, %v12950_v44  ;;  %v6518_v53 = vmin.f32 %v6390_v59, 6.0  ;;  %v6266_v7 = vadd.f32 3.0, %v12997_v42  ;;  %v6268_v37 = vadd.f32 3.0, %v13006_v3 }
 0xace   : > { %v13019_v36 = vmul.f32 0.16666667, %v12967_v4  ;;  %v13021_v26 = vmul.f32 0.16666667, %v6641_v20  ;;  %v6267_v45 = vadd.f32 3.0, %v13008_v2  ;;  %v6839_v54 = vpack.c.bf16 %v12867_v8, %v12847_v14 }
 0xacf   : > { %v13030_v39 = vmul.f32 0.16666667, %v6642_v46  ;;  %v6520_v44 = vmin.f32 %v6392_v61, 6.0  ;;  %v6519_v5 = vmin.f32 %v6391_v13, 6.0  ;;  %v6393_v29 = vmax.f32 %v6265_v38, 0.0  ;;  %v13051_v38 = vpop.f32.mrf.mxu1 }
 0xad0   : > { %v13032_v6 = vmul.f32 0.16666667, %v6644_v49  ;;  %v13034_v4 = vmul.f32 0.16666667, %v6643_v21  ;;  %v13036_v28 = vmul.f32 0.16666667, %v6013_v35  ;;  %7237 = vmatprep.mubr.bf16.mxu1 %v6839_v54  ;;  %v6841_v23 = vpack.c.bf16 %v12875_v56, %v12858_v60  ;;  %v13053_v60 = vpop.f32.mrf.mxu0 }
 0xad1   : > { %v13040_v14 = vmul.f32 0.16666667, %v6645_v40  ;;  %v13043_v8 = vmul.f32 %v6518_v53, %v12982_v25  ;;  %v6394_v52 = vmax.f32 %v6266_v7, 0.0  ;;  %v6396_v59 = vmax.f32 %v6268_v37, 0.0  ;;  %13776 = vst [vmem:[#allocation45_spill] sm:$0xff] %v13053_v60  ;;  %v13072_v53 = vpop.f32.mrf.mxu1 }
 0xad2   : > { %v6395_v30 = vmax.f32 %v6267_v45, 0.0  ;;  %7398 = vmatprep.mubr.bf16.mxu0 %v6841_v23  ;;  %v5307_v62 = vadd.f32 %v12900_v50, %v12349_v18  ;;  %v5500_v20 = vadd.f32 %v12902_v22, %v12351_v43  ;;  %v6838_v46 = vpack.c.bf16 %v12860_v33, %v12796_v27  ;;  %13778 = vst [vmem:[#allocation46_spill] sm:$0xff] %v13072_v53  ;;  %v13074_v7 = vpop.f32.mrf.mxu0 }
 0xad3   : > { %v13055_v56 = vmul.f32 %v6520_v44, %v6136_v41  ;;  %v13057_v25 = vmul.f32 %v6519_v5, %v6135_v16  ;;  %v13059_v51 = vmin.f32 %v6393_v29, 6.0  ;;  %v6840_v61 = vpack.c.bf16 %v12865_v58, %v12844_v0  ;;  %v13777_v41 = vld [vmem:[#allocation64_spill] sm:$0xff]  ;;  %13779 = vst [vmem:[#allocation43_spill] sm:$0xff] %v13074_v7 }
 0xad4   : > { %v6269_v50 = vadd.f32 3.0, %v13036_v28  ;;  %v5630_v13 = vadd.f32 3.0, %v5307_v62  ;;  %v5632_v22 = vadd.f32 3.0, %v5500_v20  ;;  %7238 = vmatmul.mubr.bf16.gmra.mxu1 %v6838_v46  ;;  %v5309_v27 = vadd.f32 %v12906_v15, %v12353_v12 }
 0xad5   : > { %v6522_v33 = vmin.f32 %v6394_v52, 6.0  ;;  %v13066_v49 = vmin.f32 %v6396_v59, 6.0  ;;  %7399 = vmatmul.mubr.bf16.gmra.mxu0 %v6840_v61  ;;  %v5502_v16 = vadd.f32 %v13777_v41, %v12355_v19  ;;  %v5311_v21 = vadd.f32 %v12917_v34, %v12349_v18  ;;  %v13082_v41 = vpop.f32.mrf.mxu1 }
 0xad6   : > { %v6523_v35 = vmin.f32 %v6395_v30, 6.0  ;;  %v5758_v0 = vmax.f32 %v5630_v13, 0.0  ;;  %v5760_v58 = vmax.f32 %v5632_v22, 0.0  ;;  %v5631_v40 = vadd.f32 3.0, %v5309_v27  ;;  %13780 = vst [vmem:[#allocation60_spill] sm:$0xff] %v13082_v41 }
 0xad7   : > { %v5633_v37 = vadd.f32 3.0, %v5502_v16  ;;  %v5634_v15 = vadd.f32 3.0, %v5311_v21  ;;  %v5504_v45 = vadd.f32 %v12919_v47, %v12351_v43  ;;  %v5313_v54 = vadd.f32 %v12942_v10, %v12353_v12  ;;  %v13084_v47 = vpop.f32.mrf.mxu0  ;;  %v13088_v41 = vpop.f32.mrf.mxu1 }
 0xad8   : > { %v6397_v44 = vmax.f32 %v6269_v50, 0.0  ;;  %v5886_v5 = vmin.f32 %v5758_v0, 6.0  ;;  %v5888_v29 = vmin.f32 %v5760_v58, 6.0  ;;  %v5759_v34 = vmax.f32 %v5631_v40, 0.0  ;;  %13781 = vst [vmem:[#allocation61_spill] sm:$0xff] %v13084_v47  ;;  %13782 = vst [vmem:[#allocation64_spill] sm:$0xff] %v13088_v41 }
 0xad9   : > { %v5761_v23 = vmax.f32 %v5633_v37, 0.0  ;;  %v5762_v52 = vmax.f32 %v5634_v15, 0.0  ;;  %v5636_v59 = vadd.f32 3.0, %v5504_v45  ;;  %v5635_v30 = vadd.f32 3.0, %v5313_v54  ;;  %v13090_v47 = vpop.f32.mrf.mxu0 }
 0xada   : > { %v6014_v46 = vmul.f32 %v5886_v5, %v5307_v62  ;;  %v6016_v61 = vmul.f32 %v5888_v29, %v5500_v20  ;;  %v5887_v13 = vmin.f32 %v5759_v34, 6.0  ;;  %v5506_v22 = vadd.f32 %v12944_v24, %v12355_v19  ;;  %13783 = vst [vmem:[#allocation69_spill] sm:$0xff] %v13090_v47 }
 0xadb   : > { %v5889_v7 = vmin.f32 %v5761_v23, 6.0  ;;  %v5890_v10 = vmin.f32 %v5762_v52, 6.0  ;;  %v5764_v50 = vmax.f32 %v5636_v59, 0.0  ;;  %v5763_v0 = vmax.f32 %v5635_v30, 0.0 }
 0xadc   : > { %v6142_v58 = vmul.f32 0.16666667, %v6014_v46  ;;  %v6144_v40 = vmul.f32 0.16666667, %v6016_v61  ;;  %v6015_v37 = vmul.f32 %v5887_v13, %v5309_v27  ;;  %v5637_v15 = vadd.f32 3.0, %v5506_v22 }
 0xadd   : > { %v6017_v60 = vmul.f32 %v5889_v7, %v5502_v16  ;;  %v6018_v53 = vmul.f32 %v5890_v10, %v5311_v21  ;;  %v5892_v62 = vmin.f32 %v5764_v50, 6.0  ;;  %v5891_v20 = vmin.f32 %v5763_v0, 6.0 }
 0xade   : > { %v6270_v5 = vadd.f32 3.0, %v6142_v58  ;;  %v6272_v29 = vadd.f32 3.0, %v6144_v40  ;;  %v13086_v34 = vmul.f32 0.16666667, %v6015_v37  ;;  %v5765_v24 = vmax.f32 %v5637_v15, 0.0 }
 0xadf   : > { %v13092_v23 = vmul.f32 0.16666667, %v6017_v60  ;;  %v13094_v52 = vmul.f32 0.16666667, %v6018_v53  ;;  %v6020_v59 = vmul.f32 %v5892_v62, %v5504_v45  ;;  %v6019_v27 = vmul.f32 %v5891_v20, %v5313_v54  ;;  %v13109_v54 = vpop.f32.mrf.mxu1 }
 0xae0   : > { %v6525_v30 = vmin.f32 %v6397_v44, 6.0  ;;  %v6398_v16 = vmax.f32 %v6270_v5, 0.0  ;;  %v6400_v21 = vmax.f32 %v6272_v29, 0.0  ;;  %v6271_v7 = vadd.f32 3.0, %v13086_v34  ;;  %13784 = vst [vmem:[#allocation70_spill] sm:$0xff] %v13109_v54  ;;  %v13111_v44 = vpop.f32.mrf.mxu0 }
 0xae1   : > { %v6273_v46 = vadd.f32 3.0, %v13092_v23  ;;  %v6274_v61 = vadd.f32 3.0, %v13094_v52  ;;  %v13099_v13 = vmul.f32 0.16666667, %v6020_v59  ;;  %v5893_v10 = vmin.f32 %v5765_v24, 6.0  ;;  %13785 = vst [vmem:[#allocation71_spill] sm:$0xff] %v13111_v44 }
 0xae2   : > { %v13102_v50 = vmul.f32 0.16666667, %v13043_v8  ;;  %v6649_v60 = vmul.f32 %v13059_v51, %v12991_v9  ;;  %v6650_v53 = vmul.f32 %v6522_v33, %v12997_v42  ;;  %v13107_v45 = vmul.f32 0.16666667, %v6019_v27 }
 0xae3   : > { %v6652_v0 = vmul.f32 %v13066_v49, %v13006_v3  ;;  %v6651_v37 = vmul.f32 %v6523_v35, %v13008_v2  ;;  %v6526_v15 = vmin.f32 %v6398_v16, 6.0  ;;  %v6528_v62 = vmin.f32 %v6400_v21, 6.0  ;;  %v13788_v16 = vld [vmem:[#allocation59_spill] sm:$0xff]  ;;  %v13789_v21 = vld [vmem:[#allocation68_spill] sm:$0xff] }
 0xae4   : > { %v13117_v8 = vmul.f32 0.16666667, %v13055_v56  ;;  %v13120_v9 = vmul.f32 0.16666667, %v13057_v25  ;;  %v6653_v42 = vmul.f32 %v6525_v30, %v13036_v28  ;;  %v6399_v51 = vmax.f32 %v6271_v7, 0.0  ;;  %v13133_v56 = vpop.f32.mrf.mxu1  ;;  %v13135_v25 = vpop.f32.mrf.mxu0 }
 0xae5   : > { %v6401_v33 = vmax.f32 %v6273_v46, 0.0  ;;  %v6402_v20 = vmax.f32 %v6274_v61, 0.0  ;;  %v13124_v5 = vadd.f32 3.0, %v13099_v13  ;;  %v6021_v29 = vmul.f32 %v5893_v10, %v5506_v22  ;;  %13786 = vst [vmem:[#allocation72_spill] sm:$0xff] %v13133_v56  ;;  %13787 = vst [vmem:[#allocation73_spill] sm:$0xff] %v13135_v25  ;;  %v13803_v10 = vld [vmem:[#allocation47_spill] sm:$0xff] }
 0xae6   : > { %v13126_v3 = vmul.f32 0.16666667, %v6649_v60  ;;  %v13128_v2 = vmul.f32 0.16666667, %v6650_v53  ;;  %v13131_v49 = vadd.f32 3.0, %v13107_v45  ;;  %v6654_v24 = vmul.f32 %v6526_v15, %v6142_v58  ;;  %v13790_v58 = vld [vmem:[#allocation19_spill] sm:$0xff] }
 0xae7   : > { %v13137_v35 = vmul.f32 0.16666667, %v6652_v0  ;;  %v13139_v28 = vmul.f32 0.16666667, %v6651_v37  ;;  %v6656_v59 = vmul.f32 %v6528_v62, %v6144_v40  ;;  %v13141_v27 = vmul.f32 0.16666667, %v6653_v42  ;;  %v13159_v62 = vpop.f32.mrf.mxu1  ;;  %v13161_v42 = vpop.f32.mrf.mxu0 }
 0xae8   : > { %v6527_v22 = vmin.f32 %v6399_v51, 6.0  ;;  %v6843_v30 = vpack.c.bf16 %v12948_v55, %v12928_v57  ;;  %v6845_v7 = vpack.c.bf16 %v13789_v21, %v13788_v16  ;;  %v6529_v46 = vmin.f32 %v6401_v33, 6.0  ;;  %v13791_v0 = vld [vmem:[#allocation20_spill] sm:$0xff]  ;;  %v13792_v55 = vld [vmem:[#allocation62_spill] sm:$0xff]  ;;  %v13793_v37 = vld [vmem:[#allocation67_spill] sm:$0xff]  ;;  %13794 = vst [vmem:[#allocation59_spill] sm:$0xff] %v13159_v62 }
 0xae9   : > { %v13147_v61 = vmin.f32 %v6402_v20, 6.0  ;;  %v13150_v60 = vmul.f32 0.16666667, %v6021_v29  ;;  %v5317_v40 = vadd.f32 %v13790_v58, %v12349_v18  ;;  %v5510_v57 = vadd.f32 %v13791_v0, %v12351_v43  ;;  %13795 = vst [vmem:[#allocation68_spill] sm:$0xff] %v13161_v42  ;;  %v13798_v20 = vld [vmem:[#allocation42_spill] sm:$0xff]  ;;  %v13800_v16 = vld [vmem:[#allocation44_spill] sm:$0xff] }
 0xaea   : > { %7245 = vmatprep.mubr.bf16.mxu1 %v6843_v30  ;;  %7406 = vmatprep.mubr.bf16.mxu0 %v6845_v7  ;;  %v6842_v15 = vpack.c.bf16 %v13793_v37, %v13792_v55  ;;  %v13163_v51 = vmul.f32 0.16666667, %v6654_v24  ;;  %v13165_v33 = vmul.f32 0.16666667, %v6656_v59  ;;  %v13799_v29 = vld [vmem:[#allocation66_spill] sm:$0xff]  ;;  %v5319_v21 = vadd.f32 %v13800_v16, %v12353_v12  ;;  %v13801_v55 = vld [vmem:[#allocation31_spill] sm:$0xff] }
 0xaeb   : > { %v6844_v30 = vpack.c.bf16 %v13799_v29, %v13798_v20  ;;  %v13172_v7 = vmul.f32 %v6527_v22, %v13086_v34  ;;  %v5638_v58 = vadd.f32 3.0, %v5317_v40  ;;  %v5640_v0 = vadd.f32 3.0, %v5510_v57  ;;  %v13802_v59 = vld [vmem:[#allocation18_spill] sm:$0xff] }
 0xaec   : > { %13796 = vst [vmem:[#allocation19_spill] sm:$0xff] %v13163_v51  ;;  %13797 = vst [vmem:[#allocation20_spill] sm:$0xff] %v13165_v33  ;;  %7246 = vmatmul.mubr.bf16.gmra.mxu1 %v6842_v15  ;;  %v5512_v37 = vadd.f32 %v13801_v55, %v12355_v19  ;;  %v5639_v24 = vadd.f32 3.0, %v5319_v21  ;;  %v5321_v53 = vadd.f32 %v13802_v59, %v12349_v18  ;;  %v6277_v34 = vadd.f32 3.0, %v13150_v60  ;;  %v13183_v15 = vpop.f32.mrf.mxu1  ;;  %v13185_v51 = vpop.f32.mrf.mxu0 }
 0xaed   : > { %7407 = vmatmul.mubr.bf16.gmra.mxu0 %v6844_v30  ;;  %v5514_v20 = vadd.f32 %v13803_v10, %v12351_v43  ;;  %v5323_v29 = vadd.f32 %v12993_v48, %v12353_v12  ;;  %v5766_v22 = vmax.f32 %v5638_v58, 0.0  ;;  %v5768_v16 = vmax.f32 %v5640_v0, 0.0  ;;  %13804 = vst [vmem:[#allocation62_spill] sm:$0xff] %v13183_v15  ;;  %13805 = vst [vmem:[#allocation67_spill] sm:$0xff] %v13185_v51 }
 0xaee   : > { %v5641_v33 = vadd.f32 3.0, %v5512_v37  ;;  %v5767_v30 = vmax.f32 %v5639_v24, 0.0  ;;  %v5642_v55 = vadd.f32 3.0, %v5321_v53  ;;  %v5516_v43 = vadd.f32 %v12995_v32, %v12355_v19  ;;  %v13189_v54 = vpop.f32.mrf.mxu1  ;;  %v13191_v24 = vpop.f32.mrf.mxu0 }
 0xaef   : > { %v5644_v42 = vadd.f32 3.0, %v5514_v20  ;;  %v5643_v62 = vadd.f32 3.0, %v5323_v29  ;;  %v5894_v18 = vmin.f32 %v5766_v22, 6.0  ;;  %v5896_v59 = vmin.f32 %v5768_v16, 6.0 }
 0xaf0   : > { %v5769_v25 = vmax.f32 %v5641_v33, 0.0  ;;  %v5895_v12 = vmin.f32 %v5767_v30, 6.0  ;;  %v5770_v48 = vmax.f32 %v5642_v55, 0.0  ;;  %v5645_v15 = vadd.f32 3.0, %v5516_v43 }
 0xaf1   : > { %v5772_v10 = vmax.f32 %v5644_v42, 0.0  ;;  %v5771_v58 = vmax.f32 %v5643_v62, 0.0  ;;  %v6022_v0 = vmul.f32 %v5894_v18, %v5317_v40  ;;  %v6024_v44 = vmul.f32 %v5896_v59, %v5510_v57  ;;  %v13198_v59 = vpop.f32.mrf.mxu1 }
 0xaf2   : > { %v5897_v56 = vmin.f32 %v5769_v25, 6.0  ;;  %v6023_v51 = vmul.f32 %v5895_v12, %v5319_v21  ;;  %v5898_v47 = vmin.f32 %v5770_v48, 6.0  ;;  %v6405_v33 = vmax.f32 %v6277_v34, 0.0  ;;  %v13200_v21 = vpop.f32.mrf.mxu0 }
 0xaf3   : > { %v5900_v22 = vmin.f32 %v5772_v10, 6.0  ;;  %v5899_v16 = vmin.f32 %v5771_v58, 6.0  ;;  %v13193_v41 = vmul.f32 0.16666667, %v6022_v0  ;;  %v5773_v32 = vmax.f32 %v5645_v15, 0.0 }
 0xaf4   : > { %v6025_v19 = vmul.f32 %v5897_v56, %v5512_v37  ;;  %v6151_v30 = vmul.f32 0.16666667, %v6023_v51  ;;  %v6026_v42 = vmul.f32 %v5898_v47, %v5321_v53  ;;  %v6657_v25 = vmul.f32 %v6529_v46, %v13092_v23 }
 0xaf5   : > { %v6028_v62 = vmul.f32 %v5900_v22, %v5514_v20  ;;  %v6027_v40 = vmul.f32 %v5899_v16, %v5323_v29  ;;  %v13196_v57 = vmul.f32 0.16666667, %v6024_v44  ;;  %v5901_v18 = vmin.f32 %v5773_v32, 6.0 }
 0xaf6   : > { %v6153_v55 = vmul.f32 0.16666667, %v6025_v19  ;;  %v6279_v12 = vadd.f32 3.0, %v6151_v30  ;;  %v6154_v34 = vmul.f32 0.16666667, %v6026_v42  ;;  %v6847_v56 = vpack.c.bf16 %v13034_v4, %v13019_v36 }
 0xaf7   : > { %v13202_v48 = vmul.f32 0.16666667, %v6028_v62  ;;  %v13806_v47 = vmax.f32 %v13124_v5, 0.0  ;;  %v13807_v23 = vmax.f32 %v13131_v49, 0.0  ;;  %v6155_v51 = vmul.f32 0.16666667, %v6027_v40 }
 0xaf8   : > { %v6281_v46 = vadd.f32 3.0, %v6153_v55  ;;  %v6533_v37 = vmin.f32 %v6405_v33, 6.0  ;;  %v6407_v20 = vmax.f32 %v6279_v12, 0.0  ;;  %v6282_v29 = vadd.f32 3.0, %v6154_v34  ;;  %7253 = vmatprep.mubr.bf16.mxu1 %v6847_v56  ;;  %v13212_v36 = vpop.f32.mrf.mxu1 }
 0xaf9   : > { %v6532_v53 = vmin.f32 %v13806_v47, 6.0  ;;  %v6531_v44 = vmin.f32 %v13807_v23, 6.0  ;;  %v6029_v15 = vmul.f32 %v5901_v18, %v5516_v43  ;;  %v6278_v10 = vadd.f32 3.0, %v13193_v41 }
 0xafa   : > { %v6280_v58 = vadd.f32 3.0, %v13196_v57  ;;  %v6409_v0 = vmax.f32 %v6281_v46, 0.0  ;;  %v6283_v22 = vadd.f32 3.0, %v6155_v51  ;;  %v13214_v4 = vpop.f32.mrf.mxu0  ;;  %v6535_v5 = vmin.f32 %v6407_v20, 6.0  ;;  %v13227_v20 = vpop.f32.mrf.mxu1 }
 0xafb   : > { %v6410_v49 = vmax.f32 %v6282_v29, 0.0  ;;  %v6284_v16 = vadd.f32 3.0, %v13202_v48  ;;  %v6157_v19 = vmul.f32 0.16666667, %v6029_v15  ;;  %v13218_v33 = vmul.f32 0.16666667, %v13172_v7 }
 0xafc   : > { %v6658_v43 = vmul.f32 %v13147_v61, %v13094_v52  ;;  %v6537_v32 = vmin.f32 %v6409_v0, 6.0  ;;  %v6411_v42 = vmax.f32 %v6283_v22, 0.0  ;;  %v13222_v62 = vmul.f32 0.16666667, %v6657_v25  ;;  %v13229_v7 = vpop.f32.mrf.mxu0 }
 0xafd   : > { %v6660_v40 = vmul.f32 %v6532_v53, %v13099_v13  ;;  %v6659_v18 = vmul.f32 %v6531_v44, %v13107_v45  ;;  %v6285_v12 = vadd.f32 3.0, %v6157_v19  ;;  %v6661_v56 = vmul.f32 %v6533_v37, %v13150_v60  ;;  %v13808_v45 = vld [vmem:[#allocation65_spill] sm:$0xff] }
 0xafe   : > { %v6406_v47 = vmax.f32 %v6278_v10, 0.0  ;;  %v6408_v23 = vmax.f32 %v6280_v58, 0.0  ;;  %v6539_v46 = vmin.f32 %v6411_v42, 6.0  ;;  %v6663_v29 = vmul.f32 %v6535_v5, %v6151_v30 }
 0xaff   : > { %v6538_v52 = vmin.f32 %v6410_v49, 6.0  ;;  %v6412_v61 = vmax.f32 %v6284_v16, 0.0  ;;  %v6413_v15 = vmax.f32 %v6285_v12, 0.0  ;;  %v6665_v25 = vmul.f32 %v6537_v32, %v6153_v55 }
 0xb00   : > { %v6667_v0 = vmul.f32 %v6539_v46, %v6155_v51  ;;  %v6849_v13 = vpack.c.bf16 %v13040_v14, %v13021_v26  ;;  %v6846_v53 = vpack.c.bf16 %v13030_v39, %v13808_v45  ;;  %v13235_v60 = vmul.f32 0.16666667, %v6658_v43  ;;  %v8044_v14 = vpop.f32.mrf.mxu1  ;;  %v13245_v39 = vpop.f32.mrf.mxu0  ;;  %v13817_v46 = vld [vmem:[#allocation72_spill] sm:$0xff] }
 0xb01   : > { %v6787_v44 = vmul.f32 0.16666667, %v6659_v18  ;;  %v6541_v37 = vmin.f32 %v6413_v15, 6.0  ;;  %v6848_v10 = vpack.c.bf16 %v13032_v6, %v13011_v11  ;;  %v13239_v58 = vmul.f32 0.16666667, %v6660_v40  ;;  %v13810_v40 = vld [vmem:[#allocation60_spill] sm:$0xff] }
 0xb02   : > { %v6789_v30 = vmul.f32 0.16666667, %v6661_v56  ;;  %7414 = vmatprep.mubr.bf16.mxu0 %v6849_v13  ;;  %7254 = vmatmul.mubr.bf16.gmra.mxu1 %v6846_v53  ;;  %v6851_v55 = vpack.c.bf16 %v13139_v28, %v13120_v9  ;;  %v6853_v26 = vpack.c.bf16 %v13141_v27, %v13126_v3  ;;  %v13247_v51 = vmin.f32 %v6406_v47, 6.0  ;;  %v13266_v28 = vld [vmem:[%s13476_s11] ss:$0 sm:$0xff]  ;;  %v13811_v18 = vld [vmem:[#allocation64_spill] sm:$0xff]  ;;  %v8157_v56 = vpop.f32.mrf.mxu0 }
 0xb03   : > { %v13249_v22 = vmin.f32 %v6408_v23, 6.0  ;;  %v13251_v5 = vmul.f32 0.16666667, %v6663_v29  ;;  %v13253_v11 = vmin.f32 %v6412_v61, 6.0  ;;  %7415 = vmatmul.mubr.bf16.gmra.mxu0 %v6848_v10  ;;  %v13255_v6 = vmul.f32 0.16666667, %v6665_v25 }
 0xb04   : > { %v13257_v49 = vmul.f32 %v6538_v52, %v6154_v34  ;;  %v13259_v9 = vmul.f32 0.16666667, %v6667_v0  ;;  %7261 = vmatprep.mubr.bf16.mxu1 %v6851_v55  ;;  %7422 = vmatprep.mubr.bf16.mxu0 %v6853_v26  ;;  %v6850_v3 = vpack.c.bf16 %v13128_v2, %v13102_v50  ;;  %v6669_v27 = vmul.f32 %v6541_v37, %v6157_v19  ;;  %v13809_v50 = vld [vmem:[#allocation46_spill] sm:$0xff]  ;;  %v8045_v19 = vpop.f32.mrf.mxu1  ;;  %v13814_v23 = vld [vmem:[#allocation61_spill] sm:$0xff]  ;;  %v13820_v15 = vld [vmem:[#allocation59_spill] sm:$0xff] }
 0xb05   : > { %v6852_v16 = vpack.c.bf16 %v13137_v35, %v13117_v8  ;;  %v6855_v43 = vpack.c.bf16 %v6787_v44, %v13218_v33  ;;  %v8025_v34 = vadd.f32 %v13026_v1, %v13002_v31  ;;  %v6857_v32 = vpack.c.bf16 %v6789_v30, %v13222_v62  ;;  %v13812_v35 = vld [vmem:[#allocation45_spill] sm:$0xff]  ;;  %v13813_v33 = vld [vmem:[#allocation43_spill] sm:$0xff]  ;;  %v13816_v62 = vld [vmem:[#allocation70_spill] sm:$0xff] }
 0xb06   : > { %v8137_v42 = vadd.f32 %v13028_v17, %v13004_v63  ;;  %v8028_v2 = vadd.f32 %v13809_v50, %v13051_v38  ;;  %v8031_v12 = vadd.f32 %v13811_v18, %v13810_v40  ;;  %v8140_v47 = vadd.f32 %v13813_v33, %v13812_v35  ;;  %v13815_v31 = vld [vmem:[#allocation69_spill] sm:$0xff]  ;;  %v13818_v38 = vld [vmem:[#allocation71_spill] sm:$0xff]  ;;  %v13821_v25 = vld [vmem:[#allocation62_spill] sm:$0xff] }
 0xb07   : > { %v7160_v8 = vadd.f32 %v8025_v34, %v13266_v28  ;;  %v8143_v1 = vadd.f32 %v13815_v31, %v13814_v23  ;;  %v8034_v29 = vadd.f32 %v13817_v46, %v13816_v62  ;;  %v13819_v52 = vld [vmem:[#allocation73_spill] sm:$0xff]  ;;  %v8037_v0 = vadd.f32 %v13821_v25, %v13820_v15  ;;  %v13822_v53 = vld [vmem:[#allocation68_spill] sm:$0xff]  ;;  %v13823_v44 = vld [vmem:[#allocation67_spill] sm:$0xff] }
 0xb08   : > { %v7163_v63 = vadd.f32 %v8028_v2, %v13266_v28  ;;  %v7168_v17 = vadd.f32 %v8031_v12, %v13266_v28  ;;  %v8146_v61 = vadd.f32 %v13819_v52, %v13818_v38  ;;  %v8149_v37 = vadd.f32 %v13823_v44, %v13822_v53  ;;  %v13824_v40 = vld [vmem:[#allocation49_spill] sm:$0xff]  ;;  %v13827_v23 = vld [vmem:[#allocation19_spill] sm:$0xff] }
 0xb09   : > { %v7321_v13 = vadd.f32 %v8137_v42, %v7160_v8  ;;  %v7171_v45 = vadd.f32 %v8034_v29, %v13266_v28  ;;  %v8040_v10 = vadd.f32 %v13198_v59, %v13189_v54  ;;  %v7176_v26 = vadd.f32 %v8037_v0, %v13266_v28  ;;  %v13825_v54 = vld [vmem:[#allocation50_spill] sm:$0xff] }
 0xb0a   : > { %7262 = vmatmul.mubr.bf16.gmra.mxu1 %v6850_v3  ;;  %v7324_v30 = vadd.f32 %v8140_v47, %v7163_v63  ;;  %v7329_v55 = vadd.f32 %v8143_v1, %v7168_v17  ;;  %v8152_v34 = vadd.f32 %v13200_v21, %v13191_v24  ;;  %v6797_v42 = vmul.f32 0.16666667, %v6669_v27  ;;  %v13826_v3 = vld [vmem:[#allocation48_spill] sm:$0xff]  ;;  %v13830_v17 = vld [vmem:[#allocation51_spill] sm:$0xff] }
 0xb0b   : > { %7423 = vmatmul.mubr.bf16.gmra.mxu0 %v6852_v16  ;;  %7269 = vmatprep.mubr.bf16.mxu1 %v6855_v43  ;;  %v7447_v18 = vadd.f32 %v7321_v13, %v13824_v40  ;;  %v7332_v12 = vadd.f32 %v8146_v61, %v7171_v45  ;;  %v7179_v8 = vadd.f32 %v8040_v10, %v13266_v28  ;;  %v13828_v16 = vld [vmem:[#allocation27_spill] sm:$0xff] }
 0xb0c   : > { %7430 = vmatprep.mubr.bf16.mxu0 %v6857_v32  ;;  %v7448_v59 = vadd.f32 %v7324_v30, %v13825_v54  ;;  %v7449_v35 = vadd.f32 %v7329_v55, %v13826_v3  ;;  %v7337_v33 = vadd.f32 %v8149_v37, %v7176_v26  ;;  %v8043_v24 = vadd.f32 %v13227_v20, %v13212_v36  ;;  %v13829_v36 = vld [vmem:[#allocation30_spill] sm:$0xff] }
 0xb0d   : > { %v8047_v50 = vpop.f32.mrf.mxu1  ;;  %v6854_v27 = vpack.c.bf16 %v13235_v60, %v13827_v23  ;;  %7479 = vst [vmem:[%s13311_s29] sm:$0xff] %v7447_v18  ;;  %v7450_v43 = vadd.f32 %v7332_v12, %v13828_v16  ;;  %v7340_v32 = vadd.f32 %v8152_v34, %v7179_v8  ;;  %v8046_v31 = vadd.f32 %v8045_v19, %v8044_v14  ;;  %v13835_v12 = vld [vmem:[#allocation26_spill] sm:$0xff] }
 0xb0e   : > { %v8159_v2 = vpop.f32.mrf.mxu0  ;;  %7480 = vst [vmem:[%s13311_s29 + $0x8] sm:$0xff] %v7448_v59  ;;  %7481 = vst [vmem:[%s13311_s29 + $0x10] sm:$0xff] %v7449_v35  ;;  %v7451_v20 = vadd.f32 %v7337_v33, %v13829_v36  ;;  %v7184_v1 = vadd.f32 %v8043_v24, %v13266_v28  ;;  %v8155_v60 = vadd.f32 %v13229_v7, %v13214_v4 }
 0xb0f   : > { %v8048_v21 = vpop.f32.mrf.mxu1  ;;  %v6859_v63 = vpack.c.bf16 %v13259_v9, %v13251_v5  ;;  %7482 = vst [vmem:[%s13311_s29 + $0x18] sm:$0xff] %v7450_v43  ;;  %v7452_v38 = vadd.f32 %v7340_v32, %v13830_v17  ;;  %v7187_v14 = vadd.f32 %v8046_v31, %v13266_v28  ;;  %v8158_v19 = vadd.f32 %v8157_v56, %v13245_v39  ;;  %v13831_v5 = vld [vmem:[#allocation20_spill] sm:$0xff]  ;;  %v13832_v56 = vld [vmem:[#allocation54_spill] sm:$0xff]  ;;  %v13837_v32 = vld [vmem:[#allocation29_spill] sm:$0xff] }
 0xb10   : > { %v8160_v47 = vpop.f32.mrf.mxu0  ;;  %v8049_v62 = vadd.f32 %v8048_v21, %v8047_v50  ;;  %v6861_v52 = vpack.c.bf16 %v6797_v42, %v13255_v6  ;;  %7483 = vst [vmem:[%s13311_s29 + $0x20] sm:$0xff] %v7451_v20  ;;  %v7345_v61 = vadd.f32 %v8155_v60, %v7184_v1  ;;  %v6668_v0 = vmul.f32 %v13253_v11, %v13202_v48 }
 0xb11   : > { %v8050_v46 = vpop.f32.mrf.mxu1  ;;  %v8161_v7 = vadd.f32 %v8160_v47, %v8159_v2  ;;  %v6856_v9 = vpack.c.bf16 %v13239_v58, %v13831_v5  ;;  %7484 = vst [vmem:[%s13311_s29 + $0x28] sm:$0xff] %v7452_v38  ;;  %v7348_v13 = vadd.f32 %v8158_v19, %v7187_v14  ;;  %v6662_v39 = vmul.f32 %v13247_v51, %v13193_v41  ;;  %v13833_v58 = vld [vmem:[#allocation53_spill] sm:$0xff]  ;;  %v13836_v47 = vld [vmem:[#allocation52_spill] sm:$0xff] }
 0xb12   : > { %v8162_v29 = vpop.f32.mrf.mxu0  ;;  %v7192_v4 = vadd.f32 %v8049_v62, %v13266_v28  ;;  %v6664_v6 = vmul.f32 %v13249_v22, %v13196_v57  ;;  %7270 = vmatmul.mubr.bf16.gmra.mxu1 %v6854_v27  ;;  %v7453_v53 = vadd.f32 %v7345_v61, %v13832_v56  ;;  %v6794_v41 = vmul.f32 0.16666667, %v13257_v49  ;;  %v13834_v57 = vld [vmem:[#allocation28_spill] sm:$0xff]  ;;  %v13838_v61 = vld [vmem:[#allocation55_spill] sm:$0xff] }
 0xb13   : > { %v8051_v15 = vpop.f32.mrf.mxu1  ;;  %7431 = vmatmul.mubr.bf16.gmra.mxu0 %v6856_v9  ;;  %7277 = vmatprep.mubr.bf16.mxu1 %v6859_v63  ;;  %v7454_v11 = vadd.f32 %v7348_v13, %v13833_v58  ;;  %v6796_v26 = vmul.f32 0.16666667, %v6668_v0  ;;  %v6790_v2 = vmul.f32 0.16666667, %v6662_v39  ;;  %v13839_v0 = vld [vmem:[#allocation24_spill] sm:$0xff] }
 0xb14   : > { %v8163_v25 = vpop.f32.mrf.mxu0  ;;  %v8052_v45 = vadd.f32 %v8051_v15, %v8050_v46  ;;  %v7353_v44 = vadd.f32 %v8161_v7, %v7192_v4  ;;  %7438 = vmatprep.mubr.bf16.mxu0 %v6861_v52  ;;  %7485 = vst [vmem:[%s13311_s29 + $0x30] sm:$0xff] %v7453_v53  ;;  %v6792_v18 = vmul.f32 0.16666667, %v6664_v6 }
 0xb15   : > { %v8053_v37 = vpop.f32.mrf.mxu1  ;;  %v8164_v30 = vadd.f32 %v8163_v25, %v8162_v29  ;;  %7486 = vst [vmem:[%s13311_s29 + $0x38] sm:$0xff] %v7454_v11  ;;  %v6858_v59 = vpack.c.bf16 %v6794_v41, %v6790_v2  ;;  %v13840_v41 = vld [vmem:[#allocation22_spill] sm:$0xff] }
 0xb16   : > { %v8165_v48 = vpop.f32.mrf.mxu0  ;;  %v7195_v10 = vadd.f32 %v8052_v45, %v13266_v28  ;;  %v7455_v51 = vadd.f32 %v7353_v44, %v13834_v57  ;;  %v6860_v33 = vpack.c.bf16 %v6796_v26, %v6792_v18 }
 0xb17   : > { %v8054_v22 = vpop.f32.mrf.mxu1 }
 0xb18   : > { %v8166_v55 = vpop.f32.mrf.mxu0  ;;  %v7356_v34 = vadd.f32 %v8164_v30, %v7195_v10  ;;  %v8055_v50 = vadd.f32 %v8054_v22, %v8053_v37  ;;  %7487 = vst [vmem:[%s13311_s29 + $0x40] sm:$0xff] %v7455_v51 }
 0xb19   : > { %v8056_v42 = vpop.f32.mrf.mxu1  ;;  %v8167_v54 = vadd.f32 %v8166_v55, %v8165_v48 }
 0xb1a   : > { %v8168_v40 = vpop.f32.mrf.mxu0  ;;  %v7456_v8 = vadd.f32 %v7356_v34, %v13835_v12  ;;  %v7200_v49 = vadd.f32 %v8055_v50, %v13266_v28  ;;  %7278 = vmatmul.mubr.bf16.gmra.mxu1 %v6858_v59 }
 0xb1b   : > { %v8057_v3 = vpop.f32.mrf.mxu1  ;;  %7439 = vmatmul.mubr.bf16.gmra.mxu0 %v6860_v33 }
 0xb1c   : > { %v8169_v35 = vpop.f32.mrf.mxu0  ;;  %7488 = vst [vmem:[%s13311_s29 + $0x48] sm:$0xff] %v7456_v8  ;;  %v7361_v24 = vadd.f32 %v8167_v54, %v7200_v49  ;;  %v8058_v21 = vadd.f32 %v8057_v3, %v8056_v42 }
 0xb1d   : > { %v8170_v16 = vadd.f32 %v8169_v35, %v8168_v40  ;;  %v13841_v40 = vld [vmem:[#allocation25_spill] sm:$0xff] }
 0xb1e   : > { %v7457_v23 = vadd.f32 %v7361_v24, %v13836_v47  ;;  %v7203_v27 = vadd.f32 %v8058_v21, %v13266_v28  ;;  %v13842_v24 = vld [vmem:[#allocation33_spill] sm:$0xff] }
 0xb20   : > { %7489 = vst [vmem:[%s13311_s29 + $0x50] sm:$0xff] %v7457_v23  ;;  %v7364_v43 = vadd.f32 %v8170_v16, %v7203_v27 }
 0xb22   : > { %v7458_v31 = vadd.f32 %v7364_v43, %v13837_v32 }
 0xb24   : > { %7490 = vst [vmem:[%s13311_s29 + $0x58] sm:$0xff] %v7458_v31 }
 0xb2a   : > { %v8059_v36 = vpop.f32.mrf.mxu1  ;;  %v8171_v20 = vpop.f32.mrf.mxu0 }
 0xb2c   : > { %v8060_v1 = vpop.f32.mrf.mxu1  ;;  %v8172_v60 = vpop.f32.mrf.mxu0 }
 0xb2d   : > { %v8061_v62 = vadd.f32 %v8060_v1, %v8059_v36  ;;  %v8173_v17 = vadd.f32 %v8172_v60, %v8171_v20  ;;  %v13843_v20 = vld [vmem:[#allocation34_spill] sm:$0xff] }
 0xb2e   : > { %v8062_v46 = vpop.f32.mrf.mxu1  ;;  %v8174_v29 = vpop.f32.mrf.mxu0 }
 0xb2f   : > { %v7208_v63 = vadd.f32 %v8061_v62, %v13266_v28 }
 0xb30   : > { %v8063_v38 = vpop.f32.mrf.mxu1  ;;  %v8175_v14 = vpop.f32.mrf.mxu0 }
 0xb31   : > { %v7369_v19 = vadd.f32 %v8173_v17, %v7208_v63  ;;  %v8064_v52 = vadd.f32 %v8063_v38, %v8062_v46  ;;  %v8176_v15 = vadd.f32 %v8175_v14, %v8174_v29  ;;  %v13844_v14 = vld [vmem:[#allocation56_spill] sm:$0xff] }
 0xb33   : > { %v7459_v4 = vadd.f32 %v7369_v19, %v13838_v61  ;;  %v7211_v7 = vadd.f32 %v8064_v52, %v13266_v28 }
 0xb35   : > { %7491 = vst [vmem:[%s13311_s29 + $0x60] sm:$0xff] %v7459_v4  ;;  %v7372_v25 = vadd.f32 %v8176_v15, %v7211_v7  ;;  %v13845_v7 = vld [vmem:[#allocation57_spill] sm:$0xff] }
 0xb37   : > { %v7460_v5 = vadd.f32 %v7372_v25, %v13839_v0 }
 0xb39   : > { %7492 = vst [vmem:[%s13311_s29 + $0x68] sm:$0xff] %v7460_v5 }
 0xb3a   : > { %v8065_v9 = vpop.f32.mrf.mxu1 }
 0xb3b   : > { %v8177_v13 = vpop.f32.mrf.mxu0 }
 0xb3c   : > { %v8066_v45 = vpop.f32.mrf.mxu1 }
 0xb3d   : > { %v8067_v39 = vadd.f32 %v8066_v45, %v8065_v9  ;;  %v8178_v6 = vpop.f32.mrf.mxu0 }
 0xb3e   : > { %v8068_v56 = vpop.f32.mrf.mxu1  ;;  %v8179_v44 = vadd.f32 %v8178_v6, %v8177_v13 }
 0xb3f   : > { %v7216_v53 = vadd.f32 %v8067_v39, %v13266_v28  ;;  %v8180_v37 = vpop.f32.mrf.mxu0 }
 0xb40   : > { %v8069_v48 = vpop.f32.mrf.mxu1 }
 0xb41   : > { %v7377_v58 = vadd.f32 %v8179_v44, %v7216_v53  ;;  %v8070_v11 = vadd.f32 %v8069_v48, %v8068_v56  ;;  %v8181_v10 = vpop.f32.mrf.mxu0 }
 0xb42   : > { %v8071_v30 = vpop.f32.mrf.mxu1  ;;  %v8182_v22 = vadd.f32 %v8181_v10, %v8180_v37 }
 0xb43   : > { %v7461_v57 = vadd.f32 %v7377_v58, %v13840_v41  ;;  %v7219_v51 = vadd.f32 %v8070_v11, %v13266_v28  ;;  %v8183_v55 = vpop.f32.mrf.mxu0  ;;  %v13846_v58 = vld [vmem:[#allocation32_spill] sm:$0xff] }
 0xb44   : > { %v8072_v26 = vpop.f32.mrf.mxu1 }
 0xb45   : > { %7493 = vst [vmem:[%s13311_s29 + $0x70] sm:$0xff] %v7461_v57  ;;  %v7380_v34 = vadd.f32 %v8182_v22, %v7219_v51  ;;  %v8073_v50 = vadd.f32 %v8072_v26, %v8071_v30  ;;  %v8184_v2 = vpop.f32.mrf.mxu0  ;;  %v13847_v57 = vld [vmem:[#allocation58_spill] sm:$0xff] }
 0xb46   : > { %v8074_v42 = vpop.f32.mrf.mxu1  ;;  %v8185_v8 = vadd.f32 %v8184_v2, %v8183_v55 }
 0xb47   : > { %v7462_v18 = vadd.f32 %v7380_v34, %v13841_v40  ;;  %v7224_v12 = vadd.f32 %v8073_v50, %v13266_v28  ;;  %v8186_v49 = vpop.f32.mrf.mxu0 }
 0xb48   : > { %v8075_v54 = vpop.f32.mrf.mxu1 }
 0xb49   : > { %7494 = vst [vmem:[%s13311_s29 + $0x78] sm:$0xff] %v7462_v18  ;;  %v7385_v59 = vadd.f32 %v8185_v8, %v7224_v12  ;;  %v8076_v3 = vadd.f32 %v8075_v54, %v8074_v42  ;;  %v8187_v35 = vpop.f32.mrf.mxu0 }
 0xb4a   : > { %v8077_v33 = vpop.f32.mrf.mxu1  ;;  %v8188_v23 = vadd.f32 %v8187_v35, %v8186_v49 }
 0xb4b   : > { %v7463_v21 = vadd.f32 %v7385_v59, %v13842_v24  ;;  %v7227_v47 = vadd.f32 %v8076_v3, %v13266_v28  ;;  %v8189_v27 = vpop.f32.mrf.mxu0  ;;  %v13848_v59 = vld [vmem:[#allocation38_spill] sm:$0xff] }
 0xb4c   : > { %v8078_v16 = vpop.f32.mrf.mxu1 }
 0xb4d   : > { %7495 = vst [vmem:[%s13311_s29 + $0x80] sm:$0xff] %v7463_v21  ;;  %v7388_v43 = vadd.f32 %v8188_v23, %v7227_v47  ;;  %v8079_v32 = vadd.f32 %v8078_v16, %v8077_v33  ;;  %v8190_v31 = vpop.f32.mrf.mxu0  ;;  %v13849_v21 = vld [vmem:[#allocation37_spill] sm:$0xff] }
 0xb4e   : > { %v8080_v36 = vpop.f32.mrf.mxu1  ;;  %v8191_v62 = vadd.f32 %v8190_v31, %v8189_v27 }
 0xb4f   : > { %v7464_v1 = vadd.f32 %v7388_v43, %v13843_v20  ;;  %v7232_v60 = vadd.f32 %v8079_v32, %v13266_v28  ;;  %v8192_v46 = vpop.f32.mrf.mxu0 }
 0xb50   : > { %v8081_v29 = vpop.f32.mrf.mxu1 }
 0xb51   : > { %7496 = vst [vmem:[%s13311_s29 + $0x88] sm:$0xff] %v7464_v1  ;;  %v7393_v63 = vadd.f32 %v8191_v62, %v7232_v60  ;;  %v8082_v17 = vadd.f32 %v8081_v29, %v8080_v36  ;;  %v8193_v38 = vpop.f32.mrf.mxu0 }
 0xb52   : > { %v8194_v61 = vadd.f32 %v8193_v38, %v8192_v46 }
 0xb53   : > { %v7465_v19 = vadd.f32 %v7393_v63, %v13844_v14  ;;  %v7235_v52 = vadd.f32 %v8082_v17, %v13266_v28  ;;  %v13850_v17 = vld [vmem:[#allocation35_spill] sm:$0xff] }
 0xb55   : > { %7497 = vst [vmem:[%s13311_s29 + $0x90] sm:$0xff] %v7465_v19  ;;  %v7396_v4 = vadd.f32 %v8194_v61, %v7235_v52 }
 0xb57   : > { %v7466_v15 = vadd.f32 %v7396_v4, %v13845_v7 }
 0xb59   : > { %7498 = vst [vmem:[%s13311_s29 + $0x98] sm:$0xff] %v7466_v15 }
 0xb94   : > { %v8083_v25 = vpop.f32.mrf.mxu1 }
 0xb95   : > { %v8195_v0 = vpop.f32.mrf.mxu0 }
 0xb96   : > { %v8084_v5 = vpop.f32.mrf.mxu1 }
 0xb97   : > { %v8085_v9 = vadd.f32 %v8084_v5, %v8083_v25  ;;  %v8196_v13 = vpop.f32.mrf.mxu0 }
 0xb98   : > { %v8086_v45 = vpop.f32.mrf.mxu1  ;;  %v8197_v6 = vadd.f32 %v8196_v13, %v8195_v0  ;;  %v13851_v0 = vld [vmem:[#allocation40_spill] sm:$0xff] }
 0xb99   : > { %v7240_v39 = vadd.f32 %v8085_v9, %v13266_v28  ;;  %v8198_v56 = vpop.f32.mrf.mxu0 }
 0xb9a   : > { %v8087_v53 = vpop.f32.mrf.mxu1 }
 0xb9b   : > { %v7401_v44 = vadd.f32 %v8197_v6, %v7240_v39  ;;  %v8088_v37 = vadd.f32 %v8087_v53, %v8086_v45  ;;  %v8199_v48 = vpop.f32.mrf.mxu0 }
 0xb9c   : > { %v8200_v30 = vadd.f32 %v8199_v48, %v8198_v56 }
 0xb9d   : > { %v7467_v11 = vadd.f32 %v7401_v44, %v13846_v58  ;;  %v7243_v10 = vadd.f32 %v8088_v37, %v13266_v28  ;;  %v13852_v37 = vld [vmem:[#allocation36_spill] sm:$0xff] }
 0xb9f   : > { %7499 = vst [vmem:[%s13311_s29 + $0xa0] sm:$0xff] %v7467_v11  ;;  %v7404_v41 = vadd.f32 %v8200_v30, %v7243_v10 }
 0xba1   : > { %v7468_v51 = vadd.f32 %v7404_v41, %v13847_v57 }
 0xba3   : > { %7500 = vst [vmem:[%s13311_s29 + $0xa8] sm:$0xff] %v7468_v51 }
 0xbac   : > { %v8089_v22 = vpop.f32.mrf.mxu1 }
 0xbad   : > { %v8201_v55 = vpop.f32.mrf.mxu0 }
 0xbae   : > { %v8090_v26 = vpop.f32.mrf.mxu1 }
 0xbaf   : > { %v8091_v34 = vadd.f32 %v8090_v26, %v8089_v22  ;;  %v8202_v50 = vpop.f32.mrf.mxu0 }
 0xbb0   : > { %v8092_v2 = vpop.f32.mrf.mxu1  ;;  %v8203_v40 = vadd.f32 %v8202_v50, %v8201_v55  ;;  %v13853_v55 = vld [vmem:[#allocation41_spill] sm:$0xff] }
 0xbb1   : > { %v7248_v42 = vadd.f32 %v8091_v34, %v13266_v28  ;;  %v8204_v18 = vpop.f32.mrf.mxu0 }
 0xbb2   : > { %v8093_v12 = vpop.f32.mrf.mxu1 }
 0xbb3   : > { %v7409_v8 = vadd.f32 %v8203_v40, %v7248_v42  ;;  %v8094_v49 = vadd.f32 %v8093_v12, %v8092_v2  ;;  %v8205_v54 = vpop.f32.mrf.mxu0 }
 0xbb4   : > { %v8206_v33 = vadd.f32 %v8205_v54, %v8204_v18 }
 0xbb5   : > { %v7469_v3 = vadd.f32 %v7409_v8, %v13848_v59  ;;  %v7251_v35 = vadd.f32 %v8094_v49, %v13266_v28  ;;  %v13854_v49 = vld [vmem:[#allocation23_spill] sm:$0xff] }
 0xbb7   : > { %7501 = vst [vmem:[%s13311_s29 + $0xb0] sm:$0xff] %v7469_v3  ;;  %v7412_v24 = vadd.f32 %v8206_v33, %v7251_v35 }
 0xbb9   : > { %v7470_v47 = vadd.f32 %v7412_v24, %v13849_v21 }
 0xbbb   : > { %7502 = vst [vmem:[%s13311_s29 + $0xb8] sm:$0xff] %v7470_v47 }
 0xbc2   : > { %v8095_v23 = vpop.f32.mrf.mxu1 }
 0xbc3   : > { %v8207_v27 = vpop.f32.mrf.mxu0 }
 0xbc4   : > { %v8096_v16 = vpop.f32.mrf.mxu1 }
 0xbc5   : > { %v8097_v43 = vadd.f32 %v8096_v16, %v8095_v23  ;;  %v8208_v32 = vpop.f32.mrf.mxu0 }
 0xbc6   : > { %v8098_v31 = vpop.f32.mrf.mxu1  ;;  %v8209_v20 = vadd.f32 %v8208_v32, %v8207_v27  ;;  %v13855_v27 = vld [vmem:[#allocation21_spill] sm:$0xff] }
 0xbc7   : > { %v7256_v36 = vadd.f32 %v8097_v43, %v13266_v28  ;;  %v8210_v1 = vpop.f32.mrf.mxu0 }
 0xbc8   : > { %v8099_v60 = vpop.f32.mrf.mxu1 }
 0xbc9   : > { %v7417_v62 = vadd.f32 %v8209_v20, %v7256_v36  ;;  %v8100_v46 = vadd.f32 %v8099_v60, %v8098_v31  ;;  %v8211_v29 = vpop.f32.mrf.mxu0 }
 0xbca   : > { %v8101_v63 = vpop.f32.mrf.mxu1  ;;  %v8212_v19 = vadd.f32 %v8211_v29, %v8210_v1 }
 0xbcb   : > { %v7471_v38 = vadd.f32 %v7417_v62, %v13850_v17  ;;  %v7259_v14 = vadd.f32 %v8100_v46, %v13266_v28  ;;  %v8213_v52 = vpop.f32.mrf.mxu0  ;;  %v13856_v62 = vld [vmem:[#allocation63_spill] sm:$0xff] }
 0xbcc   : > { %v8102_v61 = vpop.f32.mrf.mxu1 }
 0xbcd   : > { %7503 = vst [vmem:[%s13311_s29 + $0xc0] sm:$0xff] %v7471_v38  ;;  %v7420_v4 = vadd.f32 %v8212_v19, %v7259_v14  ;;  %v8103_v7 = vadd.f32 %v8102_v61, %v8101_v63  ;;  %v8214_v15 = vpop.f32.mrf.mxu0  ;;  %v13857_v38 = vld [vmem:[#allocation39_spill] sm:$0xff] }
 0xbce   : > { %v8104_v25 = vpop.f32.mrf.mxu1  ;;  %v8215_v13 = vadd.f32 %v8214_v15, %v8213_v52 }
 0xbcf   : > { %v7472_v5 = vadd.f32 %v7420_v4, %v13851_v0  ;;  %v7264_v9 = vadd.f32 %v8103_v7, %v13266_v28  ;;  %v8216_v45 = vpop.f32.mrf.mxu0 }
 0xbd0   : > { %v8105_v39 = vpop.f32.mrf.mxu1 }
 0xbd1   : > { %7504 = vst [vmem:[%s13311_s29 + $0xc8] sm:$0xff] %v7472_v5  ;;  %v7425_v6 = vadd.f32 %v8215_v13, %v7264_v9  ;;  %v8106_v56 = vadd.f32 %v8105_v39, %v8104_v25  ;;  %v8217_v53 = vpop.f32.mrf.mxu0 }
 0xbd2   : > { %v8107_v44 = vpop.f32.mrf.mxu1  ;;  %v8218_v11 = vadd.f32 %v8217_v53, %v8216_v45 }
 0xbd3   : > { %v7473_v48 = vadd.f32 %v7425_v6, %v13852_v37  ;;  %v7267_v58 = vadd.f32 %v8106_v56, %v13266_v28  ;;  %v8219_v10 = vpop.f32.mrf.mxu0 }
 0xbd4   : > { %v8108_v30 = vpop.f32.mrf.mxu1 }
 0xbd5   : > { %7505 = vst [vmem:[%s13311_s29 + $0xd0] sm:$0xff] %v7473_v48  ;;  %v7428_v41 = vadd.f32 %v8218_v11, %v7267_v58  ;;  %v8109_v57 = vadd.f32 %v8108_v30, %v8107_v44  ;;  %v8220_v51 = vpop.f32.mrf.mxu0 }
 0xbd6   : > { %v8110_v22 = vpop.f32.mrf.mxu1  ;;  %v8221_v50 = vadd.f32 %v8220_v51, %v8219_v10 }
 0xbd7   : > { %v7474_v26 = vadd.f32 %v7428_v41, %v13853_v55  ;;  %v7272_v34 = vadd.f32 %v8109_v57, %v13266_v28  ;;  %v8222_v2 = vpop.f32.mrf.mxu0 }
 0xbd8   : > { %v8111_v42 = vpop.f32.mrf.mxu1 }
 0xbd9   : > { %7506 = vst [vmem:[%s13311_s29 + $0xd8] sm:$0xff] %v7474_v26  ;;  %v7433_v40 = vadd.f32 %v8221_v50, %v7272_v34  ;;  %v8112_v18 = vadd.f32 %v8111_v42, %v8110_v22  ;;  %v8223_v12 = vpop.f32.mrf.mxu0 }
 0xbda   : > { %v8113_v8 = vpop.f32.mrf.mxu1  ;;  %v8224_v3 = vadd.f32 %v8223_v12, %v8222_v2 }
 0xbdb   : > { %v7475_v54 = vadd.f32 %v7433_v40, %v13854_v49  ;;  %v7275_v59 = vadd.f32 %v8112_v18, %v13266_v28  ;;  %v8225_v35 = vpop.f32.mrf.mxu0 }
 0xbdc   : > { %v8114_v33 = vpop.f32.mrf.mxu1 }
 0xbdd   : > { %7507 = vst [vmem:[%s13311_s29 + $0xe0] sm:$0xff] %v7475_v54  ;;  %v7436_v24 = vadd.f32 %v8224_v3, %v7275_v59  ;;  %v8115_v21 = vadd.f32 %v8114_v33, %v8113_v8  ;;  %v8226_v47 = vpop.f32.mrf.mxu0 }
 0xbde   : > { %v8116_v23 = vpop.f32.mrf.mxu1  ;;  %v8227_v32 = vadd.f32 %v8226_v47, %v8225_v35 }
 0xbdf   : > { %v7476_v16 = vadd.f32 %v7436_v24, %v13855_v27  ;;  %v7280_v43 = vadd.f32 %v8115_v21, %v13266_v28  ;;  %v8228_v31 = vpop.f32.mrf.mxu0 }
 0xbe0   : > { %v8117_v36 = vpop.f32.mrf.mxu1 }
 0xbe1   : > { %7508 = vst [vmem:[%s13311_s29 + $0xe8] sm:$0xff] %v7476_v16  ;;  %v7441_v20 = vadd.f32 %v8227_v32, %v7280_v43  ;;  %v8118_v1 = vadd.f32 %v8117_v36, %v8116_v23  ;;  %v8229_v60 = vpop.f32.mrf.mxu0 }
 0xbe2   : > { %v8230_v63 = vadd.f32 %v8229_v60, %v8228_v31 }
 0xbe3   : > { %v7477_v46 = vadd.f32 %v7441_v20, %v13856_v62  ;;  %v7283_v29 = vadd.f32 %v8118_v1, %v13266_v28 }
 0xbe5   : > { %7509 = vst [vmem:[%s13311_s29 + $0xf0] sm:$0xff] %v7477_v46  ;;  %v7444_v17 = vadd.f32 %v8230_v63, %v7283_v29 }
 0xbe7   : > { %v7478_v14 = vadd.f32 %v7444_v17, %v13857_v38 }
 0xbe9   : > { %7510 = vst [vmem:[%s13311_s29 + $0xf8] sm:$0xff] %v7478_v14 }
 0xbea   : > { %9731 = shalt.err (!%p9728_p2)
}
 0xbeb   : > { %s9732_s15 = scalar_lea.hbm %s13418_s13, 4096  ;;  %s9736_s27 = scalar_lea.hbm %s13477_s12, 8192 }
 0xbec   : > { %p9733_p3 = scmp.ne.s32.totalorder %s13418_s13, %s9732_s15  ;;  %p9737_p0 = scmp.lt.s32.totalorder %s13418_s13, %s13477_s12 }
 0xbed   : > { %p9738_p11 = scmp.lt.s32.totalorder %s9736_s27, %s9732_s15 }
 0xbee   : > { %p9734_p4 = pnand %p9733_p3, %p13858_p7 }
 0xbef   : > { %p9739_p6 = por %p9738_p11, %p9737_p0 }
 0xbf0   : > { %p9735_p8 = pneg %p9734_p4 }
 0xbf2   : > { %p9740_p12 = pnand %p9739_p6, %p9735_p8 }
 0xbf4   : > { %9743 = shalt.err (!%p9740_p12)
}
 0xbf5   : > { %s9808_s14 = smov 128   ;;  %s9809_s19 = smov 8  }
 0xbf6   : > { %8649 = dma.vmem_to_hbm [thread:$0]  (%p13858_p7), %s13420_s17, 4096, %s13418_s13, %s7512_s16, %s9808_s14, %s9808_s14, %s9809_s19  }
 0xbf7 PF: > { %s13859_s20 = sld [smem:[#allocation16_spill]]  ;;  %p13862_p13 = scmp.ge.s32.totalorder %s9790_s24, 2 }
 0xbf8   : > { %s13860_s25 = sld [smem:[#allocation17_spill]] }
 0xbfd   : > { %s7541_s4 = sand.u32 1, %s13859_s20  }
 0xbfe   : > { %p13861_p9 = scmp.ne.s32.totalorder %s13860_s25, 0  ;;  %s7542_s26 = scalar_lea.sflag [#allocation4], %s7541_s4 }
 0xc00   : > { %p8669_p5 = pnand %p13862_p13, %p13861_p9 }
 0xc02   : > { %p8670_p10 = pneg %p8669_p5 }
 0xc04   : > { %9773 = dma.done.wait (%p8670_p10), %s7542_s26, 4096  }
 0xc05   : > { %9775 = vsyncadd (%p8670_p10), %s7542_s26, 4294963200  ;;  %p27_p1 = scmp.ge.s32.totalorder %s9963_s18, 4   ;;  %s13863_s21 = smov %s9782_s22 }
 0xc06   : > { %s13864_s22 = smov %s9786_s23  ;;  %s13865_s23 = smov %s9979_s28 }
 0xc07   : > { %s13866_s24 = smov %s9963_s18  ;;  %29 = sbr.rel (!%p27_p1) target bundleno = 12 (0xc), region = 129 }
 0xc0c   :  { %7547 = vsyncpa [#allocation3], 1 }
 0xc0d   :  { %7549 = vsyncpa [#allocation3 + $0x1], 1 }
 0xc0e   :  { %7550 = vsyncpa [#allocation6], 1 }
 0xc0f   :  { %7551 = vsyncpa [#allocation9], 1 }
 0xc10   :  { %7552 = vsyncpa [#allocation4], 1 }
 0xc11   :  { %7554 = vsyncpa [#allocation4 + $0x1], 1 }

</bundles_post_ra>
